<compile_context>
chip_gen: v7x
topology: tpu7x:2x2x1
jax: 0.10.0
libtpu: 0.0.40
codegen_flags: <defaults>
</compile_context>

<pallas_src>
import functools
import math

import numpy as np
import jax
import jax.numpy as jnp
from jax import lax
from jax.experimental import pallas as pl
from jax.experimental.pallas import tpu as pltpu

BN_EPS = 1e-5
# Set to jnp.bfloat16 to trade ~1e-2 relative accuracy for higher MXU throughput (v6e/v7x).
MATMUL_DTYPE = jnp.float32

_CONV1_K, _CONV1_C = 6, 512
# (name, Cin, Cout, K, stride, pad, Hin, Hout) for the stride-2 deconv stack.
_DECONV_LAYERS = (
    ("conv2", 512, 128, 4, 2, 1, 6, 12),
    ("conv3", 128, 64, 5, 2, 1, 12, 25),
    ("conv4", 64, 32, 4, 2, 1, 25, 50),
    ("conv5", 32, 32, 4, 2, 1, 50, 100),
)
_FINAL = ("convf", 32, 1, 4, 2, 1, 100, 200)


# -----------------------------------------------------------------------------
# The single fused kernel.
# -----------------------------------------------------------------------------
def _decoder_kernel(z_ref, wfc_ref, bfc_ref,
                    w1_ref, b1_ref, g1_ref, be1_ref,
                    w2_ref, b2_ref, g2_ref, be2_ref, s2_ref,
                    w3_ref, b3_ref, g3_ref, be3_ref, s3_ref,
                    w4_ref, b4_ref, g4_ref, be4_ref, s4_ref,
                    w5_ref, b5_ref, g5_ref, be5_ref, s5_ref,
                    wf_ref, bf_ref, vf_ref, sel_ref,
                    o_ref, x1_scratch, *, eps):
    B = z_ref.shape[0]

    def mm(a, b):
        return jnp.dot(a.astype(MATMUL_DTYPE), b.astype(MATMUL_DTYPE),
                       preferred_element_type=jnp.float32)

    def bn_relu(y, g, beta):
        # Train-mode BatchNorm2d (fresh nn.Module): batch statistics over (N, H, W) == all
        # rows here, biased variance, affine, then ReLU.  Done on register values.
        inv_n = 1.0 / y.shape[0]
        mean = jnp.sum(y, axis=0, keepdims=True) * inv_n
        diff = y - mean
        var = jnp.sum(diff * diff, axis=0, keepdims=True) * inv_n
        return jnp.maximum(diff * lax.rsqrt(var + eps) * g + beta, 0.0)

    # ---- fc1 ---------------------------------------------------------------
    a = mm(z_ref[...], wfc_ref[...]) + bfc_ref[...]                   # (B, 64)

    # ---- conv1: 1x1 spatial input -> H=6, as ONE wide matmul -----------------
    c1 = g1_ref.shape[1]                                              # 512
    k1 = w1_ref.shape[1] // c1                                        # 6
    y1 = mm(a, w1_ref[...]) + b1_ref[...]                             # (B, 6*512)
    # Relayout (B, 6*512) -> (6*B, 512), rows r = h*B + b, via a tiny VMEM scratch.
    for h in range(k1):
        x1_scratch[h * B:(h + 1) * B, :] = y1[:, h * c1:(h + 1) * c1]
    x = bn_relu(x1_scratch[...], g1_ref[...], be1_ref[...])           # (6B, 512)

    # ---- stride-2 ConvTranspose stack ----------------------------------------
    # One channel matmul per layer; then K small 0/1 scatter matmuls place tap kh at
    # output rows oh = 2*ih + kh - 1 (out-of-range contributions are dropped).
    # TODO(synk): replace the 0/1 scatter matmuls with strided scatter-adds once strided
    #             vector stores (pl.ds(..., stride=2) on the store path) are a safe lowering.
    def deconv_bn_relu(x, w_ref, b_ref, g_ref, be_ref, s_ref):
        K = s_ref.shape[0]
        cout = b_ref.shape[1]
        t = mm(x, w_ref[...])                                         # (B*Hin, K*Cout)
        acc = mm(s_ref[0], t[:, 0:cout])                              # (B*Hout, Cout)
        for kh in range(1, K):
            acc = acc + mm(s_ref[kh], t[:, kh * cout:(kh + 1) * cout])
        return bn_relu(acc + b_ref[...], g_ref[...], be_ref[...])

    x = deconv_bn_relu(x, w2_ref, b2_ref, g2_ref, be2_ref, s2_ref)    # (B*12, 128)
    x = deconv_bn_relu(x, w3_ref, b3_ref, g3_ref, be3_ref, s3_ref)    # (B*25, 64)
    x = deconv_bn_relu(x, w4_ref, b4_ref, g4_ref, be4_ref, s4_ref)    # (B*50, 32)
    x = deconv_bn_relu(x, w5_ref, b5_ref, g5_ref, be5_ref, s5_ref)    # (B*100, 32)

    # ---- conv_final (Cout = 1): emit a lane-dense (B, 200) output ------------
    # u[r, oh] = sum_kh t[r, kh] * [oh == 2*ih(r) + kh - 1];  out[b] = Sel[b] @ u + bias.
    kf = vf_ref.shape[0]
    t = mm(x, wf_ref[...])                                            # (B*100, K)
    u = t[:, 0:1] * vf_ref[0]                                         # (B*100, 200)
    for kh in range(1, kf):
        u = u + t[:, kh:kh + 1] * vf_ref[kh]
    o_ref[...] = mm(sel_ref[...], u) + bf_ref[...]                    # (B, 200)


# -----------------------------------------------------------------------------
# Host-side packing (built ONCE, outside the jitted forward).
# -----------------------------------------------------------------------------
def _stack_weight(w):
    # PyTorch ConvTranspose2d weight (Cin, Cout, K, 1) -> (Cin, K*Cout), col = kh*Cout + co.
    cin, cout, k, _ = w.shape
    return jnp.transpose(w[:, :, :, 0], (0, 2, 1)).reshape(cin, k * cout)


def _scatter_mats(B, hin, hout, K, stride, pad):
    # S[kh, oh*B + b', ih*B + b] = 1  iff  b' == b  and  oh == stride*ih + kh - pad.
    r_out = np.arange(B * hout)
    r_in = np.arange(B * hin)
    oh, bo = r_out // B, r_out % B
    ih, bi = r_in // B, r_in % B
    mats = [((bo[:, None] == bi[None, :]) &
             (oh[:, None] == ih[None, :] * stride + kh - pad)).astype(np.float32)
            for kh in range(K)]
    return jnp.asarray(np.stack(mats, axis=0))


def pack_inputs(params, B):
    packed = [jnp.transpose(params["fc1_w"]),                         # (128, 64)
              params["fc1_b"][None, :]]                               # (1, 64)

    packed += [_stack_weight(params["conv1_w"]),                      # (64, 6*512)
               jnp.tile(params["conv1_b"], _CONV1_K)[None, :],        # (1, 6*512)
               params["bn1_g"][None, :],
               params["bn1_b"][None, :]]

    for i, (name, _cin, _cout, k, s, p, hin, hout) in enumerate(_DECONV_LAYERS, start=2):
        packed += [_stack_weight(params[name + "_w"]),
                   params[name + "_b"][None, :],
                   params[f"bn{i}_g"][None, :],
                   params[f"bn{i}_b"][None, :],
                   _scatter_mats(B, hin, hout, k, s, p)]

    # conv_final: weight (32,1,4,1) -> (32,4); bias (1,1); per-tap placement masks V and a
    # batch-selector Sel so the kernel can emit a lane-dense (B, 200) output.
    name, _cin, _cout, kf, s, p, hin, hout = _FINAL
    packed += [_stack_weight(params[name + "_w"]),
               params[name + "_b"].reshape(1, 1)]
    ih = np.arange(B * hin) // B
    v = np.stack([(np.arange(hout)[None, :] == ih[:, None] * s + kh - p).astype(np.float32)
                  for kh in range(kf)], axis=0)                        # (K, B*Hin, Hout)
    sel = (np.arange(B)[:, None] == (np.arange(B * hin) % B)[None, :]).astype(np.float32)
    packed += [jnp.asarray(v), jnp.asarray(sel)]
    return tuple(packed)


# -----------------------------------------------------------------------------
# Forward wrapper (single pallas_call, whole model in VMEM).
# -----------------------------------------------------------------------------
def convdecoder_forward(z, packed):
    B = z.shape[0]
    hout = _FINAL[7]                                                   # 200
    kern = functools.partial(_decoder_kernel, eps=BN_EPS)
    # NOTE: grid=() (single invocation).  At B=2 the work is too small for megacore; on
    # v7x a scale-out path would add a 'parallel' row-block grid axis plus a cross-core
    # reduction for the train-mode BatchNorm statistics.
    out2d = pl.pallas_call(
        kern,
        out_shape=jax.ShapeDtypeStruct((B, hout), jnp.float32),
        in_specs=[pl.BlockSpec(memory_space=pltpu.MemorySpace.VMEM)] * (1 + len(packed)),
        out_specs=pl.BlockSpec(memory_space=pltpu.MemorySpace.VMEM),
        scratch_shapes=[pltpu.VMEM((B * _CONV1_K, _CONV1_C), jnp.float32)],
        compiler_params=pltpu.CompilerParams(vmem_limit_bytes=32 * 1024 * 1024),
    )(z, *packed)
    # PyTorch: conv_final(x).squeeze(3).transpose(1, 2) -> (B, 200, 1)
    return out2d[:, :, None]


# -----------------------------------------------------------------------------
# Synthetic PyTorch-shaped parameters + pure numpy reference (float64).
# -----------------------------------------------------------------------------
def init_params(input_dim, key):
    cin1 = input_dim // 2
    conv_specs = [("conv1", cin1, 512, 6),
                  ("conv2", 512, 128, 4),
                  ("conv3", 128, 64, 5),
                  ("conv4", 64, 32, 4),
                  ("conv5", 32, 32, 4),
                  ("convf", 32, 1, 4)]
    params = {}
    keys = jax.random.split(key, len(conv_specs) + 1)

    kw, kb = jax.random.split(keys[0])
    bound = 1.0 / math.sqrt(input_dim)
    params["fc1_w"] = jax.random.uniform(kw, (cin1, input_dim), jnp.float32, -bound, bound)
    params["fc1_b"] = jax.random.uniform(kb, (cin1,), jnp.float32, -bound, bound)

    for k, (name, ci, co, kh) in zip(keys[1:], conv_specs):
        kw, kb = jax.random.split(k)
        bound = 1.0 / math.sqrt(ci * kh)
        params[name + "_w"] = jax.random.uniform(kw, (ci, co, kh, 1), jnp.float32,
                                                 -bound, bound)
        params[name + "_b"] = jax.random.uniform(kb, (co,), jnp.float32, -bound, bound)

    for i, c in zip((1, 2, 3, 4, 5), (512, 128, 64, 32, 32)):
        params[f"bn{i}_g"] = jnp.ones((c,), jnp.float32)
        params[f"bn{i}_b"] = jnp.zeros((c,), jnp.float32)
    return params


def reference_forward(z, params):
    def f64(x):
        return np.asarray(x, np.float64)

    def deconv(x, w, b, stride, pad):
        # x: (B, Cin, H); w: (Cin, Cout, K) -- PyTorch ConvTranspose2d semantics along H.
        Bc, _, hin = x.shape
        cout, K = w.shape[1], w.shape[2]
        hout = (hin - 1) * stride - 2 * pad + K
        out = np.zeros((Bc, cout, hout), np.float64)
        for ihh in range(hin):
            for kh in range(K):
                oh = ihh * stride + kh - pad
                if 0 <= oh < hout:
                    out[:, :, oh] += x[:, :, ihh] @ w[:, :, kh]
        return out + f64(b)[None, :, None]

    def bn_relu(x, g, be):
        mean = x.mean(axis=(0, 2), keepdims=True)
        var = x.var(axis=(0, 2), keepdims=True)      # biased, matching train-mode BN
        xn = (x - mean) / np.sqrt(var + BN_EPS)
        xn = xn * f64(g)[None, :, None] + f64(be)[None, :, None]
        return np.maximum(xn, 0.0)

    a = f64(z) @ f64(params["fc1_w"]).T + f64(params["fc1_b"])
    x = a[:, :, None]                                                  # (B, 64, 1)
    x = bn_relu(deconv(x, f64(params["conv1_w"][:, :, :, 0]), params["conv1_b"], 1, 0),
                params["bn1_g"], params["bn1_b"])
    x = bn_relu(deconv(x, f64(params["conv2_w"][:, :, :, 0]), params["conv2_b"], 2, 1),
                params["bn2_g"], params["bn2_b"])
    x = bn_relu(deconv(x, f64(params["conv3_w"][:, :, :, 0]), params["conv3_b"], 2, 1),
                params["bn3_g"], params["bn3_b"])
    x = bn_relu(deconv(x, f64(params["conv4_w"][:, :, :, 0]), params["conv4_b"], 2, 1),
                params["bn4_g"], params["bn4_b"])
    x = bn_relu(deconv(x, f64(params["conv5_w"][:, :, :, 0]), params["conv5_b"], 2, 1),
                params["bn5_g"], params["bn5_b"])
    x = deconv(x, f64(params["convf_w"][:, :, :, 0]), params["convf_b"], 2, 1)   # (B,1,200)
    return np.transpose(x, (0, 2, 1))                                  # (B, 200, 1)


if __name__ == "__main__":
    B = 2
    input_dim = 128   # fc1 = Linear(128, 64); conv1 in_channels = input_dim // 2 = 64

    root = jax.random.PRNGKey(0)
    k_params, k_z = jax.random.split(root)
    params = init_params(input_dim, k_params)
    packed = pack_inputs(params, B)          # weight relayouts + scatter constants, once
    z = jax.random.normal(k_z, (B, input_dim), jnp.float32)

    fwd = jax.jit(convdecoder_forward)
    out = jax.block_until_ready(fwd(z, packed))

    assert out.shape == (B, 200, 1), out.shape
    assert out.dtype == jnp.float32
    assert bool(jnp.all(jnp.isfinite(out)))

    ref = reference_forward(np.asarray(z), params)
    err = float(np.max(np.abs(np.asarray(out, np.float64) - ref)))
    scale = float(np.max(np.abs(ref))) + 1e-6
    assert err / scale < 5e-2, ("kernel/reference mismatch", err, scale)

    print("KERNEL_OK")
</pallas_src>

<mosaic_0001>
module attributes {stable_mosaic.version = 11 : i64} {
  func.func @_decoder_kernel(%arg0: memref<2x128xf32, #tpu.memory_space<vmem>>, %arg1: memref<128x64xf32, #tpu.memory_space<vmem>>, %arg2: memref<1x64xf32, #tpu.memory_space<vmem>>, %arg3: memref<64x3072xf32, #tpu.memory_space<vmem>>, %arg4: memref<1x3072xf32, #tpu.memory_space<vmem>>, %arg5: memref<1x512xf32, #tpu.memory_space<vmem>>, %arg6: memref<1x512xf32, #tpu.memory_space<vmem>>, %arg7: memref<512x512xf32, #tpu.memory_space<vmem>>, %arg8: memref<1x128xf32, #tpu.memory_space<vmem>>, %arg9: memref<1x128xf32, #tpu.memory_space<vmem>>, %arg10: memref<1x128xf32, #tpu.memory_space<vmem>>, %arg11: memref<4x24x12xf32, #tpu.memory_space<vmem>>, %arg12: memref<128x320xf32, #tpu.memory_space<vmem>>, %arg13: memref<1x64xf32, #tpu.memory_space<vmem>>, %arg14: memref<1x64xf32, #tpu.memory_space<vmem>>, %arg15: memref<1x64xf32, #tpu.memory_space<vmem>>, %arg16: memref<5x50x24xf32, #tpu.memory_space<vmem>>, %arg17: memref<64x128xf32, #tpu.memory_space<vmem>>, %arg18: memref<1x32xf32, #tpu.memory_space<vmem>>, %arg19: memref<1x32xf32, #tpu.memory_space<vmem>>, %arg20: memref<1x32xf32, #tpu.memory_space<vmem>>, %arg21: memref<4x100x50xf32, #tpu.memory_space<vmem>>, %arg22: memref<32x128xf32, #tpu.memory_space<vmem>>, %arg23: memref<1x32xf32, #tpu.memory_space<vmem>>, %arg24: memref<1x32xf32, #tpu.memory_space<vmem>>, %arg25: memref<1x32xf32, #tpu.memory_space<vmem>>, %arg26: memref<4x200x100xf32, #tpu.memory_space<vmem>>, %arg27: memref<32x4xf32, #tpu.memory_space<vmem>>, %arg28: memref<1x1xf32, #tpu.memory_space<vmem>>, %arg29: memref<4x200x200xf32, #tpu.memory_space<vmem>>, %arg30: memref<2x200xf32, #tpu.memory_space<vmem>>, %arg31: memref<2x200xf32, #tpu.memory_space<vmem>>, %arg32: memref<12x512xf32, #tpu.memory_space<vmem>>) attributes {dimension_semantics = [], scalar_prefetch = 0 : i64, scratch_operands = 1 : i64, tpu.core_type = #tpu.core_type<tc>} {
    %c0 = arith.constant 0 : index
    %c0_0 = arith.constant 0 : index
    %0 = vector.load %arg0[%c0, %c0_0] : memref<2x128xf32, #tpu.memory_space<vmem>>, vector<2x128xf32>
    %c0_1 = arith.constant 0 : index
    %c0_2 = arith.constant 0 : index
    %1 = vector.load %arg1[%c0_1, %c0_2] : memref<128x64xf32, #tpu.memory_space<vmem>>, vector<128x64xf32>
    %cst = arith.constant dense<0.000000e+00> : vector<2x64xf32>
    %2 = tpu.matmul %0, %1, %cst {dimension_numbers = #tpu.dot_dimension_numbers<[1], [0], [0], [1], [0, 0, 1, 1], [], []>} : vector<2x128xf32>, vector<128x64xf32>, vector<2x64xf32> -> vector<2x64xf32>
    %c0_3 = arith.constant 0 : index
    %c0_4 = arith.constant 0 : index
    %3 = vector.load %arg2[%c0_3, %c0_4] : memref<1x64xf32, #tpu.memory_space<vmem>>, vector<1x64xf32>
    %4 = vector.broadcast %3 : vector<1x64xf32> to vector<2x64xf32>
    %5 = arith.addf %2, %4 : vector<2x64xf32>
    %c0_5 = arith.constant 0 : index
    %c0_6 = arith.constant 0 : index
    %6 = vector.load %arg3[%c0_5, %c0_6] : memref<64x3072xf32, #tpu.memory_space<vmem>>, vector<64x3072xf32>
    %cst_7 = arith.constant dense<0.000000e+00> : vector<2x3072xf32>
    %7 = tpu.matmul %5, %6, %cst_7 {dimension_numbers = #tpu.dot_dimension_numbers<[1], [0], [0], [1], [0, 0, 1, 1], [], []>} : vector<2x64xf32>, vector<64x3072xf32>, vector<2x3072xf32> -> vector<2x3072xf32>
    %c0_8 = arith.constant 0 : index
    %c0_9 = arith.constant 0 : index
    %8 = vector.load %arg4[%c0_8, %c0_9] : memref<1x3072xf32, #tpu.memory_space<vmem>>, vector<1x3072xf32>
    %9 = vector.broadcast %8 : vector<1x3072xf32> to vector<2x3072xf32>
    %10 = arith.addf %7, %9 : vector<2x3072xf32>
    %11 = vector.extract_strided_slice %10 {offsets = [0, 0], sizes = [2, 512], strides = [1, 1]} : vector<2x3072xf32> to vector<2x512xf32>
    %c0_10 = arith.constant 0 : index
    %c0_11 = arith.constant 0 : index
    %12 = vector.load %arg32[%c0_10, %c0_11] : memref<12x512xf32, #tpu.memory_space<vmem>>, vector<2x512xf32>
    tpu.vector_store %arg32[%c0_10, %c0_11], %11 {strides = array<i32>} : memref<12x512xf32, #tpu.memory_space<vmem>>, vector<2x512xf32>,
    %13 = vector.extract_strided_slice %10 {offsets = [0, 512], sizes = [2, 512], strides = [1, 1]} : vector<2x3072xf32> to vector<2x512xf32>
    %c2 = arith.constant 2 : index
    %c0_12 = arith.constant 0 : index
    %14 = vector.load %arg32[%c2, %c0_12] : memref<12x512xf32, #tpu.memory_space<vmem>>, vector<2x512xf32>
    tpu.vector_store %arg32[%c2, %c0_12], %13 {strides = array<i32>} : memref<12x512xf32, #tpu.memory_space<vmem>>, vector<2x512xf32>,
    %15 = vector.extract_strided_slice %10 {offsets = [0, 1024], sizes = [2, 512], strides = [1, 1]} : vector<2x3072xf32> to vector<2x512xf32>
    %c4 = arith.constant 4 : index
    %c0_13 = arith.constant 0 : index
    %16 = vector.load %arg32[%c4, %c0_13] : memref<12x512xf32, #tpu.memory_space<vmem>>, vector<2x512xf32>
    tpu.vector_store %arg32[%c4, %c0_13], %15 {strides = array<i32>} : memref<12x512xf32, #tpu.memory_space<vmem>>, vector<2x512xf32>,
    %17 = vector.extract_strided_slice %10 {offsets = [0, 1536], sizes = [2, 512], strides = [1, 1]} : vector<2x3072xf32> to vector<2x512xf32>
    %c6 = arith.constant 6 : index
    %c0_14 = arith.constant 0 : index
    %18 = vector.load %arg32[%c6, %c0_14] : memref<12x512xf32, #tpu.memory_space<vmem>>, vector<2x512xf32>
    tpu.vector_store %arg32[%c6, %c0_14], %17 {strides = array<i32>} : memref<12x512xf32, #tpu.memory_space<vmem>>, vector<2x512xf32>,
    %19 = vector.extract_strided_slice %10 {offsets = [0, 2048], sizes = [2, 512], strides = [1, 1]} : vector<2x3072xf32> to vector<2x512xf32>
    %c8 = arith.constant 8 : index
    %c0_15 = arith.constant 0 : index
    %20 = vector.load %arg32[%c8, %c0_15] : memref<12x512xf32, #tpu.memory_space<vmem>>, vector<2x512xf32>
    tpu.vector_store %arg32[%c8, %c0_15], %19 {strides = array<i32>} : memref<12x512xf32, #tpu.memory_space<vmem>>, vector<2x512xf32>,
    %21 = vector.extract_strided_slice %10 {offsets = [0, 2560], sizes = [2, 512], strides = [1, 1]} : vector<2x3072xf32> to vector<2x512xf32>
    %c10 = arith.constant 10 : index
    %c0_16 = arith.constant 0 : index
    %22 = vector.load %arg32[%c10, %c0_16] : memref<12x512xf32, #tpu.memory_space<vmem>>, vector<2x512xf32>
    tpu.vector_store %arg32[%c10, %c0_16], %21 {strides = array<i32>} : memref<12x512xf32, #tpu.memory_space<vmem>>, vector<2x512xf32>,
    %c0_17 = arith.constant 0 : index
    %c0_18 = arith.constant 0 : index
    %23 = vector.load %arg32[%c0_17, %c0_18] : memref<12x512xf32, #tpu.memory_space<vmem>>, vector<12x512xf32>
    %c0_19 = arith.constant 0 : index
    %c0_20 = arith.constant 0 : index
    %24 = vector.load %arg5[%c0_19, %c0_20] : memref<1x512xf32, #tpu.memory_space<vmem>>, vector<1x512xf32>
    %c0_21 = arith.constant 0 : index
    %c0_22 = arith.constant 0 : index
    %25 = vector.load %arg6[%c0_21, %c0_22] : memref<1x512xf32, #tpu.memory_space<vmem>>, vector<1x512xf32>
    %cst_23 = arith.constant dense<0.000000e+00> : vector<512xf32>
    %26 = vector.multi_reduction <add>, %23, %cst_23 [0] : vector<12x512xf32> to vector<512xf32>
    %27 = vector.shape_cast %26 : vector<512xf32> to vector<1x512xf32>
    %cst_24 = arith.constant 0.0833333358 : f32
    %28 = vector.broadcast %cst_24 : f32 to vector<1x512xf32>
    %29 = arith.mulf %27, %28 : vector<1x512xf32>
    %30 = vector.broadcast %29 : vector<1x512xf32> to vector<12x512xf32>
    %31 = arith.subf %23, %30 : vector<12x512xf32>
    %32 = arith.mulf %31, %31 : vector<12x512xf32>
    %cst_25 = arith.constant dense<0.000000e+00> : vector<512xf32>
    %33 = vector.multi_reduction <add>, %32, %cst_25 [0] : vector<12x512xf32> to vector<512xf32>
    %34 = vector.shape_cast %33 : vector<512xf32> to vector<1x512xf32>
    %cst_26 = arith.constant 0.0833333358 : f32
    %35 = vector.broadcast %cst_26 : f32 to vector<1x512xf32>
    %36 = arith.mulf %34, %35 : vector<1x512xf32>
    %cst_27 = arith.constant 9.99999974E-6 : f32
    %37 = vector.broadcast %cst_27 : f32 to vector<1x512xf32>
    %38 = arith.addf %36, %37 : vector<1x512xf32>
    %39 = math.rsqrt %38 : vector<1x512xf32>
    %40 = vector.broadcast %39 : vector<1x512xf32> to vector<12x512xf32>
    %41 = arith.mulf %31, %40 : vector<12x512xf32>
    %42 = vector.broadcast %24 : vector<1x512xf32> to vector<12x512xf32>
    %43 = arith.mulf %41, %42 : vector<12x512xf32>
    %44 = vector.broadcast %25 : vector<1x512xf32> to vector<12x512xf32>
    %45 = arith.addf %43, %44 : vector<12x512xf32>
    %cst_28 = arith.constant 0.000000e+00 : f32
    %46 = vector.broadcast %cst_28 : f32 to vector<12x512xf32>
    %47 = arith.maximumf %45, %46 : vector<12x512xf32>
    %c0_29 = arith.constant 0 : index
    %c0_30 = arith.constant 0 : index
    %48 = vector.load %arg7[%c0_29, %c0_30] : memref<512x512xf32, #tpu.memory_space<vmem>>, vector<512x512xf32>
    %cst_31 = arith.constant dense<0.000000e+00> : vector<12x512xf32>
    %49 = tpu.matmul %47, %48, %cst_31 {dimension_numbers = #tpu.dot_dimension_numbers<[1], [0], [0], [1], [0, 0, 1, 1], [], []>} : vector<12x512xf32>, vector<512x512xf32>, vector<12x512xf32> -> vector<12x512xf32>
    %c0_32 = arith.constant 0 : index
    %c0_33 = arith.constant 0 : index
    %c0_34 = arith.constant 0 : index
    %50 = vector.load %arg11[%c0_32, %c0_33, %c0_34] : memref<4x24x12xf32, #tpu.memory_space<vmem>>, vector<1x24x12xf32>
    %51 = vector.shape_cast %50 : vector<1x24x12xf32> to vector<24x12xf32>
    %52 = vector.extract_strided_slice %49 {offsets = [0, 0], sizes = [12, 128], strides = [1, 1]} : vector<12x512xf32> to vector<12x128xf32>
    %cst_35 = arith.constant dense<0.000000e+00> : vector<24x128xf32>
    %53 = tpu.matmul %51, %52, %cst_35 {dimension_numbers = #tpu.dot_dimension_numbers<[1], [0], [0], [1], [0, 0, 1, 1], [], []>} : vector<24x12xf32>, vector<12x128xf32>, vector<24x128xf32> -> vector<24x128xf32>
    %c1 = arith.constant 1 : index
    %c0_36 = arith.constant 0 : index
    %c0_37 = arith.constant 0 : index
    %54 = vector.load %arg11[%c1, %c0_36, %c0_37] : memref<4x24x12xf32, #tpu.memory_space<vmem>>, vector<1x24x12xf32>
    %55 = vector.shape_cast %54 : vector<1x24x12xf32> to vector<24x12xf32>
    %56 = vector.extract_strided_slice %49 {offsets = [0, 128], sizes = [12, 128], strides = [1, 1]} : vector<12x512xf32> to vector<12x128xf32>
    %cst_38 = arith.constant dense<0.000000e+00> : vector<24x128xf32>
    %57 = tpu.matmul %55, %56, %cst_38 {dimension_numbers = #tpu.dot_dimension_numbers<[1], [0], [0], [1], [0, 0, 1, 1], [], []>} : vector<24x12xf32>, vector<12x128xf32>, vector<24x128xf32> -> vector<24x128xf32>
    %58 = arith.addf %53, %57 : vector<24x128xf32>
    %c2_39 = arith.constant 2 : index
    %c0_40 = arith.constant 0 : index
    %c0_41 = arith.constant 0 : index
    %59 = vector.load %arg11[%c2_39, %c0_40, %c0_41] : memref<4x24x12xf32, #tpu.memory_space<vmem>>, vector<1x24x12xf32>
    %60 = vector.shape_cast %59 : vector<1x24x12xf32> to vector<24x12xf32>
    %61 = vector.extract_strided_slice %49 {offsets = [0, 256], sizes = [12, 128], strides = [1, 1]} : vector<12x512xf32> to vector<12x128xf32>
    %cst_42 = arith.constant dense<0.000000e+00> : vector<24x128xf32>
    %62 = tpu.matmul %60, %61, %cst_42 {dimension_numbers = #tpu.dot_dimension_numbers<[1], [0], [0], [1], [0, 0, 1, 1], [], []>} : vector<24x12xf32>, vector<12x128xf32>, vector<24x128xf32> -> vector<24x128xf32>
    %63 = arith.addf %58, %62 : vector<24x128xf32>
    %c3 = arith.constant 3 : index
    %c0_43 = arith.constant 0 : index
    %c0_44 = arith.constant 0 : index
    %64 = vector.load %arg11[%c3, %c0_43, %c0_44] : memref<4x24x12xf32, #tpu.memory_space<vmem>>, vector<1x24x12xf32>
    %65 = vector.shape_cast %64 : vector<1x24x12xf32> to vector<24x12xf32>
    %66 = vector.extract_strided_slice %49 {offsets = [0, 384], sizes = [12, 128], strides = [1, 1]} : vector<12x512xf32> to vector<12x128xf32>
    %cst_45 = arith.constant dense<0.000000e+00> : vector<24x128xf32>
    %67 = tpu.matmul %65, %66, %cst_45 {dimension_numbers = #tpu.dot_dimension_numbers<[1], [0], [0], [1], [0, 0, 1, 1], [], []>} : vector<24x12xf32>, vector<12x128xf32>, vector<24x128xf32> -> vector<24x128xf32>
    %68 = arith.addf %63, %67 : vector<24x128xf32>
    %c0_46 = arith.constant 0 : index
    %c0_47 = arith.constant 0 : index
    %69 = vector.load %arg8[%c0_46, %c0_47] : memref<1x128xf32, #tpu.memory_space<vmem>>, vector<1x128xf32>
    %70 = vector.broadcast %69 : vector<1x128xf32> to vector<24x128xf32>
    %71 = arith.addf %68, %70 : vector<24x128xf32>
    %c0_48 = arith.constant 0 : index
    %c0_49 = arith.constant 0 : index
    %72 = vector.load %arg9[%c0_48, %c0_49] : memref<1x128xf32, #tpu.memory_space<vmem>>, vector<1x128xf32>
    %c0_50 = arith.constant 0 : index
    %c0_51 = arith.constant 0 : index
    %73 = vector.load %arg10[%c0_50, %c0_51] : memref<1x128xf32, #tpu.memory_space<vmem>>, vector<1x128xf32>
    %cst_52 = arith.constant dense<0.000000e+00> : vector<128xf32>
    %74 = vector.multi_reduction <add>, %71, %cst_52 [0] : vector<24x128xf32> to vector<128xf32>
    %75 = vector.shape_cast %74 : vector<128xf32> to vector<1x128xf32>
    %cst_53 = arith.constant 0.0416666679 : f32
    %76 = vector.broadcast %cst_53 : f32 to vector<1x128xf32>
    %77 = arith.mulf %75, %76 : vector<1x128xf32>
    %78 = vector.broadcast %77 : vector<1x128xf32> to vector<24x128xf32>
    %79 = arith.subf %71, %78 : vector<24x128xf32>
    %80 = arith.mulf %79, %79 : vector<24x128xf32>
    %cst_54 = arith.constant dense<0.000000e+00> : vector<128xf32>
    %81 = vector.multi_reduction <add>, %80, %cst_54 [0] : vector<24x128xf32> to vector<128xf32>
    %82 = vector.shape_cast %81 : vector<128xf32> to vector<1x128xf32>
    %cst_55 = arith.constant 0.0416666679 : f32
    %83 = vector.broadcast %cst_55 : f32 to vector<1x128xf32>
    %84 = arith.mulf %82, %83 : vector<1x128xf32>
    %cst_56 = arith.constant 9.99999974E-6 : f32
    %85 = vector.broadcast %cst_56 : f32 to vector<1x128xf32>
    %86 = arith.addf %84, %85 : vector<1x128xf32>
    %87 = math.rsqrt %86 : vector<1x128xf32>
    %88 = vector.broadcast %87 : vector<1x128xf32> to vector<24x128xf32>
    %89 = arith.mulf %79, %88 : vector<24x128xf32>
    %90 = vector.broadcast %72 : vector<1x128xf32> to vector<24x128xf32>
    %91 = arith.mulf %89, %90 : vector<24x128xf32>
    %92 = vector.broadcast %73 : vector<1x128xf32> to vector<24x128xf32>
    %93 = arith.addf %91, %92 : vector<24x128xf32>
    %cst_57 = arith.constant 0.000000e+00 : f32
    %94 = vector.broadcast %cst_57 : f32 to vector<24x128xf32>
    %95 = arith.maximumf %93, %94 : vector<24x128xf32>
    %c0_58 = arith.constant 0 : index
    %c0_59 = arith.constant 0 : index
    %96 = vector.load %arg12[%c0_58, %c0_59] : memref<128x320xf32, #tpu.memory_space<vmem>>, vector<128x320xf32>
    %cst_60 = arith.constant dense<0.000000e+00> : vector<24x320xf32>
    %97 = tpu.matmul %95, %96, %cst_60 {dimension_numbers = #tpu.dot_dimension_numbers<[1], [0], [0], [1], [0, 0, 1, 1], [], []>} : vector<24x128xf32>, vector<128x320xf32>, vector<24x320xf32> -> vector<24x320xf32>
    %c0_61 = arith.constant 0 : index
    %c0_62 = arith.constant 0 : index
    %c0_63 = arith.constant 0 : index
    %98 = vector.load %arg16[%c0_61, %c0_62, %c0_63] : memref<5x50x24xf32, #tpu.memory_space<vmem>>, vector<1x50x24xf32>
    %99 = vector.shape_cast %98 : vector<1x50x24xf32> to vector<50x24xf32>
    %100 = vector.extract_strided_slice %97 {offsets = [0, 0], sizes = [24, 64], strides = [1, 1]} : vector<24x320xf32> to vector<24x64xf32>
    %cst_64 = arith.constant dense<0.000000e+00> : vector<50x64xf32>
    %101 = tpu.matmul %99, %100, %cst_64 {dimension_numbers = #tpu.dot_dimension_numbers<[1], [0], [0], [1], [0, 0, 1, 1], [], []>} : vector<50x24xf32>, vector<24x64xf32>, vector<50x64xf32> -> vector<50x64xf32>
    %c1_65 = arith.constant 1 : index
    %c0_66 = arith.constant 0 : index
    %c0_67 = arith.constant 0 : index
    %102 = vector.load %arg16[%c1_65, %c0_66, %c0_67] : memref<5x50x24xf32, #tpu.memory_space<vmem>>, vector<1x50x24xf32>
    %103 = vector.shape_cast %102 : vector<1x50x24xf32> to vector<50x24xf32>
    %104 = vector.extract_strided_slice %97 {offsets = [0, 64], sizes = [24, 64], strides = [1, 1]} : vector<24x320xf32> to vector<24x64xf32>
    %cst_68 = arith.constant dense<0.000000e+00> : vector<50x64xf32>
    %105 = tpu.matmul %103, %104, %cst_68 {dimension_numbers = #tpu.dot_dimension_numbers<[1], [0], [0], [1], [0, 0, 1, 1], [], []>} : vector<50x24xf32>, vector<24x64xf32>, vector<50x64xf32> -> vector<50x64xf32>
    %106 = arith.addf %101, %105 : vector<50x64xf32>
    %c2_69 = arith.constant 2 : index
    %c0_70 = arith.constant 0 : index
    %c0_71 = arith.constant 0 : index
    %107 = vector.load %arg16[%c2_69, %c0_70, %c0_71] : memref<5x50x24xf32, #tpu.memory_space<vmem>>, vector<1x50x24xf32>
    %108 = vector.shape_cast %107 : vector<1x50x24xf32> to vector<50x24xf32>
    %109 = vector.extract_strided_slice %97 {offsets = [0, 128], sizes = [24, 64], strides = [1, 1]} : vector<24x320xf32> to vector<24x64xf32>
    %cst_72 = arith.constant dense<0.000000e+00> : vector<50x64xf32>
    %110 = tpu.matmul %108, %109, %cst_72 {dimension_numbers = #tpu.dot_dimension_numbers<[1], [0], [0], [1], [0, 0, 1, 1], [], []>} : vector<50x24xf32>, vector<24x64xf32>, vector<50x64xf32> -> vector<50x64xf32>
    %111 = arith.addf %106, %110 : vector<50x64xf32>
    %c3_73 = arith.constant 3 : index
    %c0_74 = arith.constant 0 : index
    %c0_75 = arith.constant 0 : index
    %112 = vector.load %arg16[%c3_73, %c0_74, %c0_75] : memref<5x50x24xf32, #tpu.memory_space<vmem>>, vector<1x50x24xf32>
    %113 = vector.shape_cast %112 : vector<1x50x24xf32> to vector<50x24xf32>
    %114 = vector.extract_strided_slice %97 {offsets = [0, 192], sizes = [24, 64], strides = [1, 1]} : vector<24x320xf32> to vector<24x64xf32>
    %cst_76 = arith.constant dense<0.000000e+00> : vector<50x64xf32>
    %115 = tpu.matmul %113, %114, %cst_76 {dimension_numbers = #tpu.dot_dimension_numbers<[1], [0], [0], [1], [0, 0, 1, 1], [], []>} : vector<50x24xf32>, vector<24x64xf32>, vector<50x64xf32> -> vector<50x64xf32>
    %116 = arith.addf %111, %115 : vector<50x64xf32>
    %c4_77 = arith.constant 4 : index
    %c0_78 = arith.constant 0 : index
    %c0_79 = arith.constant 0 : index
    %117 = vector.load %arg16[%c4_77, %c0_78, %c0_79] : memref<5x50x24xf32, #tpu.memory_space<vmem>>, vector<1x50x24xf32>
    %118 = vector.shape_cast %117 : vector<1x50x24xf32> to vector<50x24xf32>
    %119 = vector.extract_strided_slice %97 {offsets = [0, 256], sizes = [24, 64], strides = [1, 1]} : vector<24x320xf32> to vector<24x64xf32>
    %cst_80 = arith.constant dense<0.000000e+00> : vector<50x64xf32>
    %120 = tpu.matmul %118, %119, %cst_80 {dimension_numbers = #tpu.dot_dimension_numbers<[1], [0], [0], [1], [0, 0, 1, 1], [], []>} : vector<50x24xf32>, vector<24x64xf32>, vector<50x64xf32> -> vector<50x64xf32>
    %121 = arith.addf %116, %120 : vector<50x64xf32>
    %c0_81 = arith.constant 0 : index
    %c0_82 = arith.constant 0 : index
    %122 = vector.load %arg13[%c0_81, %c0_82] : memref<1x64xf32, #tpu.memory_space<vmem>>, vector<1x64xf32>
    %123 = vector.broadcast %122 : vector<1x64xf32> to vector<50x64xf32>
    %124 = arith.addf %121, %123 : vector<50x64xf32>
    %c0_83 = arith.constant 0 : index
    %c0_84 = arith.constant 0 : index
    %125 = vector.load %arg14[%c0_83, %c0_84] : memref<1x64xf32, #tpu.memory_space<vmem>>, vector<1x64xf32>
    %c0_85 = arith.constant 0 : index
    %c0_86 = arith.constant 0 : index
    %126 = vector.load %arg15[%c0_85, %c0_86] : memref<1x64xf32, #tpu.memory_space<vmem>>, vector<1x64xf32>
    %cst_87 = arith.constant dense<0.000000e+00> : vector<64xf32>
    %127 = vector.multi_reduction <add>, %124, %cst_87 [0] : vector<50x64xf32> to vector<64xf32>
    %128 = vector.shape_cast %127 : vector<64xf32> to vector<1x64xf32>
    %cst_88 = arith.constant 2.000000e-02 : f32
    %129 = vector.broadcast %cst_88 : f32 to vector<1x64xf32>
    %130 = arith.mulf %128, %129 : vector<1x64xf32>
    %131 = vector.broadcast %130 : vector<1x64xf32> to vector<50x64xf32>
    %132 = arith.subf %124, %131 : vector<50x64xf32>
    %133 = arith.mulf %132, %132 : vector<50x64xf32>
    %cst_89 = arith.constant dense<0.000000e+00> : vector<64xf32>
    %134 = vector.multi_reduction <add>, %133, %cst_89 [0] : vector<50x64xf32> to vector<64xf32>
    %135 = vector.shape_cast %134 : vector<64xf32> to vector<1x64xf32>
    %cst_90 = arith.constant 2.000000e-02 : f32
    %136 = vector.broadcast %cst_90 : f32 to vector<1x64xf32>
    %137 = arith.mulf %135, %136 : vector<1x64xf32>
    %cst_91 = arith.constant 9.99999974E-6 : f32
    %138 = vector.broadcast %cst_91 : f32 to vector<1x64xf32>
    %139 = arith.addf %137, %138 : vector<1x64xf32>
    %140 = math.rsqrt %139 : vector<1x64xf32>
    %141 = vector.broadcast %140 : vector<1x64xf32> to vector<50x64xf32>
    %142 = arith.mulf %132, %141 : vector<50x64xf32>
    %143 = vector.broadcast %125 : vector<1x64xf32> to vector<50x64xf32>
    %144 = arith.mulf %142, %143 : vector<50x64xf32>
    %145 = vector.broadcast %126 : vector<1x64xf32> to vector<50x64xf32>
    %146 = arith.addf %144, %145 : vector<50x64xf32>
    %cst_92 = arith.constant 0.000000e+00 : f32
    %147 = vector.broadcast %cst_92 : f32 to vector<50x64xf32>
    %148 = arith.maximumf %146, %147 : vector<50x64xf32>
    %c0_93 = arith.constant 0 : index
    %c0_94 = arith.constant 0 : index
    %149 = vector.load %arg17[%c0_93, %c0_94] : memref<64x128xf32, #tpu.memory_space<vmem>>, vector<64x128xf32>
    %cst_95 = arith.constant dense<0.000000e+00> : vector<50x128xf32>
    %150 = tpu.matmul %148, %149, %cst_95 {dimension_numbers = #tpu.dot_dimension_numbers<[1], [0], [0], [1], [0, 0, 1, 1], [], []>} : vector<50x64xf32>, vector<64x128xf32>, vector<50x128xf32> -> vector<50x128xf32>
    %c0_96 = arith.constant 0 : index
    %c0_97 = arith.constant 0 : index
    %c0_98 = arith.constant 0 : index
    %151 = vector.load %arg21[%c0_96, %c0_97, %c0_98] : memref<4x100x50xf32, #tpu.memory_space<vmem>>, vector<1x100x50xf32>
    %152 = vector.shape_cast %151 : vector<1x100x50xf32> to vector<100x50xf32>
    %153 = vector.extract_strided_slice %150 {offsets = [0, 0], sizes = [50, 32], strides = [1, 1]} : vector<50x128xf32> to vector<50x32xf32>
    %cst_99 = arith.constant dense<0.000000e+00> : vector<100x32xf32>
    %154 = tpu.matmul %152, %153, %cst_99 {dimension_numbers = #tpu.dot_dimension_numbers<[1], [0], [0], [1], [0, 0, 1, 1], [], []>} : vector<100x50xf32>, vector<50x32xf32>, vector<100x32xf32> -> vector<100x32xf32>
    %c1_100 = arith.constant 1 : index
    %c0_101 = arith.constant 0 : index
    %c0_102 = arith.constant 0 : index
    %155 = vector.load %arg21[%c1_100, %c0_101, %c0_102] : memref<4x100x50xf32, #tpu.memory_space<vmem>>, vector<1x100x50xf32>
    %156 = vector.shape_cast %155 : vector<1x100x50xf32> to vector<100x50xf32>
    %157 = vector.extract_strided_slice %150 {offsets = [0, 32], sizes = [50, 32], strides = [1, 1]} : vector<50x128xf32> to vector<50x32xf32>
    %cst_103 = arith.constant dense<0.000000e+00> : vector<100x32xf32>
    %158 = tpu.matmul %156, %157, %cst_103 {dimension_numbers = #tpu.dot_dimension_numbers<[1], [0], [0], [1], [0, 0, 1, 1], [], []>} : vector<100x50xf32>, vector<50x32xf32>, vector<100x32xf32> -> vector<100x32xf32>
    %159 = arith.addf %154, %158 : vector<100x32xf32>
    %c2_104 = arith.constant 2 : index
    %c0_105 = arith.constant 0 : index
    %c0_106 = arith.constant 0 : index
    %160 = vector.load %arg21[%c2_104, %c0_105, %c0_106] : memref<4x100x50xf32, #tpu.memory_space<vmem>>, vector<1x100x50xf32>
    %161 = vector.shape_cast %160 : vector<1x100x50xf32> to vector<100x50xf32>
    %162 = vector.extract_strided_slice %150 {offsets = [0, 64], sizes = [50, 32], strides = [1, 1]} : vector<50x128xf32> to vector<50x32xf32>
    %cst_107 = arith.constant dense<0.000000e+00> : vector<100x32xf32>
    %163 = tpu.matmul %161, %162, %cst_107 {dimension_numbers = #tpu.dot_dimension_numbers<[1], [0], [0], [1], [0, 0, 1, 1], [], []>} : vector<100x50xf32>, vector<50x32xf32>, vector<100x32xf32> -> vector<100x32xf32>
    %164 = arith.addf %159, %163 : vector<100x32xf32>
    %c3_108 = arith.constant 3 : index
    %c0_109 = arith.constant 0 : index
    %c0_110 = arith.constant 0 : index
    %165 = vector.load %arg21[%c3_108, %c0_109, %c0_110] : memref<4x100x50xf32, #tpu.memory_space<vmem>>, vector<1x100x50xf32>
    %166 = vector.shape_cast %165 : vector<1x100x50xf32> to vector<100x50xf32>
    %167 = vector.extract_strided_slice %150 {offsets = [0, 96], sizes = [50, 32], strides = [1, 1]} : vector<50x128xf32> to vector<50x32xf32>
    %cst_111 = arith.constant dense<0.000000e+00> : vector<100x32xf32>
    %168 = tpu.matmul %166, %167, %cst_111 {dimension_numbers = #tpu.dot_dimension_numbers<[1], [0], [0], [1], [0, 0, 1, 1], [], []>} : vector<100x50xf32>, vector<50x32xf32>, vector<100x32xf32> -> vector<100x32xf32>
    %169 = arith.addf %164, %168 : vector<100x32xf32>
    %c0_112 = arith.constant 0 : index
    %c0_113 = arith.constant 0 : index
    %170 = vector.load %arg18[%c0_112, %c0_113] : memref<1x32xf32, #tpu.memory_space<vmem>>, vector<1x32xf32>
    %171 = vector.broadcast %170 : vector<1x32xf32> to vector<100x32xf32>
    %172 = arith.addf %169, %171 : vector<100x32xf32>
    %c0_114 = arith.constant 0 : index
    %c0_115 = arith.constant 0 : index
    %173 = vector.load %arg19[%c0_114, %c0_115] : memref<1x32xf32, #tpu.memory_space<vmem>>, vector<1x32xf32>
    %c0_116 = arith.constant 0 : index
    %c0_117 = arith.constant 0 : index
    %174 = vector.load %arg20[%c0_116, %c0_117] : memref<1x32xf32, #tpu.memory_space<vmem>>, vector<1x32xf32>
    %cst_118 = arith.constant dense<0.000000e+00> : vector<32xf32>
    %175 = vector.multi_reduction <add>, %172, %cst_118 [0] : vector<100x32xf32> to vector<32xf32>
    %176 = vector.shape_cast %175 : vector<32xf32> to vector<1x32xf32>
    %cst_119 = arith.constant 0.00999999977 : f32
    %177 = vector.broadcast %cst_119 : f32 to vector<1x32xf32>
    %178 = arith.mulf %176, %177 : vector<1x32xf32>
    %179 = vector.broadcast %178 : vector<1x32xf32> to vector<100x32xf32>
    %180 = arith.subf %172, %179 : vector<100x32xf32>
    %181 = arith.mulf %180, %180 : vector<100x32xf32>
    %cst_120 = arith.constant dense<0.000000e+00> : vector<32xf32>
    %182 = vector.multi_reduction <add>, %181, %cst_120 [0] : vector<100x32xf32> to vector<32xf32>
    %183 = vector.shape_cast %182 : vector<32xf32> to vector<1x32xf32>
    %cst_121 = arith.constant 0.00999999977 : f32
    %184 = vector.broadcast %cst_121 : f32 to vector<1x32xf32>
    %185 = arith.mulf %183, %184 : vector<1x32xf32>
    %cst_122 = arith.constant 9.99999974E-6 : f32
    %186 = vector.broadcast %cst_122 : f32 to vector<1x32xf32>
    %187 = arith.addf %185, %186 : vector<1x32xf32>
    %188 = math.rsqrt %187 : vector<1x32xf32>
    %189 = vector.broadcast %188 : vector<1x32xf32> to vector<100x32xf32>
    %190 = arith.mulf %180, %189 : vector<100x32xf32>
    %191 = vector.broadcast %173 : vector<1x32xf32> to vector<100x32xf32>
    %192 = arith.mulf %190, %191 : vector<100x32xf32>
    %193 = vector.broadcast %174 : vector<1x32xf32> to vector<100x32xf32>
    %194 = arith.addf %192, %193 : vector<100x32xf32>
    %cst_123 = arith.constant 0.000000e+00 : f32
    %195 = vector.broadcast %cst_123 : f32 to vector<100x32xf32>
    %196 = arith.maximumf %194, %195 : vector<100x32xf32>
    %c0_124 = arith.constant 0 : index
    %c0_125 = arith.constant 0 : index
    %197 = vector.load %arg22[%c0_124, %c0_125] : memref<32x128xf32, #tpu.memory_space<vmem>>, vector<32x128xf32>
    %cst_126 = arith.constant dense<0.000000e+00> : vector<100x128xf32>
    %198 = tpu.matmul %196, %197, %cst_126 {dimension_numbers = #tpu.dot_dimension_numbers<[1], [0], [0], [1], [0, 0, 1, 1], [], []>} : vector<100x32xf32>, vector<32x128xf32>, vector<100x128xf32> -> vector<100x128xf32>
    %c0_127 = arith.constant 0 : index
    %c0_128 = arith.constant 0 : index
    %c0_129 = arith.constant 0 : index
    %199 = vector.load %arg26[%c0_127, %c0_128, %c0_129] : memref<4x200x100xf32, #tpu.memory_space<vmem>>, vector<1x200x100xf32>
    %200 = vector.shape_cast %199 : vector<1x200x100xf32> to vector<200x100xf32>
    %201 = vector.extract_strided_slice %198 {offsets = [0, 0], sizes = [100, 32], strides = [1, 1]} : vector<100x128xf32> to vector<100x32xf32>
    %cst_130 = arith.constant dense<0.000000e+00> : vector<200x32xf32>
    %202 = tpu.matmul %200, %201, %cst_130 {dimension_numbers = #tpu.dot_dimension_numbers<[1], [0], [0], [1], [0, 0, 1, 1], [], []>} : vector<200x100xf32>, vector<100x32xf32>, vector<200x32xf32> -> vector<200x32xf32>
    %c1_131 = arith.constant 1 : index
    %c0_132 = arith.constant 0 : index
    %c0_133 = arith.constant 0 : index
    %203 = vector.load %arg26[%c1_131, %c0_132, %c0_133] : memref<4x200x100xf32, #tpu.memory_space<vmem>>, vector<1x200x100xf32>
    %204 = vector.shape_cast %203 : vector<1x200x100xf32> to vector<200x100xf32>
    %205 = vector.extract_strided_slice %198 {offsets = [0, 32], sizes = [100, 32], strides = [1, 1]} : vector<100x128xf32> to vector<100x32xf32>
    %cst_134 = arith.constant dense<0.000000e+00> : vector<200x32xf32>
    %206 = tpu.matmul %204, %205, %cst_134 {dimension_numbers = #tpu.dot_dimension_numbers<[1], [0], [0], [1], [0, 0, 1, 1], [], []>} : vector<200x100xf32>, vector<100x32xf32>, vector<200x32xf32> -> vector<200x32xf32>
    %207 = arith.addf %202, %206 : vector<200x32xf32>
    %c2_135 = arith.constant 2 : index
    %c0_136 = arith.constant 0 : index
    %c0_137 = arith.constant 0 : index
    %208 = vector.load %arg26[%c2_135, %c0_136, %c0_137] : memref<4x200x100xf32, #tpu.memory_space<vmem>>, vector<1x200x100xf32>
    %209 = vector.shape_cast %208 : vector<1x200x100xf32> to vector<200x100xf32>
    %210 = vector.extract_strided_slice %198 {offsets = [0, 64], sizes = [100, 32], strides = [1, 1]} : vector<100x128xf32> to vector<100x32xf32>
    %cst_138 = arith.constant dense<0.000000e+00> : vector<200x32xf32>
    %211 = tpu.matmul %209, %210, %cst_138 {dimension_numbers = #tpu.dot_dimension_numbers<[1], [0], [0], [1], [0, 0, 1, 1], [], []>} : vector<200x100xf32>, vector<100x32xf32>, vector<200x32xf32> -> vector<200x32xf32>
    %212 = arith.addf %207, %211 : vector<200x32xf32>
    %c3_139 = arith.constant 3 : index
    %c0_140 = arith.constant 0 : index
    %c0_141 = arith.constant 0 : index
    %213 = vector.load %arg26[%c3_139, %c0_140, %c0_141] : memref<4x200x100xf32, #tpu.memory_space<vmem>>, vector<1x200x100xf32>
    %214 = vector.shape_cast %213 : vector<1x200x100xf32> to vector<200x100xf32>
    %215 = vector.extract_strided_slice %198 {offsets = [0, 96], sizes = [100, 32], strides = [1, 1]} : vector<100x128xf32> to vector<100x32xf32>
    %cst_142 = arith.constant dense<0.000000e+00> : vector<200x32xf32>
    %216 = tpu.matmul %214, %215, %cst_142 {dimension_numbers = #tpu.dot_dimension_numbers<[1], [0], [0], [1], [0, 0, 1, 1], [], []>} : vector<200x100xf32>, vector<100x32xf32>, vector<200x32xf32> -> vector<200x32xf32>
    %217 = arith.addf %212, %216 : vector<200x32xf32>
    %c0_143 = arith.constant 0 : index
    %c0_144 = arith.constant 0 : index
    %218 = vector.load %arg23[%c0_143, %c0_144] : memref<1x32xf32, #tpu.memory_space<vmem>>, vector<1x32xf32>
    %219 = vector.broadcast %218 : vector<1x32xf32> to vector<200x32xf32>
    %220 = arith.addf %217, %219 : vector<200x32xf32>
    %c0_145 = arith.constant 0 : index
    %c0_146 = arith.constant 0 : index
    %221 = vector.load %arg24[%c0_145, %c0_146] : memref<1x32xf32, #tpu.memory_space<vmem>>, vector<1x32xf32>
    %c0_147 = arith.constant 0 : index
    %c0_148 = arith.constant 0 : index
    %222 = vector.load %arg25[%c0_147, %c0_148] : memref<1x32xf32, #tpu.memory_space<vmem>>, vector<1x32xf32>
    %cst_149 = arith.constant dense<0.000000e+00> : vector<32xf32>
    %223 = vector.multi_reduction <add>, %220, %cst_149 [0] : vector<200x32xf32> to vector<32xf32>
    %224 = vector.shape_cast %223 : vector<32xf32> to vector<1x32xf32>
    %cst_150 = arith.constant 5.000000e-03 : f32
    %225 = vector.broadcast %cst_150 : f32 to vector<1x32xf32>
    %226 = arith.mulf %224, %225 : vector<1x32xf32>
    %227 = vector.broadcast %226 : vector<1x32xf32> to vector<200x32xf32>
    %228 = arith.subf %220, %227 : vector<200x32xf32>
    %229 = arith.mulf %228, %228 : vector<200x32xf32>
    %cst_151 = arith.constant dense<0.000000e+00> : vector<32xf32>
    %230 = vector.multi_reduction <add>, %229, %cst_151 [0] : vector<200x32xf32> to vector<32xf32>
    %231 = vector.shape_cast %230 : vector<32xf32> to vector<1x32xf32>
    %cst_152 = arith.constant 5.000000e-03 : f32
    %232 = vector.broadcast %cst_152 : f32 to vector<1x32xf32>
    %233 = arith.mulf %231, %232 : vector<1x32xf32>
    %cst_153 = arith.constant 9.99999974E-6 : f32
    %234 = vector.broadcast %cst_153 : f32 to vector<1x32xf32>
    %235 = arith.addf %233, %234 : vector<1x32xf32>
    %236 = math.rsqrt %235 : vector<1x32xf32>
    %237 = vector.broadcast %236 : vector<1x32xf32> to vector<200x32xf32>
    %238 = arith.mulf %228, %237 : vector<200x32xf32>
    %239 = vector.broadcast %221 : vector<1x32xf32> to vector<200x32xf32>
    %240 = arith.mulf %238, %239 : vector<200x32xf32>
    %241 = vector.broadcast %222 : vector<1x32xf32> to vector<200x32xf32>
    %242 = arith.addf %240, %241 : vector<200x32xf32>
    %cst_154 = arith.constant 0.000000e+00 : f32
    %243 = vector.broadcast %cst_154 : f32 to vector<200x32xf32>
    %244 = arith.maximumf %242, %243 : vector<200x32xf32>
    %c0_155 = arith.constant 0 : index
    %c0_156 = arith.constant 0 : index
    %245 = vector.load %arg27[%c0_155, %c0_156] : memref<32x4xf32, #tpu.memory_space<vmem>>, vector<32x4xf32>
    %cst_157 = arith.constant dense<0.000000e+00> : vector<200x4xf32>
    %246 = tpu.matmul %244, %245, %cst_157 {dimension_numbers = #tpu.dot_dimension_numbers<[1], [0], [0], [1], [0, 0, 1, 1], [], []>} : vector<200x32xf32>, vector<32x4xf32>, vector<200x4xf32> -> vector<200x4xf32>
    %247 = vector.extract_strided_slice %246 {offsets = [0, 0], sizes = [200, 1], strides = [1, 1]} : vector<200x4xf32> to vector<200x1xf32>
    %c0_158 = arith.constant 0 : index
    %c0_159 = arith.constant 0 : index
    %c0_160 = arith.constant 0 : index
    %248 = vector.load %arg29[%c0_158, %c0_159, %c0_160] : memref<4x200x200xf32, #tpu.memory_space<vmem>>, vector<1x200x200xf32>
    %249 = vector.shape_cast %248 : vector<1x200x200xf32> to vector<200x200xf32>
    %250 = vector.broadcast %247 : vector<200x1xf32> to vector<200x200xf32>
    %251 = arith.mulf %250, %249 : vector<200x200xf32>
    %252 = vector.extract_strided_slice %246 {offsets = [0, 1], sizes = [200, 1], strides = [1, 1]} : vector<200x4xf32> to vector<200x1xf32>
    %c1_161 = arith.constant 1 : index
    %c0_162 = arith.constant 0 : index
    %c0_163 = arith.constant 0 : index
    %253 = vector.load %arg29[%c1_161, %c0_162, %c0_163] : memref<4x200x200xf32, #tpu.memory_space<vmem>>, vector<1x200x200xf32>
    %254 = vector.shape_cast %253 : vector<1x200x200xf32> to vector<200x200xf32>
    %255 = vector.broadcast %252 : vector<200x1xf32> to vector<200x200xf32>
    %256 = arith.mulf %255, %254 : vector<200x200xf32>
    %257 = arith.addf %251, %256 : vector<200x200xf32>
    %258 = vector.extract_strided_slice %246 {offsets = [0, 2], sizes = [200, 1], strides = [1, 1]} : vector<200x4xf32> to vector<200x1xf32>
    %c2_164 = arith.constant 2 : index
    %c0_165 = arith.constant 0 : index
    %c0_166 = arith.constant 0 : index
    %259 = vector.load %arg29[%c2_164, %c0_165, %c0_166] : memref<4x200x200xf32, #tpu.memory_space<vmem>>, vector<1x200x200xf32>
    %260 = vector.shape_cast %259 : vector<1x200x200xf32> to vector<200x200xf32>
    %261 = vector.broadcast %258 : vector<200x1xf32> to vector<200x200xf32>
    %262 = arith.mulf %261, %260 : vector<200x200xf32>
    %263 = arith.addf %257, %262 : vector<200x200xf32>
    %264 = vector.extract_strided_slice %246 {offsets = [0, 3], sizes = [200, 1], strides = [1, 1]} : vector<200x4xf32> to vector<200x1xf32>
    %c3_167 = arith.constant 3 : index
    %c0_168 = arith.constant 0 : index
    %c0_169 = arith.constant 0 : index
    %265 = vector.load %arg29[%c3_167, %c0_168, %c0_169] : memref<4x200x200xf32, #tpu.memory_space<vmem>>, vector<1x200x200xf32>
    %266 = vector.shape_cast %265 : vector<1x200x200xf32> to vector<200x200xf32>
    %267 = vector.broadcast %264 : vector<200x1xf32> to vector<200x200xf32>
    %268 = arith.mulf %267, %266 : vector<200x200xf32>
    %269 = arith.addf %263, %268 : vector<200x200xf32>
    %c0_170 = arith.constant 0 : index
    %c0_171 = arith.constant 0 : index
    %270 = vector.load %arg30[%c0_170, %c0_171] : memref<2x200xf32, #tpu.memory_space<vmem>>, vector<2x200xf32>
    %cst_172 = arith.constant dense<0.000000e+00> : vector<2x200xf32>
    %271 = tpu.matmul %270, %269, %cst_172 {dimension_numbers = #tpu.dot_dimension_numbers<[1], [0], [0], [1], [0, 0, 1, 1], [], []>} : vector<2x200xf32>, vector<200x200xf32>, vector<2x200xf32> -> vector<2x200xf32>
    %c0_173 = arith.constant 0 : index
    %c0_174 = arith.constant 0 : index
    %272 = vector.load %arg28[%c0_173, %c0_174] : memref<1x1xf32, #tpu.memory_space<vmem>>, vector<1x1xf32>
    %273 = vector.broadcast %272 : vector<1x1xf32> to vector<2x200xf32>
    %274 = arith.addf %271, %273 : vector<2x200xf32>
    %c0_175 = arith.constant 0 : index
    %c0_176 = arith.constant 0 : index
    %275 = vector.load %arg31[%c0_175, %c0_176] : memref<2x200xf32, #tpu.memory_space<vmem>>, vector<2x200xf32>
    tpu.vector_store %arg31[%c0_175, %c0_176], %274 {strides = array<i32>} : memref<2x200xf32, #tpu.memory_space<vmem>>, vector<2x200xf32>,
    return
  }
}

</mosaic_0001>

<bundles_post_ra>
// kernel: convdecoder_forward.1
= control target key start
LH: loop header
LB: loop body
LE: loop exit
PB: predicated region body
PF: predicated region fallthrough
CT: control target
= control target key end

     0   :  { %s11463_s6 = smov 1   ;;  %s11464_s10 = smov 2   ;;  %s14422_s0 = inlined_call_operand.smem [shape: u32[32], index: -1, kind: input, shape index: {}] }
   0x1   :  { %s11535_s5 = sld [smem:[%s14422_s0]]   ;;  %s11465_s14 = smov 3  }
   0x2   :  { %s11540_s9 = sld [smem:[%s14422_s0 + %s11463_s6]]   ;;  %s11466_s18 = smov 4  }
   0x3   :  { %s11545_s13 = sld [smem:[%s14422_s0 + %s11464_s10]]   ;;  %s11467_s22 = smov 5  }
   0x4   :  { %s11550_s17 = sld [smem:[%s14422_s0 + %s11465_s14]]   ;;  %s11468_s26 = smov 6  }
   0x5   :  { %s11555_s21 = sld [smem:[%s14422_s0 + %s11466_s18]]   ;;  %s11469_s30 = smov 7  }
   0x6   :  { %s11560_s25 = sld [smem:[%s14422_s0 + %s11467_s22]]   ;;  %s11470_s4 = smov 8  }
   0x7   :  { %s11565_s29 = sld [smem:[%s14422_s0 + %s11468_s26]]   ;;  %s11471_s10 = smov 9  }
   0x8   :  { %14432 = sst [smem:[#allocation35_spill]] %s11540_s9  ;;  %s11472_s15 = smov 10  }
   0x9   :  { %s11570_s3 = sld [smem:[%s14422_s0 + %s11469_s30]]   ;;  %s11473_s20 = smov 11  }
   0xa   :  { %s11575_s8 = sld [smem:[%s14422_s0 + %s11470_s4]]   ;;  %s11474_s26 = smov 12  }
   0xb   :  { %s11580_s14 = sld [smem:[%s14422_s0 + %s11471_s10]]   ;;  %s11475_s1 = smov 13  }
   0xc   :  { %14433 = sst [smem:[#allocation36_spill]] %s11560_s25  ;;  %s11476_s7 = smov 14  }
   0xd   :  { %14434 = sst [smem:[#allocation37_spill]] %s11565_s29  ;;  %s11478_s22 = smov 16  }
   0xe   :  { %s11585_s19 = sld [smem:[%s14422_s0 + %s11472_s15]]   ;;  %s11477_s15 = smov 15  }
   0xf   :  { %14435 = sst [smem:[#allocation38_spill]] %s11570_s3  ;;  %s11479_s28 = smov 17  }
  0x10   :  { %s11590_s24 = sld [smem:[%s14422_s0 + %s11473_s20]]   ;;  %s11492_s10 = smov 30  }
  0x11   :  { %s11595_s30 = sld [smem:[%s14422_s0 + %s11474_s26]]   ;;  %s11493_s16 = smov 31  }
  0x12   :  { %s11600_s6 = sld [smem:[%s14422_s0 + %s11475_s1]]   ;;  %s11491_s1 = smov 29  }
  0x13   :  { %s11605_s12 = sld [smem:[%s14422_s0 + %s11476_s7]]   ;;  %s11480_s7 = smov 18  }
  0x14   :  { %s11610_s20 = sld [smem:[%s14422_s0 + %s11477_s15]]   ;;  %s11481_s15 = smov 19  }
  0x15   :  { %s11615_s27 = sld [smem:[%s14422_s0 + %s11478_s22]]   ;;  %s11482_s22 = smov 20  }
  0x16   :  { %14436 = sst [smem:[#allocation39_spill]] %s11590_s24 }
  0x17   :  { %14437 = sst [smem:[#allocation40_spill]] %s11595_s30 }
  0x18   :  { %s11620_s4 = sld [smem:[%s14422_s0 + %s11479_s28]]   ;;  %s11483_s28 = smov 21  }
  0x19   :  { %s11625_s30 = sld [smem:[%s14422_s0 + %s11480_s7]]   ;;  %s11484_s7 = smov 22  }
  0x1a   :  { %s11630_s24 = sld [smem:[%s14422_s0 + %s11481_s15]]   ;;  %s11485_s15 = smov 23  }
  0x1b   :  { %14438 = sst [smem:[#allocation41_spill]] %s11615_s27 }
  0x1c   :  { %s11635_s27 = sld [smem:[%s14422_s0 + %s11482_s22]]   ;;  %s11486_s22 = smov 24  }
  0x1d   :  { %s11645_s29 = sld [smem:[%s14422_s0 + %s11484_s7]]   ;;  %s11488_s7 = smov 26  }
  0x1e   :  { %14439 = sst [smem:[#allocation42_spill]] %s11620_s4 }
  0x1f   :  { %s11640_s4 = sld [smem:[%s14422_s0 + %s11483_s28]]   ;;  %s11487_s28 = smov 25  }
  0x20   :  { %s11650_s25 = sld [smem:[%s14422_s0 + %s11485_s15]]   ;;  %s11489_s15 = smov 27  }
  0x21   :  { %s11655_s3 = sld [smem:[%s14422_s0 + %s11486_s22]]   ;;  %s11490_s22 = smov 28  }
  0x22   :  { %s11683_s9 = sld [smem:[%s14422_s0 + %s11492_s10]]  }
  0x23   :  { %14441 = sst [smem:[#allocation44_spill]] %s11645_s29 }
  0x24   :  { %s11665_s29 = sld [smem:[%s14422_s0 + %s11488_s7]]  }
  0x25   :  { %14440 = sst [smem:[#allocation43_spill]] %s11640_s4 }
  0x26   :  { %14442 = sst [smem:[#allocation45_spill]] %s11650_s25 }
  0x27   :  { %14443 = sst [smem:[#allocation46_spill]] %s11655_s3 }
  0x28   :  { %s11660_s4 = sld [smem:[%s14422_s0 + %s11487_s28]]  }
  0x29   :  { %s11670_s25 = sld [smem:[%s14422_s0 + %s11489_s15]]  }
  0x2a   :  { %s8232_s3 = sld [smem:[%s14422_s0 + %s11490_s22]]  }
  0x2e   :  { %14444 = sst [smem:[#allocation47_spill]] %s11660_s4 }
  0x2f   :  { %14445 = sst [smem:[#allocation48_spill]] %s11670_s25 }
  0x30   :  { %s11678_s4 = sld [smem:[%s14422_s0 + %s11491_s1]]   ;;  %v68_v0 = vstv %s8232_s3 }
  0x31   :  { %s11688_s25 = sld [smem:[%s14422_s0 + %s11493_s16]]   ;;  %69 = vst [vmem:[#allocation3] sm:$0x1] %v68_v0 }
  0x32   :  { %70 = vsyncpa [#allocation5], 0 }
  0x33   :  { %71 = vsyncpa [#allocation7], 0 }
  0x34   :  { %72 = vsyncpa [#allocation10], 0 }
  0x35   :  { %73 = vsyncpa [#allocation13], 0 }
  0x36   :  { %74 = vsyncpa [#allocation16], 0 }
  0x37   :  { %75 = vsyncpa [#allocation19], 0 }
  0x38   :  { %76 = vsyncpa [#allocation22], 0 }
  0x39   :  { %77 = vsyncpa [#allocation25], 0  ;;  %s11494_s22 = smov [#allocation6]   ;;  %s11495_s26 = smov [#allocation9]  }
  0x3a   :  { %s96_s23 = sshll.u32 %s11494_s22, 4  ;;  %s118_s1 = sshll.u32 %s11495_s26, 4  ;;  %s97_s23 = int_to_ptr.vmem [resolvable:$true] %s96_s23  ;;  %s119_s1 = int_to_ptr.vmem [resolvable:$true] %s118_s1 }
  0x3b   :  { %s11117_s0 = scalar_lea.hbm %s11545_s13, 16 }
  0x3c   :  { %p11118_p0 = scmp.ne.s32.totalorder %s11545_s13, %s11117_s0  ;;  %p11121_p1 = scmp.lt.u32.totalorder %s11117_s0, %s11545_s13 }
  0x3e   :  { %p11123_p2 = pnand %p11121_p1, %p11118_p0 }
  0x40   :  { %11126 = shalt.err (!%p11123_p2)
}
  0x41   :  { %s11127_s3 = scalar_lea.vmem %s97_s23, 16  ;;  %s11131_s28 = scalar_lea.vmem %s97_s23, 32 }
  0x42   :  { %p11128_p3 = scmp.ne.s32.totalorder %s97_s23, %s11127_s3  ;;  %p11132_p4 = scmp.lt.s32.totalorder %s97_s23, %s97_s23 }
  0x43   :  { %p11133_p5 = scmp.lt.s32.totalorder %s11131_s28, %s11127_s3 }
  0x45   :  { %p11134_p6 = por %p11133_p5, %p11132_p4 }
  0x47   :  { %p11135_p7 = pnand %p11134_p6, %p11128_p3 }
  0x49   :  { %11138 = shalt.err (!%p11135_p7)
}
  0x4a   :  { %99 = dma.hbm_to_vmem [thread:$0]  %s11545_s13, 16, %s97_s23, [#allocation7]  }
  0x4b   :  { %s11139_s2 = scalar_lea.hbm %s11555_s21, 384 }
  0x4c   :  { %p11140_p8 = scmp.ne.s32.totalorder %s11555_s21, %s11139_s2  ;;  %p11143_p9 = scmp.lt.u32.totalorder %s11139_s2, %s11555_s21 }
  0x4e   :  { %p11145_p10 = pnand %p11143_p9, %p11140_p8 }
  0x50   :  { %11148 = shalt.err (!%p11145_p10)
}
  0x51   :  { %s11149_s10 = scalar_lea.vmem %s119_s1, 384  ;;  %p11154_p12 = scmp.lt.s32.totalorder %s119_s1, %s119_s1 }
  0x52   :  { %p11150_p11 = scmp.ne.s32.totalorder %s119_s1, %s11149_s10  ;;  %p11155_p13 = scmp.lt.s32.totalorder %s11149_s10, %s11149_s10 }
  0x54   :  { %p11156_p0 = por %p11155_p13, %p11154_p12 }
  0x56   :  { %p11157_p1 = pnand %p11156_p0, %p11150_p11 }
  0x58   :  { %11160 = shalt.err (!%p11157_p1)
}
  0x59   :  { %121 = dma.hbm_to_vmem [thread:$0]  %s11555_s21, 384, %s119_s1, [#allocation10]  }
  0x5a   :  { %s11496_s7 = smov [#allocation12]   ;;  %s11497_s13 = smov [#allocation15]  }
  0x5b   :  { %s144_s11 = sshll.u32 %s11496_s7, 4  ;;  %s168_s16 = sshll.u32 %s11497_s13, 4  ;;  %s145_s11 = int_to_ptr.vmem [resolvable:$true] %s144_s11  ;;  %s169_s16 = int_to_ptr.vmem [resolvable:$true] %s168_s16 }
  0x5c   :  { %s11161_s15 = scalar_lea.hbm %s11580_s14, 16 }
  0x5d   :  { %p11162_p2 = scmp.ne.s32.totalorder %s11580_s14, %s11161_s15  ;;  %p11165_p3 = scmp.lt.u32.totalorder %s11161_s15, %s11580_s14 }
  0x5f   :  { %p11167_p4 = pnand %p11165_p3, %p11162_p2 }
  0x61   :  { %11170 = shalt.err (!%p11167_p4)
}
  0x62   :  { %s11171_s18 = scalar_lea.vmem %s145_s11, 16  ;;  %s11175_s22 = scalar_lea.vmem %s145_s11, 32 }
  0x63   :  { %p11172_p5 = scmp.ne.s32.totalorder %s145_s11, %s11171_s18  ;;  %p11176_p6 = scmp.lt.s32.totalorder %s145_s11, %s145_s11 }
  0x64   :  { %p11177_p7 = scmp.lt.s32.totalorder %s11175_s22, %s11171_s18 }
  0x66   :  { %p11178_p8 = por %p11177_p7, %p11176_p6 }
  0x68   :  { %p11179_p9 = pnand %p11178_p8, %p11172_p5 }
  0x6a   :  { %11182 = shalt.err (!%p11179_p9)
}
  0x6b   :  { %147 = dma.hbm_to_vmem [thread:$0]  %s11580_s14, 16, %s145_s11, [#allocation13]  }
  0x6c   :  { %s11183_s21 = scalar_lea.hbm %s11600_s6, 16 }
  0x6d   :  { %p11184_p10 = scmp.ne.s32.totalorder %s11600_s6, %s11183_s21  ;;  %p11187_p11 = scmp.lt.u32.totalorder %s11183_s21, %s11600_s6 }
  0x6f   :  { %p11189_p12 = pnand %p11187_p11, %p11184_p10 }
  0x71   :  { %11192 = shalt.err (!%p11189_p12)
}
  0x72   :  { %s11193_s23 = scalar_lea.vmem %s169_s16, 16  ;;  %s11197_s26 = scalar_lea.vmem %s169_s16, 32 }
  0x73   :  { %p11194_p13 = scmp.ne.s32.totalorder %s169_s16, %s11193_s23  ;;  %p11198_p0 = scmp.lt.s32.totalorder %s169_s16, %s169_s16 }
  0x74   :  { %p11199_p1 = scmp.lt.s32.totalorder %s11197_s26, %s11193_s23 }
  0x76   :  { %p11200_p2 = por %p11199_p1, %p11198_p0 }
  0x78   :  { %p11201_p3 = pnand %p11200_p2, %p11194_p13 }
  0x7a   :  { %11204 = shalt.err (!%p11201_p3)
}
  0x7b   :  { %171 = dma.hbm_to_vmem [thread:$0]  %s11600_s6, 16, %s169_s16, [#allocation16]  }
  0x7c   :  { %s11498_s1 = smov [#allocation18]   ;;  %s11499_s0 = smov [#allocation21]  }
  0x7d   :  { %s188_s14 = sshll.u32 %s11498_s1, 4  ;;  %s212_s3 = sshll.u32 %s11499_s0, 4  ;;  %s189_s14 = int_to_ptr.vmem [resolvable:$true] %s188_s14  ;;  %s213_s3 = int_to_ptr.vmem [resolvable:$true] %s212_s3 }
  0x7e   :  { %s11205_s28 = scalar_lea.hbm %s11610_s20, 16 }
  0x7f   :  { %p11206_p4 = scmp.ne.s32.totalorder %s11610_s20, %s11205_s28  ;;  %p11209_p5 = scmp.lt.u32.totalorder %s11205_s28, %s11610_s20 }
  0x81   :  { %p11211_p6 = pnand %p11209_p5, %p11206_p4 }
  0x83   :  { %11214 = shalt.err (!%p11211_p6)
}
  0x84   :  { %s11215_s2 = scalar_lea.vmem %s189_s14, 16  ;;  %s11219_s10 = scalar_lea.vmem %s189_s14, 32 }
  0x85   :  { %p11216_p7 = scmp.ne.s32.totalorder %s189_s14, %s11215_s2  ;;  %p11220_p8 = scmp.lt.s32.totalorder %s189_s14, %s189_s14 }
  0x86   :  { %p11221_p9 = scmp.lt.s32.totalorder %s11219_s10, %s11215_s2 }
  0x88   :  { %p11222_p10 = por %p11221_p9, %p11220_p8 }
  0x8a   :  { %p11223_p11 = pnand %p11222_p10, %p11216_p7 }
  0x8c   :  { %11226 = shalt.err (!%p11223_p11)
}
  0x8d   :  { %191 = dma.hbm_to_vmem [thread:$0]  %s11610_s20, 16, %s189_s14, [#allocation19]  }
  0x8e   :  { %s11227_s6 = scalar_lea.hbm %s11630_s24, 16 }
  0x8f   :  { %p11228_p12 = scmp.ne.s32.totalorder %s11630_s24, %s11227_s6  ;;  %p11231_p13 = scmp.lt.u32.totalorder %s11227_s6, %s11630_s24 }
  0x91   :  { %p11233_p0 = pnand %p11231_p13, %p11228_p12 }
  0x93   :  { %11236 = shalt.err (!%p11233_p0)
}
  0x94   :  { %s11237_s7 = scalar_lea.vmem %s213_s3, 16  ;;  %s11241_s11 = scalar_lea.vmem %s213_s3, 32 }
  0x95   :  { %p11238_p1 = scmp.ne.s32.totalorder %s213_s3, %s11237_s7  ;;  %p11242_p2 = scmp.lt.s32.totalorder %s213_s3, %s213_s3 }
  0x96   :  { %p11243_p3 = scmp.lt.s32.totalorder %s11241_s11, %s11237_s7 }
  0x98   :  { %p11244_p4 = por %p11243_p3, %p11242_p2 }
  0x9a   :  { %p11245_p5 = pnand %p11244_p4, %p11238_p1 }
  0x9c   :  { %11248 = shalt.err (!%p11245_p5)
}
  0x9d   :  { %215 = dma.hbm_to_vmem [thread:$0]  %s11630_s24, 16, %s213_s3, [#allocation22]  }
  0x9e   :  { %s11500_s13 = smov [#allocation24]   ;;  %s11249_s16 = scalar_lea.hbm %s11665_s29, 12800 }
  0x9f   :  { %s241_s20 = sshll.u32 %s11500_s13, 4  ;;  %p11250_p6 = scmp.ne.s32.totalorder %s11665_s29, %s11249_s16  ;;  %s242_s20 = int_to_ptr.vmem [resolvable:$true] %s241_s20 }
  0xa0   :  { %p11253_p7 = scmp.lt.u32.totalorder %s11249_s16, %s11665_s29 }
  0xa2   :  { %p11255_p8 = pnand %p11253_p7, %p11250_p6 }
  0xa4   :  { %11258 = shalt.err (!%p11255_p8)
}
  0xa5   :  { %s11259_s15 = scalar_lea.vmem %s242_s20, 12800  ;;  %p11264_p10 = scmp.lt.s32.totalorder %s242_s20, %s242_s20 }
  0xa6   :  { %p11260_p9 = scmp.ne.s32.totalorder %s242_s20, %s11259_s15  ;;  %p11265_p11 = scmp.lt.s32.totalorder %s11259_s15, %s11259_s15 }
  0xa8   :  { %p11266_p12 = por %p11265_p11, %p11264_p10 }
  0xaa   :  { %p11267_p13 = pnand %p11266_p12, %p11260_p9 }
  0xac   :  { %11270 = shalt.err (!%p11267_p13)
}
  0xad   :  { %s11501_s18 = smov 128   ;;  %s11502_s24 = smov 8  }
  0xae   :  { %247 = dma.hbm_to_vmem [thread:$0]  %s11665_s29, 12800, %s242_s20, [#allocation25], %s11501_s18, %s11501_s18, %s11502_s24  }
  0xaf   :  { %s11503_s22 = smov [#allocation4]   ;;  %s11504_s23 = smov [#allocation8]  }
  0xb0   :  { %s84_s21 = sshll.u32 %s11503_s22, 4  ;;  %s105_s26 = sshll.u32 %s11504_s23, 4  ;;  %s85_s21 = int_to_ptr.vmem [resolvable:$true] %s84_s21  ;;  %s106_s26 = int_to_ptr.vmem [resolvable:$true] %s105_s26 }
  0xb1   :  { %s11271_s1 = scalar_lea.hbm %s11535_s5, 32 }
  0xb2   :  { %p11272_p0 = scmp.ne.s32.totalorder %s11535_s5, %s11271_s1  ;;  %p11275_p1 = scmp.lt.u32.totalorder %s11271_s1, %s11535_s5 }
  0xb4   :  { %p11277_p2 = pnand %p11275_p1, %p11272_p0 }
  0xb6   :  { %11280 = shalt.err (!%p11277_p2)
}
  0xb7   :  { %s11281_s14 = scalar_lea.vmem %s85_s21, 32  ;;  %p11286_p4 = scmp.lt.s32.totalorder %s85_s21, %s85_s21 }
  0xb8   :  { %p11282_p3 = scmp.ne.s32.totalorder %s85_s21, %s11281_s14  ;;  %p11287_p5 = scmp.lt.s32.totalorder %s11281_s14, %s11281_s14 }
  0xba   :  { %p11288_p6 = por %p11287_p5, %p11286_p4 }
  0xbc   :  { %p11289_p7 = pnand %p11288_p6, %p11282_p3 }
  0xbe   :  { %11292 = shalt.err (!%p11289_p7)
}
  0xbf   :  { %87 = dma.hbm_to_vmem [thread:$0]  %s11535_s5, 32, %s85_s21, [#allocation5]  }
  0xc0   :  { %s11293_s29 = scalar_lea.hbm %s11550_s17, 24576 }
  0xc1   :  { %p11294_p8 = scmp.ne.s32.totalorder %s11550_s17, %s11293_s29  ;;  %p11297_p9 = scmp.lt.u32.totalorder %s11293_s29, %s11550_s17 }
  0xc3   :  { %p11299_p10 = pnand %p11297_p9, %p11294_p8 }
  0xc5   :  { %11302 = shalt.err (!%p11299_p10)
}
  0xc6   :  { %s11303_s0 = scalar_lea.vmem %s106_s26, 24576  ;;  %p11308_p12 = scmp.lt.s32.totalorder %s106_s26, %s106_s26 }
  0xc7   :  { %p11304_p11 = scmp.ne.s32.totalorder %s106_s26, %s11303_s0  ;;  %p11309_p13 = scmp.lt.s32.totalorder %s11303_s0, %s11303_s0 }
  0xc9   :  { %p11310_p0 = por %p11309_p13, %p11308_p12 }
  0xcb   :  { %p11311_p1 = pnand %p11310_p0, %p11304_p11 }
  0xcd   :  { %11314 = shalt.err (!%p11311_p1)
}
  0xce   :  { %s11505_s3 = smov 3072   ;;  %s11506_s28 = smov 192  }
  0xcf   :  { %111 = dma.hbm_to_vmem [thread:$0]  %s11550_s17, 24576, %s106_s26, [#allocation7], %s11505_s3, %s11505_s3, %s11506_s28  }
  0xd0   :  { %s11507_s5 = smov [#allocation11]   ;;  %s11508_s10 = smov [#allocation14]  }
  0xd1   :  { %s134_s2 = sshll.u32 %s11507_s5, 4  ;;  %s154_s6 = sshll.u32 %s11508_s10, 4  ;;  %s135_s2 = int_to_ptr.vmem [resolvable:$true] %s134_s2  ;;  %s155_s6 = int_to_ptr.vmem [resolvable:$true] %s154_s6 }
  0xd2   :  { %s11315_s7 = scalar_lea.hbm %s11575_s8, 16 }
  0xd3   :  { %p11316_p2 = scmp.ne.s32.totalorder %s11575_s8, %s11315_s7  ;;  %p11319_p3 = scmp.lt.u32.totalorder %s11315_s7, %s11575_s8 }
  0xd5   :  { %p11321_p4 = pnand %p11319_p3, %p11316_p2 }
  0xd7   :  { %11324 = shalt.err (!%p11321_p4)
}
  0xd8   :  { %s11325_s11 = scalar_lea.vmem %s135_s2, 16  ;;  %s11329_s13 = scalar_lea.vmem %s135_s2, 32 }
  0xd9   :  { %p11326_p5 = scmp.ne.s32.totalorder %s135_s2, %s11325_s11  ;;  %p11330_p6 = scmp.lt.s32.totalorder %s135_s2, %s135_s2 }
  0xda   :  { %p11331_p7 = scmp.lt.s32.totalorder %s11329_s13, %s11325_s11 }
  0xdc   :  { %p11332_p8 = por %p11331_p7, %p11330_p6 }
  0xde   :  { %p11333_p9 = pnand %p11332_p8, %p11326_p5 }
  0xe0   :  { %11336 = shalt.err (!%p11333_p9)
}
  0xe1   :  { %137 = dma.hbm_to_vmem [thread:$0]  %s11575_s8, 16, %s135_s2, [#allocation10]  }
  0xe2   :  { %s11337_s17 = scalar_lea.hbm %s11585_s19, 16 }
  0xe3   :  { %p11338_p10 = scmp.ne.s32.totalorder %s11585_s19, %s11337_s17  ;;  %p11341_p11 = scmp.lt.u32.totalorder %s11337_s17, %s11585_s19 }
  0xe5   :  { %p11343_p12 = pnand %p11341_p11, %p11338_p10 }
  0xe7   :  { %11346 = shalt.err (!%p11343_p12)
}
  0xe8   :  { %s11347_s20 = scalar_lea.vmem %s155_s6, 16  ;;  %s11351_s16 = scalar_lea.vmem %s155_s6, 32 }
  0xe9   :  { %p11348_p13 = scmp.ne.s32.totalorder %s155_s6, %s11347_s20  ;;  %p11352_p0 = scmp.lt.s32.totalorder %s155_s6, %s155_s6 }
  0xea   :  { %p11353_p1 = scmp.lt.s32.totalorder %s11351_s16, %s11347_s20 }
  0xec   :  { %p11354_p2 = por %p11353_p1, %p11352_p0 }
  0xee   :  { %p11355_p3 = pnand %p11354_p2, %p11348_p13 }
  0xf0   :  { %11358 = shalt.err (!%p11355_p3)
}
  0xf1   :  { %157 = dma.hbm_to_vmem [thread:$0]  %s11585_s19, 16, %s155_s6, [#allocation13]  }
  0xf2   :  { %s11509_s8 = smov [#allocation17]   ;;  %s11510_s18 = smov [#allocation20]  }
  0xf3   :  { %s178_s15 = sshll.u32 %s11509_s8, 4  ;;  %s202_s24 = sshll.u32 %s11510_s18, 4  ;;  %s179_s15 = int_to_ptr.vmem [resolvable:$true] %s178_s15  ;;  %s203_s24 = int_to_ptr.vmem [resolvable:$true] %s202_s24 }
  0xf4   :  { %s11359_s22 = scalar_lea.hbm %s11605_s12, 16 }
  0xf5   :  { %p11360_p4 = scmp.ne.s32.totalorder %s11605_s12, %s11359_s22  ;;  %p11363_p5 = scmp.lt.u32.totalorder %s11359_s22, %s11605_s12 }
  0xf7   :  { %p11365_p6 = pnand %p11363_p5, %p11360_p4 }
  0xf9   :  { %11368 = shalt.err (!%p11365_p6)
}
  0xfa   :  { %s11369_s21 = scalar_lea.vmem %s179_s15, 16  ;;  %s11373_s23 = scalar_lea.vmem %s179_s15, 32 }
  0xfb   :  { %p11370_p7 = scmp.ne.s32.totalorder %s179_s15, %s11369_s21  ;;  %p11374_p8 = scmp.lt.s32.totalorder %s179_s15, %s179_s15 }
  0xfc   :  { %p11375_p9 = scmp.lt.s32.totalorder %s11373_s23, %s11369_s21 }
  0xfe   :  { %p11376_p10 = por %p11375_p9, %p11374_p8 }
 0x100   :  { %p11377_p11 = pnand %p11376_p10, %p11370_p7 }
 0x102   :  { %11380 = shalt.err (!%p11377_p11)
}
 0x103   :  { %181 = dma.hbm_to_vmem [thread:$0]  %s11605_s12, 16, %s179_s15, [#allocation16]  }
 0x104   :  { %s11381_s19 = scalar_lea.hbm %s11625_s30, 16 }
 0x105   :  { %p11382_p12 = scmp.ne.s32.totalorder %s11625_s30, %s11381_s19  ;;  %p11385_p13 = scmp.lt.u32.totalorder %s11381_s19, %s11625_s30 }
 0x107   :  { %p11387_p0 = pnand %p11385_p13, %p11382_p12 }
 0x109   :  { %11390 = shalt.err (!%p11387_p0)
}
 0x10a   :  { %s11391_s26 = scalar_lea.vmem %s203_s24, 16  ;;  %s11395_s1 = scalar_lea.vmem %s203_s24, 32 }
 0x10b   :  { %p11392_p1 = scmp.ne.s32.totalorder %s203_s24, %s11391_s26  ;;  %p11396_p2 = scmp.lt.s32.totalorder %s203_s24, %s203_s24 }
 0x10c   :  { %p11397_p3 = scmp.lt.s32.totalorder %s11395_s1, %s11391_s26 }
 0x10e   :  { %p11398_p4 = por %p11397_p3, %p11396_p2 }
 0x110   :  { %p11399_p5 = pnand %p11398_p4, %p11392_p1 }
 0x112   :  { %11402 = shalt.err (!%p11399_p5)
}
 0x113   :  { %205 = dma.hbm_to_vmem [thread:$0]  %s11625_s30, 16, %s203_s24, [#allocation19]  }
 0x114   :  { %s11511_s12 = smov [#allocation23]   ;;  %s11512_s29 = smov [#allocation26]  }
 0x115   :  { %s222_s14 = sshll.u32 %s11511_s12, 4  ;;  %s257_s0 = sshll.u32 %s11512_s29, 4  ;;  %s223_s14 = int_to_ptr.vmem [resolvable:$true] %s222_s14  ;;  %s258_s0 = int_to_ptr.vmem [resolvable:$true] %s257_s0 }
 0x116   :  { %s11403_s3 = scalar_lea.hbm %s11635_s27, 16 }
 0x117   :  { %p11404_p6 = scmp.ne.s32.totalorder %s11635_s27, %s11403_s3  ;;  %p11407_p7 = scmp.lt.u32.totalorder %s11403_s3, %s11635_s27 }
 0x119   :  { %p11409_p8 = pnand %p11407_p7, %p11404_p6 }
 0x11b   :  { %11412 = shalt.err (!%p11409_p8)
}
 0x11c   :  { %s11413_s28 = scalar_lea.vmem %s223_s14, 16  ;;  %s11417_s5 = scalar_lea.vmem %s223_s14, 32 }
 0x11d   :  { %p11414_p9 = scmp.ne.s32.totalorder %s223_s14, %s11413_s28  ;;  %p11418_p10 = scmp.lt.s32.totalorder %s223_s14, %s223_s14 }
 0x11e   :  { %p11419_p11 = scmp.lt.s32.totalorder %s11417_s5, %s11413_s28 }
 0x120   :  { %p11420_p12 = por %p11419_p11, %p11418_p10 }
 0x122   :  { %p11421_p13 = pnand %p11420_p12, %p11414_p9 }
 0x124   :  { %11424 = shalt.err (!%p11421_p13)
}
 0x125   :  { %225 = dma.hbm_to_vmem [thread:$0]  %s11635_s27, 16, %s223_s14, [#allocation22]  }
 0x126   :  { %s11425_s30 = scalar_lea.hbm %s11678_s4, 25600 }
 0x127   :  { %p11426_p0 = scmp.ne.s32.totalorder %s11678_s4, %s11425_s30  ;;  %p11429_p1 = scmp.lt.u32.totalorder %s11425_s30, %s11678_s4 }
 0x129   :  { %p11431_p2 = pnand %p11429_p1, %p11426_p0 }
 0x12b   :  { %11434 = shalt.err (!%p11431_p2)
}
 0x12c   :  { %s11435_s2 = scalar_lea.vmem %s258_s0, 25600  ;;  %p11440_p4 = scmp.lt.s32.totalorder %s258_s0, %s258_s0 }
 0x12d   :  { %p11436_p3 = scmp.ne.s32.totalorder %s258_s0, %s11435_s2  ;;  %p11441_p5 = scmp.lt.s32.totalorder %s11435_s2, %s11435_s2 }
 0x12f   :  { %p11442_p6 = por %p11441_p5, %p11440_p4 }
 0x131   :  { %p11443_p7 = pnand %p11442_p6, %p11436_p3 }
 0x133   :  { %11446 = shalt.err (!%p11443_p7)
}
 0x134   :  { %s11513_s10 = smov 256   ;;  %s11514_s6 = smov 16  }
 0x135   :  { %263 = dma.hbm_to_vmem [thread:$0]  %s11678_s4, 25600, %s258_s0, [#allocation25], %s11513_s10, %s11513_s10, %s11514_s6  }
 0x136   :  { %11447 = dma.done.wait [#allocation5], 32  }
 0x137   :  { %11448 = vsyncadd [#allocation5], 4294967264 }
 0x138   :  { %11449 = dma.done.wait [#allocation7], 24592  }
 0x139   :  { %11450 = vsyncadd [#allocation7], 4294942704 }
 0x13a   :  { %11451 = dma.done.wait [#allocation10], 400  }
 0x13b   :  { %11452 = vsyncadd [#allocation10], 4294966896 }
 0x13c   :  { %11453 = dma.done.wait [#allocation13], 32  }
 0x13d   :  { %11454 = vsyncadd [#allocation13], 4294967264 }
 0x13e   :  { %11455 = dma.done.wait [#allocation16], 32  }
 0x13f   :  { %11456 = vsyncadd [#allocation16], 4294967264 }
 0x140   :  { %11457 = dma.done.wait [#allocation19], 32  }
 0x141   :  { %11458 = vsyncadd [#allocation19], 4294967264 }
 0x142   :  { %11459 = dma.done.wait [#allocation22], 32  }
 0x143   :  { %11460 = vsyncadd [#allocation22], 4294967264 }
 0x144   :  { %11461 = dma.done.wait [#allocation25], 38400  }
 0x145   :  { %11462 = vsyncadd [#allocation25], 4294928896  ;;  %s14446_s27 = sld [smem:[#allocation35_spill]]  ;;  %v11515_v1 = vmov 0.0|0.0   ;;  %vm11516_vm0 = vmmov 0   ;;  %v11517_v2 = vmov 0.0  }
 0x146   :  { %10041 = vmatprep.subr.bf16.mxu0 %v11515_v1  ;;  %9027 = vmatprep.mubr.msk.f32.mxu0 %vm11516_vm0, %v11517_v2  ;;  %v406_v11 = vld [vmem:[#allocation8 + $0x8] sm:$0xff]  ;;  %v405_v16 = vld [vmem:[#allocation8] sm:$0xff]  ;;  %v311_v58 = vld [vmem:[#allocation4] sm:$0x3]  ;;  %vm723_vm1 = vcmask 523264   ;;  %s14447_s4 = sld [smem:[#allocation38_spill]] }
 0x147   :  { %791 = vmatprep.mubr.f32.mxu1 %v11517_v2  ;;  %v430_v12 = vld [vmem:[#allocation8 + $0xc8] sm:$0xff]  ;;  %v429_v17 = vld [vmem:[#allocation8 + $0xc0] sm:$0xff]  ;;  %vm1661_vm2 = vcmask 1043456   ;;  %s14448_s7 = sld [smem:[#allocation36_spill]]  ;;  %s14449_s11 = sld [smem:[#allocation37_spill]]  ;;  %vm11518_vm3 = vmmov 1  }
 0x148   :  { %v10065_v15 = vpack.c.bf16 %v430_v12, %v406_v11  ;;  %v10067_v19 = vpack.c.bf16 %v429_v17, %v405_v16  ;;  %v454_v20 = vld [vmem:[#allocation8 + $0x188] sm:$0xff]  ;;  %v453_v23 = vld [vmem:[#allocation8 + $0x180] sm:$0xff]  ;;  %s14450_s13 = sld [smem:[#allocation39_spill]]  ;;  %vm12245_vm4 = vmpackc.low %vm1661_vm2, %vm11518_vm3  ;;  %vm2403_vm5 = vcmask 97280   ;;  %s14453_s17 = sld [smem:[#allocation40_spill]]  ;;  %vm3086_vm6 = vcmask 195584  }
 0x149   :  { %v478_v21 = vld [vmem:[#allocation8 + $0x248] sm:$0xff]  ;;  %v477_v24 = vld [vmem:[#allocation8 + $0x240] sm:$0xff]  ;;  %s14454_s20 = sld [smem:[#allocation41_spill]]  ;;  %s11519_s16 = smov 64   ;;  %vm3776_vm7 = vcmask 517120   ;;  %vm4085_vm8 = vcmask 1041408  }
 0x14a   :  { %10066 = vmatprep.subr.bf16.mxu1 %v10065_v15  ;;  %v10069_v22 = vpack.c.bf16 %v478_v21, %v454_v20  ;;  %v10071_v27 = vpack.c.bf16 %v477_v24, %v453_v23  ;;  %v502_v28 = vld [vmem:[#allocation8 + $0x308] sm:$0xff]  ;;  %v501_v32 = vld [vmem:[#allocation8 + $0x300] sm:$0xff]  ;;  %v432_v15 = vld [vmem:[#allocation8 + $0xd8] sm:$0xff]  ;;  %s14455_s8 = sld [smem:[#allocation42_spill]]  ;;  %s11520_s15 = smov 96   ;;  %vm4045_vm9 = vcmask 408576  }
 0x14b   :  { %v312_v3 = vld [vmem:[%s14446_s27] sm:$0xff]  ;;  %v313_v4 = vld [vmem:[%s14446_s27 + $0x8] sm:$0xff]  ;;  %v314_v5 = vld [vmem:[%s14446_s27 + $0x10] sm:$0xff]  ;;  %10068 = vmatpush1.bf16.msra.mxu1 %v10067_v19  ;;  %s14456_s18 = sld [smem:[#allocation43_spill]]  ;;  %s11521_s24 = smov 32   ;;  %vm4847_vm10 = vcmask 261120  }
 0x14c   :  { %v10042_v6 = vpack.c.bf16 %v313_v4, %v312_v3  ;;  %v315_v7 = vld [vmem:[%s14446_s27 + $0x18] sm:$0xff]  ;;  %v316_v9 = vld [vmem:[%s14446_s27 + $0x20] sm:$0xff]  ;;  %v317_v10 = vld [vmem:[%s14446_s27 + $0x28] sm:$0xff]  ;;  %10070 = vmatprep.subr.bf16.mxu1 %v10069_v22  ;;  %s14457_s22 = sld [smem:[#allocation44_spill]]  ;;  %vm4871_vm11 = vcmask 257024   ;;  %vm5280_vm12 = vcmask 818176  }
 0x14d   :  { %v10045_v8 = vpack.c.bf16 %v315_v7, %v314_v5  ;;  %v10048_v13 = vpack.c.bf16 %v317_v10, %v316_v9  ;;  %v318_v14 = vld [vmem:[%s14446_s27 + $0x30] sm:$0xff]  ;;  %v319_v18 = vld [vmem:[%s14446_s27 + $0x38] sm:$0xff]  ;;  %v320_v26 = vld [vmem:[%s14446_s27 + $0x40] sm:$0xff]  ;;  %s14458_s21 = sld [smem:[#allocation45_spill]]  ;;  %s14459_s23 = sld [smem:[#allocation48_spill]]  ;;  %vm8105_vm13 = vcmask 588800  }
 0x14e   :  { %10043 = vmatpush3.bf16.msra.mxu0 %v10042_v6  ;;  %v10051_v25 = vpack.c.bf16 %v319_v18, %v318_v14  ;;  %v526_v29 = vld [vmem:[#allocation8 + $0x3c8] sm:$0xff]  ;;  %v525_v33 = vld [vmem:[#allocation8 + $0x3c0] sm:$0xff]  ;;  %v323_v42 = vld [vmem:[%s14446_s27 + $0x58] sm:$0xff]  ;;  %s14460_s19 = sld [smem:[#allocation46_spill]]  ;;  %s14461_s26 = sld [smem:[#allocation47_spill]]  ;;  %vm8190_vm14 = vcmask 584706  }
 0x14f   :  { %10044 = vmatprep.subr.bf16.mxu0 %v11515_v1  ;;  %v321_v30 = vld [vmem:[%s14446_s27 + $0x48] sm:$0xff]  ;;  %v10073_v31 = vpack.c.bf16 %v526_v29, %v502_v28  ;;  %10072 = vmatpush1.bf16.msra.mxu1 %v10071_v27  ;;  %v10075_v35 = vpack.c.bf16 %v525_v33, %v501_v32  ;;  %v322_v41 = vld [vmem:[%s14446_s27 + $0x50] sm:$0xff]  ;;  %v324_v45 = vld [vmem:[%s14446_s27 + $0x60] sm:$0xff] }
 0x150   :  { %v550_v34 = vld [vmem:[#allocation8 + $0x488] sm:$0xff]  ;;  %v10054_v37 = vpack.c.bf16 %v321_v30, %v320_v26  ;;  %v549_v39 = vld [vmem:[#allocation8 + $0x480] sm:$0xff]  ;;  %v10057_v44 = vpack.c.bf16 %v323_v42, %v322_v41  ;;  %v327_v49 = vld [vmem:[%s14446_s27 + $0x78] sm:$0xff] }
 0x151   :  { %v574_v36 = vld [vmem:[#allocation8 + $0x548] sm:$0xff]  ;;  %10074 = vmatprep.subr.bf16.mxu1 %v10073_v31  ;;  %v573_v40 = vld [vmem:[#allocation8 + $0x540] sm:$0xff]  ;;  %v408_v14 = vld [vmem:[#allocation8 + $0x18] sm:$0xff] }
 0x152   :  { %10046 = vmatpush3.bf16.msra.mxu0 %v10045_v8  ;;  %v10077_v38 = vpack.c.bf16 %v574_v36, %v550_v34  ;;  %v10079_v43 = vpack.c.bf16 %v573_v40, %v549_v39  ;;  %v325_v46 = vld [vmem:[%s14446_s27 + $0x68] sm:$0xff]  ;;  %v326_v48 = vld [vmem:[%s14446_s27 + $0x70] sm:$0xff]  ;;  %v10081_v17 = vpack.c.bf16 %v432_v15, %v408_v14  ;;  %v8236_v20 = vld [vmem:[#allocation6] ss:$0 sm:$0xff] }
 0x153   :  { %10047 = vmatprep.subr.bf16.mxu0 %v11515_v1  ;;  %10076 = vmatpush1.bf16.msra.mxu1 %v10075_v35  ;;  %v10060_v47 = vpack.c.bf16 %v325_v46, %v324_v45  ;;  %v410_v50 = vld [vmem:[#allocation8 + $0x28] sm:$0xff]  ;;  %v10063_v52 = vpack.c.bf16 %v327_v49, %v326_v48  ;;  %v409_v54 = vld [vmem:[#allocation8 + $0x20] sm:$0xff]  ;;  %v407_v21 = vld [vmem:[#allocation8 + $0x10] sm:$0xff] }
 0x154   :  { %10078 = vmatprep.subr.bf16.mxu1 %v10077_v38  ;;  %v434_v51 = vld [vmem:[#allocation8 + $0xe8] sm:$0xff]  ;;  %v433_v55 = vld [vmem:[#allocation8 + $0xe0] sm:$0xff]  ;;  %v431_v22 = vld [vmem:[#allocation8 + $0xd0] sm:$0xff] }
 0x155   :  { %v10097_v53 = vpack.c.bf16 %v434_v51, %v410_v50  ;;  %v458_v56 = vld [vmem:[#allocation8 + $0x1a8] sm:$0xff]  ;;  %v10099_v59 = vpack.c.bf16 %v433_v55, %v409_v54  ;;  %v457_v61 = vld [vmem:[#allocation8 + $0x1a0] sm:$0xff]  ;;  %v480_v26 = vld [vmem:[#allocation8 + $0x258] sm:$0xff]  ;;  %v10083_v30 = vpack.c.bf16 %v431_v22, %v407_v21 }
 0x156   :  { %10049 = vmatpush3.bf16.msra.mxu0 %v10048_v13  ;;  %v482_v57 = vld [vmem:[#allocation8 + $0x268] sm:$0xff]  ;;  %v481_v62 = vld [vmem:[#allocation8 + $0x260] sm:$0xff]  ;;  %v455_v32 = vld [vmem:[#allocation8 + $0x190] sm:$0xff] }
 0x157   :  { %10050 = vmatprep.subr.bf16.mxu0 %v11515_v1  ;;  %10080 = vmatpush1.bf16.msra.mxu1 %v10079_v43  ;;  %v10101_v60 = vpack.c.bf16 %v482_v57, %v458_v56  ;;  %v506_v63 = vld [vmem:[#allocation8 + $0x328] sm:$0xff]  ;;  %v10103_v3 = vpack.c.bf16 %v481_v62, %v457_v61  ;;  %v505_v5 = vld [vmem:[#allocation8 + $0x320] sm:$0xff]  ;;  %v479_v33 = vld [vmem:[#allocation8 + $0x250] sm:$0xff] }
 0x158   :  { %v530_v0 = vld [vmem:[#allocation8 + $0x3e8] sm:$0xff]  ;;  %v529_v6 = vld [vmem:[#allocation8 + $0x3e0] sm:$0xff]  ;;  %10082 = vmatprep.subr.bf16.mxu1 %v10081_v17  ;;  %v504_v40 = vld [vmem:[#allocation8 + $0x318] sm:$0xff] }
 0x159   :  { %v10105_v4 = vpack.c.bf16 %v530_v0, %v506_v63  ;;  %v554_v7 = vld [vmem:[#allocation8 + $0x4a8] sm:$0xff]  ;;  %v10107_v9 = vpack.c.bf16 %v529_v6, %v505_v5  ;;  %v553_v11 = vld [vmem:[#allocation8 + $0x4a0] sm:$0xff]  ;;  %v528_v41 = vld [vmem:[#allocation8 + $0x3d8] sm:$0xff] }
 0x15a   :  { %10052 = vmatpush3.bf16.msra.mxu0 %v10051_v25  ;;  %v578_v8 = vld [vmem:[#allocation8 + $0x568] sm:$0xff]  ;;  %v577_v12 = vld [vmem:[#allocation8 + $0x560] sm:$0xff]  ;;  %v456_v25 = vld [vmem:[#allocation8 + $0x198] sm:$0xff]  ;;  %v10089_v48 = vpack.c.bf16 %v528_v41, %v504_v40 }
 0x15b   :  { %10053 = vmatprep.subr.bf16.mxu0 %v11515_v1  ;;  %v10109_v10 = vpack.c.bf16 %v578_v8, %v554_v7  ;;  %v10111_v13 = vpack.c.bf16 %v577_v12, %v553_v11  ;;  %v414_v16 = vld [vmem:[#allocation8 + $0x48] sm:$0xff]  ;;  %v413_v23 = vld [vmem:[#allocation8 + $0x40] sm:$0xff]  ;;  %v10085_v36 = vpack.c.bf16 %v480_v26, %v456_v25  ;;  %v503_v46 = vld [vmem:[#allocation8 + $0x310] sm:$0xff] }
 0x15c   :  { %v438_v18 = vld [vmem:[#allocation8 + $0x108] sm:$0xff]  ;;  %v437_v24 = vld [vmem:[#allocation8 + $0x100] sm:$0xff]  ;;  %v412_v0 = vld [vmem:[#allocation8 + $0x38] sm:$0xff] }
 0x15d   :  { %v10129_v19 = vpack.c.bf16 %v438_v18, %v414_v16  ;;  %v462_v27 = vld [vmem:[#allocation8 + $0x1c8] sm:$0xff]  ;;  %v10131_v31 = vpack.c.bf16 %v437_v24, %v413_v23  ;;  %v461_v38 = vld [vmem:[#allocation8 + $0x1c0] sm:$0xff]  ;;  %v411_v8 = vld [vmem:[#allocation8 + $0x30] sm:$0xff] }
 0x15e   :  { %10055 = vmatpush3.bf16.msra.mxu0 %v10054_v37  ;;  %v486_v28 = vld [vmem:[#allocation8 + $0x288] sm:$0xff]  ;;  %v485_v39 = vld [vmem:[#allocation8 + $0x280] sm:$0xff]  ;;  %v460_v14 = vld [vmem:[#allocation8 + $0x1b8] sm:$0xff] }
 0x15f   :  { %10056 = vmatprep.subr.bf16.mxu0 %v11515_v1  ;;  %v10133_v37 = vpack.c.bf16 %v486_v28, %v462_v27  ;;  %v510_v42 = vld [vmem:[#allocation8 + $0x348] sm:$0xff]  ;;  %v10135_v45 = vpack.c.bf16 %v485_v39, %v461_v38  ;;  %v509_v50 = vld [vmem:[#allocation8 + $0x340] sm:$0xff]  ;;  %v484_v15 = vld [vmem:[#allocation8 + $0x278] sm:$0xff] }
 0x160   :  { %v534_v43 = vld [vmem:[#allocation8 + $0x408] sm:$0xff]  ;;  %v533_v51 = vld [vmem:[#allocation8 + $0x400] sm:$0xff]  ;;  %v483_v21 = vld [vmem:[#allocation8 + $0x270] sm:$0xff]  ;;  %v10117_v22 = vpack.c.bf16 %v484_v15, %v460_v14 }
 0x161   :  { %v10137_v49 = vpack.c.bf16 %v534_v43, %v510_v42  ;;  %v558_v54 = vld [vmem:[#allocation8 + $0x4c8] sm:$0xff]  ;;  %v10139_v57 = vpack.c.bf16 %v533_v51, %v509_v50  ;;  %v557_v62 = vld [vmem:[#allocation8 + $0x4c0] sm:$0xff]  ;;  %v508_v26 = vld [vmem:[#allocation8 + $0x338] sm:$0xff] }
 0x162   :  { %10058 = vmatpush3.bf16.msra.mxu0 %v10057_v44  ;;  %v10087_v44 = vpack.c.bf16 %v479_v33, %v455_v32  ;;  %v582_v55 = vld [vmem:[#allocation8 + $0x588] sm:$0xff]  ;;  %v581_v63 = vld [vmem:[#allocation8 + $0x580] sm:$0xff]  ;;  %v532_v27 = vld [vmem:[#allocation8 + $0x3f8] sm:$0xff] }
 0x163   :  { %10059 = vmatprep.subr.bf16.mxu0 %v11515_v1  ;;  %v10141_v61 = vpack.c.bf16 %v582_v55, %v558_v54  ;;  %v442_v5 = vld [vmem:[#allocation8 + $0x128] sm:$0xff]  ;;  %v10143_v7 = vpack.c.bf16 %v581_v63, %v557_v62  ;;  %v417_v12 = vld [vmem:[#allocation8 + $0x60] sm:$0xff]  ;;  %v507_v32 = vld [vmem:[#allocation8 + $0x330] sm:$0xff] }
 0x164   :  { %v466_v16 = vld [vmem:[#allocation8 + $0x1e8] sm:$0xff]  ;;  %v465_v24 = vld [vmem:[#allocation8 + $0x1e0] sm:$0xff]  ;;  %v531_v33 = vld [vmem:[#allocation8 + $0x3f0] sm:$0xff] }
 0x165   :  { %v490_v17 = vld [vmem:[#allocation8 + $0x2a8] sm:$0xff]  ;;  %v489_v25 = vld [vmem:[#allocation8 + $0x2a0] sm:$0xff]  ;;  %v556_v39 = vld [vmem:[#allocation8 + $0x4b8] sm:$0xff]  ;;  %v10123_v43 = vpack.c.bf16 %v531_v33, %v507_v32 }
 0x166   :  { %10061 = vmatpush3.bf16.msra.mxu0 %v10060_v47  ;;  %v527_v47 = vld [vmem:[#allocation8 + $0x3d0] sm:$0xff]  ;;  %v10165_v23 = vpack.c.bf16 %v490_v17, %v466_v16  ;;  %v514_v28 = vld [vmem:[#allocation8 + $0x368] sm:$0xff]  ;;  %v537_v38 = vld [vmem:[#allocation8 + $0x420] sm:$0xff] }
 0x167   :  { %10062 = vmatprep.subr.bf16.mxu0 %v11515_v1  ;;  %v10091_v56 = vpack.c.bf16 %v527_v47, %v503_v46  ;;  %v580_v40 = vld [vmem:[#allocation8 + $0x578] sm:$0xff]  ;;  %v562_v41 = vld [vmem:[#allocation8 + $0x4e8] sm:$0xff]  ;;  %v579_v46 = vld [vmem:[#allocation8 + $0x570] sm:$0xff] }
 0x168   :  { %v586_v42 = vld [vmem:[#allocation8 + $0x5a8] sm:$0xff]  ;;  %v10125_v47 = vpack.c.bf16 %v580_v40, %v556_v39  ;;  %v585_v50 = vld [vmem:[#allocation8 + $0x5a0] sm:$0xff]  ;;  %v416_v51 = vld [vmem:[#allocation8 + $0x58] sm:$0xff] }
 0x169   :  { %v446_v54 = vld [vmem:[#allocation8 + $0x148] sm:$0xff]  ;;  %v445_v62 = vld [vmem:[#allocation8 + $0x140] sm:$0xff]  ;;  %v464_v63 = vld [vmem:[#allocation8 + $0x1d8] sm:$0xff] }
 0x16a   :  { %10064 = vmatpush3.bf16.msra.mxu0 %v10063_v52  ;;  %v552_v52 = vld [vmem:[#allocation8 + $0x498] sm:$0xff]  ;;  %v518_v15 = vld [vmem:[#allocation8 + $0x388] sm:$0xff]  ;;  %v583_v32 = vld [vmem:[#allocation8 + $0x590] sm:$0xff] }
 0x16b   :  { %10098 = vmatprep.subr.bf16.mxu0 %v10097_v53  ;;  %v576_v53 = vld [vmem:[#allocation8 + $0x558] sm:$0xff]  ;;  %v542_v16 = vld [vmem:[#allocation8 + $0x448] sm:$0xff]  ;;  %vm8191_vm15 = vmor %vm8190_vm14, %vm4085_vm8 }
 0x16c   :  { %v536_v14 = vld [vmem:[#allocation8 + $0x418] sm:$0xff]  ;;  %v426_v40 = vld [vmem:[#allocation8 + $0xa8] sm:$0xff] }
 0x16d   :  { %9028 = vmatmul.mubr.f32.vlgmr.msra.gmra.mrb[0].mxu0 %v311_v58  ;;  %v551_v58 = vld [vmem:[#allocation8 + $0x490] sm:$0xff]  ;;  %v444_v39 = vld [vmem:[#allocation8 + $0x138] sm:$0xff] }
 0x16e   :  { %10100 = vmatpush1.bf16.msra.mxu0 %v10099_v59  ;;  %933 = vmatprep.mubr.f32.mxu0 %v11517_v2  ;;  %v575_v59 = vld [vmem:[#allocation8 + $0x550] sm:$0xff] }
 0x16f   :  { %10102 = vmatprep.subr.bf16.mxu0 %v10101_v60  ;;  %v10093_v60 = vpack.c.bf16 %v576_v53, %v552_v52  ;;  %v10095_v6 = vpack.c.bf16 %v575_v59, %v551_v58  ;;  %v440_v52 = vld [vmem:[#allocation8 + $0x118] sm:$0xff]  ;;  %v422_v53 = vld [vmem:[#allocation8 + $0x88] sm:$0xff]  ;;  %v439_v58 = vld [vmem:[#allocation8 + $0x110] sm:$0xff] }
 0x170   :  { %v10145_v59 = vpack.c.bf16 %v440_v52, %v416_v51  ;;  %v492_v51 = vld [vmem:[#allocation8 + $0x2b8] sm:$0xff]  ;;  %v474_v52 = vld [vmem:[#allocation8 + $0x228] sm:$0xff] }
 0x172   :  { %10104 = vmatpush1.bf16.msra.mxu0 %v10103_v3  ;;  %v436_v3 = vld [vmem:[#allocation8 + $0xf8] sm:$0xff] }
 0x173   :  { %10106 = vmatprep.subr.bf16.mxu0 %v10105_v4  ;;  %v418_v4 = vld [vmem:[#allocation8 + $0x68] sm:$0xff] }
 0x174   :  { %v10161_v11 = vpack.c.bf16 %v442_v5, %v418_v4  ;;  %v494_v4 = vld [vmem:[#allocation8 + $0x2c8] sm:$0xff] }
 0x176   :  { %10108 = vmatpush1.bf16.msra.mxu0 %v10107_v9  ;;  %v435_v9 = vld [vmem:[#allocation8 + $0xf0] sm:$0xff] }
 0x177   :  { %10110 = vmatprep.subr.bf16.mxu0 %v10109_v10  ;;  %v10113_v10 = vpack.c.bf16 %v436_v3, %v412_v0  ;;  %v10115_v18 = vpack.c.bf16 %v435_v9, %v411_v8  ;;  %v488_v0 = vld [vmem:[#allocation8 + $0x298] sm:$0xff]  ;;  %v470_v3 = vld [vmem:[#allocation8 + $0x208] sm:$0xff]  ;;  %v487_v8 = vld [vmem:[#allocation8 + $0x290] sm:$0xff] }
 0x178   :  { %v10149_v9 = vpack.c.bf16 %v488_v0, %v464_v63  ;;  %v540_v63 = vld [vmem:[#allocation8 + $0x438] sm:$0xff]  ;;  %v522_v0 = vld [vmem:[#allocation8 + $0x3a8] sm:$0xff] }
 0x17a   :  { %10112 = vmatpush1.bf16.msra.mxu0 %v10111_v13  ;;  %v441_v13 = vld [vmem:[#allocation8 + $0x120] sm:$0xff] }
 0x17b   :  { %10130 = vmatprep.subr.bf16.mxu0 %v10129_v19  ;;  %v10163_v19 = vpack.c.bf16 %v441_v13, %v417_v12  ;;  %v493_v12 = vld [vmem:[#allocation8 + $0x2c0] sm:$0xff]  ;;  %v512_v13 = vld [vmem:[#allocation8 + $0x358] sm:$0xff] }
 0x240   :  { %v401_v29 = vpop.f32.mrb[0].mxu0 }
 0x241   :  { %v11778_v34 = vadd.f32 %v8236_v20, %v401_v29  ;;  %v9029_v35 = vpop.f32.mrb[1].mxu0  ;;  %v459_v20 = vld [vmem:[#allocation8 + $0x1b0] sm:$0xff]  ;;  %v538_v29 = vld [vmem:[#allocation8 + $0x428] sm:$0xff] }
 0x242   :  { %v10121_v35 = vpack.c.bf16 %v532_v27, %v508_v26  ;;  %v584_v26 = vld [vmem:[#allocation8 + $0x598] sm:$0xff]  ;;  %v566_v27 = vld [vmem:[#allocation8 + $0x508] sm:$0xff] }
 0x243   :  { %8237 = vmatmul.mubr.msk.f32.vlgmr.msra.gmra.mrb[0].mxu1 %vm723_vm1, %v11778_v34  ;;  %8239 = vmatmul.mubr.msk.f32.vlgmr.msra.gmra.mrb[2].mxu0 %vm723_vm1, %v11778_v34 }
 0x244   :  { %10084 = vmatpush1.bf16.msra.mxu1 %v10083_v30  ;;  %10132 = vmatpush1.bf16.msra.mxu0 %v10131_v31  ;;  %v10119_v30 = vpack.c.bf16 %v483_v21, %v459_v20  ;;  %v10167_v31 = vpack.c.bf16 %v489_v25, %v465_v24  ;;  %v535_v20 = vld [vmem:[#allocation8 + $0x410] sm:$0xff]  ;;  %v10153_v21 = vpack.c.bf16 %v536_v14, %v512_v13  ;;  %v541_v24 = vld [vmem:[#allocation8 + $0x440] sm:$0xff]  ;;  %v560_v25 = vld [vmem:[#allocation8 + $0x4d8] sm:$0xff] }
 0x245   :  { %10086 = vmatprep.subr.bf16.mxu1 %v10085_v36  ;;  %10134 = vmatprep.subr.bf16.mxu0 %v10133_v37  ;;  %v10169_v36 = vpack.c.bf16 %v538_v29, %v514_v28  ;;  %v513_v37 = vld [vmem:[#allocation8 + $0x360] sm:$0xff]  ;;  %v590_v28 = vld [vmem:[#allocation8 + $0x5c8] sm:$0xff]  ;;  %v10157_v33 = vpack.c.bf16 %v584_v26, %v560_v25  ;;  %v588_v13 = vld [vmem:[#allocation8 + $0x5b8] sm:$0xff] }
 0x246   :  { %862 = vmatprep.mubr.f32.mxu1 %v11517_v2  ;;  %1075 = vmatprep.mubr.f32.mxu0 %v11517_v2  ;;  %v570_v14 = vld [vmem:[#allocation8 + $0x528] sm:$0xff]  ;;  %v448_v25 = vld [vmem:[#allocation8 + $0x158] sm:$0xff] }
 0x248   :  { %10088 = vmatpush1.bf16.msra.mxu1 %v10087_v44  ;;  %10136 = vmatpush1.bf16.msra.mxu0 %v10135_v45  ;;  %v10171_v44 = vpack.c.bf16 %v537_v38, %v513_v37  ;;  %v555_v45 = vld [vmem:[#allocation8 + $0x4b0] sm:$0xff]  ;;  %v589_v37 = vld [vmem:[#allocation8 + $0x5c0] sm:$0xff]  ;;  %v420_v38 = vld [vmem:[#allocation8 + $0x78] sm:$0xff] }
 0x249   :  { %10090 = vmatprep.subr.bf16.mxu1 %v10089_v48  ;;  %10138 = vmatprep.subr.bf16.mxu0 %v10137_v49  ;;  %v10173_v48 = vpack.c.bf16 %v586_v42, %v562_v41  ;;  %v561_v49 = vld [vmem:[#allocation8 + $0x4e0] sm:$0xff]  ;;  %v10127_v55 = vpack.c.bf16 %v579_v46, %v555_v45  ;;  %v450_v41 = vld [vmem:[#allocation8 + $0x168] sm:$0xff]  ;;  %v443_v45 = vld [vmem:[#allocation8 + $0x130] sm:$0xff]  ;;  %v10177_v46 = vpack.c.bf16 %v444_v39, %v420_v38 }
 0x24a   :  { %v520_v38 = vld [vmem:[#allocation8 + $0x398] sm:$0xff] }
 0x24b   :  { %v544_v39 = vld [vmem:[#allocation8 + $0x458] sm:$0xff] }
 0x24c   :  { %10092 = vmatpush1.bf16.msra.mxu1 %v10091_v56  ;;  %10140 = vmatpush1.bf16.msra.mxu0 %v10139_v57  ;;  %v10175_v56 = vpack.c.bf16 %v585_v50, %v561_v49  ;;  %v415_v57 = vld [vmem:[#allocation8 + $0x50] sm:$0xff]  ;;  %v449_v49 = vld [vmem:[#allocation8 + $0x160] sm:$0xff]  ;;  %v468_v50 = vld [vmem:[#allocation8 + $0x1f8] sm:$0xff] }
 0x24d   :  { %10094 = vmatprep.subr.bf16.mxu1 %v10093_v60  ;;  %10142 = vmatprep.subr.bf16.mxu0 %v10141_v61  ;;  %v10193_v60 = vpack.c.bf16 %v446_v54, %v422_v53  ;;  %v421_v61 = vld [vmem:[#allocation8 + $0x80] sm:$0xff]  ;;  %v10147_v5 = vpack.c.bf16 %v439_v58, %v415_v57  ;;  %v498_v53 = vld [vmem:[#allocation8 + $0x2e8] sm:$0xff]  ;;  %v491_v57 = vld [vmem:[#allocation8 + $0x2b0] sm:$0xff]  ;;  %v10181_v58 = vpack.c.bf16 %v492_v51, %v468_v50 }
 0x24e   :  { %v428_v50 = vld [vmem:[#allocation8 + $0xb8] sm:$0xff] }
 0x24f   :  { %v452_v51 = vld [vmem:[#allocation8 + $0x178] sm:$0xff] }
 0x250   :  { %10096 = vmatpush1.bf16.msra.mxu1 %v10095_v6  ;;  %10144 = vmatpush1.bf16.msra.mxu0 %v10143_v7  ;;  %v10195_v6 = vpack.c.bf16 %v445_v62, %v421_v61  ;;  %v463_v7 = vld [vmem:[#allocation8 + $0x1d0] sm:$0xff]  ;;  %v497_v61 = vld [vmem:[#allocation8 + $0x2e0] sm:$0xff]  ;;  %v516_v62 = vld [vmem:[#allocation8 + $0x378] sm:$0xff] }
 0x251   :  { %10114 = vmatprep.subr.bf16.mxu1 %v10113_v10  ;;  %10162 = vmatprep.subr.bf16.mxu0 %v10161_v11  ;;  %v10197_v10 = vpack.c.bf16 %v494_v4, %v470_v3  ;;  %v469_v11 = vld [vmem:[#allocation8 + $0x200] sm:$0xff]  ;;  %v10151_v17 = vpack.c.bf16 %v487_v8, %v463_v7  ;;  %v546_v3 = vld [vmem:[#allocation8 + $0x468] sm:$0xff]  ;;  %v539_v7 = vld [vmem:[#allocation8 + $0x430] sm:$0xff]  ;;  %v10185_v8 = vpack.c.bf16 %v540_v63, %v516_v62 }
 0x252   :  { %v524_v62 = vld [vmem:[#allocation8 + $0x3b8] sm:$0xff] }
 0x253   :  { %8238 = vmatmul.mubr.msk.f32.vlgmr.msra.gmra.mrb[2].mxu1 %vm723_vm1, %v11778_v34  ;;  %8241 = vmatmul.mubr.msk.f32.vlgmr.msra.gmra.mrb[4].mxu0 %vm723_vm1, %v11778_v34  ;;  %v548_v63 = vld [vmem:[#allocation8 + $0x478] sm:$0xff] }
 0x254   :  { %10116 = vmatpush1.bf16.msra.mxu1 %v10115_v18  ;;  %10164 = vmatpush1.bf16.msra.mxu0 %v10163_v19  ;;  %v10199_v18 = vpack.c.bf16 %v493_v12, %v469_v11  ;;  %v511_v19 = vld [vmem:[#allocation8 + $0x350] sm:$0xff]  ;;  %v545_v11 = vld [vmem:[#allocation8 + $0x460] sm:$0xff]  ;;  %v564_v12 = vld [vmem:[#allocation8 + $0x4f8] sm:$0xff] }
 0x255   :  { %10118 = vmatprep.subr.bf16.mxu1 %v10117_v22  ;;  %10166 = vmatprep.subr.bf16.mxu0 %v10165_v23  ;;  %v10201_v22 = vpack.c.bf16 %v542_v16, %v518_v15  ;;  %v517_v23 = vld [vmem:[#allocation8 + $0x380] sm:$0xff]  ;;  %v10155_v29 = vpack.c.bf16 %v535_v20, %v511_v19  ;;  %v594_v15 = vld [vmem:[#allocation8 + $0x5e8] sm:$0xff]  ;;  %v10189_v19 = vpack.c.bf16 %v588_v13, %v564_v12 }
 0x256   :  { %1004 = vmatprep.mubr.f32.mxu1 %v11517_v2  ;;  %1217 = vmatprep.mubr.f32.mxu0 %v11517_v2  ;;  %v10237_v20 = vpack.c.bf16 %v594_v15, %v570_v14  ;;  %v1833_v13 = vld [vmem:[%s14447_s4 + $0x8] sm:$0xff]  ;;  %v1835_v15 = vld [vmem:[%s14447_s4 + $0x18] sm:$0xff] }
 0x257   :  { %v1837_v14 = vld [vmem:[%s14447_s4 + $0x28] sm:$0xff] }
 0x258   :  { %10120 = vmatpush1.bf16.msra.mxu1 %v10119_v30  ;;  %10168 = vmatpush1.bf16.msra.mxu0 %v10167_v31  ;;  %v10203_v30 = vpack.c.bf16 %v541_v24, %v517_v23  ;;  %v559_v31 = vld [vmem:[#allocation8 + $0x4d0] sm:$0xff]  ;;  %v593_v23 = vld [vmem:[#allocation8 + $0x5e0] sm:$0xff]  ;;  %v424_v24 = vld [vmem:[#allocation8 + $0x98] sm:$0xff] }
 0x259   :  { %10122 = vmatprep.subr.bf16.mxu1 %v10121_v35  ;;  %10170 = vmatprep.subr.bf16.mxu0 %v10169_v36  ;;  %v10205_v35 = vpack.c.bf16 %v590_v28, %v566_v27  ;;  %v565_v36 = vld [vmem:[#allocation8 + $0x500] sm:$0xff]  ;;  %v10159_v42 = vpack.c.bf16 %v583_v32, %v559_v31  ;;  %v10209_v28 = vpack.c.bf16 %v448_v25, %v424_v24  ;;  %v472_v31 = vld [vmem:[#allocation8 + $0x218] sm:$0xff] }
 0x25a   :  { %v496_v32 = vld [vmem:[#allocation8 + $0x2d8] sm:$0xff]  ;;  %v1841_v24 = vld [vmem:[%s14447_s4 + $0x48] sm:$0xff] }
 0x25b   :  { %v1845_v25 = vld [vmem:[%s14447_s4 + $0x68] sm:$0xff] }
 0x25c   :  { %10124 = vmatpush1.bf16.msra.mxu1 %v10123_v43  ;;  %10172 = vmatpush1.bf16.msra.mxu0 %v10171_v44  ;;  %v10207_v43 = vpack.c.bf16 %v589_v37, %v565_v36  ;;  %v419_v44 = vld [vmem:[#allocation8 + $0x70] sm:$0xff] }
 0x25d   :  { %10126 = vmatprep.subr.bf16.mxu1 %v10125_v47  ;;  %10174 = vmatprep.subr.bf16.mxu0 %v10173_v48  ;;  %v10225_v47 = vpack.c.bf16 %v450_v41, %v426_v40  ;;  %v425_v48 = vld [vmem:[#allocation8 + $0xa0] sm:$0xff]  ;;  %v10179_v54 = vpack.c.bf16 %v443_v45, %v419_v44  ;;  %v471_v36 = vld [vmem:[#allocation8 + $0x210] sm:$0xff]  ;;  %v10217_v41 = vpack.c.bf16 %v544_v39, %v520_v38  ;;  %v568_v44 = vld [vmem:[#allocation8 + $0x518] sm:$0xff] }
 0x25e   :  { %v495_v37 = vld [vmem:[#allocation8 + $0x2d0] sm:$0xff]  ;;  %v592_v45 = vld [vmem:[#allocation8 + $0x5d8] sm:$0xff]  ;;  %v1853_v38 = vld [vmem:[%s14447_s4 + $0xa8] sm:$0xff] }
 0x25f   :  { %v10215_v40 = vpack.c.bf16 %v495_v37, %v471_v36  ;;  %v1849_v37 = vld [vmem:[%s14447_s4 + $0x88] sm:$0xff]  ;;  %v1851_v39 = vld [vmem:[%s14447_s4 + $0x98] sm:$0xff] }
 0x260   :  { %10128 = vmatpush1.bf16.msra.mxu1 %v10127_v55  ;;  %10176 = vmatpush1.bf16.msra.mxu0 %v10175_v56  ;;  %v10227_v55 = vpack.c.bf16 %v449_v49, %v425_v48  ;;  %v467_v56 = vld [vmem:[#allocation8 + $0x1f0] sm:$0xff] }
 0x261   :  { %10146 = vmatprep.subr.bf16.mxu1 %v10145_v59  ;;  %10194 = vmatprep.subr.bf16.mxu0 %v10193_v60  ;;  %v10229_v59 = vpack.c.bf16 %v498_v53, %v474_v52  ;;  %v473_v60 = vld [vmem:[#allocation8 + $0x220] sm:$0xff]  ;;  %v10183_v4 = vpack.c.bf16 %v491_v57, %v467_v56  ;;  %v567_v48 = vld [vmem:[#allocation8 + $0x510] sm:$0xff]  ;;  %v10241_v53 = vpack.c.bf16 %v452_v51, %v428_v50  ;;  %v476_v56 = vld [vmem:[#allocation8 + $0x238] sm:$0xff] }
 0x262   :  { %v591_v49 = vld [vmem:[#allocation8 + $0x5d0] sm:$0xff]  ;;  %v500_v57 = vld [vmem:[#allocation8 + $0x2f8] sm:$0xff]  ;;  %v1861_v50 = vld [vmem:[%s14447_s4 + $0xe8] sm:$0xff] }
 0x263   :  { %8240 = vmatmul.mubr.msk.f32.vlgmr.msra.gmra.mrb[4].mxu1 %vm723_vm1, %v11778_v34  ;;  %8243 = vmatmul.mubr.msk.f32.vlgmr.msra.gmra.mrb[6].mxu0 %vm723_vm1, %v11778_v34  ;;  %v10223_v52 = vpack.c.bf16 %v591_v49, %v567_v48  ;;  %v1857_v49 = vld [vmem:[%s14447_s4 + $0xc8] sm:$0xff]  ;;  %v1859_v51 = vld [vmem:[%s14447_s4 + $0xd8] sm:$0xff] }
 0x264   :  { %10148 = vmatpush1.bf16.msra.mxu1 %v10147_v5  ;;  %10196 = vmatpush1.bf16.msra.mxu0 %v10195_v6  ;;  %v10231_v5 = vpack.c.bf16 %v497_v61, %v473_v60  ;;  %v515_v6 = vld [vmem:[#allocation8 + $0x370] sm:$0xff] }
 0x265   :  { %10150 = vmatprep.subr.bf16.mxu1 %v10149_v9  ;;  %10198 = vmatprep.subr.bf16.mxu0 %v10197_v10  ;;  %v10233_v9 = vpack.c.bf16 %v546_v3, %v522_v0  ;;  %v521_v10 = vld [vmem:[#allocation8 + $0x3a0] sm:$0xff]  ;;  %v10187_v16 = vpack.c.bf16 %v539_v7, %v515_v6  ;;  %v475_v60 = vld [vmem:[#allocation8 + $0x230] sm:$0xff]  ;;  %v10249_v3 = vpack.c.bf16 %v548_v63, %v524_v62  ;;  %v572_v6 = vld [vmem:[#allocation8 + $0x538] sm:$0xff] }
 0x266   :  { %1146 = vmatprep.mubr.f32.mxu1 %v11517_v2  ;;  %1359 = vmatprep.mubr.f32.mxu0 %v11517_v2  ;;  %v499_v61 = vld [vmem:[#allocation8 + $0x2f0] sm:$0xff]  ;;  %v596_v7 = vld [vmem:[#allocation8 + $0x5f8] sm:$0xff]  ;;  %v1869_v62 = vld [vmem:[%s14447_s4 + $0x128] sm:$0xff] }
 0x267   :  { %v10247_v0 = vpack.c.bf16 %v499_v61, %v475_v60  ;;  %v1865_v60 = vld [vmem:[%s14447_s4 + $0x108] sm:$0xff]  ;;  %v1867_v63 = vld [vmem:[%s14447_s4 + $0x118] sm:$0xff] }
 0x268   :  { %10152 = vmatpush1.bf16.msra.mxu1 %v10151_v17  ;;  %10200 = vmatpush1.bf16.msra.mxu0 %v10199_v18  ;;  %v10235_v17 = vpack.c.bf16 %v545_v11, %v521_v10  ;;  %v563_v18 = vld [vmem:[#allocation8 + $0x4f0] sm:$0xff] }
 0x269   :  { %10154 = vmatprep.subr.bf16.mxu1 %v10153_v21  ;;  %10202 = vmatprep.subr.bf16.mxu0 %v10201_v22  ;;  %v587_v21 = vld [vmem:[#allocation8 + $0x5b0] sm:$0xff]  ;;  %v569_v22 = vld [vmem:[#allocation8 + $0x520] sm:$0xff] }
 0x26a   :  { %v10191_v26 = vpack.c.bf16 %v587_v21, %v563_v18  ;;  %v10239_v27 = vpack.c.bf16 %v593_v23, %v569_v22  ;;  %v571_v10 = vld [vmem:[#allocation8 + $0x530] sm:$0xff]  ;;  %v1832_v18 = vld [vmem:[%s14447_s4] sm:$0xff] }
 0x26b   :  { %v595_v11 = vld [vmem:[#allocation8 + $0x5f0] sm:$0xff] }
 0x26c   :  { %10156 = vmatpush1.bf16.msra.mxu1 %v10155_v29  ;;  %10204 = vmatpush1.bf16.msra.mxu0 %v10203_v30  ;;  %v423_v29 = vld [vmem:[#allocation8 + $0x90] sm:$0xff]  ;;  %v10255_v12 = vpack.c.bf16 %v595_v11, %v571_v10  ;;  %v1873_v10 = vld [vmem:[%s14447_s4 + $0x148] sm:$0xff] }
 0x26d   :  { %10158 = vmatprep.subr.bf16.mxu1 %v10157_v33  ;;  %10206 = vmatprep.subr.bf16.mxu0 %v10205_v35  ;;  %v447_v30 = vld [vmem:[#allocation8 + $0x150] sm:$0xff]  ;;  %v10213_v35 = vpack.c.bf16 %v496_v32, %v472_v31  ;;  %v1844_v31 = vld [vmem:[%s14447_s4 + $0x60] sm:$0xff]  ;;  %v1877_v11 = vld [vmem:[%s14447_s4 + $0x168] sm:$0xff] }
 0x26e   :  { %v10211_v33 = vpack.c.bf16 %v447_v30, %v423_v29  ;;  %v1834_v22 = vld [vmem:[%s14447_s4 + $0x10] sm:$0xff]  ;;  %v1840_v30 = vld [vmem:[%s14447_s4 + $0x40] sm:$0xff] }
 0x26f   :  { %v1838_v23 = vld [vmem:[%s14447_s4 + $0x30] sm:$0xff] }
 0x270   :  { %10160 = vmatpush1.bf16.msra.mxu1 %v10159_v42  ;;  %10208 = vmatpush1.bf16.msra.mxu0 %v10207_v43  ;;  %v519_v42 = vld [vmem:[#allocation8 + $0x390] sm:$0xff] }
 0x271   :  { %10178 = vmatprep.subr.bf16.mxu1 %v10177_v46  ;;  %10226 = vmatprep.subr.bf16.mxu0 %v10225_v47  ;;  %v543_v43 = vld [vmem:[#allocation8 + $0x450] sm:$0xff]  ;;  %v10221_v47 = vpack.c.bf16 %v592_v45, %v568_v44 }
 0x272   :  { %v10219_v46 = vpack.c.bf16 %v543_v43, %v519_v42  ;;  %v1842_v32 = vld [vmem:[%s14447_s4 + $0x50] sm:$0xff]  ;;  %v1848_v42 = vld [vmem:[%s14447_s4 + $0x80] sm:$0xff] }
 0x273   :  { %8242 = vmatmul.mubr.msk.f32.vlgmr.msra.gmra.mrb[6].mxu1 %vm723_vm1, %v11778_v34  ;;  %8245 = vmatmul.mubr.msk.f32.vlgmr.msra.gmra.mrb[8].mxu0 %vm723_vm1, %v11778_v34  ;;  %v1852_v43 = vld [vmem:[%s14447_s4 + $0xa0] sm:$0xff] }
 0x274   :  { %10180 = vmatpush1.bf16.msra.mxu1 %v10179_v54  ;;  %10228 = vmatpush1.bf16.msra.mxu0 %v10227_v55  ;;  %v427_v54 = vld [vmem:[#allocation8 + $0xb0] sm:$0xff]  ;;  %v10267_v45 = vpack.c.bf16 %v1852_v43, %v1848_v42 }
 0x275   :  { %10182 = vmatprep.subr.bf16.mxu1 %v10181_v58  ;;  %10230 = vmatprep.subr.bf16.mxu0 %v10229_v59  ;;  %v451_v55 = vld [vmem:[#allocation8 + $0x170] sm:$0xff]  ;;  %v10245_v59 = vpack.c.bf16 %v500_v57, %v476_v56 }
 0x276   :  { %1288 = vmatprep.mubr.f32.mxu1 %v11517_v2  ;;  %1501 = vmatprep.mubr.f32.mxu0 %v11517_v2  ;;  %v10243_v58 = vpack.c.bf16 %v451_v55, %v427_v54  ;;  %v1856_v54 = vld [vmem:[%s14447_s4 + $0xc0] sm:$0xff] }
 0x277   :  { %v1860_v55 = vld [vmem:[%s14447_s4 + $0xe0] sm:$0xff] }
 0x278   :  { %10184 = vmatpush1.bf16.msra.mxu1 %v10183_v4  ;;  %10232 = vmatpush1.bf16.msra.mxu0 %v10231_v5  ;;  %v523_v4 = vld [vmem:[#allocation8 + $0x3b0] sm:$0xff]  ;;  %v10271_v57 = vpack.c.bf16 %v1860_v55, %v1856_v54 }
 0x279   :  { %10186 = vmatprep.subr.bf16.mxu1 %v10185_v8  ;;  %10234 = vmatprep.subr.bf16.mxu0 %v10233_v9  ;;  %v547_v5 = vld [vmem:[#allocation8 + $0x470] sm:$0xff]  ;;  %v10253_v9 = vpack.c.bf16 %v596_v7, %v572_v6  ;;  %v1868_v6 = vld [vmem:[%s14447_s4 + $0x120] sm:$0xff] }
 0x27a   :  { %v10251_v8 = vpack.c.bf16 %v547_v5, %v523_v4  ;;  %v1864_v5 = vld [vmem:[%s14447_s4 + $0x100] sm:$0xff]  ;;  %v1866_v7 = vld [vmem:[%s14447_s4 + $0x110] sm:$0xff] }
 0x27c   :  { %10188 = vmatpush1.bf16.msra.mxu1 %v10187_v16  ;;  %10236 = vmatpush1.bf16.msra.mxu0 %v10235_v17  ;;  %v10257_v16 = vpack.c.bf16 %v1837_v14, %v1833_v13  ;;  %v1839_v17 = vld [vmem:[%s14447_s4 + $0x38] sm:$0xff]  ;;  %v10277_v13 = vpack.c.bf16 %v1877_v11, %v1873_v10 }
 0x27d   :  { %10190 = vmatprep.subr.bf16.mxu1 %v10189_v19  ;;  %10238 = vmatprep.subr.bf16.mxu0 %v10237_v20  ;;  %v1836_v19 = vld [vmem:[%s14447_s4 + $0x20] sm:$0xff]  ;;  %v10385_v20 = vpack.c.bf16 %v1839_v17, %v1835_v15  ;;  %v1875_v14 = vld [vmem:[%s14447_s4 + $0x158] sm:$0xff] }
 0x27e   :  { %v10259_v21 = vpack.c.bf16 %v1836_v19, %v1832_v18  ;;  %v1879_v15 = vld [vmem:[%s14447_s4 + $0x178] sm:$0xff]  ;;  %v1876_v18 = vld [vmem:[%s14447_s4 + $0x160] sm:$0xff]  ;;  %v1874_v19 = vld [vmem:[%s14447_s4 + $0x150] sm:$0xff] }
 0x27f   :  { %v10405_v17 = vpack.c.bf16 %v1879_v15, %v1875_v14  ;;  %v1912_v14 = vld [vmem:[%s14447_s4 + $0x280] sm:$0xff] }
 0x280   :  { %10192 = vmatpush1.bf16.msra.mxu1 %v10191_v26  ;;  %10240 = vmatpush1.bf16.msra.mxu0 %v10239_v27  ;;  %v1843_v26 = vld [vmem:[%s14447_s4 + $0x58] sm:$0xff] }
 0x281   :  { %10210 = vmatprep.subr.bf16.mxu1 %v10209_v28  ;;  %10258 = vmatprep.subr.bf16.mxu0 %v10257_v16  ;;  %v1847_v27 = vld [vmem:[%s14447_s4 + $0x78] sm:$0xff]  ;;  %v10261_v28 = vpack.c.bf16 %v1845_v25, %v1841_v24  ;;  %v1872_v16 = vld [vmem:[%s14447_s4 + $0x140] sm:$0xff]  ;;  %v1885_v24 = vld [vmem:[%s14447_s4 + $0x1a8] sm:$0xff] }
 0x282   :  { %v10389_v29 = vpack.c.bf16 %v1847_v27, %v1843_v26  ;;  %v1887_v26 = vld [vmem:[%s14447_s4 + $0x1b8] sm:$0xff]  ;;  %v1880_v27 = vld [vmem:[%s14447_s4 + $0x180] sm:$0xff] }
 0x283   :  { %8244 = vmatmul.mubr.msk.f32.vlgmr.msra.gmra.mrb[8].mxu1 %vm723_vm1, %v11778_v34  ;;  %8247 = vmatmul.mubr.msk.f32.vlgmr.msra.gmra.mrb[10].mxu0 %vm723_vm1, %v11778_v34 }
 0x284   :  { %10212 = vmatpush1.bf16.msra.mxu1 %v10211_v33  ;;  %1430 = vmatprep.mubr.f32.mxu1 %v11517_v2  ;;  %v10263_v33 = vpack.c.bf16 %v1844_v31, %v1840_v30  ;;  %v1882_v31 = vld [vmem:[%s14447_s4 + $0x190] sm:$0xff] }
 0x285   :  { %10214 = vmatprep.subr.bf16.mxu1 %v10213_v35  ;;  %10260 = vmatpush1.bf16.msra.mxu0 %v10259_v21  ;;  %v1846_v35 = vld [vmem:[%s14447_s4 + $0x70] sm:$0xff]  ;;  %v10279_v21 = vpack.c.bf16 %v1876_v18, %v1872_v16  ;;  %v1916_v16 = vld [vmem:[%s14447_s4 + $0x2a0] sm:$0xff] }
 0x286   :  { %10262 = vmatprep.subr.bf16.mxu0 %v10261_v28  ;;  %v10391_v36 = vpack.c.bf16 %v1846_v35, %v1842_v32  ;;  %v1884_v28 = vld [vmem:[%s14447_s4 + $0x1a0] sm:$0xff]  ;;  %v1886_v32 = vld [vmem:[%s14447_s4 + $0x1b0] sm:$0xff]  ;;  %v1889_v35 = vld [vmem:[%s14447_s4 + $0x1c8] sm:$0xff] }
 0x287   :  { %v10283_v30 = vpack.c.bf16 %v1884_v28, %v1880_v27  ;;  %v1918_v18 = vld [vmem:[%s14447_s4 + $0x2b0] sm:$0xff] }
 0x288   :  { %10216 = vmatpush1.bf16.msra.mxu1 %v10215_v40  ;;  %v10265_v40 = vpack.c.bf16 %v1853_v38, %v1849_v37  ;;  %v1891_v37 = vld [vmem:[%s14447_s4 + $0x1d8] sm:$0xff]  ;;  %v1922_v28 = vld [vmem:[%s14447_s4 + $0x2d0] sm:$0xff] }
 0x289   :  { %10218 = vmatprep.subr.bf16.mxu1 %v10217_v41  ;;  %10264 = vmatpush1.bf16.msra.mxu0 %v10263_v33  ;;  %v1855_v41 = vld [vmem:[%s14447_s4 + $0xb8] sm:$0xff]  ;;  %v10411_v33 = vpack.c.bf16 %v1886_v32, %v1882_v31  ;;  %v603_v31 = vlaneseq  ;;  %v1933_v32 = vld [vmem:[%s14447_s4 + $0x328] sm:$0xff] }
 0x28a   :  { %v10393_v44 = vpack.c.bf16 %v1855_v41, %v1851_v39  ;;  %10266 = vmatprep.subr.bf16.mxu0 %v10265_v40  ;;  %v1895_v39 = vld [vmem:[%s14447_s4 + $0x1f8] sm:$0xff]  ;;  %v1888_v40 = vld [vmem:[%s14447_s4 + $0x1c0] sm:$0xff] }
 0x28b   :  { %v1892_v41 = vld [vmem:[%s14447_s4 + $0x1e0] sm:$0xff]  ;;  %v10413_v42 = vpack.c.bf16 %v1895_v39, %v1891_v37 }
 0x28c   :  { %10220 = vmatpush1.bf16.msra.mxu1 %v10219_v46  ;;  %v1850_v46 = vld [vmem:[%s14447_s4 + $0x90] sm:$0xff]  ;;  %v10287_v43 = vpack.c.bf16 %v1892_v41, %v1888_v40  ;;  %v1928_v39 = vld [vmem:[%s14447_s4 + $0x300] sm:$0xff] }
 0x28d   :  { %10222 = vmatprep.subr.bf16.mxu1 %v10221_v47  ;;  %v1854_v47 = vld [vmem:[%s14447_s4 + $0xb0] sm:$0xff]  ;;  %10268 = vmatpush1.bf16.msra.mxu0 %v10267_v45  ;;  %v1932_v40 = vld [vmem:[%s14447_s4 + $0x320] sm:$0xff] }
 0x28e   :  { %v10395_v48 = vpack.c.bf16 %v1854_v47, %v1850_v46  ;;  %v1894_v45 = vld [vmem:[%s14447_s4 + $0x1f0] sm:$0xff]  ;;  %v1897_v47 = vld [vmem:[%s14447_s4 + $0x208] sm:$0xff] }
 0x28f   :  { %v1930_v41 = vld [vmem:[%s14447_s4 + $0x310] sm:$0xff] }
 0x290   :  { %10224 = vmatpush1.bf16.msra.mxu1 %v10223_v52  ;;  %v10269_v52 = vpack.c.bf16 %v1861_v50, %v1857_v49  ;;  %v1899_v49 = vld [vmem:[%s14447_s4 + $0x218] sm:$0xff] }
 0x291   :  { %10242 = vmatprep.subr.bf16.mxu1 %v10241_v53  ;;  %v1863_v53 = vld [vmem:[%s14447_s4 + $0xf8] sm:$0xff] }
 0x292   :  { %v10397_v56 = vpack.c.bf16 %v1863_v53, %v1859_v51  ;;  %10270 = vmatprep.subr.bf16.mxu0 %v10269_v52  ;;  %v1903_v51 = vld [vmem:[%s14447_s4 + $0x238] sm:$0xff]  ;;  %v1896_v52 = vld [vmem:[%s14447_s4 + $0x200] sm:$0xff] }
 0x293   :  { %8246 = vmatmul.mubr.msk.f32.vlgmr.msra.gmra.mrb[10].mxu1 %vm723_vm1, %v11778_v34  ;;  %10272 = vmatpush1.bf16.msra.mxu0 %v10271_v57  ;;  %v1900_v53 = vld [vmem:[%s14447_s4 + $0x220] sm:$0xff]  ;;  %v10417_v54 = vpack.c.bf16 %v1903_v51, %v1899_v49  ;;  %v1902_v57 = vld [vmem:[%s14447_s4 + $0x230] sm:$0xff]  ;;  %v10307_v49 = vpack.c.bf16 %v1932_v40, %v1928_v39  ;;  %v1961_v40 = vld [vmem:[%s14447_s4 + $0x408] sm:$0xff] }
 0x294   :  { %10244 = vmatpush1.bf16.msra.mxu1 %v10243_v58  ;;  %1572 = vmatprep.mubr.f32.mxu1 %v11517_v2  ;;  %v1858_v58 = vld [vmem:[%s14447_s4 + $0xd0] sm:$0xff]  ;;  %v10291_v55 = vpack.c.bf16 %v1900_v53, %v1896_v52  ;;  %v1936_v52 = vld [vmem:[%s14447_s4 + $0x340] sm:$0xff] }
 0x295   :  { %10246 = vmatprep.subr.bf16.mxu1 %v10245_v59  ;;  %v1862_v59 = vld [vmem:[%s14447_s4 + $0xf0] sm:$0xff]  ;;  %v1940_v53 = vld [vmem:[%s14447_s4 + $0x360] sm:$0xff] }
 0x296   :  { %v10399_v61 = vpack.c.bf16 %v1862_v59, %v1858_v58  ;;  %v1905_v58 = vld [vmem:[%s14447_s4 + $0x248] sm:$0xff] }
 0x298   :  { %10248 = vmatpush1.bf16.msra.mxu1 %v10247_v0  ;;  %v1871_v0 = vld [vmem:[%s14447_s4 + $0x138] sm:$0xff] }
 0x299   :  { %10250 = vmatprep.subr.bf16.mxu1 %v10249_v3  ;;  %v10273_v3 = vpack.c.bf16 %v1869_v62, %v1865_v60  ;;  %v10401_v4 = vpack.c.bf16 %v1871_v0, %v1867_v63  ;;  %v1909_v60 = vld [vmem:[%s14447_s4 + $0x268] sm:$0xff]  ;;  %v1911_v62 = vld [vmem:[%s14447_s4 + $0x278] sm:$0xff] }
 0x29a   :  { %v10293_v63 = vpack.c.bf16 %v1909_v60, %v1905_v58  ;;  %v1949_v58 = vld [vmem:[%s14447_s4 + $0x3a8] sm:$0xff] }
 0x29b   :  { %10274 = vmatprep.subr.bf16.mxu0 %v10273_v3  ;;  %v1904_v3 = vld [vmem:[%s14447_s4 + $0x240] sm:$0xff] }
 0x29c   :  { %10252 = vmatpush1.bf16.msra.mxu1 %v10251_v8  ;;  %v10275_v8 = vpack.c.bf16 %v1868_v6, %v1864_v5  ;;  %v1906_v5 = vld [vmem:[%s14447_s4 + $0x250] sm:$0xff] }
 0x29d   :  { %10254 = vmatprep.subr.bf16.mxu1 %v10253_v9  ;;  %v1870_v9 = vld [vmem:[%s14447_s4 + $0x130] sm:$0xff] }
 0x29e   :  { %10276 = vmatpush1.bf16.msra.mxu0 %v10275_v8  ;;  %v1913_v8 = vld [vmem:[%s14447_s4 + $0x288] sm:$0xff] }
 0x29f   :  { %10278 = vmatprep.subr.bf16.mxu0 %v10277_v13  ;;  %v1919_v13 = vld [vmem:[%s14447_s4 + $0x2b8] sm:$0xff] }
 0x2a0   :  { %10256 = vmatpush1.bf16.msra.mxu1 %v10255_v12  ;;  %v10403_v12 = vpack.c.bf16 %v1870_v9, %v1866_v7  ;;  %v1910_v7 = vld [vmem:[%s14447_s4 + $0x270] sm:$0xff]  ;;  %v1917_v9 = vld [vmem:[%s14447_s4 + $0x2a8] sm:$0xff] }
 0x2a1   :  { %10386 = vmatprep.subr.bf16.mxu1 %v10385_v20  ;;  %v1878_v20 = vld [vmem:[%s14447_s4 + $0x170] sm:$0xff]  ;;  %v10423_v10 = vpack.c.bf16 %v1910_v7, %v1906_v5  ;;  %v10297_v11 = vpack.c.bf16 %v1917_v9, %v1913_v8  ;;  %v1944_v7 = vld [vmem:[%s14447_s4 + $0x380] sm:$0xff] }
 0x2a2   :  { %10280 = vmatpush1.bf16.msra.mxu0 %v10279_v21  ;;  %v1925_v21 = vld [vmem:[%s14447_s4 + $0x2e8] sm:$0xff]  ;;  %v1948_v8 = vld [vmem:[%s14447_s4 + $0x3a0] sm:$0xff]  ;;  %v1946_v9 = vld [vmem:[%s14447_s4 + $0x390] sm:$0xff] }
 0x2a3   :  { %8248 = vmatmul.mubr.msk.f32.vlgmr.msra.gmra.mrb[12].mxu1 %vm723_vm1, %v11778_v34  ;;  %v10387_v34 = vpack.c.bf16 %v1838_v23, %v1834_v22  ;;  %v10407_v22 = vpack.c.bf16 %v1878_v20, %v1874_v19  ;;  %v1881_v23 = vld [vmem:[%s14447_s4 + $0x188] sm:$0xff]  ;;  %v10299_v19 = vpack.c.bf16 %v1916_v16, %v1912_v14  ;;  %v1955_v16 = vld [vmem:[%s14447_s4 + $0x3d8] sm:$0xff] }
 0x2a4   :  { %v10281_v25 = vpack.c.bf16 %v1885_v24, %v1881_v23  ;;  %v1921_v20 = vld [vmem:[%s14447_s4 + $0x2c8] sm:$0xff] }
 0x2a5   :  { %10388 = vmatpush1.bf16.msra.mxu1 %v10387_v34  ;;  %v1883_v34 = vld [vmem:[%s14447_s4 + $0x198] sm:$0xff]  ;;  %v10301_v24 = vpack.c.bf16 %v1925_v21, %v1921_v20  ;;  %v10315_v20 = vpack.c.bf16 %v1948_v8, %v1944_v7 }
 0x2a6   :  { %10390 = vmatprep.subr.bf16.mxu1 %v10389_v29  ;;  %v10409_v29 = vpack.c.bf16 %v1887_v26, %v1883_v34  ;;  %10282 = vmatprep.subr.bf16.mxu0 %v10281_v25  ;;  %v1927_v34 = vld [vmem:[%s14447_s4 + $0x2f8] sm:$0xff]  ;;  %v1920_v25 = vld [vmem:[%s14447_s4 + $0x2c0] sm:$0xff] }
 0x2a7   :  { %10284 = vmatpush1.bf16.msra.mxu0 %v10283_v30  ;;  %v1924_v26 = vld [vmem:[%s14447_s4 + $0x2e0] sm:$0xff]  ;;  %v1929_v30 = vld [vmem:[%s14447_s4 + $0x308] sm:$0xff] }
 0x2a9   :  { %10392 = vmatpush1.bf16.msra.mxu1 %v10391_v36  ;;  %v1893_v36 = vld [vmem:[%s14447_s4 + $0x1e8] sm:$0xff] }
 0x2aa   :  { %10394 = vmatprep.subr.bf16.mxu1 %v10393_v44  ;;  %v10285_v38 = vpack.c.bf16 %v1893_v36, %v1889_v35  ;;  %v1890_v44 = vld [vmem:[%s14447_s4 + $0x1d0] sm:$0xff]  ;;  %v1935_v35 = vld [vmem:[%s14447_s4 + $0x338] sm:$0xff]  ;;  %v10303_v36 = vpack.c.bf16 %v1924_v26, %v1920_v25 }
 0x2ab   :  { %v10415_v46 = vpack.c.bf16 %v1894_v45, %v1890_v44  ;;  %v1937_v44 = vld [vmem:[%s14447_s4 + $0x348] sm:$0xff] }
 0x2ac   :  { %10286 = vmatprep.subr.bf16.mxu0 %v10285_v38  ;;  %v10305_v38 = vpack.c.bf16 %v1933_v32, %v1929_v30  ;;  %v1941_v45 = vld [vmem:[%s14447_s4 + $0x368] sm:$0xff] }
 0x2ad   :  { %10396 = vmatpush1.bf16.msra.mxu1 %v10395_v48  ;;  %10288 = vmatpush1.bf16.msra.mxu0 %v10287_v43  ;;  %v1901_v48 = vld [vmem:[%s14447_s4 + $0x228] sm:$0xff]  ;;  %v1934_v43 = vld [vmem:[%s14447_s4 + $0x330] sm:$0xff]  ;;  %v10309_v51 = vpack.c.bf16 %v1941_v45, %v1937_v44  ;;  %v1967_v44 = vld [vmem:[%s14447_s4 + $0x438] sm:$0xff] }
 0x2ae   :  { %10398 = vmatprep.subr.bf16.mxu1 %v10397_v56  ;;  %v10289_v50 = vpack.c.bf16 %v1901_v48, %v1897_v47  ;;  %v1898_v56 = vld [vmem:[%s14447_s4 + $0x210] sm:$0xff]  ;;  %v1939_v47 = vld [vmem:[%s14447_s4 + $0x358] sm:$0xff] }
 0x2af   :  { %v10419_v59 = vpack.c.bf16 %v1902_v57, %v1898_v56  ;;  %v1943_v48 = vld [vmem:[%s14447_s4 + $0x378] sm:$0xff]  ;;  %v1942_v56 = vld [vmem:[%s14447_s4 + $0x370] sm:$0xff]  ;;  %v1945_v57 = vld [vmem:[%s14447_s4 + $0x388] sm:$0xff] }
 0x2b0   :  { %10290 = vmatprep.subr.bf16.mxu0 %v10289_v50  ;;  %v10435_v50 = vpack.c.bf16 %v1934_v43, %v1930_v41  ;;  %v1965_v41 = vld [vmem:[%s14447_s4 + $0x428] sm:$0xff] }
 0x2b1   :  { %10400 = vmatpush1.bf16.msra.mxu1 %v10399_v61  ;;  %v1907_v61 = vld [vmem:[%s14447_s4 + $0x258] sm:$0xff]  ;;  %10292 = vmatpush1.bf16.msra.mxu0 %v10291_v55  ;;  %v10437_v55 = vpack.c.bf16 %v1943_v48, %v1939_v47  ;;  %v10321_v43 = vpack.c.bf16 %v1965_v41, %v1961_v40  ;;  %v11973_v48 = vld [vmem:[#allocation9 + $0x8] sm:$0xff] }
 0x2b2   :  { %10402 = vmatprep.subr.bf16.mxu1 %v10401_v4  ;;  %v10421_v0 = vpack.c.bf16 %v1911_v62, %v1907_v61  ;;  %v1908_v4 = vld [vmem:[%s14447_s4 + $0x260] sm:$0xff]  ;;  %10294 = vmatprep.subr.bf16.mxu0 %v10293_v63  ;;  %v1947_v61 = vld [vmem:[%s14447_s4 + $0x398] sm:$0xff] }
 0x2b3   :  { %v10295_v6 = vpack.c.bf16 %v1908_v4, %v1904_v3  ;;  %v1951_v62 = vld [vmem:[%s14447_s4 + $0x3b8] sm:$0xff]  ;;  %v11938_v63 = vld [vmem:[#allocation9] sm:$0xff]  ;;  %v10311_v4 = vpack.c.bf16 %v1940_v53, %v1936_v52 }
 0x2b5   :  { %10404 = vmatpush1.bf16.msra.mxu1 %v10403_v12  ;;  %v1915_v12 = vld [vmem:[%s14447_s4 + $0x298] sm:$0xff]  ;;  %10296 = vmatpush1.bf16.msra.mxu0 %v10295_v6  ;;  %v10313_v6 = vpack.c.bf16 %v1949_v58, %v1945_v57 }
 0x2b6   :  { %10406 = vmatprep.subr.bf16.mxu1 %v10405_v17  ;;  %v10425_v15 = vpack.c.bf16 %v1919_v13, %v1915_v12  ;;  %v1914_v17 = vld [vmem:[%s14447_s4 + $0x290] sm:$0xff]  ;;  %10298 = vmatprep.subr.bf16.mxu0 %v10297_v11  ;;  %v1953_v12 = vld [vmem:[%s14447_s4 + $0x3c8] sm:$0xff] }
 0x2b7   :  { %v10427_v23 = vpack.c.bf16 %v1918_v18, %v1914_v17  ;;  %v1950_v11 = vld [vmem:[%s14447_s4 + $0x3b0] sm:$0xff]  ;;  %v1957_v13 = vld [vmem:[%s14447_s4 + $0x3e8] sm:$0xff]  ;;  %v1959_v17 = vld [vmem:[%s14447_s4 + $0x3f8] sm:$0xff] }
 0x2b8   :  { %v10443_v21 = vpack.c.bf16 %v1950_v11, %v1946_v9  ;;  %v10445_v26 = vpack.c.bf16 %v1959_v17, %v1955_v16 }
 0x2b9   :  { %10408 = vmatpush1.bf16.msra.mxu1 %v10407_v22  ;;  %v1923_v22 = vld [vmem:[%s14447_s4 + $0x2d8] sm:$0xff]  ;;  %10300 = vmatpush1.bf16.msra.mxu0 %v10299_v19 }
 0x2ba   :  { %10410 = vmatprep.subr.bf16.mxu1 %v10409_v29  ;;  %v10429_v27 = vpack.c.bf16 %v1927_v34, %v1923_v22  ;;  %v1926_v29 = vld [vmem:[%s14447_s4 + $0x2f0] sm:$0xff]  ;;  %10302 = vmatprep.subr.bf16.mxu0 %v10301_v24  ;;  %v10317_v22 = vpack.c.bf16 %v1957_v13, %v1953_v12  ;;  %v1956_v24 = vld [vmem:[%s14447_s4 + $0x3e0] sm:$0xff] }
 0x2bb   :  { %v10431_v37 = vpack.c.bf16 %v1926_v29, %v1922_v28  ;;  %v1958_v28 = vld [vmem:[%s14447_s4 + $0x3f0] sm:$0xff] }
 0x2bd   :  { %10412 = vmatpush1.bf16.msra.mxu1 %v10411_v33  ;;  %v1931_v33 = vld [vmem:[%s14447_s4 + $0x318] sm:$0xff]  ;;  %10304 = vmatpush1.bf16.msra.mxu0 %v10303_v36 }
 0x2be   :  { %10414 = vmatprep.subr.bf16.mxu1 %v10413_v42  ;;  %v10433_v42 = vpack.c.bf16 %v1935_v35, %v1931_v33  ;;  %10306 = vmatprep.subr.bf16.mxu0 %v10305_v38 }
 0x2c1   :  { %10416 = vmatpush1.bf16.msra.mxu1 %v10415_v46  ;;  %v11920_v46 = vshrl.u32 %v603_v31, 7  ;;  %10308 = vmatpush1.bf16.msra.mxu0 %v10307_v49 }
 0x2c2   :  { %10418 = vmatprep.subr.bf16.mxu1 %v10417_v54  ;;  %v1938_v54 = vld [vmem:[%s14447_s4 + $0x350] sm:$0xff]  ;;  %10310 = vmatprep.subr.bf16.mxu0 %v10309_v51 }
 0x2c3   :  { %v11934_v60 = vsub.s32 4, %v11920_v46  ;;  %v11944_v3 = vsub.s32 5, %v11920_v46  ;;  %v10439_v5 = vpack.c.bf16 %v1942_v56, %v1938_v54  ;;  %v11971_v47 = vsub.s32 2, %v11920_v46 }
 0x2c4   :  { %v11976_v49 = vsub.s32 3, %v11920_v46  ;;  %v11987_v7 = vsub.s32 6, %v11920_v46  ;;  %v11990_v8 = vsub.s32 7, %v11920_v46 }
 0x2c5   :  { %10420 = vmatpush1.bf16.msra.mxu1 %v10419_v59  ;;  %v11931_v59 = vsub.s32 0, %v11920_v46  ;;  %v626_v19 = vrot.slane %v11938_v63, %v11944_v3  ;;  %10312 = vmatpush1.bf16.msra.mxu0 %v10311_v4  ;;  %v658_v12 = vrot.slane %v11973_v48, %v11944_v3 }
 0x2c6   :  { %10422 = vmatprep.subr.bf16.mxu1 %v10421_v0  ;;  %v11941_v0 = vsub.s32 1, %v11920_v46  ;;  %10314 = vmatprep.subr.bf16.mxu0 %v10313_v6  ;;  %v618_v52 = vrot.slane %v11938_v63, %v11976_v49  ;;  %v630_v9 = vrot.slane %v11938_v63, %v11987_v7  ;;  %v634_v11 = vrot.slane %v11938_v63, %v11990_v8 }
 0x2c7   :  { %v606_v14 = vrot.slane %v11938_v63, %v11931_v59  ;;  %v638_v51 = vrot.slane %v11973_v48, %v11931_v59  ;;  %v666_v41 = vrot.slane %v11973_v48, %v11990_v8 }
 0x2c8   :  { %v610_v18 = vrot.slane %v11938_v63, %v11941_v0  ;;  %v642_v53 = vrot.slane %v11973_v48, %v11941_v0 }
 0x2c9   :  { %10424 = vmatpush1.bf16.msra.mxu1 %v10423_v10  ;;  %v10441_v10 = vpack.c.bf16 %v1951_v62, %v1947_v61  ;;  %10316 = vmatpush1.bf16.msra.mxu0 %v10315_v20 }
 0x2ca   :  { %10426 = vmatprep.subr.bf16.mxu1 %v10425_v15  ;;  %v622_v15 = vrot.slane %v11938_v63, %v11934_v60  ;;  %10318 = vmatprep.subr.bf16.mxu0 %v10317_v22 }
 0x2cd   :  { %10428 = vmatpush1.bf16.msra.mxu1 %v10427_v23  ;;  %v1952_v23 = vld [vmem:[%s14447_s4 + $0x3c0] sm:$0xff] }
 0x2ce   :  { %10430 = vmatprep.subr.bf16.mxu1 %v10429_v27  ;;  %v1954_v27 = vld [vmem:[%s14447_s4 + $0x3d0] sm:$0xff]  ;;  %v10319_v36 = vpack.c.bf16 %v1956_v24, %v1952_v23 }
 0x2cf   :  { %v10447_v38 = vpack.c.bf16 %v1958_v28, %v1954_v27 }
 0x2d0   :  { %10320 = vmatpush1.bf16.msra.mxu0 %v10319_v36 }
 0x2d1   :  { %10432 = vmatpush1.bf16.msra.mxu1 %v10431_v37  ;;  %10322 = vmatprep.subr.bf16.mxu0 %v10321_v43 }
 0x2d2   :  { %10434 = vmatprep.subr.bf16.mxu1 %v10433_v42  ;;  %v1963_v42 = vld [vmem:[%s14447_s4 + $0x418] sm:$0xff] }
 0x2d3   :  { %v10449_v45 = vpack.c.bf16 %v1967_v44, %v1963_v42 }
 0x2d5   :  { %10436 = vmatpush1.bf16.msra.mxu1 %v10435_v50  ;;  %v614_v50 = vrot.slane %v11938_v63, %v11971_v47  ;;  %v12000_v63 = vld [vmem:[#allocation9 + $0x10] sm:$0xff] }
 0x2d6   :  { %10438 = vmatprep.subr.bf16.mxu1 %v10437_v55  ;;  %v674_v27 = vrot.slane %v12000_v63, %v11941_v0  ;;  %v686_v40 = vrot.slane %v12000_v63, %v11934_v60  ;;  %v690_v42 = vrot.slane %v12000_v63, %v11944_v3  ;;  %v678_v3 = vrot.slane %v12000_v63, %v11971_v47 }
 0x2d9   :  { %10440 = vmatpush1.bf16.msra.mxu1 %v10439_v5 }
 0x2da   :  { %10442 = vmatprep.subr.bf16.mxu1 %v10441_v10  ;;  %v654_v10 = vrot.slane %v11973_v48, %v11934_v60 }
 0x2dd   :  { %10444 = vmatpush1.bf16.msra.mxu1 %v10443_v21 }
 0x2de   :  { %10446 = vmatprep.subr.bf16.mxu1 %v10445_v26  ;;  %v650_v26 = vrot.slane %v11973_v48, %v11976_v49 }
 0x2e1   :  { %10448 = vmatpush1.bf16.msra.mxu1 %v10447_v38 }
 0x2e2   :  { %10450 = vmatprep.subr.bf16.mxu1 %v10449_v45 }
 0x316   :  { %v793_v34 = vpop.f32.mrb[0].mxu1  ;;  %v935_v25 = vpop.f32.mrb[2].mxu0 }
 0x317   :  { %v794_v29 = vadd.f32 %v793_v34, %v606_v14  ;;  %v936_v30 = vadd.f32 %v935_v25, %v622_v15  ;;  %v795_v31 = vpop.f32.mrb[1].mxu1  ;;  %v937_v32 = vpop.f32.mrb[3].mxu0  ;;  %v646_v34 = vrot.slane %v11973_v48, %v11971_v47  ;;  %v670_v25 = vrot.slane %v12000_v63, %v11931_v59 }
 0x318   :  { %v796_v33 = vadd.f32 %v795_v31, %v610_v18  ;;  %v938_v35 = vadd.f32 %v937_v32, %v626_v19 }
 0x319   :  { %1579 = vst [vmem:[#allocation2] sm:$0x3] %v794_v29  ;;  %v1587_v37 = vrot.slane %v936_v30, 6 }
 0x31a   :  { %1580 = vst [vmem:[#allocation2 + $0x8] sm:$0x3] %v796_v33  ;;  %v1588_v39 = vrot.slane %v938_v35, 6 }
 0x31b   :  { %1595 = vst [vmem:[#allocation2] sm:$0xc] %v1587_v37 }
 0x31c   :  { %1596 = vst [vmem:[#allocation2 + $0x8] sm:$0xc] %v1588_v39  ;;  %v662_v39 = vrot.slane %v11973_v48, %v11987_v7 }
 0x326   :  { %v864_v54 = vpop.f32.mrb[2].mxu1  ;;  %v1077_v55 = vpop.f32.mrb[4].mxu0 }
 0x327   :  { %v865_v56 = vadd.f32 %v864_v54, %v614_v50  ;;  %v1078_v57 = vadd.f32 %v1077_v55, %v638_v51  ;;  %v866_v58 = vpop.f32.mrb[3].mxu1  ;;  %v1079_v61 = vpop.f32.mrb[5].mxu0 }
 0x328   :  { %v867_v62 = vadd.f32 %v866_v58, %v618_v52  ;;  %v1080_v4 = vadd.f32 %v1079_v61, %v642_v53 }
 0x329   :  { %1581 = vst [vmem:[#allocation2 + $0x10] sm:$0x3] %v865_v56  ;;  %v1603_v5 = vrot.slane %v1078_v57, 4 }
 0x32a   :  { %1582 = vst [vmem:[#allocation2 + $0x18] sm:$0x3] %v867_v62  ;;  %v1604_v6 = vrot.slane %v1080_v4, 4  ;;  %v682_v4 = vrot.slane %v12000_v63, %v11976_v49 }
 0x32b   :  { %1611 = vst [vmem:[#allocation2] sm:$0x30] %v1603_v5 }
 0x32c   :  { %1612 = vst [vmem:[#allocation2 + $0x8] sm:$0x30] %v1604_v6 }
 0x336   :  { %v1006_v13 = vpop.f32.mrb[4].mxu1  ;;  %v1219_v14 = vpop.f32.mrb[6].mxu0 }
 0x337   :  { %v1007_v15 = vadd.f32 %v1006_v13, %v630_v9  ;;  %v1220_v16 = vadd.f32 %v1219_v14, %v654_v10  ;;  %v1008_v17 = vpop.f32.mrb[5].mxu1  ;;  %v1221_v18 = vpop.f32.mrb[7].mxu0 }
 0x338   :  { %v1009_v19 = vadd.f32 %v1008_v17, %v634_v11  ;;  %v1222_v20 = vadd.f32 %v1221_v18, %v658_v12 }
 0x339   :  { %v1589_v21 = vrot.slane %v1007_v15, 6  ;;  %v1619_v22 = vrot.slane %v1220_v16, 2 }
 0x33a   :  { %v1590_v23 = vrot.slane %v1009_v19, 6  ;;  %v1620_v24 = vrot.slane %v1222_v20, 2 }
 0x33b   :  { %1597 = vst [vmem:[#allocation2 + $0x10] sm:$0xc] %v1589_v21  ;;  %1627 = vst [vmem:[#allocation2] sm:$0xc0] %v1619_v22 }
 0x33c   :  { %1598 = vst [vmem:[#allocation2 + $0x18] sm:$0xc] %v1590_v23  ;;  %1628 = vst [vmem:[#allocation2 + $0x8] sm:$0xc0] %v1620_v24 }
 0x342   :  { %v1651_v61 = vld [vmem:[#allocation2] sm:$0xff] }
 0x343   :  { %v1652_v5 = vld [vmem:[#allocation2 + $0x8] sm:$0xff] }
 0x346   :  { %v1148_v28 = vpop.f32.mrb[6].mxu1  ;;  %v1361_v29 = vpop.f32.mrb[8].mxu0 }
 0x347   :  { %v1149_v30 = vadd.f32 %v1148_v28, %v646_v34  ;;  %v1362_v31 = vadd.f32 %v1361_v29, %v670_v25  ;;  %v1150_v32 = vpop.f32.mrb[7].mxu1  ;;  %v1363_v33 = vpop.f32.mrb[9].mxu0  ;;  %v698_v29 = vrot.slane %v12000_v63, %v11990_v8 }
 0x348   :  { %v1151_v35 = vadd.f32 %v1150_v32, %v650_v26  ;;  %v1364_v36 = vadd.f32 %v1363_v33, %v674_v27  ;;  %v694_v27 = vrot.slane %v12000_v63, %v11987_v7 }
 0x349   :  { %v1605_v37 = vrot.slane %v1149_v30, 4  ;;  %1631 = vst [vmem:[#allocation2 + $0x20] sm:$0x3] %v1362_v31 }
 0x34a   :  { %v1606_v38 = vrot.slane %v1151_v35, 4  ;;  %1632 = vst [vmem:[#allocation2 + $0x28] sm:$0x3] %v1364_v36 }
 0x34b   :  { %1613 = vst [vmem:[#allocation2 + $0x10] sm:$0x30] %v1605_v37 }
 0x34c   :  { %1614 = vst [vmem:[#allocation2 + $0x18] sm:$0x30] %v1606_v38 }
 0x356   :  { %v1290_v43 = vpop.f32.mrb[8].mxu1  ;;  %v1503_v44 = vpop.f32.mrb[10].mxu0 }
 0x357   :  { %v1291_v45 = vadd.f32 %v1290_v43, %v662_v39  ;;  %v1504_v50 = vadd.f32 %v1503_v44, %v686_v40  ;;  %v1292_v51 = vpop.f32.mrb[9].mxu1  ;;  %v1505_v52 = vpop.f32.mrb[11].mxu0 }
 0x358   :  { %v1293_v53 = vadd.f32 %v1292_v51, %v666_v41  ;;  %v1506_v54 = vadd.f32 %v1505_v52, %v690_v42 }
 0x359   :  { %v1621_v55 = vrot.slane %v1291_v45, 2  ;;  %v1639_v56 = vrot.slane %v1504_v50, 6 }
 0x35a   :  { %v1622_v57 = vrot.slane %v1293_v53, 2  ;;  %v1640_v58 = vrot.slane %v1506_v54, 6 }
 0x35b   :  { %1629 = vst [vmem:[#allocation2 + $0x10] sm:$0xc0] %v1621_v55  ;;  %1647 = vst [vmem:[#allocation2 + $0x20] sm:$0xc] %v1639_v56 }
 0x35c   :  { %1630 = vst [vmem:[#allocation2 + $0x18] sm:$0xc0] %v1622_v57  ;;  %1648 = vst [vmem:[#allocation2 + $0x28] sm:$0xc] %v1640_v58 }
 0x362   :  { %v1655_v60 = vld [vmem:[#allocation2 + $0x20] sm:$0xf] }
 0x363   :  { %v1656_v48 = vld [vmem:[#allocation2 + $0x28] sm:$0xf]  ;;  %v1662_v62 = vsel %vm1661_vm2, %v1655_v60, 0.0 }
 0x364   :  { %v1670_v6 = vsel %vm1661_vm2, %v1656_v48, 0.0  ;;  %v1663_v9 = vadd.f32 %v1662_v62, %v1651_v61 }
 0x365   :  { %v1671_v10 = vadd.f32 %v1670_v6, %v1652_v5 }
 0x366   :  { %v1432_v11 = vpop.f32.mrb[10].mxu1  ;;  %v1664_v12 = vrot.slane %v1663_v9, 4 }
 0x367   :  { %v1433_v13 = vadd.f32 %v1432_v11, %v678_v3  ;;  %v1434_v14 = vpop.f32.mrb[11].mxu1  ;;  %v1672_v15 = vrot.slane %v1671_v10, 4 }
 0x368   :  { %v1435_v16 = vadd.f32 %v1434_v14, %v682_v4  ;;  %v1665_v17 = vadd.f32 %v1664_v12, %v1663_v9  ;;  %v1654_v4 = vld [vmem:[#allocation2 + $0x18] sm:$0xff] }
 0x369   :  { %1633 = vst [vmem:[#allocation2 + $0x30] sm:$0x3] %v1433_v13  ;;  %v1673_v18 = vadd.f32 %v1672_v15, %v1671_v10 }
 0x36a   :  { %1634 = vst [vmem:[#allocation2 + $0x38] sm:$0x3] %v1435_v16  ;;  %v1666_v19 = vrot.slane %v1665_v17, 2 }
 0x36b   :  { %v1674_v20 = vrot.slane %v1673_v18, 2 }
 0x36c   :  { %v1667_v21 = vadd.f32 %v1666_v19, %v1665_v17 }
 0x36d   :  { %v1675_v22 = vadd.f32 %v1674_v20, %v1673_v18 }
 0x36e   :  { %v1668_v23 = vrot.slane %v1667_v21, 1 }
 0x36f   :  { %v1676_v24 = vrot.slane %v1675_v22, 1 }
 0x370   :  { %v1669_v34 = vadd.f32 %v1668_v23, %v1667_v21 }
 0x371   :  { %v1677_v25 = vadd.f32 %v1676_v24, %v1675_v22 }
 0x372   :  { %v1694_v26 = vmul.f32 0.083333336, %v1669_v34 }
 0x373   :  { %v1695_v28 = vmul.f32 0.083333336, %v1677_v25 }
 0x374   :  { %v12028_v30 = vsub.f32 %v1651_v61, %v1694_v26  ;;  %v12030_v31 = vsub.f32 %v1655_v60, %v1694_v26  ;;  %v12049_v26 = vld [vmem:[%s14448_s7] sm:$0xf] }
 0x375   :  { %v12032_v32 = vsub.f32 %v1652_v5, %v1695_v28  ;;  %v12034_v33 = vsub.f32 %v1656_v48, %v1695_v28  ;;  %v1653_v48 = vld [vmem:[#allocation2 + $0x10] sm:$0xff]  ;;  %v12052_v28 = vld [vmem:[%s14449_s11] sm:$0xf] }
 0x376   :  { %v1574_v35 = vpop.f32.mrb[12].mxu1  ;;  %v1706_v36 = vmul.f32 %v12028_v30, %v12028_v30  ;;  %v1710_v37 = vmul.f32 %v12030_v31, %v12030_v31 }
 0x377   :  { %v1575_v7 = vadd.f32 %v1574_v35, %v694_v27  ;;  %v1576_v38 = vpop.f32.mrb[13].mxu1  ;;  %v1707_v8 = vmul.f32 %v12032_v32, %v12032_v32  ;;  %v1711_v63 = vmul.f32 %v12034_v33, %v12034_v33 }
 0x378   :  { %v1577_v39 = vadd.f32 %v1576_v38, %v698_v29  ;;  %v1714_v40 = vsel %vm1661_vm2, %v1710_v37, 0.0  ;;  %v1770_v37 = vrot.slane %v12049_v26, %v11931_v59 }
 0x379   :  { %v1641_v41 = vrot.slane %v1575_v7, 6  ;;  %v1722_v42 = vsel %vm1661_vm2, %v1711_v63, 0.0  ;;  %v1715_v43 = vadd.f32 %v1714_v40, %v1706_v36  ;;  %v1774_v36 = vrot.slane %v12049_v26, %v11941_v0 }
 0x37a   :  { %v1642_v44 = vrot.slane %v1577_v39, 6  ;;  %v1723_v45 = vadd.f32 %v1722_v42, %v1707_v8  ;;  %v1803_v63 = vrot.slane %v12052_v28, %v11941_v0  ;;  %v1799_v39 = vrot.slane %v12052_v28, %v11931_v59 }
 0x37b   :  { %1649 = vst [vmem:[#allocation2 + $0x30] sm:$0xc] %v1641_v41  ;;  %v1716_v50 = vrot.slane %v1715_v43, 4 }
 0x37c   :  { %1650 = vst [vmem:[#allocation2 + $0x38] sm:$0xc] %v1642_v44  ;;  %v1724_v51 = vrot.slane %v1723_v45, 4 }
 0x37d   :  { %v1717_v52 = vadd.f32 %v1716_v50, %v1715_v43 }
 0x37e   :  { %v1725_v53 = vadd.f32 %v1724_v51, %v1723_v45 }
 0x37f   :  { %v1718_v54 = vrot.slane %v1717_v52, 2 }
 0x380   :  { %v1726_v55 = vrot.slane %v1725_v53, 2 }
 0x381   :  { %v1719_v56 = vadd.f32 %v1718_v54, %v1717_v52  ;;  %v1960_v54 = vld [vmem:[%s14447_s4 + $0x400] sm:$0xff] }
 0x382   :  { %v1727_v57 = vadd.f32 %v1726_v55, %v1725_v53  ;;  %v1657_v58 = vld [vmem:[#allocation2 + $0x30] sm:$0xf] }
 0x383   :  { %v1720_v60 = vrot.slane %v1719_v56, 1  ;;  %v1658_v3 = vld [vmem:[#allocation2 + $0x38] sm:$0xf]  ;;  %v1678_v61 = vsel %vm1661_vm2, %v1657_v58, 0.0 }
 0x384   :  { %v1728_v62 = vrot.slane %v1727_v57, 1  ;;  %v1686_v5 = vsel %vm1661_vm2, %v1658_v3, 0.0  ;;  %v1679_v6 = vadd.f32 %v1678_v61, %v1653_v48 }
 0x385   :  { %v1721_v9 = vadd.f32 %v1720_v60, %v1719_v56  ;;  %v1687_v10 = vadd.f32 %v1686_v5, %v1654_v4  ;;  %v1966_v60 = vld [vmem:[%s14447_s4 + $0x430] sm:$0xff] }
 0x386   :  { %v1729_v11 = vadd.f32 %v1728_v62, %v1727_v57  ;;  %v1680_v12 = vrot.slane %v1679_v6, 4  ;;  %v1964_v57 = vld [vmem:[%s14447_s4 + $0x420] sm:$0xff]  ;;  %v1969_v62 = vld [vmem:[%s14447_s4 + $0x448] sm:$0xff] }
 0x387   :  { %v1746_v13 = vmul.f32 0.083333336, %v1721_v9  ;;  %v1688_v14 = vrot.slane %v1687_v10, 4  ;;  %v1971_v9 = vld [vmem:[%s14447_s4 + $0x458] sm:$0xff] }
 0x388   :  { %v1747_v15 = vmul.f32 0.083333336, %v1729_v11  ;;  %v1681_v16 = vadd.f32 %v1680_v12, %v1679_v6  ;;  %v1973_v6 = vld [vmem:[%s14447_s4 + $0x468] sm:$0xff] }
 0x389   :  { %v1750_v17 = vadd.f32 1e-05, %v1746_v13  ;;  %v1689_v18 = vadd.f32 %v1688_v14, %v1687_v10  ;;  %v1975_v10 = vld [vmem:[%s14447_s4 + $0x478] sm:$0xff]  ;;  %v10323_v13 = vpack.c.bf16 %v1964_v57, %v1960_v54  ;;  %v1988_v57 = vld [vmem:[%s14447_s4 + $0x4e0] sm:$0xff] }
 0x38a   :  { %v1751_v19 = vadd.f32 1e-05, %v1747_v15  ;;  %v1682_v20 = vrot.slane %v1681_v16, 2  ;;  %v1968_v15 = vld [vmem:[%s14447_s4 + $0x440] sm:$0xff] }
 0x38b   :  { %11101 = vrsqrt.f32 %v1750_v17  ;;  %v1690_v21 = vrot.slane %v1689_v18, 2 }
 0x38c   :  { %11103 = vrsqrt.f32 %v1751_v19  ;;  %v1683_v22 = vadd.f32 %v1682_v20, %v1681_v16  ;;  %v1972_v16 = vld [vmem:[%s14447_s4 + $0x460] sm:$0xff]  ;;  %v1970_v20 = vld [vmem:[%s14447_s4 + $0x450] sm:$0xff] }
 0x38d   :  { %v1691_v23 = vadd.f32 %v1690_v21, %v1689_v18  ;;  %v1974_v21 = vld [vmem:[%s14447_s4 + $0x470] sm:$0xff] }
 0x38e   :  { %v1684_v24 = vrot.slane %v1683_v22, 1 }
 0x38f   :  { %v1692_v34 = vrot.slane %v1691_v23, 1 }
 0x390   :  { %v1685_v25 = vadd.f32 %v1684_v24, %v1683_v22  ;;  %v1977_v22 = vld [vmem:[%s14447_s4 + $0x488] sm:$0xff]  ;;  %v10325_v24 = vpack.c.bf16 %v1973_v6, %v1969_v62  ;;  %v1995_v6 = vld [vmem:[%s14447_s4 + $0x518] sm:$0xff] }
 0x391   :  { %v1693_v27 = vadd.f32 %v1692_v34, %v1691_v23  ;;  %v10453_v34 = vpack.c.bf16 %v1975_v10, %v1971_v9  ;;  %v1993_v62 = vld [vmem:[%s14447_s4 + $0x508] sm:$0xff]  ;;  %v1999_v9 = vld [vmem:[%s14447_s4 + $0x538] sm:$0xff] }
 0x392   :  { %v1696_v29 = vmul.f32 0.083333336, %v1685_v25  ;;  %v1981_v25 = vld [vmem:[%s14447_s4 + $0x4a8] sm:$0xff] }
 0x393   :  { %v1697_v35 = vmul.f32 0.083333336, %v1693_v27  ;;  %v1979_v27 = vld [vmem:[%s14447_s4 + $0x498] sm:$0xff] }
 0x394   :  { %v12058_v7 = vsub.f32 %v1653_v48, %v1696_v29  ;;  %v12060_v38 = vsub.f32 %v1657_v58, %v1696_v29  ;;  %v1962_v58 = vld [vmem:[%s14447_s4 + $0x410] sm:$0xff]  ;;  %v1983_v29 = vld [vmem:[%s14447_s4 + $0x4b8] sm:$0xff] }
 0x395   :  { %v11102_v8 = vpop.eup %11101  ;;  %v12066_v40 = vsub.f32 %v1654_v4, %v1697_v35  ;;  %v12068_v41 = vsub.f32 %v1658_v3, %v1697_v35  ;;  %v10451_v14 = vpack.c.bf16 %v1966_v60, %v1962_v58 }
 0x396   :  { %v11104_v42 = vpop.eup %11103  ;;  %v1758_v43 = vmul.f32 %v11102_v8, %v12028_v30  ;;  %v1762_v44 = vmul.f32 %v11102_v8, %v12030_v31  ;;  %v1708_v45 = vmul.f32 %v12058_v7, %v12058_v7  ;;  %v1712_v0 = vmul.f32 %v12060_v38, %v12060_v38 }
 0x397   :  { %v1759_v59 = vmul.f32 %v11104_v42, %v12032_v32  ;;  %v1763_v50 = vmul.f32 %v11104_v42, %v12034_v33  ;;  %v1709_v51 = vmul.f32 %v12066_v40, %v12066_v40  ;;  %v1713_v30 = vmul.f32 %v12068_v41, %v12068_v41  ;;  %v1980_v42 = vld [vmem:[%s14447_s4 + $0x4a0] sm:$0xff] }
 0x398   :  { %v1787_v31 = vmul.f32 %v1770_v37, %v1758_v43  ;;  %v1730_v52 = vsel %vm1661_vm2, %v1712_v0, 0.0  ;;  %v1791_v3 = vmul.f32 %v1770_v37, %v1762_v44  ;;  %v10327_v8 = vpack.c.bf16 %v1972_v16, %v1968_v15  ;;  %v1996_v15 = vld [vmem:[%s14447_s4 + $0x520] sm:$0xff] }
 0x399   :  { %v1788_v53 = vmul.f32 %v1774_v36, %v1759_v59  ;;  %v1792_v55 = vmul.f32 %v1774_v36, %v1763_v50  ;;  %v1738_v32 = vsel %vm1661_vm2, %v1713_v30, 0.0  ;;  %v1731_v56 = vadd.f32 %v1730_v52, %v1708_v45  ;;  %v1978_v59 = vld [vmem:[%s14447_s4 + $0x490] sm:$0xff]  ;;  %v1987_v52 = vld [vmem:[%s14447_s4 + $0x4d8] sm:$0xff] }
 0x39a   :  { %v1816_v33 = vadd.f32 %v1799_v39, %v1787_v31  ;;  %v1739_v48 = vadd.f32 %v1738_v32, %v1709_v51  ;;  %v1820_v19 = vadd.f32 %v1799_v39, %v1791_v3  ;;  %v1976_v39 = vld [vmem:[%s14447_s4 + $0x480] sm:$0xff]  ;;  %v10329_v45 = vpack.c.bf16 %v1981_v25, %v1977_v22  ;;  %v1982_v50 = vld [vmem:[%s14447_s4 + $0x4b0] sm:$0xff]  ;;  %v1985_v51 = vld [vmem:[%s14447_s4 + $0x4c8] sm:$0xff] }
 0x39b   :  { %v1817_v61 = vadd.f32 %v1803_v63, %v1788_v53  ;;  %v1732_v4 = vrot.slane %v1731_v56, 4  ;;  %v1821_v5 = vadd.f32 %v1803_v63, %v1792_v55  ;;  %v10455_v63 = vpack.c.bf16 %v1974_v21, %v1970_v20  ;;  %v1989_v31 = vld [vmem:[%s14447_s4 + $0x4e8] sm:$0xff]  ;;  %v1991_v53 = vld [vmem:[%s14447_s4 + $0x4f8] sm:$0xff]  ;;  %v1998_v20 = vld [vmem:[%s14447_s4 + $0x530] sm:$0xff] }
 0x39c   :  { %v1740_v11 = vrot.slane %v1739_v48, 4  ;;  %v1824_v18 = vmax.f32 %v1816_v33, 0.0  ;;  %v1828_v44 = vmax.f32 %v1820_v19, 0.0  ;;  %v10457_v0 = vpack.c.bf16 %v1983_v29, %v1979_v27  ;;  %v1984_v33 = vld [vmem:[%s14447_s4 + $0x4c0] sm:$0xff]  ;;  %v1994_v19 = vld [vmem:[%s14447_s4 + $0x510] sm:$0xff]  ;;  %v2001_v21 = vld [vmem:[%s14447_s4 + $0x548] sm:$0xff] }
 0x39d   :  { %v1825_v12 = vmax.f32 %v1817_v61, 0.0  ;;  %v1733_v17 = vadd.f32 %v1732_v4, %v1731_v56  ;;  %v1829_v36 = vmax.f32 %v1821_v5, 0.0  ;;  %v10331_v32 = vpack.c.bf16 %v1980_v42, %v1976_v39  ;;  %v1990_v61 = vld [vmem:[%s14447_s4 + $0x4f0] sm:$0xff]  ;;  %v1997_v5 = vld [vmem:[%s14447_s4 + $0x528] sm:$0xff]  ;;  %v2000_v29 = vld [vmem:[%s14447_s4 + $0x540] sm:$0xff] }
 0x39e   :  { %v1741_v23 = vadd.f32 %v1740_v11, %v1739_v48  ;;  %v10459_v56 = vpack.c.bf16 %v1982_v50, %v1978_v59  ;;  %v10333_v60 = vpack.c.bf16 %v1989_v31, %v1985_v51  ;;  %v10461_v3 = vpack.c.bf16 %v1991_v53, %v1987_v52  ;;  %v1986_v48 = vld [vmem:[%s14447_s4 + $0x4d0] sm:$0xff]  ;;  %v2009_v39 = vld [vmem:[%s14447_s4 + $0x588] sm:$0xff]  ;;  %v2012_v50 = vld [vmem:[%s14447_s4 + $0x5a0] sm:$0xff] }
 0x39f   :  { %2152 = vmatprep.mubr.f32.mxu0 %v1825_v12  ;;  %2306 = vmatprep.mubr.f32.mxu1 %v1825_v12  ;;  %v1734_v35 = vrot.slane %v1733_v17, 2  ;;  %v10335_v12 = vpack.c.bf16 %v1988_v57, %v1984_v33  ;;  %v10467_v27 = vpack.c.bf16 %v1998_v20, %v1994_v19  ;;  %v2013_v42 = vld [vmem:[%s14447_s4 + $0x5a8] sm:$0xff]  ;;  %v2010_v51 = vld [vmem:[%s14447_s4 + $0x590] sm:$0xff]  ;;  %v1778_v57 = vrot.slane %v12049_v26, %v11971_v47  ;;  %v2024_v19 = vld [vmem:[%s14447_s4 + $0x600] sm:$0xff] }
 0x3a0   :  { %2153 = vmatmul.mubr.f32.vlgmr.msra.gmra.mrb[12].mxu0 %v1824_v18  ;;  %2307 = vmatmul.mubr.f32.vlgmr.msra.gmra.mrb[14].mxu1 %v1824_v18  ;;  %v1742_v37 = vrot.slane %v1741_v23, 2  ;;  %v10465_v18 = vpack.c.bf16 %v1999_v9, %v1995_v6  ;;  %v10345_v31 = vpack.c.bf16 %v2013_v42, %v2009_v39  ;;  %v2017_v53 = vld [vmem:[%s14447_s4 + $0x5c8] sm:$0xff]  ;;  %v2022_v9 = vld [vmem:[%s14447_s4 + $0x5f0] sm:$0xff] }
 0x3a1   :  { %10324 = vmatpush1.bf16.msra.mxu0 %v10323_v13  ;;  %10452 = vmatpush1.bf16.msra.mxu1 %v10451_v14  ;;  %v1735_v43 = vadd.f32 %v1734_v35, %v1733_v17  ;;  %v10463_v13 = vpack.c.bf16 %v1990_v61, %v1986_v48  ;;  %v1992_v14 = vld [vmem:[%s14447_s4 + $0x500] sm:$0xff]  ;;  %v10337_v17 = vpack.c.bf16 %v1997_v5, %v1993_v62  ;;  %v2018_v61 = vld [vmem:[%s14447_s4 + $0x5d0] sm:$0xff] }
 0x3a2   :  { %2158 = vmatprep.mubr.f32.mxu0 %v1829_v36  ;;  %2312 = vmatprep.mubr.f32.mxu1 %v1829_v36  ;;  %v1743_v30 = vadd.f32 %v1742_v37, %v1741_v23  ;;  %v2005_v23 = vld [vmem:[%s14447_s4 + $0x568] sm:$0xff]  ;;  %v10339_v25 = vpack.c.bf16 %v1996_v15, %v1992_v14  ;;  %v2004_v35 = vld [vmem:[%s14447_s4 + $0x560] sm:$0xff]  ;;  %v12147_v62 = vrot.slane %v12049_v26, %v11976_v49  ;;  %v2027_v14 = vld [vmem:[%s14447_s4 + $0x618] sm:$0xff] }
 0x3a3   :  { %10326 = vmatprep.subr.bf16.mxu0 %v10325_v24  ;;  %10454 = vmatprep.subr.bf16.mxu1 %v10453_v34  ;;  %v1736_v54 = vrot.slane %v1735_v43, 1  ;;  %v2003_v24 = vld [vmem:[%s14447_s4 + $0x558] sm:$0xff]  ;;  %v10341_v36 = vpack.c.bf16 %v2005_v23, %v2001_v21  ;;  %v2020_v48 = vld [vmem:[%s14447_s4 + $0x5e0] sm:$0xff]  ;;  %v2026_v20 = vld [vmem:[%s14447_s4 + $0x610] sm:$0xff] }
 0x3a4   :  { %2159 = vmatmul.mubr.f32.gmra.mrb[14].mxu0 %v1828_v44  ;;  %2313 = vmatmul.mubr.f32.gmra.mrb[16].mxu1 %v1828_v44  ;;  %v1744_v55 = vrot.slane %v1743_v30, 1  ;;  %v2007_v34 = vld [vmem:[%s14447_s4 + $0x578] sm:$0xff]  ;;  %v2030_v21 = vld [vmem:[%s14447_s4 + $0x630] sm:$0xff] }
 0x3a5   :  { %10328 = vmatpush1.bf16.msra.mxu0 %v10327_v8  ;;  %10456 = vmatpush1.bf16.msra.mxu1 %v10455_v63  ;;  %v1737_v58 = vadd.f32 %v1736_v54, %v1735_v43  ;;  %v10469_v37 = vpack.c.bf16 %v2007_v34, %v2003_v24  ;;  %v2002_v8 = vld [vmem:[%s14447_s4 + $0x550] sm:$0xff]  ;;  %v2011_v43 = vld [vmem:[%s14447_s4 + $0x598] sm:$0xff]  ;;  %v2021_v54 = vld [vmem:[%s14447_s4 + $0x5e8] sm:$0xff] }
 0x3a6   :  { %10330 = vmatprep.subr.bf16.mxu0 %v10329_v45  ;;  %10458 = vmatprep.subr.bf16.mxu1 %v10457_v0  ;;  %v1745_v4 = vadd.f32 %v1744_v55, %v1743_v30  ;;  %v2006_v63 = vld [vmem:[%s14447_s4 + $0x570] sm:$0xff]  ;;  %v2015_v44 = vld [vmem:[%s14447_s4 + $0x5b8] sm:$0xff]  ;;  %v2008_v45 = vld [vmem:[%s14447_s4 + $0x580] sm:$0xff]  ;;  %v10343_v0 = vpack.c.bf16 %v2004_v35, %v2000_v29 }
 0x3a7   :  { %v1748_v10 = vmul.f32 0.083333336, %v1737_v58  ;;  %v10471_v59 = vpack.c.bf16 %v2006_v63, %v2002_v8  ;;  %v2014_v30 = vld [vmem:[%s14447_s4 + $0x5b0] sm:$0xff]  ;;  %v10473_v52 = vpack.c.bf16 %v2015_v44, %v2011_v43  ;;  %v2019_v55 = vld [vmem:[%s14447_s4 + $0x5d8] sm:$0xff]  ;;  %v2032_v8 = vld [vmem:[%s14447_s4 + $0x640] sm:$0xff] }
 0x3a8   :  { %v1749_v11 = vmul.f32 0.083333336, %v1745_v4  ;;  %v10475_v33 = vpack.c.bf16 %v2014_v30, %v2010_v51  ;;  %v1807_v4 = vrot.slane %v12052_v28, %v11971_v47  ;;  %v12162_v47 = vrot.slane %v12052_v28, %v11976_v49  ;;  %v2031_v15 = vld [vmem:[%s14447_s4 + $0x638] sm:$0xff]  ;;  %v2028_v49 = vld [vmem:[%s14447_s4 + $0x620] sm:$0xff]  ;;  %v2034_v43 = vld [vmem:[%s14447_s4 + $0x650] sm:$0xff] }
 0x3a9   :  { %10332 = vmatpush1.bf16.msra.mxu0 %v10331_v32  ;;  %10460 = vmatpush1.bf16.msra.mxu1 %v10459_v56  ;;  %v1752_v16 = vadd.f32 1e-05, %v1748_v10  ;;  %v2023_v32 = vld [vmem:[%s14447_s4 + $0x5f8] sm:$0xff]  ;;  %v10347_v56 = vpack.c.bf16 %v2012_v50, %v2008_v45  ;;  %v2025_v10 = vld [vmem:[%s14447_s4 + $0x608] sm:$0xff]  ;;  %v10481_v28 = vpack.c.bf16 %v2031_v15, %v2027_v14  ;;  %v2036_v63 = vld [vmem:[%s14447_s4 + $0x660] sm:$0xff] }
 0x3aa   :  { %10334 = vmatprep.subr.bf16.mxu0 %v10333_v60  ;;  %10462 = vmatprep.subr.bf16.mxu1 %v10461_v3  ;;  %v1753_v22 = vadd.f32 1e-05, %v1749_v11  ;;  %v10349_v60 = vpack.c.bf16 %v2021_v54, %v2017_v53  ;;  %v2016_v3 = vld [vmem:[%s14447_s4 + $0x5c0] sm:$0xff]  ;;  %v10477_v6 = vpack.c.bf16 %v2023_v32, %v2019_v55  ;;  %v2029_v11 = vld [vmem:[%s14447_s4 + $0x628] sm:$0xff]  ;;  %v2039_v29 = vld [vmem:[%s14447_s4 + $0x678] sm:$0xff]  ;;  %v10359_v51 = vpack.c.bf16 %v2036_v63, %v2032_v8 }
 0x3ab   :  { %11105 = vrsqrt.f32 %v1752_v16  ;;  %v10351_v16 = vpack.c.bf16 %v2020_v48, %v2016_v3  ;;  %v2038_v44 = vld [vmem:[%s14447_s4 + $0x670] sm:$0xff]  ;;  %v2041_v45 = vld [vmem:[%s14447_s4 + $0x688] sm:$0xff]  ;;  %v2047_v50 = vld [vmem:[%s14447_s4 + $0x6b8] sm:$0xff] }
 0x3ac   :  { %11107 = vrsqrt.f32 %v1753_v22  ;;  %v2033_v22 = vld [vmem:[%s14447_s4 + $0x648] sm:$0xff]  ;;  %v10487_v30 = vpack.c.bf16 %v2038_v44, %v2034_v43  ;;  %v2042_v55 = vld [vmem:[%s14447_s4 + $0x690] sm:$0xff]  ;;  %v2048_v48 = vld [vmem:[%s14447_s4 + $0x6c0] sm:$0xff] }
 0x3ad   :  { %10336 = vmatpush1.bf16.msra.mxu0 %v10335_v12  ;;  %10464 = vmatpush1.bf16.msra.mxu1 %v10463_v13  ;;  %v2046_v32 = vld [vmem:[%s14447_s4 + $0x6b0] sm:$0xff]  ;;  %v2077_v8 = vld [vmem:[%s14447_s4 + $0x7a8] sm:$0xff]  ;;  %v2075_v63 = vld [vmem:[%s14447_s4 + $0x798] sm:$0xff] }
 0x3ae   :  { %10338 = vmatprep.subr.bf16.mxu0 %v10337_v17  ;;  %10466 = vmatprep.subr.bf16.mxu1 %v10465_v18  ;;  %v10491_v3 = vpack.c.bf16 %v2046_v32, %v2042_v55  ;;  %v2072_v44 = vld [vmem:[%s14447_s4 + $0x780] sm:$0xff] }
 0x3b1   :  { %10340 = vmatpush1.bf16.msra.mxu0 %v10339_v25  ;;  %10468 = vmatpush1.bf16.msra.mxu1 %v10467_v27  ;;  %v2037_v25 = vld [vmem:[%s14447_s4 + $0x668] sm:$0xff]  ;;  %v2035_v27 = vld [vmem:[%s14447_s4 + $0x658] sm:$0xff] }
 0x3b2   :  { %10342 = vmatprep.subr.bf16.mxu0 %v10341_v36  ;;  %10470 = vmatprep.subr.bf16.mxu1 %v10469_v37  ;;  %v10355_v36 = vpack.c.bf16 %v2028_v49, %v2024_v19  ;;  %v10483_v37 = vpack.c.bf16 %v2030_v21, %v2026_v20  ;;  %v10357_v39 = vpack.c.bf16 %v2037_v25, %v2033_v22  ;;  %v2065_v19 = vld [vmem:[%s14447_s4 + $0x748] sm:$0xff]  ;;  %v2071_v20 = vld [vmem:[%s14447_s4 + $0x778] sm:$0xff]  ;;  %v2068_v25 = vld [vmem:[%s14447_s4 + $0x760] sm:$0xff] }
 0x3b3   :  { %v10485_v42 = vpack.c.bf16 %v2039_v29, %v2035_v27  ;;  %v2069_v49 = vld [vmem:[%s14447_s4 + $0x768] sm:$0xff] }
 0x3b4   :  { %v10373_v27 = vpack.c.bf16 %v2069_v49, %v2065_v19  ;;  %v2398_v19 = vld [vmem:[%s14450_s13 + $0x10] sm:$0xff]  ;;  %v8251_v49 = vld [vmem:[%s14450_s13 + $0x28] sm:$0xff] }
 0x3b5   :  { %v11106_v58 = vpop.eup %11105  ;;  %10344 = vmatpush1.bf16.msra.mxu0 %v10343_v0  ;;  %10472 = vmatpush1.bf16.msra.mxu1 %v10471_v59  ;;  %v2045_v0 = vld [vmem:[%s14447_s4 + $0x6a8] sm:$0xff]  ;;  %v2043_v59 = vld [vmem:[%s14447_s4 + $0x698] sm:$0xff] }
 0x3b6   :  { %v12151_v5 = vpop.eup %11107  ;;  %10346 = vmatprep.subr.bf16.mxu0 %v10345_v31  ;;  %10474 = vmatprep.subr.bf16.mxu1 %v10473_v52  ;;  %v1760_v12 = vmul.f32 %v11106_v58, %v12058_v7  ;;  %v1764_v13 = vmul.f32 %v11106_v58, %v12060_v38  ;;  %v10479_v7 = vpack.c.bf16 %v2022_v9, %v2018_v61  ;;  %v2040_v31 = vld [vmem:[%s14447_s4 + $0x680] sm:$0xff]  ;;  %v2055_v58 = vld [vmem:[%s14447_s4 + $0x6f8] sm:$0xff]  ;;  %v2050_v9 = vld [vmem:[%s14447_s4 + $0x6d0] sm:$0xff] }
 0x3b7   :  { %v1761_v26 = vmul.f32 %v12151_v5, %v12066_v40  ;;  %v10353_v38 = vpack.c.bf16 %v2029_v11, %v2025_v10  ;;  %v2044_v52 = vld [vmem:[%s14447_s4 + $0x6a0] sm:$0xff]  ;;  %v10361_v53 = vpack.c.bf16 %v2045_v0, %v2041_v45  ;;  %v10489_v54 = vpack.c.bf16 %v2047_v50, %v2043_v59  ;;  %v2054_v10 = vld [vmem:[%s14447_s4 + $0x6f0] sm:$0xff]  ;;  %v2057_v11 = vld [vmem:[%s14447_s4 + $0x708] sm:$0xff] }
 0x3b8   :  { %v1789_v17 = vmul.f32 %v1778_v57, %v1760_v12  ;;  %v1793_v18 = vmul.f32 %v1778_v57, %v1764_v13  ;;  %v2051_v57 = vld [vmem:[%s14447_s4 + $0x6d8] sm:$0xff]  ;;  %v2052_v61 = vld [vmem:[%s14447_s4 + $0x6e0] sm:$0xff]  ;;  %v2061_v12 = vld [vmem:[%s14447_s4 + $0x728] sm:$0xff]  ;;  %v10495_v15 = vpack.c.bf16 %v2054_v10, %v2050_v9 }
 0x3b9   :  { %10348 = vmatpush1.bf16.msra.mxu0 %v10347_v56  ;;  %10476 = vmatpush1.bf16.msra.mxu1 %v10475_v33  ;;  %v1790_v40 = vmul.f32 %v12147_v62, %v1761_v26  ;;  %v2049_v56 = vld [vmem:[%s14447_s4 + $0x6c8] sm:$0xff]  ;;  %v2059_v13 = vld [vmem:[%s14447_s4 + $0x718] sm:$0xff]  ;;  %v10367_v14 = vpack.c.bf16 %v2052_v61, %v2048_v48  ;;  %v2076_v45 = vld [vmem:[%s14447_s4 + $0x7a0] sm:$0xff] }
 0x3ba   :  { %10350 = vmatprep.subr.bf16.mxu0 %v10349_v60  ;;  %10478 = vmatprep.subr.bf16.mxu1 %v10477_v6  ;;  %v12172_v23 = vadd.f32 %v1807_v4, %v1789_v17  ;;  %v12174_v24 = vadd.f32 %v1807_v4, %v1793_v18  ;;  %v2053_v33 = vld [vmem:[%s14447_s4 + $0x6e8] sm:$0xff]  ;;  %v10363_v60 = vpack.c.bf16 %v2044_v52, %v2040_v31  ;;  %v2063_v26 = vld [vmem:[%s14447_s4 + $0x738] sm:$0xff]  ;;  %v2060_v17 = vld [vmem:[%s14447_s4 + $0x720] sm:$0xff] }
 0x3bb   :  { %v1819_v34 = vadd.f32 %v12162_v47, %v1790_v40  ;;  %v10365_v4 = vpack.c.bf16 %v2053_v33, %v2049_v56  ;;  %v10493_v6 = vpack.c.bf16 %v2055_v58, %v2051_v57  ;;  %v10369_v18 = vpack.c.bf16 %v2061_v12, %v2057_v11  ;;  %v2062_v40 = vld [vmem:[%s14447_s4 + $0x730] sm:$0xff]  ;;  %v2085_v31 = vld [vmem:[%s14447_s4 + $0x7e8] sm:$0xff]  ;;  %v2083_v52 = vld [vmem:[%s14447_s4 + $0x7d8] sm:$0xff] }
 0x3bc   :  { %v2074_v50 = vld [vmem:[%s14447_s4 + $0x790] sm:$0xff]  ;;  %v10379_v55 = vpack.c.bf16 %v2076_v45, %v2072_v44  ;;  %v2080_v56 = vld [vmem:[%s14447_s4 + $0x7c0] sm:$0xff] }
 0x3bd   :  { %10352 = vmatpush1.bf16.msra.mxu0 %v10351_v16  ;;  %10480 = vmatpush1.bf16.msra.mxu1 %v10479_v7  ;;  %v1827_v35 = vmax.f32 %v1819_v34, 0.0  ;;  %v2056_v16 = vld [vmem:[%s14447_s4 + $0x700] sm:$0xff]  ;;  %v10497_v7 = vpack.c.bf16 %v2063_v26, %v2059_v13  ;;  %v2858_v44 = vld [vmem:[%s14453_s17 + $0x50] sm:$0xff] }
 0x3be   :  { %10354 = vmatprep.subr.bf16.mxu0 %v10353_v38  ;;  %10482 = vmatprep.subr.bf16.mxu1 %v10481_v28  ;;  %v2058_v38 = vld [vmem:[%s14447_s4 + $0x710] sm:$0xff]  ;;  %v2067_v28 = vld [vmem:[%s14447_s4 + $0x758] sm:$0xff]  ;;  %v10371_v21 = vpack.c.bf16 %v2060_v17, %v2056_v16  ;;  %v2064_v34 = vld [vmem:[%s14447_s4 + $0x740] sm:$0xff] }
 0x3bf   :  { %2229 = vmatprep.mubr.f32.mxu0 %v1827_v35  ;;  %2383 = vmatprep.mubr.f32.mxu1 %v1827_v35  ;;  %v10499_v22 = vpack.c.bf16 %v2062_v40, %v2058_v38  ;;  %v10501_v29 = vpack.c.bf16 %v2071_v20, %v2067_v28  ;;  %v2066_v35 = vld [vmem:[%s14447_s4 + $0x750] sm:$0xff]  ;;  %v2084_v58 = vld [vmem:[%s14447_s4 + $0x7e0] sm:$0xff]  ;;  %v2397_v38 = vld [vmem:[%s14450_s13 + $0x8] sm:$0xff] }
 0x3c0   :  { %v10383_v61 = vpack.c.bf16 %v2084_v58, %v2080_v56  ;;  %v8250_v40 = vld [vmem:[%s14450_s13 + $0x20] sm:$0xff]  ;;  %v8267_v28 = vld [vmem:[%s14450_s13 + $0x48] sm:$0xff]  ;;  %v8260_v20 = vld [vmem:[%s14450_s13 + $0x30] sm:$0xff] }
 0x3c1   :  { %10356 = vmatpush1.bf16.msra.mxu0 %v10355_v36  ;;  %10484 = vmatpush1.bf16.msra.mxu1 %v10483_v37  ;;  %v2070_v36 = vld [vmem:[%s14447_s4 + $0x770] sm:$0xff]  ;;  %v2073_v37 = vld [vmem:[%s14447_s4 + $0x788] sm:$0xff] }
 0x3c2   :  { %10358 = vmatprep.subr.bf16.mxu0 %v10357_v39  ;;  %10486 = vmatprep.subr.bf16.mxu1 %v10485_v42  ;;  %v2079_v39 = vld [vmem:[%s14447_s4 + $0x7b8] sm:$0xff]  ;;  %v10375_v42 = vpack.c.bf16 %v2068_v25, %v2064_v34  ;;  %v10503_v43 = vpack.c.bf16 %v2070_v36, %v2066_v35  ;;  %v10377_v0 = vpack.c.bf16 %v2077_v8, %v2073_v37  ;;  %v8262_v25 = vld [vmem:[%s14450_s13 + $0x40] sm:$0xff]  ;;  %v2850_v8 = vld [vmem:[%s14453_s17 + $0x10] sm:$0xff] }
 0x3c3   :  { %v10505_v59 = vpack.c.bf16 %v2079_v39, %v2075_v63  ;;  %v8269_v34 = vld [vmem:[%s14450_s13 + $0x58] sm:$0xff]  ;;  %v2848_v36 = vld [vmem:[%s14453_s17] sm:$0xff]  ;;  %v2853_v39 = vld [vmem:[%s14453_s17 + $0x28] sm:$0xff] }
 0x3c4   :  { %v2851_v37 = vld [vmem:[%s14453_s17 + $0x18] sm:$0xff]  ;;  %v2862_v56 = vld [vmem:[%s14453_s17 + $0x70] sm:$0xff] }
 0x3c5   :  { %10360 = vmatpush1.bf16.msra.mxu0 %v10359_v51  ;;  %10488 = vmatpush1.bf16.msra.mxu1 %v10487_v30  ;;  %v2078_v51 = vld [vmem:[%s14447_s4 + $0x7b0] sm:$0xff]  ;;  %v2081_v30 = vld [vmem:[%s14447_s4 + $0x7c8] sm:$0xff]  ;;  %v10531_v63 = vpack.c.bf16 %v2851_v37, %v2848_v36 }
 0x3c6   :  { %10362 = vmatprep.subr.bf16.mxu0 %v10361_v53  ;;  %10490 = vmatprep.subr.bf16.mxu1 %v10489_v54  ;;  %v2087_v53 = vld [vmem:[%s14447_s4 + $0x7f8] sm:$0xff]  ;;  %v1765_v54 = vmul.f32 %v12151_v5, %v12068_v41  ;;  %v10507_v32 = vpack.c.bf16 %v2078_v51, %v2074_v50  ;;  %v10381_v33 = vpack.c.bf16 %v2085_v31, %v2081_v30  ;;  %v1826_v5 = vmax.f32 %v12172_v23, 0.0  ;;  %v2856_v50 = vld [vmem:[%s14453_s17 + $0x40] sm:$0xff]  ;;  %v2894_v36 = vld [vmem:[%s14453_s17 + $0x170] sm:$0xff] }
 0x3c7   :  { %v10509_v57 = vpack.c.bf16 %v2087_v53, %v2083_v52  ;;  %v2859_v30 = vld [vmem:[%s14453_s17 + $0x58] sm:$0xff]  ;;  %v2861_v52 = vld [vmem:[%s14453_s17 + $0x68] sm:$0xff]  ;;  %v2864_v53 = vld [vmem:[%s14453_s17 + $0x80] sm:$0xff] }
 0x3c8   :  { %v1794_v48 = vmul.f32 %v12147_v62, %v1765_v54  ;;  %v1830_v62 = vmax.f32 %v12174_v24, 0.0  ;;  %v10565_v31 = vpack.c.bf16 %v2859_v30, %v2856_v50  ;;  %v10537_v54 = vpack.c.bf16 %v2864_v53, %v2861_v52  ;;  %v2890_v37 = vld [vmem:[%s14453_s17 + $0x150] sm:$0xff] }
 0x3c9   :  { %10364 = vmatpush1.bf16.msra.mxu0 %v10363_v60  ;;  %10492 = vmatpush1.bf16.msra.mxu1 %v10491_v3  ;;  %v2082_v60 = vld [vmem:[%s14447_s4 + $0x7d0] sm:$0xff] }
 0x3ca   :  { %10366 = vmatprep.subr.bf16.mxu0 %v10365_v4  ;;  %10494 = vmatprep.subr.bf16.mxu1 %v10493_v6  ;;  %v2086_v3 = vld [vmem:[%s14447_s4 + $0x7f0] sm:$0xff]  ;;  %v1823_v41 = vadd.f32 %v12162_v47, %v1794_v48 }
 0x3cb   :  { %v10511_v4 = vpack.c.bf16 %v2086_v3, %v2082_v60  ;;  %v2867_v60 = vld [vmem:[%s14453_s17 + $0x98] sm:$0xff]  ;;  %v2870_v3 = vld [vmem:[%s14453_s17 + $0xb0] sm:$0xff] }
 0x3cc   :  { %v1831_v6 = vmax.f32 %v1823_v41, 0.0  ;;  %v10541_v48 = vpack.c.bf16 %v2870_v3, %v2867_v60  ;;  %v2868_v41 = vld [vmem:[%s14453_s17 + $0xa0] sm:$0xff] }
 0x3cd   :  { %10368 = vmatpush1.bf16.msra.mxu0 %v10367_v14  ;;  %10496 = vmatpush1.bf16.msra.mxu1 %v10495_v15 }
 0x3ce   :  { %10370 = vmatprep.subr.bf16.mxu0 %v10369_v18  ;;  %10498 = vmatprep.subr.bf16.mxu1 %v10497_v7  ;;  %v2396_v18 = vld [vmem:[%s14450_s13] sm:$0xff]  ;;  %v8249_v7 = vld [vmem:[%s14450_s13 + $0x18] sm:$0xff] }
 0x3d1   :  { %10372 = vmatpush1.bf16.msra.mxu0 %v10371_v21  ;;  %10500 = vmatpush1.bf16.msra.mxu1 %v10499_v22  ;;  %v8268_v21 = vld [vmem:[%s14450_s13 + $0x50] sm:$0xff]  ;;  %v8261_v22 = vld [vmem:[%s14450_s13 + $0x38] sm:$0xff] }
 0x3d2   :  { %10374 = vmatprep.subr.bf16.mxu0 %v10373_v27  ;;  %10502 = vmatprep.subr.bf16.mxu1 %v10501_v29  ;;  %v2849_v27 = vld [vmem:[%s14453_s17 + $0x8] sm:$0xff]  ;;  %v2852_v29 = vld [vmem:[%s14453_s17 + $0x20] sm:$0xff] }
 0x3d3   :  { %v10529_v35 = vpack.c.bf16 %v2852_v29, %v2849_v27  ;;  %v2889_v27 = vld [vmem:[%s14453_s17 + $0x148] sm:$0xff] }
 0x3d5   :  { %10376 = vmatpush1.bf16.msra.mxu0 %v10375_v42  ;;  %10504 = vmatpush1.bf16.msra.mxu1 %v10503_v43  ;;  %v10562_v42 = vpack.c.bf16 %v2853_v39, %v2850_v8  ;;  %v2855_v43 = vld [vmem:[%s14453_s17 + $0x38] sm:$0xff]  ;;  %v2892_v39 = vld [vmem:[%s14453_s17 + $0x160] sm:$0xff] }
 0x3d6   :  { %10378 = vmatprep.subr.bf16.mxu0 %v10377_v0  ;;  %10506 = vmatprep.subr.bf16.mxu1 %v10505_v59  ;;  %v10533_v45 = vpack.c.bf16 %v2858_v44, %v2855_v43  ;;  %v2854_v0 = vld [vmem:[%s14453_s17 + $0x30] sm:$0xff]  ;;  %v2857_v59 = vld [vmem:[%s14453_s17 + $0x48] sm:$0xff] }
 0x3d7   :  { %v10535_v51 = vpack.c.bf16 %v2857_v59, %v2854_v0 }
 0x3d9   :  { %10380 = vmatpush1.bf16.msra.mxu0 %v10379_v55  ;;  %10508 = vmatpush1.bf16.msra.mxu1 %v10507_v32  ;;  %v2860_v55 = vld [vmem:[%s14453_s17 + $0x60] sm:$0xff]  ;;  %v2863_v32 = vld [vmem:[%s14453_s17 + $0x78] sm:$0xff] }
 0x3da   :  { %10382 = vmatprep.subr.bf16.mxu0 %v10381_v33  ;;  %10510 = vmatprep.subr.bf16.mxu1 %v10509_v57  ;;  %v10539_v33 = vpack.c.bf16 %v2863_v32, %v2860_v55  ;;  %v2865_v57 = vld [vmem:[%s14453_s17 + $0x88] sm:$0xff] }
 0x3db   :  { %v10568_v58 = vpack.c.bf16 %v2865_v57, %v2862_v56 }
 0x3dd   :  { %10384 = vmatpush1.bf16.msra.mxu0 %v10383_v61  ;;  %10512 = vmatpush1.bf16.msra.mxu1 %v10511_v4  ;;  %v2866_v61 = vld [vmem:[%s14453_s17 + $0x90] sm:$0xff]  ;;  %v2869_v4 = vld [vmem:[%s14453_s17 + $0xa8] sm:$0xff] }
 0x3de   :  { %10517 = vmatprep.subr.bf16.mxu1 %v11515_v1  ;;  %10513 = vmatprep.subr.bf16.mxu0 %v11515_v1 }
 0x3e0   :  { %2230 = vmatmul.mubr.f32.vlgmr.msra.gmra.mrb[12].mxu0 %v1826_v5  ;;  %2384 = vmatmul.mubr.f32.vlgmr.msra.gmra.mrb[14].mxu1 %v1826_v5  ;;  %v10543_v5 = vpack.c.bf16 %v2869_v4, %v2866_v61 }
 0x3e1   :  { %2235 = vmatprep.mubr.f32.mxu0 %v1831_v6  ;;  %2389 = vmatprep.mubr.f32.mxu1 %v1831_v6  ;;  %v2871_v6 = vld [vmem:[%s14453_s17 + $0xb8] sm:$0xff] }
 0x3e4   :  { %2236 = vmatmul.mubr.f32.gmra.mrb[14].mxu0 %v1830_v62  ;;  %2390 = vmatmul.mubr.f32.gmra.mrb[16].mxu1 %v1830_v62  ;;  %v10571_v62 = vpack.c.bf16 %v2871_v6, %v2868_v41 }
 0x3e5   :  { %9034 = vmatprep.mubr.msk.f32.mxu0 %vm11516_vm0, %v11517_v2  ;;  %9047 = vmatprep.mubr.msk.f32.mxu1 %vm11516_vm0, %v11517_v2 }
 0x4b3   :  { %v2231_v47 = vpop.f32.mrb[12].mxu0  ;;  %v2385_v23 = vpop.f32.mrb[14].mxu1 }
 0x4b4   :  { %v2233_v9 = vpop.f32.mrb[13].mxu0  ;;  %v2387_v10 = vpop.f32.mrb[15].mxu1 }
 0x4b7   :  { %v2237_v11 = vpop.f32.mrb[14].mxu0  ;;  %v2391_v12 = vpop.f32.mrb[16].mxu1 }
 0x4b8   :  { %v10518_v13 = vpack.c.bf16 %v2237_v11, %v2231_v47  ;;  %v10522_v26 = vpack.c.bf16 %v2391_v12, %v2385_v23  ;;  %v2239_v14 = vpop.f32.mrb[15].mxu0  ;;  %v2393_v15 = vpop.f32.mrb[17].mxu1  ;;  %v2873_v47 = vld [vmem:[%s14453_s17 + $0xc8] sm:$0xff]  ;;  %v2876_v23 = vld [vmem:[%s14453_s17 + $0xe0] sm:$0xff]  ;;  %v2875_v11 = vld [vmem:[%s14453_s17 + $0xd8] sm:$0xff] }
 0x4b9   :  { %v10514_v16 = vpack.c.bf16 %v2239_v14, %v2233_v9  ;;  %v10526_v17 = vpack.c.bf16 %v2393_v15, %v2387_v10  ;;  %v10545_v9 = vpack.c.bf16 %v2876_v23, %v2873_v47  ;;  %v2872_v10 = vld [vmem:[%s14453_s17 + $0xc0] sm:$0xff]  ;;  %v2874_v12 = vld [vmem:[%s14453_s17 + $0xd0] sm:$0xff]  ;;  %v2879_v14 = vld [vmem:[%s14453_s17 + $0xf8] sm:$0xff] }
 0x4ba   :  { %10520 = vmatpush3.bf16.msk.msra.mxu1 %vm12245_vm4, %v10518_v13  ;;  %v10547_v24 = vpack.c.bf16 %v2875_v11, %v2872_v10  ;;  %v2877_v13 = vld [vmem:[%s14453_s17 + $0xe8] sm:$0xff]  ;;  %v2882_v15 = vld [vmem:[%s14453_s17 + $0x110] sm:$0xff]  ;;  %v8274_v23 = vld [vmem:[#allocation11] ss:$0 sm:$0xff] }
 0x4bb   :  { %10516 = vmatpush3.bf16.msk.msra.mxu0 %vm12245_vm4, %v10514_v16  ;;  %10525 = vmatprep.subr.bf16.mxu1 %v11515_v1  ;;  %v10549_v16 = vpack.c.bf16 %v2882_v15, %v2879_v14 }
 0x4bc   :  { %10521 = vmatprep.subr.bf16.mxu0 %v11515_v1 }
 0x4bd   :  { %9048 = vmatmul.mubr.msk.f32.vlgmr.msra.gmra.mrb[18].mxu1 %vm2403_vm5, %v2396_v18  ;;  %v2881_v18 = vld [vmem:[%s14453_s17 + $0x108] sm:$0xff] }
 0x4be   :  { %9035 = vmatmul.mubr.msk.f32.vlgmr.msra.gmra.mrb[16].mxu0 %vm2403_vm5, %v8249_v7  ;;  %10528 = vmatpush3.bf16.msk.msra.mxu1 %vm12245_vm4, %v10526_v17  ;;  %v2878_v17 = vld [vmem:[%s14453_s17 + $0xf0] sm:$0xff]  ;;  %v2880_v7 = vld [vmem:[%s14453_s17 + $0x100] sm:$0xff] }
 0x4bf   :  { %10524 = vmatpush3.bf16.msk.msra.mxu0 %vm12245_vm4, %v10522_v26  ;;  %9037 = vmatprep.mubr.msk.f32.mxu0 %vm11516_vm0, %v11517_v2  ;;  %v10574_v26 = vpack.c.bf16 %v2877_v13, %v2874_v12 }
 0x4c0   :  { %9050 = vmatprep.mubr.msk.f32.mxu1 %vm11516_vm0, %v11517_v2  ;;  %10561 = vmatprep.subr.bf16.mxu1 %v11515_v1 }
 0x4c1   :  { %9051 = vmatmul.mubr.msk.f32.gmra.mrb[20].mxu1 %vm2403_vm5, %v2397_v38  ;;  %10530 = vmatprep.subr.bf16.mxu0 %v10529_v35  ;;  %v10551_v38 = vpack.c.bf16 %v2881_v18, %v2878_v17  ;;  %v2891_v35 = vld [vmem:[%s14453_s17 + $0x158] sm:$0xff] }
 0x4c2   :  { %9038 = vmatmul.mubr.msk.f32.gmra.mrb[18].mxu0 %vm2403_vm5, %v8250_v40  ;;  %9053 = vmatprep.mubr.msk.f32.mxu1 %vm11516_vm0, %v11517_v2  ;;  %v2883_v40 = vld [vmem:[%s14453_s17 + $0x118] sm:$0xff]  ;;  %v10557_v8 = vpack.c.bf16 %v2894_v36, %v2891_v35 }
 0x4c3   :  { %9040 = vmatprep.mubr.msk.f32.mxu0 %vm11516_vm0, %v11517_v2 }
 0x4c5   :  { %9054 = vmatmul.mubr.msk.f32.gmra.mrb[22].mxu1 %vm2403_vm5, %v2398_v19  ;;  %v10577_v19 = vpack.c.bf16 %v2883_v40, %v2880_v7 }
 0x4c6   :  { %9041 = vmatmul.mubr.msk.f32.gmra.mrb[20].mxu0 %vm2403_vm5, %v8251_v49  ;;  %9073 = vmatprep.mubr.msk.f32.mxu1 %vm11516_vm0, %v11517_v2  ;;  %v2885_v49 = vld [vmem:[%s14453_s17 + $0x128] sm:$0xff] }
 0x4c7   :  { %9060 = vmatprep.mubr.msk.f32.mxu0 %vm11516_vm0, %v11517_v2 }
 0x4c9   :  { %9074 = vmatmul.mubr.msk.f32.vlgmr.msra.gmra.mrb[24].mxu1 %vm2403_vm5, %v8267_v28  ;;  %v2888_v28 = vld [vmem:[%s14453_s17 + $0x140] sm:$0xff] }
 0x4ca   :  { %9061 = vmatmul.mubr.msk.f32.vlgmr.msra.gmra.mrb[22].mxu0 %vm2403_vm5, %v8260_v20  ;;  %9076 = vmatprep.mubr.msk.f32.mxu1 %vm11516_vm0, %v11517_v2  ;;  %v10553_v20 = vpack.c.bf16 %v2888_v28, %v2885_v49 }
 0x4cb   :  { %9063 = vmatprep.mubr.msk.f32.mxu0 %vm11516_vm0, %v11517_v2  ;;  %10532 = vmatpush1.bf16.msra.mxu0 %v10531_v63  ;;  %v2893_v63 = vld [vmem:[%s14453_s17 + $0x168] sm:$0xff] }
 0x4cc   :  { %10563 = vmatpush3.bf16.msra.mxu1 %v10562_v42  ;;  %10534 = vmatprep.subr.bf16.mxu0 %v10533_v45  ;;  %v2895_v42 = vld [vmem:[%s14453_s17 + $0x178] sm:$0xff]  ;;  %v10559_v43 = vpack.c.bf16 %v2893_v63, %v2890_v37 }
 0x4cd   :  { %9077 = vmatmul.mubr.msk.f32.gmra.mrb[26].mxu1 %vm2403_vm5, %v8268_v21  ;;  %10564 = vmatprep.subr.bf16.mxu1 %v11515_v1  ;;  %v2884_v21 = vld [vmem:[%s14453_s17 + $0x120] sm:$0xff]  ;;  %v10583_v44 = vpack.c.bf16 %v2895_v42, %v2892_v39 }
 0x4ce   :  { %9064 = vmatmul.mubr.msk.f32.gmra.mrb[24].mxu0 %vm2403_vm5, %v8261_v22  ;;  %9079 = vmatprep.mubr.msk.f32.mxu1 %vm11516_vm0, %v11517_v2  ;;  %v2887_v22 = vld [vmem:[%s14453_s17 + $0x138] sm:$0xff] }
 0x4cf   :  { %9066 = vmatprep.mubr.msk.f32.mxu0 %vm11516_vm0, %v11517_v2  ;;  %10536 = vmatpush1.bf16.msra.mxu0 %v10535_v51 }
 0x4d0   :  { %10566 = vmatpush3.bf16.msra.mxu1 %v10565_v31  ;;  %10538 = vmatprep.subr.bf16.mxu0 %v10537_v54 }
 0x4d1   :  { %9080 = vmatmul.mubr.msk.f32.gmra.mrb[28].mxu1 %vm2403_vm5, %v8269_v34  ;;  %10567 = vmatprep.subr.bf16.mxu1 %v11515_v1  ;;  %v2886_v34 = vld [vmem:[%s14453_s17 + $0x130] sm:$0xff] }
 0x4d2   :  { %9067 = vmatmul.mubr.msk.f32.gmra.mrb[26].mxu0 %vm2403_vm5, %v8262_v25  ;;  %9114 = vmatprep.mubr.msk.f32.mxu1 %vm11516_vm0, %v11517_v2  ;;  %v10555_v25 = vpack.c.bf16 %v2887_v22, %v2884_v21  ;;  %v10580_v29 = vpack.c.bf16 %v2889_v27, %v2886_v34 }
 0x4d3   :  { %2960 = vmatprep.mubr.f32.mxu0 %v11517_v2  ;;  %10540 = vmatpush1.bf16.msra.mxu0 %v10539_v33 }
 0x4d4   :  { %10569 = vmatpush3.bf16.msra.mxu1 %v10568_v58  ;;  %10542 = vmatprep.subr.bf16.mxu0 %v10541_v48 }
 0x4d5   :  { %10570 = vmatprep.subr.bf16.mxu1 %v11515_v1 }
 0x4d7   :  { %10544 = vmatpush1.bf16.msra.mxu0 %v10543_v5 }
 0x4d8   :  { %10572 = vmatpush3.bf16.msra.mxu1 %v10571_v62  ;;  %10546 = vmatprep.subr.bf16.mxu0 %v10545_v9 }
 0x4d9   :  { %10573 = vmatprep.subr.bf16.mxu1 %v11515_v1 }
 0x4db   :  { %10548 = vmatpush1.bf16.msra.mxu0 %v10547_v24 }
 0x4dc   :  { %10575 = vmatpush3.bf16.msra.mxu1 %v10574_v26  ;;  %10550 = vmatprep.subr.bf16.mxu0 %v10549_v16 }
 0x4dd   :  { %10576 = vmatprep.subr.bf16.mxu1 %v11515_v1 }
 0x4df   :  { %10552 = vmatpush1.bf16.msra.mxu0 %v10551_v38 }
 0x4e0   :  { %10578 = vmatpush3.bf16.msra.mxu1 %v10577_v19  ;;  %10554 = vmatprep.subr.bf16.mxu0 %v10553_v20 }
 0x4e1   :  { %10579 = vmatprep.subr.bf16.mxu1 %v11515_v1 }
 0x4e3   :  { %10556 = vmatpush1.bf16.msra.mxu0 %v10555_v25 }
 0x4e4   :  { %10581 = vmatpush3.bf16.msra.mxu1 %v10580_v29  ;;  %10558 = vmatprep.subr.bf16.mxu0 %v10557_v8 }
 0x4e5   :  { %10582 = vmatprep.subr.bf16.mxu1 %v11515_v1 }
 0x4e7   :  { %10560 = vmatpush1.bf16.msra.mxu0 %v10559_v43 }
 0x4e8   :  { %10584 = vmatpush3.bf16.msra.mxu1 %v10583_v44  ;;  %10585 = vmatprep.subr.bf16.mxu0 %v11515_v1 }
 0x4e9   :  { %10780 = vmatprep.subr.bf16.mxu1 %v11515_v1 }
 0x590   :  { %v2574_v45 = vpop.f32.mrb[18].mxu1 }
 0x591   :  { %v2482_v0 = vpop.f32.mrb[16].mxu0  ;;  %v9049_v59 = vpop.f32.mrb[19].mxu1 }
 0x592   :  { %v2575_v50 = vadd.f32 %v2574_v45, %v2482_v0  ;;  %v9036_v51 = vpop.f32.mrb[17].mxu0  ;;  %v8275_v59 = vld [vmem:[#allocation12] ss:$0 sm:$0xff] }
 0x594   :  { %v2579_v30 = vpop.f32.mrb[20].mxu1 }
 0x595   :  { %v2487_v31 = vpop.f32.mrb[18].mxu0  ;;  %v9052_v52 = vpop.f32.mrb[21].mxu1 }
 0x596   :  { %v2580_v53 = vadd.f32 %v2579_v30, %v2487_v31  ;;  %v9039_v54 = vpop.f32.mrb[19].mxu0  ;;  %v8276_v31 = vld [vmem:[#allocation14] ss:$0 sm:$0xff] }
 0x598   :  { %v2584_v55 = vpop.f32.mrb[22].mxu1 }
 0x599   :  { %v2492_v32 = vpop.f32.mrb[20].mxu0  ;;  %v9055_v56 = vpop.f32.mrb[23].mxu1 }
 0x59a   :  { %v2585_v33 = vadd.f32 %v2584_v55, %v2492_v32  ;;  %v9042_v57 = vpop.f32.mrb[21].mxu0 }
 0x59c   :  { %v2769_v58 = vpop.f32.mrb[24].mxu1 }
 0x59d   :  { %v2670_v60 = vpop.f32.mrb[22].mxu0  ;;  %v9075_v3 = vpop.f32.mrb[25].mxu1 }
 0x59e   :  { %v2684_v48 = vadd.f32 %v2670_v60, %v2575_v50  ;;  %v9062_v61 = vpop.f32.mrb[23].mxu0 }
 0x5a0   :  { %v2783_v4 = vadd.f32 %v2769_v58, %v2684_v48  ;;  %v2774_v41 = vpop.f32.mrb[26].mxu1 }
 0x5a1   :  { %v2675_v5 = vpop.f32.mrb[24].mxu0  ;;  %v9078_v6 = vpop.f32.mrb[27].mxu1 }
 0x5a2   :  { %v2685_v62 = vadd.f32 %v2675_v5, %v2580_v53  ;;  %v9065_v47 = vpop.f32.mrb[25].mxu0  ;;  %v2793_v24 = vadd.f32 %v8274_v23, %v2783_v4 }
 0x5a4   :  { %v2784_v9 = vadd.f32 %v2774_v41, %v2685_v62  ;;  %v2779_v10 = vpop.f32.mrb[28].mxu1 }
 0x5a5   :  { %v2680_v11 = vpop.f32.mrb[26].mxu0  ;;  %v9081_v12 = vpop.f32.mrb[29].mxu1 }
 0x5a6   :  { %v2794_v13 = vadd.f32 %v8274_v23, %v2784_v9  ;;  %v2686_v26 = vadd.f32 %v2680_v11, %v2585_v33  ;;  %v9068_v14 = vpop.f32.mrb[27].mxu0 }
 0x5a7   :  { %v3065_v14 = vld [vmem:[%s14454_s20 + $0x30] sm:$0x3] }
 0x5a8   :  { %v2798_v15 = vadd.f32 %v2794_v13, %v2793_v24  ;;  %v2785_v16 = vadd.f32 %v2779_v10, %v2686_v26  ;;  %v3064_v26 = vld [vmem:[%s14454_s20 + $0x28] sm:$0xff] }
 0x5aa   :  { %v2795_v17 = vadd.f32 %v8274_v23, %v2785_v16 }
 0x5ac   :  { %v2799_v18 = vadd.f32 %v2798_v15, %v2795_v17 }
 0x5ae   :  { %v2800_v7 = vrot.slane %v2799_v18, 4 }
 0x5b0   :  { %v2801_v38 = vadd.f32 %v2800_v7, %v2799_v18 }
 0x5b2   :  { %v2802_v40 = vrot.slane %v2801_v38, 2 }
 0x5b4   :  { %v2803_v19 = vadd.f32 %v2802_v40, %v2801_v38 }
 0x5b6   :  { %v2804_v49 = vrot.slane %v2803_v19, 1 }
 0x5b8   :  { %v2805_v28 = vadd.f32 %v2804_v49, %v2803_v19  ;;  %v8277_v49 = vld [vmem:[%s14454_s20 + $0x38] sm:$0xff] }
 0x5ba   :  { %v2806_v20 = vmul.f32 0.041666668, %v2805_v28 }
 0x5bc   :  { %v2807_v21 = vsub.f32 %v2793_v24, %v2806_v20  ;;  %v2808_v22 = vsub.f32 %v2794_v13, %v2806_v20  ;;  %v2809_v34 = vsub.f32 %v2795_v17, %v2806_v20 }
 0x5be   :  { %v2810_v25 = vmul.f32 %v2807_v21, %v2807_v21  ;;  %v2811_v27 = vmul.f32 %v2808_v22, %v2808_v22  ;;  %v2812_v29 = vmul.f32 %v2809_v34, %v2809_v34 }
 0x5c0   :  { %v2813_v35 = vadd.f32 %v2811_v27, %v2810_v25  ;;  %v8279_v25 = vld [vmem:[%s14454_s20 + $0x48] sm:$0xff]  ;;  %v8314_v27 = vld [vmem:[%s14454_s20 + $0xb8] sm:$0xff] }
 0x5c2   :  { %v2814_v36 = vadd.f32 %v2813_v35, %v2812_v29  ;;  %v8280_v29 = vld [vmem:[%s14454_s20 + $0x50] sm:$0xff]  ;;  %v8315_v35 = vld [vmem:[%s14454_s20 + $0xc0] sm:$0xff] }
 0x5c4   :  { %v2815_v37 = vrot.slane %v2814_v36, 4 }
 0x5c6   :  { %v2816_v8 = vadd.f32 %v2815_v37, %v2814_v36  ;;  %v8281_v36 = vld [vmem:[%s14454_s20 + $0x58] sm:$0xff]  ;;  %v8316_v37 = vld [vmem:[%s14454_s20 + $0xc8] sm:$0xff] }
 0x5c8   :  { %v2817_v63 = vrot.slane %v2816_v8, 2 }
 0x5ca   :  { %v2818_v39 = vadd.f32 %v2817_v63, %v2816_v8  ;;  %v8282_v8 = vld [vmem:[%s14454_s20 + $0x60] sm:$0xff]  ;;  %v8317_v63 = vld [vmem:[%s14454_s20 + $0xd0] sm:$0xff] }
 0x5cc   :  { %v2819_v42 = vrot.slane %v2818_v39, 1 }
 0x5ce   :  { %v2820_v43 = vadd.f32 %v2819_v42, %v2818_v39  ;;  %v8283_v39 = vld [vmem:[%s14454_s20 + $0x68] sm:$0x3]  ;;  %v8318_v42 = vld [vmem:[%s14454_s20 + $0xd8] sm:$0x3] }
 0x5d0   :  { %v2821_v44 = vmul.f32 0.041666668, %v2820_v43  ;;  %v3059_v43 = vld [vmem:[%s14454_s20] sm:$0xff] }
 0x5d2   :  { %v2822_v45 = vadd.f32 1e-05, %v2821_v44  ;;  %v3060_v44 = vld [vmem:[%s14454_s20 + $0x8] sm:$0xff] }
 0x5d4   :  { %11109 = vrsqrt.f32 %v2822_v45  ;;  %v3061_v45 = vld [vmem:[%s14454_s20 + $0x10] sm:$0xff] }
 0x5de   :  { %v11110_v0 = vpop.eup %11109 }
 0x5df   :  { %v2824_v50 = vmul.f32 %v11110_v0, %v2807_v21  ;;  %v2826_v51 = vmul.f32 %v11110_v0, %v2809_v34  ;;  %v2825_v30 = vmul.f32 %v11110_v0, %v2808_v22  ;;  %v8312_v21 = vld [vmem:[%s14454_s20 + $0xa8] sm:$0xff]  ;;  %v8278_v22 = vld [vmem:[%s14454_s20 + $0x40] sm:$0xff]  ;;  %v8313_v34 = vld [vmem:[%s14454_s20 + $0xb0] sm:$0xff] }
 0x5e0   :  { %v3062_v0 = vld [vmem:[%s14454_s20 + $0x18] sm:$0xff] }
 0x5e1   :  { %v2833_v52 = vmul.f32 %v8275_v59, %v2824_v50  ;;  %v2834_v53 = vmul.f32 %v8275_v59, %v2825_v30  ;;  %v2835_v56 = vmul.f32 %v8275_v59, %v2826_v51  ;;  %v3063_v59 = vld [vmem:[%s14454_s20 + $0x20] sm:$0xff]  ;;  %v8298_v50 = vld [vmem:[%s14454_s20 + $0x70] sm:$0xff]  ;;  %v8299_v51 = vld [vmem:[%s14454_s20 + $0x78] sm:$0xff] }
 0x5e2   :  { %v8300_v30 = vld [vmem:[%s14454_s20 + $0x80] sm:$0xff] }
 0x5e3   :  { %v2842_v54 = vadd.f32 %v8276_v31, %v2833_v52  ;;  %v2843_v32 = vadd.f32 %v8276_v31, %v2834_v53  ;;  %v2844_v57 = vadd.f32 %v8276_v31, %v2835_v56  ;;  %v8301_v31 = vld [vmem:[%s14454_s20 + $0x88] sm:$0xff]  ;;  %v8302_v52 = vld [vmem:[%s14454_s20 + $0x90] sm:$0xff]  ;;  %v8303_v53 = vld [vmem:[%s14454_s20 + $0x98] sm:$0xff] }
 0x5e4   :  { %v8328_v56 = vld [vmem:[%s14454_s20 + $0xf0] sm:$0xff] }
 0x5e5   :  { %v2845_v55 = vmax.f32 %v2842_v54, 0.0  ;;  %v2846_v33 = vmax.f32 %v2843_v32, 0.0  ;;  %v2847_v58 = vmax.f32 %v2844_v57, 0.0  ;;  %v8304_v54 = vld [vmem:[%s14454_s20 + $0xa0] sm:$0x3]  ;;  %v8327_v32 = vld [vmem:[%s14454_s20 + $0xe8] sm:$0xff] }
 0x5e6   :  { %v8330_v57 = vld [vmem:[%s14454_s20 + $0x100] sm:$0xff] }
 0x5e7   :  { %2961 = vmatmul.mubr.f32.vlgmr.msra.gmra.mrb[28].mxu0 %v2845_v55  ;;  %9115 = vmatmul.mubr.f32.vlgmr.msra.gmra.mrb[30].mxu1 %v2845_v55  ;;  %v8326_v55 = vld [vmem:[%s14454_s20 + $0xe0] sm:$0xff] }
 0x5e8   :  { %2966 = vmatprep.mubr.f32.mxu0 %v11517_v2  ;;  %9117 = vmatprep.mubr.msk.f32.mxu1 %vm11516_vm0, %v11517_v2 }
 0x5eb   :  { %2967 = vmatmul.mubr.f32.gmra.mrb[30].mxu0 %v2846_v33  ;;  %9118 = vmatmul.mubr.f32.gmra.mrb[32].mxu1 %v2846_v33  ;;  %v8329_v33 = vld [vmem:[%s14454_s20 + $0xf8] sm:$0xff] }
 0x5ec   :  { %2972 = vmatprep.mubr.f32.mxu0 %v11517_v2  ;;  %9120 = vmatprep.mubr.msk.f32.mxu1 %vm11516_vm0, %v11517_v2 }
 0x5ef   :  { %2973 = vmatmul.mubr.f32.gmra.mrb[32].mxu0 %v2847_v58  ;;  %9121 = vmatmul.mubr.f32.gmra.mrb[34].mxu1 %v2847_v58  ;;  %v8331_v58 = vld [vmem:[%s14454_s20 + $0x108] sm:$0xff] }
 0x5f0   :  { %9171 = vmatprep.mubr.msk.f32.mxu1 %vm11516_vm0, %v11517_v2  ;;  %9129 = vmatprep.mubr.msk.f32.mxu0 %vm11516_vm0, %v11517_v2 }
 0x6ba   :  { %v2962_v60 = vpop.f32.mrb[28].mxu0  ;;  %v12374_v3 = vpop.f32.mrb[30].mxu1 }
 0x6bb   :  { %v12376_v48 = vpop.f32.mrb[29].mxu0  ;;  %v9116_v61 = vpop.f32.mrb[31].mxu1 }
 0x6be   :  { %v2968_v4 = vpop.f32.mrb[30].mxu0  ;;  %v12378_v41 = vpop.f32.mrb[32].mxu1 }
 0x6bf   :  { %v10589_v5 = vpack.c.bf16 %v2968_v4, %v2962_v60  ;;  %v10598_v6 = vpack.c.bf16 %v12378_v41, %v12374_v3  ;;  %v12382_v62 = vpop.f32.mrb[31].mxu0  ;;  %v9119_v47 = vpop.f32.mrb[33].mxu1  ;;  %v10856_v23 = vpack.i.bf16 %v2968_v4, %v2962_v60  ;;  %v8332_v60 = vld [vmem:[%s14454_s20 + $0x110] sm:$0x3] }
 0x6c0   :  { %v10592_v9 = vpack.c.bf16 %v12382_v62, %v12376_v48  ;;  %v10861_v10 = vpack.i.bf16 %v12382_v62, %v12376_v48 }
 0x6c1   :  { %10857 = vrot.lane.b32.xlu0 %v10856_v23, %s11519_s16  ;;  %10782 = vmatpush3.bf16.msra.mxu1 %v10589_v5 }
 0x6c2   :  { %v12389_v11 = vpop.f32.mrb[34].mxu1  ;;  %10862 = vrot.lane.b32.xlu1 %v10861_v10, %s11519_s16  ;;  %v2974_v12 = vpop.f32.mrb[32].mxu0  ;;  %10781 = vmatprep.subr.mxu1 %v11517_v2 }
 0x6c3   :  { %v12393_v24 = vpop.f32.mrb[33].mxu0  ;;  %v9122_v13 = vpop.f32.mrb[35].mxu1 }
 0x6c5   :  { %3081 = vrot.lane.b32.xlu0 %v2974_v12, %s11519_s16  ;;  %10783 = vmatpush3.msra.mxu1 %v2974_v12 }
 0x6c6   :  { %3480 = vrot.lane.b32.xlu1 %v12393_v24, %s11519_s16  ;;  %10594 = vmatprep.subr.bf16.mxu1 %v11515_v1 }
 0x6c7   :  { %9172 = vmatmul.mubr.msk.f32.vlgmr.msra.gmra.mrb[36].mxu1 %vm3086_vm6, %v3064_v26 }
 0x6c8   :  { %9174 = vmatprep.mubr.msk.f32.mxu1 %vm11516_vm0, %v11517_v2 }
 0x6cb   :  { %9175 = vmatmul.mubr.msk.f32.gmra.mrb[38].mxu1 %vm3086_vm6, %v3065_v14 }
 0x6cc   :  { %9210 = vmatprep.mubr.msk.f32.mxu1 %vm11516_vm0, %v11517_v2 }
 0x733   :  { %v10858_v15 = vpop.permute.xlu0 %10857 }
 0x734   :  { %v10860_v16 = vunpack.i.h.bf16 %v10858_v15  ;;  %v10859_v17 = vunpack.i.l.bf16 %v10858_v15  ;;  %v10863_v18 = vpop.permute.xlu1 %10862 }
 0x735   :  { %v10865_v7 = vunpack.i.h.bf16 %v10863_v18  ;;  %v10864_v38 = vunpack.i.l.bf16 %v10863_v18 }
 0x736   :  { %v10586_v40 = vpack.c.bf16 %v10860_v16, %v10859_v17 }
 0x737   :  { %v10595_v19 = vpack.c.bf16 %v10865_v7, %v10864_v38  ;;  %v3082_v28 = vpop.permute.xlu0 %3081 }
 0x738   :  { %10587 = vmatpush3.bf16.msra.mxu0 %v10586_v40  ;;  %v3481_v20 = vpop.permute.xlu1 %3480 }
 0x739   :  { %10596 = vmatpush3.bf16.msra.mxu1 %v10595_v19  ;;  %9127 = vmatprep.subr.mxu0 %v11517_v2 }
 0x73a   :  { %9208 = vmatprep.subr.mxu1 %v11517_v2 }
 0x73c   :  { %9128 = vmatpush3.msra.mxu0 %v3082_v28 }
 0x73d   :  { %9130 = vmatmul.mubr.msk.f32.vlgmr.msra.gmra.mrb[34].mxu0 %vm3086_vm6, %v8277_v49  ;;  %10588 = vmatprep.subr.bf16.mxu0 %v11515_v1 }
 0x73e   :  { %9209 = vmatpush3.msra.mxu1 %v3481_v20  ;;  %10590 = vmatpush3.bf16.msra.mxu0 %v10589_v5 }
 0x73f   :  { %9132 = vmatprep.mubr.msk.f32.mxu0 %vm11516_vm0, %v11517_v2  ;;  %9154 = vmatprep.subr.mxu0 %v11517_v2 }
 0x740   :  { %9211 = vmatmul.mubr.msk.f32.vlgmr.msra.gmra.mrb[40].mxu1 %vm3086_vm6, %v8312_v21  ;;  %10600 = vmatprep.subr.bf16.mxu1 %v11515_v1 }
 0x741   :  { %9133 = vmatmul.mubr.msk.f32.gmra.mrb[36].mxu0 %vm3086_vm6, %v8278_v22  ;;  %9213 = vmatprep.mubr.msk.f32.mxu1 %vm11516_vm0, %v11517_v2 }
 0x742   :  { %9155 = vmatpush3.msra.mxu0 %v2974_v12  ;;  %9135 = vmatprep.mubr.msk.f32.mxu0 %vm11516_vm0, %v11517_v2 }
 0x743   :  { %10591 = vmatprep.subr.bf16.mxu0 %v11515_v1 }
 0x744   :  { %9214 = vmatmul.mubr.msk.f32.gmra.mrb[42].mxu1 %vm3086_vm6, %v8313_v34 }
 0x745   :  { %9136 = vmatmul.mubr.msk.f32.gmra.mrb[38].mxu0 %vm3086_vm6, %v8279_v25  ;;  %9216 = vmatprep.mubr.msk.f32.mxu1 %vm11516_vm0, %v11517_v2 }
 0x746   :  { %9138 = vmatprep.mubr.msk.f32.mxu0 %vm11516_vm0, %v11517_v2 }
 0x748   :  { %9217 = vmatmul.mubr.msk.f32.gmra.mrb[44].mxu1 %vm3086_vm6, %v8314_v27 }
 0x749   :  { %9139 = vmatmul.mubr.msk.f32.gmra.mrb[40].mxu0 %vm3086_vm6, %v8280_v29  ;;  %9219 = vmatprep.mubr.msk.f32.mxu1 %vm11516_vm0, %v11517_v2 }
 0x74a   :  { %9141 = vmatprep.mubr.msk.f32.mxu0 %vm11516_vm0, %v11517_v2 }
 0x74c   :  { %9220 = vmatmul.mubr.msk.f32.gmra.mrb[46].mxu1 %vm3086_vm6, %v8315_v35 }
 0x74d   :  { %9142 = vmatmul.mubr.msk.f32.gmra.mrb[42].mxu0 %vm3086_vm6, %v8281_v36  ;;  %9222 = vmatprep.mubr.msk.f32.mxu1 %vm11516_vm0, %v11517_v2 }
 0x74e   :  { %9144 = vmatprep.mubr.msk.f32.mxu0 %vm11516_vm0, %v11517_v2 }
 0x750   :  { %9223 = vmatmul.mubr.msk.f32.gmra.mrb[48].mxu1 %vm3086_vm6, %v8316_v37  ;;  %v3862_v37 = vld [vmem:[%s14455_s8] sm:$0xff] }
 0x751   :  { %9145 = vmatmul.mubr.msk.f32.gmra.mrb[44].mxu0 %vm3086_vm6, %v8282_v8  ;;  %9225 = vmatprep.mubr.msk.f32.mxu1 %vm11516_vm0, %v11517_v2  ;;  %v3863_v8 = vld [vmem:[%s14455_s8 + $0x8] sm:$0xff] }
 0x752   :  { %9147 = vmatprep.mubr.msk.f32.mxu0 %vm11516_vm0, %v11517_v2 }
 0x754   :  { %9226 = vmatmul.mubr.msk.f32.gmra.mrb[50].mxu1 %vm3086_vm6, %v8317_v63  ;;  %v10601_v63 = vpack.c.bf16 %v3863_v8, %v3862_v37 }
 0x755   :  { %9148 = vmatmul.mubr.msk.f32.gmra.mrb[46].mxu0 %vm3086_vm6, %v8283_v39  ;;  %9228 = vmatprep.mubr.msk.f32.mxu1 %vm11516_vm0, %v11517_v2 }
 0x756   :  { %9156 = vmatprep.mubr.msk.f32.mxu0 %vm11516_vm0, %v11517_v2  ;;  %10602 = vmatpush3.bf16.msra.mxu1 %v10601_v63 }
 0x757   :  { %10603 = vmatprep.subr.bf16.mxu1 %v11515_v1 }
 0x758   :  { %9229 = vmatmul.mubr.msk.f32.gmra.mrb[52].mxu1 %vm3086_vm6, %v8318_v42 }
 0x759   :  { %9157 = vmatmul.mubr.msk.f32.vlgmr.msra.gmra.mrb[48].mxu0 %vm3086_vm6, %v3059_v43  ;;  %9274 = vmatprep.mubr.msk.f32.mxu1 %vm11516_vm0, %v11517_v2 }
 0x75a   :  { %10593 = vmatpush3.bf16.msra.mxu0 %v10592_v9  ;;  %9159 = vmatprep.mubr.msk.f32.mxu0 %vm11516_vm0, %v11517_v2 }
 0x75b   :  { %9181 = vmatprep.subr.mxu0 %v11517_v2 }
 0x75d   :  { %9160 = vmatmul.mubr.msk.f32.gmra.mrb[50].mxu0 %vm3086_vm6, %v3060_v44  ;;  %v3864_v44 = vld [vmem:[%s14455_s8 + $0x10] sm:$0xff] }
 0x75e   :  { %9182 = vmatpush3.msra.mxu0 %v12393_v24  ;;  %9162 = vmatprep.mubr.msk.f32.mxu0 %vm11516_vm0, %v11517_v2 }
 0x75f   :  { %10597 = vmatprep.subr.bf16.mxu0 %v11515_v1 }
 0x761   :  { %9163 = vmatmul.mubr.msk.f32.gmra.mrb[52].mxu0 %vm3086_vm6, %v3061_v45  ;;  %v3865_v45 = vld [vmem:[%s14455_s8 + $0x18] sm:$0xff] }
 0x762   :  { %9165 = vmatprep.mubr.msk.f32.mxu0 %vm11516_vm0, %v11517_v2 }
 0x765   :  { %9166 = vmatmul.mubr.msk.f32.gmra.mrb[54].mxu0 %vm3086_vm6, %v3062_v0  ;;  %v10604_v0 = vpack.c.bf16 %v3865_v45, %v3864_v44 }
 0x766   :  { %9168 = vmatprep.mubr.msk.f32.mxu0 %vm11516_vm0, %v11517_v2 }
 0x767   :  { %10605 = vmatpush3.bf16.msra.mxu1 %v10604_v0 }
 0x768   :  { %10606 = vmatprep.subr.bf16.mxu1 %v11515_v1 }
 0x769   :  { %9169 = vmatmul.mubr.msk.f32.gmra.mrb[56].mxu0 %vm3086_vm6, %v3063_v59 }
 0x76a   :  { %9183 = vmatprep.mubr.msk.f32.mxu0 %vm11516_vm0, %v11517_v2 }
 0x76d   :  { %9184 = vmatmul.mubr.msk.f32.vlgmr.msra.gmra.mrb[58].mxu0 %vm3086_vm6, %v8298_v50 }
 0x76e   :  { %10599 = vmatpush3.bf16.msra.mxu0 %v10598_v6  ;;  %9186 = vmatprep.mubr.msk.f32.mxu0 %vm11516_vm0, %v11517_v2 }
 0x76f   :  { %9235 = vmatprep.subr.mxu0 %v11517_v2 }
 0x771   :  { %9187 = vmatmul.mubr.msk.f32.gmra.mrb[60].mxu0 %vm3086_vm6, %v8299_v51 }
 0x772   :  { %9236 = vmatpush3.msra.mxu0 %v12389_v11  ;;  %9189 = vmatprep.mubr.msk.f32.mxu0 %vm11516_vm0, %v11517_v2 }
 0x773   :  { %10612 = vmatprep.subr.bf16.mxu0 %v11515_v1 }
 0x775   :  { %9190 = vmatmul.mubr.msk.f32.gmra.mrb[62].mxu0 %vm3086_vm6, %v8300_v30  ;;  %v3866_v30 = vld [vmem:[%s14455_s8 + $0x20] sm:$0xff] }
 0x776   :  { %9192 = vmatprep.mubr.msk.f32.mxu0 %vm11516_vm0, %v11517_v2 }
 0x779   :  { %9193 = vmatmul.mubr.msk.f32.gmra.mrb[64].mxu0 %vm3086_vm6, %v8301_v31  ;;  %v3867_v31 = vld [vmem:[%s14455_s8 + $0x28] sm:$0xff] }
 0x77a   :  { %9195 = vmatprep.mubr.msk.f32.mxu0 %vm11516_vm0, %v11517_v2 }
 0x77d   :  { %9196 = vmatmul.mubr.msk.f32.gmra.mrb[66].mxu0 %vm3086_vm6, %v8302_v52  ;;  %v10607_v52 = vpack.c.bf16 %v3867_v31, %v3866_v30 }
 0x77e   :  { %9198 = vmatprep.mubr.msk.f32.mxu0 %vm11516_vm0, %v11517_v2 }
 0x77f   :  { %10608 = vmatpush3.bf16.msra.mxu1 %v10607_v52 }
 0x780   :  { %10609 = vmatprep.subr.bf16.mxu1 %v11515_v1 }
 0x781   :  { %9199 = vmatmul.mubr.msk.f32.gmra.mrb[68].mxu0 %vm3086_vm6, %v8303_v53 }
 0x782   :  { %9201 = vmatprep.mubr.msk.f32.mxu0 %vm11516_vm0, %v11517_v2 }
 0x785   :  { %9202 = vmatmul.mubr.msk.f32.gmra.mrb[70].mxu0 %vm3086_vm6, %v8304_v54  ;;  %v3868_v54 = vld [vmem:[%s14455_s8 + $0x30] sm:$0xff] }
 0x786   :  { %9237 = vmatprep.mubr.msk.f32.mxu0 %vm11516_vm0, %v11517_v2 }
 0x789   :  { %9238 = vmatmul.mubr.msk.f32.vlgmr.msra.gmra.mrb[72].mxu0 %vm3086_vm6, %v8326_v55  ;;  %v3869_v55 = vld [vmem:[%s14455_s8 + $0x38] sm:$0xff] }
 0x78a   :  { %9240 = vmatprep.mubr.msk.f32.mxu0 %vm11516_vm0, %v11517_v2 }
 0x78d   :  { %9241 = vmatmul.mubr.msk.f32.gmra.mrb[74].mxu0 %vm3086_vm6, %v8327_v32 }
 0x78e   :  { %9243 = vmatprep.mubr.msk.f32.mxu0 %vm11516_vm0, %v11517_v2 }
 0x791   :  { %9244 = vmatmul.mubr.msk.f32.gmra.mrb[76].mxu0 %vm3086_vm6, %v8328_v56 }
 0x792   :  { %9246 = vmatprep.mubr.msk.f32.mxu0 %vm11516_vm0, %v11517_v2 }
 0x795   :  { %9247 = vmatmul.mubr.msk.f32.gmra.mrb[78].mxu0 %vm3086_vm6, %v8329_v33  ;;  %v10610_v33 = vpack.c.bf16 %v3869_v55, %v3868_v54 }
 0x796   :  { %9249 = vmatprep.mubr.msk.f32.mxu0 %vm11516_vm0, %v11517_v2 }
 0x797   :  { %10611 = vmatpush3.bf16.msra.mxu1 %v10610_v33 }
 0x798   :  { %10621 = vmatprep.subr.bf16.mxu1 %v11515_v1 }
 0x799   :  { %9250 = vmatmul.mubr.msk.f32.gmra.mrb[80].mxu0 %vm3086_vm6, %v8330_v57 }
 0x79a   :  { %9252 = vmatprep.mubr.msk.f32.mxu0 %vm11516_vm0, %v11517_v2  ;;  %v3320_v3 = vpop.f32.mrb[36].mxu1 }
 0x79b   :  { %v9173_v48 = vpop.f32.mrb[37].mxu1 }
 0x79d   :  { %9253 = vmatmul.mubr.msk.f32.gmra.mrb[82].mxu0 %vm3086_vm6, %v8331_v58 }
 0x79e   :  { %9255 = vmatprep.mubr.msk.f32.mxu0 %vm11516_vm0, %v11517_v2  ;;  %v3325_v61 = vpop.f32.mrb[38].mxu1 }
 0x79f   :  { %v9176_v4 = vpop.f32.mrb[39].mxu1 }
 0x7a1   :  { %9256 = vmatmul.mubr.msk.f32.gmra.mrb[84].mxu0 %vm3086_vm6, %v8332_v60 }
 0x7a2   :  { %9309 = vmatprep.mubr.msk.f32.mxu0 %vm11516_vm0, %v11517_v2 }
 0x810   :  { %v3174_v41 = vpop.f32.mrb[34].mxu0 }
 0x811   :  { %v9131_v5 = vpop.f32.mrb[35].mxu0 }
 0x813   :  { %v12557_v6 = vpop.f32.mrb[40].mxu1 }
 0x814   :  { %v3179_v62 = vpop.f32.mrb[36].mxu0  ;;  %v9212_v47 = vpop.f32.mrb[41].mxu1 }
 0x815   :  { %v9134_v23 = vpop.f32.mrb[37].mxu0 }
 0x817   :  { %v12559_v9 = vpop.f32.mrb[42].mxu1 }
 0x818   :  { %v3184_v10 = vpop.f32.mrb[38].mxu0  ;;  %v9215_v11 = vpop.f32.mrb[43].mxu1 }
 0x819   :  { %v9137_v12 = vpop.f32.mrb[39].mxu0 }
 0x81b   :  { %v12561_v24 = vpop.f32.mrb[44].mxu1 }
 0x81c   :  { %v3189_v13 = vpop.f32.mrb[40].mxu0  ;;  %v9218_v26 = vpop.f32.mrb[45].mxu1 }
 0x81d   :  { %v9140_v14 = vpop.f32.mrb[41].mxu0 }
 0x81f   :  { %v12563_v15 = vpop.f32.mrb[46].mxu1 }
 0x820   :  { %v3194_v16 = vpop.f32.mrb[42].mxu0  ;;  %v9221_v17 = vpop.f32.mrb[47].mxu1 }
 0x821   :  { %v9143_v18 = vpop.f32.mrb[43].mxu0 }
 0x823   :  { %v12565_v7 = vpop.f32.mrb[48].mxu1 }
 0x824   :  { %v3199_v38 = vpop.f32.mrb[44].mxu0  ;;  %v9224_v40 = vpop.f32.mrb[49].mxu1 }
 0x825   :  { %v12567_v19 = vadd.f32 %v3320_v3, %v3199_v38  ;;  %v9146_v49 = vpop.f32.mrb[45].mxu0 }
 0x827   :  { %v12569_v28 = vpop.f32.mrb[50].mxu1 }
 0x828   :  { %v3204_v20 = vpop.f32.mrb[46].mxu0  ;;  %v9227_v21 = vpop.f32.mrb[51].mxu1 }
 0x829   :  { %v12571_v22 = vadd.f32 %v3325_v61, %v3204_v20  ;;  %v9149_v34 = vpop.f32.mrb[47].mxu0 }
 0x82b   :  { %v12573_v25 = vpop.f32.mrb[52].mxu1 }
 0x82c   :  { %v3295_v27 = vpop.f32.mrb[48].mxu0  ;;  %v9230_v29 = vpop.f32.mrb[53].mxu1 }
 0x82d   :  { %v3296_v35 = vadd.f32 %v3295_v27, %v3174_v41  ;;  %v9158_v36 = vpop.f32.mrb[49].mxu0 }
 0x82e   :  { %v8340_v36 = vld [vmem:[#allocation15] ss:$0 sm:$0xff] }
 0x830   :  { %v3300_v39 = vpop.f32.mrb[50].mxu0 }
 0x831   :  { %v3301_v42 = vadd.f32 %v3300_v39, %v3179_v62  ;;  %v9161_v43 = vpop.f32.mrb[51].mxu0 }
 0x834   :  { %v3305_v59 = vpop.f32.mrb[52].mxu0 }
 0x835   :  { %v3306_v50 = vadd.f32 %v3305_v59, %v3184_v10  ;;  %v9164_v51 = vpop.f32.mrb[53].mxu0 }
 0x838   :  { %v3310_v53 = vpop.f32.mrb[54].mxu0 }
 0x839   :  { %v3311_v32 = vadd.f32 %v3310_v53, %v3189_v13  ;;  %v9167_v56 = vpop.f32.mrb[55].mxu0 }
 0x83c   :  { %v3315_v57 = vpop.f32.mrb[56].mxu0 }
 0x83d   :  { %v3316_v58 = vadd.f32 %v3315_v57, %v3194_v16  ;;  %v9170_v60 = vpop.f32.mrb[57].mxu0 }
 0x840   :  { %v3424_v3 = vpop.f32.mrb[58].mxu0 }
 0x841   :  { %v3458_v48 = vadd.f32 %v3424_v3, %v3296_v35  ;;  %v9185_v61 = vpop.f32.mrb[59].mxu0 }
 0x843   :  { %v3606_v4 = vadd.f32 %v12557_v6, %v3458_v48 }
 0x844   :  { %v3429_v41 = vpop.f32.mrb[60].mxu0 }
 0x845   :  { %v3459_v5 = vadd.f32 %v3429_v41, %v3301_v42  ;;  %v9188_v62 = vpop.f32.mrb[61].mxu0 }
 0x847   :  { %v3607_v47 = vadd.f32 %v12559_v9, %v3459_v5 }
 0x848   :  { %v3434_v23 = vpop.f32.mrb[62].mxu0 }
 0x849   :  { %v3460_v10 = vadd.f32 %v3434_v23, %v3306_v50  ;;  %v9191_v11 = vpop.f32.mrb[63].mxu0 }
 0x84b   :  { %v3608_v12 = vadd.f32 %v12561_v24, %v3460_v10 }
 0x84c   :  { %v3439_v13 = vpop.f32.mrb[64].mxu0 }
 0x84d   :  { %v3461_v26 = vadd.f32 %v3439_v13, %v3311_v32  ;;  %v9194_v14 = vpop.f32.mrb[65].mxu0 }
 0x84f   :  { %v3609_v16 = vadd.f32 %v12563_v15, %v3461_v26 }
 0x850   :  { %v3444_v17 = vpop.f32.mrb[66].mxu0 }
 0x851   :  { %v3462_v18 = vadd.f32 %v3444_v17, %v3316_v58  ;;  %v9197_v38 = vpop.f32.mrb[67].mxu0 }
 0x853   :  { %v3610_v6 = vadd.f32 %v12565_v7, %v3462_v18 }
 0x854   :  { %v3449_v40 = vpop.f32.mrb[68].mxu0 }
 0x855   :  { %v3463_v49 = vadd.f32 %v3449_v40, %v12567_v19  ;;  %v9200_v20 = vpop.f32.mrb[69].mxu0 }
 0x857   :  { %v3611_v9 = vadd.f32 %v12569_v28, %v3463_v49 }
 0x858   :  { %v3454_v21 = vpop.f32.mrb[70].mxu0 }
 0x859   :  { %v3464_v34 = vadd.f32 %v3454_v21, %v12571_v22  ;;  %v9203_v24 = vpop.f32.mrb[71].mxu0 }
 0x85b   :  { %v3612_v27 = vadd.f32 %v12573_v25, %v3464_v34 }
 0x85c   :  { %v3708_v29 = vpop.f32.mrb[72].mxu0 }
 0x85d   :  { %v3742_v35 = vadd.f32 %v3708_v29, %v3606_v4  ;;  %v9239_v15 = vpop.f32.mrb[73].mxu0 }
 0x85f   :  { %v3756_v8 = vadd.f32 %v8340_v36, %v3742_v35 }
 0x860   :  { %v3713_v37 = vpop.f32.mrb[74].mxu0 }
 0x861   :  { %v3743_v63 = vadd.f32 %v3713_v37, %v3607_v47  ;;  %v9242_v7 = vpop.f32.mrb[75].mxu0  ;;  %v3765_v19 = vsel %vm723_vm1, %v3756_v8, 0.0 }
 0x863   :  { %v3757_v39 = vadd.f32 %v8340_v36, %v3743_v63 }
 0x864   :  { %v3718_v42 = vpop.f32.mrb[76].mxu0 }
 0x865   :  { %v3766_v28 = vsel %vm723_vm1, %v3757_v39, 0.0  ;;  %v3744_v43 = vadd.f32 %v3718_v42, %v3608_v12  ;;  %v9245_v44 = vpop.f32.mrb[77].mxu0 }
 0x866   :  { %v3767_v22 = vadd.f32 %v3766_v28, %v3765_v19 }
 0x867   :  { %v3758_v45 = vadd.f32 %v8340_v36, %v3744_v43 }
 0x868   :  { %v3723_v0 = vpop.f32.mrb[78].mxu0 }
 0x869   :  { %v3768_v25 = vsel %vm723_vm1, %v3758_v45, 0.0  ;;  %v3745_v59 = vadd.f32 %v3723_v0, %v3609_v16  ;;  %v9248_v50 = vpop.f32.mrb[79].mxu0 }
 0x86a   :  { %v3769_v51 = vadd.f32 %v3768_v25, %v3767_v22 }
 0x86b   :  { %v3759_v30 = vadd.f32 %v8340_v36, %v3745_v59 }
 0x86c   :  { %v3728_v31 = vpop.f32.mrb[80].mxu0 }
 0x86d   :  { %v3770_v52 = vsel %vm723_vm1, %v3759_v30, 0.0  ;;  %v3746_v53 = vadd.f32 %v3728_v31, %v3610_v6  ;;  %v9251_v54 = vpop.f32.mrb[81].mxu0 }
 0x86e   :  { %v3771_v55 = vadd.f32 %v3770_v52, %v3769_v51 }
 0x86f   :  { %v3760_v32 = vadd.f32 %v8340_v36, %v3746_v53  ;;  %v8341_v53 = vld [vmem:[#allocation17] ss:$0 sm:$0xff] }
 0x870   :  { %v3733_v56 = vpop.f32.mrb[82].mxu0 }
 0x871   :  { %v3772_v33 = vsel %vm723_vm1, %v3760_v32, 0.0  ;;  %v3747_v57 = vadd.f32 %v3733_v56, %v3611_v9  ;;  %v9254_v58 = vpop.f32.mrb[83].mxu0 }
 0x872   :  { %v3773_v60 = vadd.f32 %v3772_v33, %v3771_v55  ;;  %v8342_v33 = vld [vmem:[#allocation18] ss:$0 sm:$0xff] }
 0x873   :  { %v3761_v3 = vadd.f32 %v8340_v36, %v3747_v57 }
 0x874   :  { %v3738_v48 = vpop.f32.mrb[84].mxu0 }
 0x875   :  { %v3774_v61 = vsel %vm723_vm1, %v3761_v3, 0.0  ;;  %v3748_v4 = vadd.f32 %v3738_v48, %v3612_v27  ;;  %v9257_v41 = vpop.f32.mrb[85].mxu0 }
 0x876   :  { %v3775_v5 = vadd.f32 %v3774_v61, %v3773_v60 }
 0x877   :  { %v3762_v62 = vadd.f32 %v8340_v36, %v3748_v4 }
 0x879   :  { %v3777_v47 = vsel %vm3776_vm7, %v3762_v62, 0.0 }
 0x87a   :  { %v3778_v23 = vadd.f32 %v3777_v47, %v3775_v5 }
 0x87c   :  { %v3779_v10 = vrot.slane %v3778_v23, 4 }
 0x87e   :  { %v3780_v11 = vadd.f32 %v3779_v10, %v3778_v23 }
 0x880   :  { %v3781_v12 = vrot.slane %v3780_v11, 2 }
 0x882   :  { %v3782_v13 = vadd.f32 %v3781_v12, %v3780_v11 }
 0x884   :  { %v3783_v26 = vrot.slane %v3782_v13, 1 }
 0x886   :  { %v3784_v14 = vadd.f32 %v3783_v26, %v3782_v13 }
 0x888   :  { %v3785_v16 = vmul.f32 0.02, %v3784_v14 }
 0x88a   :  { %v3786_v17 = vsub.f32 %v3756_v8, %v3785_v16  ;;  %v3787_v18 = vsub.f32 %v3757_v39, %v3785_v16  ;;  %v3788_v38 = vsub.f32 %v3758_v45, %v3785_v16  ;;  %v3789_v6 = vsub.f32 %v3759_v30, %v3785_v16 }
 0x88b   :  { %v3790_v40 = vsub.f32 %v3760_v32, %v3785_v16  ;;  %v3791_v49 = vsub.f32 %v3761_v3, %v3785_v16  ;;  %v3792_v20 = vsub.f32 %v3762_v62, %v3785_v16 }
 0x88c   :  { %v3793_v9 = vmul.f32 %v3786_v17, %v3786_v17  ;;  %v3794_v21 = vmul.f32 %v3787_v18, %v3787_v18  ;;  %v3795_v34 = vmul.f32 %v3788_v38, %v3788_v38  ;;  %v3796_v24 = vmul.f32 %v3789_v6, %v3789_v6 }
 0x88d   :  { %v3797_v15 = vmul.f32 %v3790_v40, %v3790_v40  ;;  %v3798_v8 = vmul.f32 %v3791_v49, %v3791_v49  ;;  %v3799_v39 = vmul.f32 %v3792_v20, %v3792_v20 }
 0x88e   :  { %v3800_v27 = vsel %vm723_vm1, %v3793_v9, 0.0  ;;  %v3801_v29 = vsel %vm723_vm1, %v3794_v21, 0.0  ;;  %v3803_v36 = vsel %vm723_vm1, %v3795_v34, 0.0  ;;  %v3805_v63 = vsel %vm723_vm1, %v3796_v24, 0.0 }
 0x88f   :  { %v3802_v35 = vadd.f32 %v3801_v29, %v3800_v27  ;;  %v3807_v42 = vsel %vm723_vm1, %v3797_v15, 0.0  ;;  %v3809_v28 = vsel %vm723_vm1, %v3798_v8, 0.0  ;;  %v3811_v44 = vsel %vm3776_vm7, %v3799_v39, 0.0 }
 0x891   :  { %v3804_v37 = vadd.f32 %v3803_v36, %v3802_v35 }
 0x893   :  { %v3806_v7 = vadd.f32 %v3805_v63, %v3804_v37 }
 0x895   :  { %v3808_v19 = vadd.f32 %v3807_v42, %v3806_v7 }
 0x897   :  { %v3810_v43 = vadd.f32 %v3809_v28, %v3808_v19 }
 0x899   :  { %v3812_v22 = vadd.f32 %v3811_v44, %v3810_v43  ;;  %v3991_v44 = vld [vmem:[%s14456_s18] sm:$0xff] }
 0x89b   :  { %v3813_v45 = vrot.slane %v3812_v22, 4 }
 0x89d   :  { %v3814_v0 = vadd.f32 %v3813_v45, %v3812_v22  ;;  %v3992_v22 = vld [vmem:[%s14456_s18 + $0x8] sm:$0xff]  ;;  %v3993_v45 = vld [vmem:[%s14456_s18 + $0x10] sm:$0xff] }
 0x89f   :  { %v3815_v25 = vrot.slane %v3814_v0, 2 }
 0x8a1   :  { %v3816_v59 = vadd.f32 %v3815_v25, %v3814_v0  ;;  %v3994_v0 = vld [vmem:[%s14456_s18 + $0x18] sm:$0xff]  ;;  %v3995_v25 = vld [vmem:[%s14456_s18 + $0x20] sm:$0xff] }
 0x8a3   :  { %v3817_v50 = vrot.slane %v3816_v59, 1 }
 0x8a5   :  { %v3818_v51 = vadd.f32 %v3817_v50, %v3816_v59  ;;  %v3996_v59 = vld [vmem:[%s14456_s18 + $0x28] sm:$0xff]  ;;  %v3997_v50 = vld [vmem:[%s14456_s18 + $0x30] sm:$0xff] }
 0x8a7   :  { %v3819_v30 = vmul.f32 0.02, %v3818_v51  ;;  %v3998_v51 = vld [vmem:[%s14456_s18 + $0x38] sm:$0xff] }
 0x8a9   :  { %v3820_v31 = vadd.f32 1e-05, %v3819_v30  ;;  %v3999_v30 = vld [vmem:[%s14456_s18 + $0x40] sm:$0xff] }
 0x8ab   :  { %11111 = vrsqrt.f32 %v3820_v31  ;;  %v4000_v31 = vld [vmem:[%s14456_s18 + $0x48] sm:$0xff] }
 0x8b5   :  { %v11112_v52 = vpop.eup %11111 }
 0x8b6   :  { %v3828_v54 = vmul.f32 %v11112_v52, %v3792_v20  ;;  %v3822_v55 = vmul.f32 %v11112_v52, %v3786_v17  ;;  %v3823_v32 = vmul.f32 %v11112_v52, %v3787_v18  ;;  %v3824_v56 = vmul.f32 %v11112_v52, %v3788_v38 }
 0x8b7   :  { %v3825_v57 = vmul.f32 %v11112_v52, %v3789_v6  ;;  %v3826_v58 = vmul.f32 %v11112_v52, %v3790_v40  ;;  %v3827_v60 = vmul.f32 %v11112_v52, %v3791_v49  ;;  %v4001_v52 = vld [vmem:[%s14456_s18 + $0x50] sm:$0xff] }
 0x8b8   :  { %v3835_v3 = vmul.f32 %v8341_v53, %v3822_v55  ;;  %v3836_v48 = vmul.f32 %v8341_v53, %v3823_v32  ;;  %v3837_v5 = vmul.f32 %v8341_v53, %v3824_v56  ;;  %v3841_v16 = vmul.f32 %v8341_v53, %v3828_v54  ;;  %v4003_v54 = vld [vmem:[%s14456_s18 + $0x60] sm:$0xf] }
 0x8b9   :  { %v3838_v23 = vmul.f32 %v8341_v53, %v3825_v57  ;;  %v3839_v12 = vmul.f32 %v8341_v53, %v3826_v58  ;;  %v3840_v14 = vmul.f32 %v8341_v53, %v3827_v60  ;;  %v4002_v53 = vld [vmem:[%s14456_s18 + $0x58] sm:$0xff] }
 0x8ba   :  { %v3848_v61 = vadd.f32 %v8342_v33, %v3835_v3  ;;  %v3849_v41 = vadd.f32 %v8342_v33, %v3836_v48  ;;  %v3850_v47 = vadd.f32 %v8342_v33, %v3837_v5  ;;  %v3854_v6 = vadd.f32 %v8342_v33, %v3841_v16 }
 0x8bb   :  { %v3851_v11 = vadd.f32 %v8342_v33, %v3838_v23  ;;  %v3852_v26 = vadd.f32 %v8342_v33, %v3839_v12  ;;  %v3853_v18 = vadd.f32 %v8342_v33, %v3840_v14 }
 0x8bc   :  { %v3855_v4 = vmax.f32 %v3848_v61, 0.0  ;;  %v3856_v62 = vmax.f32 %v3849_v41, 0.0  ;;  %v3857_v10 = vmax.f32 %v3850_v47, 0.0  ;;  %v3861_v40 = vmax.f32 %v3854_v6, 0.0 }
 0x8bd   :  { %v3858_v13 = vmax.f32 %v3851_v11, 0.0  ;;  %v3859_v17 = vmax.f32 %v3852_v26, 0.0  ;;  %v3860_v38 = vmax.f32 %v3853_v18, 0.0 }
 0x8be   :  { %9275 = vmatmul.mubr.msk.f32.vlgmr.msra.gmra.mrb[54].mxu1 %vm723_vm1, %v3855_v4 }
 0x8bf   :  { %9277 = vmatprep.mubr.msk.f32.mxu1 %vm11516_vm0, %v11517_v2 }
 0x8c2   :  { %9278 = vmatmul.mubr.msk.f32.gmra.mrb[56].mxu1 %vm723_vm1, %v3856_v62 }
 0x8c3   :  { %9280 = vmatprep.mubr.msk.f32.mxu1 %vm11516_vm0, %v11517_v2 }
 0x8c6   :  { %9281 = vmatmul.mubr.msk.f32.gmra.mrb[58].mxu1 %vm723_vm1, %v3857_v10 }
 0x8c7   :  { %9283 = vmatprep.mubr.msk.f32.mxu1 %vm11516_vm0, %v11517_v2 }
 0x8ca   :  { %9284 = vmatmul.mubr.msk.f32.gmra.mrb[60].mxu1 %vm723_vm1, %v3858_v13  ;;  %v8350_v13 = vld [vmem:[%s14456_s18 + $0x68] sm:$0xff] }
 0x8cb   :  { %9286 = vmatprep.mubr.msk.f32.mxu1 %vm11516_vm0, %v11517_v2 }
 0x8ce   :  { %9287 = vmatmul.mubr.msk.f32.gmra.mrb[62].mxu1 %vm723_vm1, %v3859_v17 }
 0x8cf   :  { %9289 = vmatprep.mubr.msk.f32.mxu1 %vm11516_vm0, %v11517_v2 }
 0x8d2   :  { %9290 = vmatmul.mubr.msk.f32.gmra.mrb[64].mxu1 %vm723_vm1, %v3860_v38 }
 0x8d3   :  { %9292 = vmatprep.mubr.msk.f32.mxu1 %vm11516_vm0, %v11517_v2 }
 0x8d6   :  { %9293 = vmatmul.mubr.msk.f32.gmra.mrb[66].mxu1 %vm723_vm1, %v3861_v40 }
 0x8d7   :  { %9362 = vmatprep.mubr.msk.f32.mxu1 %vm11516_vm0, %v11517_v2 }
 0x991   :  { %v3957_v49 = vpop.f32.mrb[54].mxu1 }
 0x992   :  { %v9276_v20 = vpop.f32.mrb[55].mxu1 }
 0x995   :  { %v3962_v9 = vpop.f32.mrb[56].mxu1 }
 0x996   :  { %v10622_v21 = vpack.c.bf16 %v3962_v9, %v3957_v49  ;;  %v9279_v34 = vpop.f32.mrb[57].mxu1  ;;  %v10866_v24 = vpack.i.bf16 %v3962_v9, %v3957_v49  ;;  %v8351_v49 = vld [vmem:[%s14456_s18 + $0x70] sm:$0xff] }
 0x998   :  { %10867 = vrot.lane.b32.xlu0 %v10866_v24, %s11520_s15  ;;  %10623 = vmatpush3.bf16.msra.mxu1 %v10622_v21 }
 0x999   :  { %v3967_v27 = vpop.f32.mrb[58].mxu1  ;;  %10624 = vmatprep.subr.bf16.mxu1 %v11515_v1 }
 0x99a   :  { %v9282_v29 = vpop.f32.mrb[59].mxu1 }
 0x99d   :  { %v3972_v35 = vpop.f32.mrb[60].mxu1 }
 0x99e   :  { %v10625_v15 = vpack.c.bf16 %v3972_v35, %v3967_v27  ;;  %v9285_v36 = vpop.f32.mrb[61].mxu1  ;;  %v10871_v37 = vpack.i.bf16 %v3972_v35, %v3967_v27 }
 0x9a0   :  { %10872 = vrot.lane.b32.xlu1 %v10871_v37, %s11520_s15  ;;  %10626 = vmatpush3.bf16.msra.mxu1 %v10625_v15  ;;  %v8352_v15 = vld [vmem:[%s14456_s18 + $0x78] sm:$0xff] }
 0x9a1   :  { %v3977_v8 = vpop.f32.mrb[62].mxu1  ;;  %10627 = vmatprep.subr.bf16.mxu1 %v11515_v1 }
 0x9a2   :  { %v9288_v63 = vpop.f32.mrb[63].mxu1 }
 0x9a3   :  { %v8418_v63 = vld [vmem:[%s14456_s18 + $0x138] sm:$0xff] }
 0x9a5   :  { %v3982_v7 = vpop.f32.mrb[64].mxu1 }
 0x9a6   :  { %v10628_v39 = vpack.c.bf16 %v3982_v7, %v3977_v8  ;;  %v9291_v42 = vpop.f32.mrb[65].mxu1  ;;  %v10876_v19 = vpack.i.bf16 %v3982_v7, %v3977_v8  ;;  %v8353_v8 = vld [vmem:[%s14456_s18 + $0x80] sm:$0xff] }
 0x9a7   :  { %v8354_v42 = vld [vmem:[%s14456_s18 + $0x88] sm:$0xff] }
 0x9a8   :  { %10877 = vrot.lane.b32.xlu0 %v10876_v19, %s11520_s15  ;;  %10629 = vmatpush3.bf16.msra.mxu1 %v10628_v39 }
 0x9a9   :  { %v3987_v28 = vpop.f32.mrb[66].mxu1  ;;  %9360 = vmatprep.subr.mxu1 %v11517_v2 }
 0x9aa   :  { %4037 = vrot.lane.b32.xlu1 %v3987_v28, %s11520_s15  ;;  %v9294_v43 = vpop.f32.mrb[67].mxu1 }
 0x9ab   :  { %v8420_v43 = vld [vmem:[%s14456_s18 + $0x148] sm:$0xff] }
 0x9ac   :  { %10882 = vrot.lane.b32.xlu0 %v10866_v24, %s11519_s16  ;;  %9361 = vmatpush3.msk.msra.mxu1 %vm4085_vm8, %v3987_v28 }
 0x9ad   :  { %9363 = vmatmul.mubr.msk.f32.vlgmr.msra.gmra.mrb[68].mxu1 %vm4045_vm9, %v3991_v44  ;;  %10639 = vmatprep.subr.bf16.mxu1 %v11515_v1  ;;  %v8356_v44 = vld [vmem:[%s14456_s18 + $0x98] sm:$0xff] }
 0x9ae   :  { %10887 = vrot.lane.b32.xlu1 %v10866_v24, %s11521_s24  ;;  %9365 = vmatprep.mubr.msk.f32.mxu1 %vm11516_vm0, %v11517_v2 }
 0x9b0   :  { %10892 = vrot.lane.b32.xlu0 %v10871_v37, %s11519_s16 }
 0x9b1   :  { %9366 = vmatmul.mubr.msk.f32.gmra.mrb[70].mxu1 %vm4045_vm9, %v3992_v22  ;;  %v8421_v22 = vld [vmem:[%s14456_s18 + $0x150] sm:$0xff] }
 0x9b2   :  { %10897 = vrot.lane.b32.xlu1 %v10871_v37, %s11521_s24  ;;  %9368 = vmatprep.mubr.msk.f32.mxu1 %vm11516_vm0, %v11517_v2 }
 0x9b4   :  { %10902 = vrot.lane.b32.xlu0 %v10876_v19, %s11519_s16 }
 0x9b5   :  { %9369 = vmatmul.mubr.msk.f32.gmra.mrb[72].mxu1 %vm4045_vm9, %v3993_v45  ;;  %v8357_v45 = vld [vmem:[%s14456_s18 + $0xa0] sm:$0xff] }
 0x9b6   :  { %10907 = vrot.lane.b32.xlu1 %v10876_v19, %s11521_s24  ;;  %9371 = vmatprep.mubr.msk.f32.mxu1 %vm11516_vm0, %v11517_v2  ;;  %v8419_v19 = vld [vmem:[%s14456_s18 + $0x140] sm:$0xff] }
 0x9b8   :  { %4415 = vrot.lane.b32.xlu0 %v3987_v28, %s11519_s16 }
 0x9b9   :  { %9372 = vmatmul.mubr.msk.f32.gmra.mrb[74].mxu1 %vm4045_vm9, %v3994_v0  ;;  %v8422_v0 = vld [vmem:[%s14456_s18 + $0x158] sm:$0xff] }
 0x9ba   :  { %4633 = vrot.lane.b32.xlu1 %v3987_v28, %s11521_s24  ;;  %9374 = vmatprep.mubr.msk.f32.mxu1 %vm11516_vm0, %v11517_v2  ;;  %v8355_v28 = vld [vmem:[%s14456_s18 + $0x90] sm:$0xff] }
 0x9bd   :  { %9375 = vmatmul.mubr.msk.f32.gmra.mrb[76].mxu1 %vm4045_vm9, %v3995_v25  ;;  %v8358_v25 = vld [vmem:[%s14456_s18 + $0xa8] sm:$0xff] }
 0x9be   :  { %9377 = vmatprep.mubr.msk.f32.mxu1 %vm11516_vm0, %v11517_v2 }
 0x9c1   :  { %9378 = vmatmul.mubr.msk.f32.gmra.mrb[78].mxu1 %vm4045_vm9, %v3996_v59  ;;  %v8423_v59 = vld [vmem:[%s14456_s18 + $0x160] sm:$0xff] }
 0x9c2   :  { %9380 = vmatprep.mubr.msk.f32.mxu1 %vm11516_vm0, %v11517_v2 }
 0x9c5   :  { %9381 = vmatmul.mubr.msk.f32.gmra.mrb[80].mxu1 %vm4045_vm9, %v3997_v50  ;;  %v8359_v50 = vld [vmem:[%s14456_s18 + $0xb0] sm:$0xff] }
 0x9c6   :  { %9383 = vmatprep.mubr.msk.f32.mxu1 %vm11516_vm0, %v11517_v2 }
 0x9c9   :  { %9384 = vmatmul.mubr.msk.f32.gmra.mrb[82].mxu1 %vm4045_vm9, %v3998_v51  ;;  %v8424_v51 = vld [vmem:[%s14456_s18 + $0x168] sm:$0xff] }
 0x9ca   :  { %9386 = vmatprep.mubr.msk.f32.mxu1 %vm11516_vm0, %v11517_v2 }
 0x9cd   :  { %9387 = vmatmul.mubr.msk.f32.gmra.mrb[84].mxu1 %vm4045_vm9, %v3999_v30  ;;  %v8360_v30 = vld [vmem:[%s14456_s18 + $0xb8] sm:$0xff] }
 0x9ce   :  { %9389 = vmatprep.mubr.msk.f32.mxu1 %vm11516_vm0, %v11517_v2 }
 0x9d1   :  { %9390 = vmatmul.mubr.msk.f32.gmra.mrb[86].mxu1 %vm4045_vm9, %v4000_v31  ;;  %v8425_v31 = vld [vmem:[%s14456_s18 + $0x170] sm:$0xff] }
 0x9d2   :  { %9392 = vmatprep.mubr.msk.f32.mxu1 %vm11516_vm0, %v11517_v2 }
 0x9d5   :  { %9393 = vmatmul.mubr.msk.f32.gmra.mrb[88].mxu1 %vm4045_vm9, %v4001_v52  ;;  %v8361_v52 = vld [vmem:[%s14456_s18 + $0xc0] sm:$0xff] }
 0x9d6   :  { %9395 = vmatprep.mubr.msk.f32.mxu1 %vm11516_vm0, %v11517_v2 }
 0x9d9   :  { %9396 = vmatmul.mubr.msk.f32.gmra.mrb[90].mxu1 %vm4045_vm9, %v4002_v53  ;;  %v8426_v53 = vld [vmem:[%s14456_s18 + $0x178] sm:$0xff] }
 0x9da   :  { %9398 = vmatprep.mubr.msk.f32.mxu1 %vm11516_vm0, %v11517_v2 }
 0x9dd   :  { %9399 = vmatmul.mubr.msk.f32.gmra.mrb[92].mxu1 %vm4045_vm9, %v4003_v54  ;;  %v8362_v54 = vld [vmem:[%s14456_s18 + $0xc8] sm:$0xf] }
 0x9de   :  { %9468 = vmatprep.mubr.msk.f32.mxu1 %vm11516_vm0, %v11517_v2 }
 0xa0a   :  { %v10868_v55 = vpop.permute.xlu0 %10867 }
 0xa0b   :  { %v10870_v32 = vunpack.i.h.bf16 %v10868_v55  ;;  %v10869_v56 = vunpack.i.l.bf16 %v10868_v55  ;;  %v8427_v55 = vld [vmem:[%s14456_s18 + $0x180] sm:$0xff] }
 0xa0d   :  { %v10613_v33 = vpack.c.bf16 %v10870_v32, %v10869_v56  ;;  %v8391_v32 = vld [vmem:[%s14456_s18 + $0xd0] sm:$0xff]  ;;  %v8428_v56 = vld [vmem:[%s14456_s18 + $0x188] sm:$0xff] }
 0xa0f   :  { %10614 = vmatpush3.bf16.msra.mxu0 %v10613_v33  ;;  %v8392_v33 = vld [vmem:[%s14456_s18 + $0xd8] sm:$0xff] }
 0xa10   :  { %10615 = vmatprep.subr.bf16.mxu0 %v11515_v1 }
 0xa12   :  { %v10873_v57 = vpop.permute.xlu1 %10872 }
 0xa13   :  { %v10875_v58 = vunpack.i.h.bf16 %v10873_v57  ;;  %v10874_v60 = vunpack.i.l.bf16 %v10873_v57  ;;  %v8429_v57 = vld [vmem:[%s14456_s18 + $0x190] sm:$0xff] }
 0xa15   :  { %v10616_v3 = vpack.c.bf16 %v10875_v58, %v10874_v60  ;;  %v8393_v58 = vld [vmem:[%s14456_s18 + $0xe0] sm:$0xff]  ;;  %v8430_v60 = vld [vmem:[%s14456_s18 + $0x198] sm:$0xf] }
 0xa17   :  { %10617 = vmatpush3.bf16.msra.mxu0 %v10616_v3  ;;  %v8394_v3 = vld [vmem:[%s14456_s18 + $0xe8] sm:$0xff] }
 0xa18   :  { %10618 = vmatprep.subr.bf16.mxu0 %v11515_v1 }
 0xa1a   :  { %v10878_v48 = vpop.permute.xlu0 %10877 }
 0xa1b   :  { %v10880_v61 = vunpack.i.h.bf16 %v10878_v48  ;;  %v10879_v4 = vunpack.i.l.bf16 %v10878_v48  ;;  %v8395_v48 = vld [vmem:[%s14456_s18 + $0xf0] sm:$0xff] }
 0xa1c   :  { %v4038_v41 = vpop.permute.xlu1 %4037 }
 0xa1d   :  { %v10619_v5 = vpack.c.bf16 %v10880_v61, %v10879_v4  ;;  %v8396_v61 = vld [vmem:[%s14456_s18 + $0xf8] sm:$0xff]  ;;  %v8397_v4 = vld [vmem:[%s14456_s18 + $0x100] sm:$0xff] }
 0xa1e   :  { %v10883_v62 = vpop.permute.xlu0 %10882 }
 0xa1f   :  { %v10885_v47 = vunpack.i.h.bf16 %v10883_v62  ;;  %v10884_v23 = vunpack.i.l.bf16 %v10883_v62  ;;  %10620 = vmatpush3.bf16.msra.mxu0 %v10619_v5  ;;  %v8399_v5 = vld [vmem:[%s14456_s18 + $0x110] sm:$0xff]  ;;  %v8400_v62 = vld [vmem:[%s14456_s18 + $0x118] sm:$0xff] }
 0xa20   :  { %v10888_v10 = vpop.permute.xlu1 %10887  ;;  %9307 = vmatprep.subr.mxu0 %v11517_v2 }
 0xa21   :  { %v10890_v11 = vunpack.i.h.bf16 %v10888_v10  ;;  %v10889_v12 = vunpack.i.l.bf16 %v10888_v10  ;;  %v10631_v14 = vpack.c.bf16 %v10885_v47, %v10884_v23  ;;  %v8401_v47 = vld [vmem:[%s14456_s18 + $0x120] sm:$0xff]  ;;  %v8402_v10 = vld [vmem:[%s14456_s18 + $0x128] sm:$0xff] }
 0xa22   :  { %v10893_v26 = vpop.permute.xlu0 %10892 }
 0xa23   :  { %v10640_v16 = vpack.c.bf16 %v10890_v11, %v10889_v12  ;;  %v10895_v17 = vunpack.i.h.bf16 %v10893_v26  ;;  %v10894_v18 = vunpack.i.l.bf16 %v10893_v26  ;;  %9308 = vmatpush3.msk.msra.mxu0 %vm4085_vm8, %v4038_v41  ;;  %v8398_v41 = vld [vmem:[%s14456_s18 + $0x108] sm:$0xff] }
 0xa24   :  { %9310 = vmatmul.mubr.msk.f32.vlgmr.msra.gmra.mrb[86].mxu0 %vm4045_vm9, %v8350_v13  ;;  %10630 = vmatprep.subr.bf16.mxu0 %v11515_v1  ;;  %v10898_v38 = vpop.permute.xlu1 %10897  ;;  %v8403_v13 = vld [vmem:[%s14456_s18 + $0x130] sm:$0xf] }
 0xa25   :  { %v10900_v6 = vunpack.i.h.bf16 %v10898_v38  ;;  %v10899_v40 = vunpack.i.l.bf16 %v10898_v38  ;;  %10632 = vmatpush3.bf16.msra.mxu0 %v10631_v14  ;;  %10641 = vmatpush3.bf16.msra.mxu1 %v10640_v16  ;;  %v10634_v9 = vpack.c.bf16 %v10895_v17, %v10894_v18 }
 0xa26   :  { %v10903_v20 = vpop.permute.xlu0 %10902  ;;  %9312 = vmatprep.mubr.msk.f32.mxu0 %vm11516_vm0, %v11517_v2  ;;  %10633 = vmatprep.subr.bf16.mxu0 %v11515_v1 }
 0xa27   :  { %v10643_v21 = vpack.c.bf16 %v10900_v6, %v10899_v40  ;;  %v10905_v34 = vunpack.i.h.bf16 %v10903_v20  ;;  %v10904_v24 = vunpack.i.l.bf16 %v10903_v20  ;;  %10642 = vmatprep.subr.bf16.mxu1 %v11515_v1 }
 0xa28   :  { %9313 = vmatmul.mubr.msk.f32.gmra.mrb[88].mxu0 %vm4045_vm9, %v8351_v49  ;;  %v10908_v27 = vpop.permute.xlu1 %10907 }
 0xa29   :  { %v10910_v29 = vunpack.i.h.bf16 %v10908_v27  ;;  %v10909_v35 = vunpack.i.l.bf16 %v10908_v27  ;;  %10635 = vmatpush3.bf16.msra.mxu0 %v10634_v9  ;;  %10644 = vmatpush3.bf16.msra.mxu1 %v10643_v21  ;;  %v10637_v36 = vpack.c.bf16 %v10905_v34, %v10904_v24 }
 0xa2a   :  { %9315 = vmatprep.mubr.msk.f32.mxu0 %vm11516_vm0, %v11517_v2  ;;  %10636 = vmatprep.subr.bf16.mxu0 %v11515_v1  ;;  %v4416_v7 = vpop.permute.xlu0 %4415 }
 0xa2b   :  { %v10646_v37 = vpack.c.bf16 %v10910_v29, %v10909_v35  ;;  %10645 = vmatprep.subr.bf16.mxu1 %v11515_v1 }
 0xa2c   :  { %9316 = vmatmul.mubr.msk.f32.gmra.mrb[90].mxu0 %vm4045_vm9, %v8352_v15  ;;  %v4634_v39 = vpop.permute.xlu1 %4633 }
 0xa2d   :  { %10638 = vmatpush3.bf16.msra.mxu0 %v10637_v36  ;;  %10647 = vmatpush3.bf16.msra.mxu1 %v10646_v37 }
 0xa2e   :  { %9318 = vmatprep.mubr.msk.f32.mxu0 %vm11516_vm0, %v11517_v2  ;;  %9413 = vmatprep.subr.mxu0 %v11517_v2 }
 0xa2f   :  { %9466 = vmatprep.subr.mxu1 %v11517_v2 }
 0xa30   :  { %9319 = vmatmul.mubr.msk.f32.gmra.mrb[92].mxu0 %vm4045_vm9, %v8353_v8 }
 0xa31   :  { %9414 = vmatpush3.msk.msra.mxu0 %vm4085_vm8, %v4416_v7  ;;  %9467 = vmatpush3.msk.msra.mxu1 %vm4085_vm8, %v4634_v39 }
 0xa32   :  { %9321 = vmatprep.mubr.msk.f32.mxu0 %vm11516_vm0, %v11517_v2  ;;  %9469 = vmatmul.mubr.msk.f32.vlgmr.msra.gmra.mrb[94].mxu1 %vm4045_vm9, %v8418_v63 }
 0xa33   :  { %9471 = vmatprep.mubr.msk.f32.mxu1 %vm11516_vm0, %v11517_v2  ;;  %10648 = vmatprep.subr.bf16.mxu0 %v11515_v1 }
 0xa34   :  { %9322 = vmatmul.mubr.msk.f32.gmra.mrb[94].mxu0 %vm4045_vm9, %v8354_v42  ;;  %10654 = vmatprep.subr.bf16.mxu1 %v11515_v1 }
 0xa35   :  { %9324 = vmatprep.mubr.msk.f32.mxu0 %vm11516_vm0, %v11517_v2 }
 0xa36   :  { %9472 = vmatmul.mubr.msk.f32.gmra.mrb[96].mxu1 %vm4045_vm9, %v8419_v19 }
 0xa37   :  { %9474 = vmatprep.mubr.msk.f32.mxu1 %vm11516_vm0, %v11517_v2 }
 0xa38   :  { %9325 = vmatmul.mubr.msk.f32.gmra.mrb[96].mxu0 %vm4045_vm9, %v8355_v28 }
 0xa39   :  { %9327 = vmatprep.mubr.msk.f32.mxu0 %vm11516_vm0, %v11517_v2 }
 0xa3a   :  { %9475 = vmatmul.mubr.msk.f32.gmra.mrb[98].mxu1 %vm4045_vm9, %v8420_v43 }
 0xa3b   :  { %9477 = vmatprep.mubr.msk.f32.mxu1 %vm11516_vm0, %v11517_v2 }
 0xa3c   :  { %9328 = vmatmul.mubr.msk.f32.gmra.mrb[98].mxu0 %vm4045_vm9, %v8356_v44 }
 0xa3d   :  { %9330 = vmatprep.mubr.msk.f32.mxu0 %vm11516_vm0, %v11517_v2 }
 0xa3e   :  { %9478 = vmatmul.mubr.msk.f32.gmra.mrb[100].mxu1 %vm4045_vm9, %v8421_v22 }
 0xa3f   :  { %9480 = vmatprep.mubr.msk.f32.mxu1 %vm11516_vm0, %v11517_v2 }
 0xa40   :  { %9331 = vmatmul.mubr.msk.f32.gmra.mrb[100].mxu0 %vm4045_vm9, %v8357_v45 }
 0xa41   :  { %9333 = vmatprep.mubr.msk.f32.mxu0 %vm11516_vm0, %v11517_v2 }
 0xa42   :  { %9481 = vmatmul.mubr.msk.f32.gmra.mrb[102].mxu1 %vm4045_vm9, %v8422_v0 }
 0xa43   :  { %9483 = vmatprep.mubr.msk.f32.mxu1 %vm11516_vm0, %v11517_v2 }
 0xa44   :  { %9334 = vmatmul.mubr.msk.f32.gmra.mrb[102].mxu0 %vm4045_vm9, %v8358_v25 }
 0xa45   :  { %9336 = vmatprep.mubr.msk.f32.mxu0 %vm11516_vm0, %v11517_v2 }
 0xa46   :  { %9484 = vmatmul.mubr.msk.f32.gmra.mrb[104].mxu1 %vm4045_vm9, %v8423_v59 }
 0xa47   :  { %9486 = vmatprep.mubr.msk.f32.mxu1 %vm11516_vm0, %v11517_v2 }
 0xa48   :  { %9337 = vmatmul.mubr.msk.f32.gmra.mrb[104].mxu0 %vm4045_vm9, %v8359_v50 }
 0xa49   :  { %9339 = vmatprep.mubr.msk.f32.mxu0 %vm11516_vm0, %v11517_v2 }
 0xa4a   :  { %9487 = vmatmul.mubr.msk.f32.gmra.mrb[106].mxu1 %vm4045_vm9, %v8424_v51 }
 0xa4b   :  { %9489 = vmatprep.mubr.msk.f32.mxu1 %vm11516_vm0, %v11517_v2 }
 0xa4c   :  { %9340 = vmatmul.mubr.msk.f32.gmra.mrb[106].mxu0 %vm4045_vm9, %v8360_v30 }
 0xa4d   :  { %9342 = vmatprep.mubr.msk.f32.mxu0 %vm11516_vm0, %v11517_v2 }
 0xa4e   :  { %9490 = vmatmul.mubr.msk.f32.gmra.mrb[108].mxu1 %vm4045_vm9, %v8425_v31 }
 0xa4f   :  { %9492 = vmatprep.mubr.msk.f32.mxu1 %vm11516_vm0, %v11517_v2 }
 0xa50   :  { %9343 = vmatmul.mubr.msk.f32.gmra.mrb[108].mxu0 %vm4045_vm9, %v8361_v52 }
 0xa51   :  { %9345 = vmatprep.mubr.msk.f32.mxu0 %vm11516_vm0, %v11517_v2 }
 0xa52   :  { %9493 = vmatmul.mubr.msk.f32.gmra.mrb[110].mxu1 %vm4045_vm9, %v8426_v53 }
 0xa53   :  { %9495 = vmatprep.mubr.msk.f32.mxu1 %vm11516_vm0, %v11517_v2 }
 0xa54   :  { %9346 = vmatmul.mubr.msk.f32.gmra.mrb[110].mxu0 %vm4045_vm9, %v8362_v54 }
 0xa55   :  { %9415 = vmatprep.mubr.msk.f32.mxu0 %vm11516_vm0, %v11517_v2 }
 0xa56   :  { %9496 = vmatmul.mubr.msk.f32.gmra.mrb[112].mxu1 %vm4045_vm9, %v8427_v55 }
 0xa57   :  { %9498 = vmatprep.mubr.msk.f32.mxu1 %vm11516_vm0, %v11517_v2 }
 0xa58   :  { %9416 = vmatmul.mubr.msk.f32.vlgmr.msra.gmra.mrb[112].mxu0 %vm4045_vm9, %v8391_v32 }
 0xa59   :  { %9418 = vmatprep.mubr.msk.f32.mxu0 %vm11516_vm0, %v11517_v2 }
 0xa5a   :  { %9499 = vmatmul.mubr.msk.f32.gmra.mrb[114].mxu1 %vm4045_vm9, %v8428_v56 }
 0xa5b   :  { %9501 = vmatprep.mubr.msk.f32.mxu1 %vm11516_vm0, %v11517_v2 }
 0xa5c   :  { %9419 = vmatmul.mubr.msk.f32.gmra.mrb[114].mxu0 %vm4045_vm9, %v8392_v33 }
 0xa5d   :  { %9421 = vmatprep.mubr.msk.f32.mxu0 %vm11516_vm0, %v11517_v2 }
 0xa5e   :  { %9502 = vmatmul.mubr.msk.f32.gmra.mrb[116].mxu1 %vm4045_vm9, %v8429_v57 }
 0xa5f   :  { %9504 = vmatprep.mubr.msk.f32.mxu1 %vm11516_vm0, %v11517_v2 }
 0xa60   :  { %9422 = vmatmul.mubr.msk.f32.gmra.mrb[116].mxu0 %vm4045_vm9, %v8393_v58 }
 0xa61   :  { %9424 = vmatprep.mubr.msk.f32.mxu0 %vm11516_vm0, %v11517_v2 }
 0xa62   :  { %9505 = vmatmul.mubr.msk.f32.gmra.mrb[118].mxu1 %vm4045_vm9, %v8430_v60 }
 0xa63   :  { %9580 = vmatprep.mubr.msk.f32.mxu1 %vm11516_vm0, %v11517_v2 }
 0xa64   :  { %9425 = vmatmul.mubr.msk.f32.gmra.mrb[118].mxu0 %vm4045_vm9, %v8394_v3 }
 0xa65   :  { %9427 = vmatprep.mubr.msk.f32.mxu0 %vm11516_vm0, %v11517_v2 }
 0xa68   :  { %9428 = vmatmul.mubr.msk.f32.gmra.mrb[120].mxu0 %vm4045_vm9, %v8395_v48 }
 0xa69   :  { %9430 = vmatprep.mubr.msk.f32.mxu0 %vm11516_vm0, %v11517_v2 }
 0xa6c   :  { %9431 = vmatmul.mubr.msk.f32.gmra.mrb[122].mxu0 %vm4045_vm9, %v8396_v61 }
 0xa6d   :  { %9433 = vmatprep.mubr.msk.f32.mxu0 %vm11516_vm0, %v11517_v2 }
 0xa70   :  { %9434 = vmatmul.mubr.msk.f32.gmra.mrb[124].mxu0 %vm4045_vm9, %v8397_v4 }
 0xa71   :  { %9436 = vmatprep.mubr.msk.f32.mxu0 %vm11516_vm0, %v11517_v2 }
 0xa74   :  { %9437 = vmatmul.mubr.msk.f32.gmra.mrb[126].mxu0 %vm4045_vm9, %v8398_v41 }
 0xa75   :  { %9439 = vmatprep.mubr.msk.f32.mxu0 %vm11516_vm0, %v11517_v2 }
 0xa78   :  { %9440 = vmatmul.mubr.msk.f32.gmra.mrb[128].mxu0 %vm4045_vm9, %v8399_v5 }
 0xa79   :  { %9442 = vmatprep.mubr.msk.f32.mxu0 %vm11516_vm0, %v11517_v2 }
 0xa7c   :  { %9443 = vmatmul.mubr.msk.f32.gmra.mrb[130].mxu0 %vm4045_vm9, %v8400_v62 }
 0xa7d   :  { %9445 = vmatprep.mubr.msk.f32.mxu0 %vm11516_vm0, %v11517_v2 }
 0xa80   :  { %9446 = vmatmul.mubr.msk.f32.gmra.mrb[132].mxu0 %vm4045_vm9, %v8401_v47  ;;  %v4325_v23 = vpop.f32.mrb[68].mxu1 }
 0xa81   :  { %9448 = vmatprep.mubr.msk.f32.mxu0 %vm11516_vm0, %v11517_v2  ;;  %v9364_v11 = vpop.f32.mrb[69].mxu1 }
 0xa84   :  { %9449 = vmatmul.mubr.msk.f32.gmra.mrb[134].mxu0 %vm4045_vm9, %v8402_v10  ;;  %v4330_v12 = vpop.f32.mrb[70].mxu1 }
 0xa85   :  { %9451 = vmatprep.mubr.msk.f32.mxu0 %vm11516_vm0, %v11517_v2  ;;  %v9367_v26 = vpop.f32.mrb[71].mxu1 }
 0xa88   :  { %9452 = vmatmul.mubr.msk.f32.gmra.mrb[136].mxu0 %vm4045_vm9, %v8403_v13  ;;  %v4335_v14 = vpop.f32.mrb[72].mxu1 }
 0xa89   :  { %v9370_v16 = vpop.f32.mrb[73].mxu1  ;;  %9515 = vmatprep.mubr.msk.f32.mxu0 %vm11516_vm0, %v11517_v2 }
 0xa8c   :  { %v4340_v17 = vpop.f32.mrb[74].mxu1 }
 0xa8d   :  { %v9373_v18 = vpop.f32.mrb[75].mxu1 }
 0xa90   :  { %v4345_v38 = vpop.f32.mrb[76].mxu1 }
 0xa91   :  { %v9376_v6 = vpop.f32.mrb[77].mxu1 }
 0xa94   :  { %v4350_v40 = vpop.f32.mrb[78].mxu1 }
 0xa95   :  { %v9379_v49 = vpop.f32.mrb[79].mxu1 }
 0xa98   :  { %v4355_v20 = vpop.f32.mrb[80].mxu1 }
 0xa99   :  { %v9382_v9 = vpop.f32.mrb[81].mxu1 }
 0xa9c   :  { %v4360_v21 = vpop.f32.mrb[82].mxu1 }
 0xa9d   :  { %v9385_v34 = vpop.f32.mrb[83].mxu1 }
 0xaa0   :  { %v4365_v24 = vpop.f32.mrb[84].mxu1 }
 0xaa1   :  { %v9388_v27 = vpop.f32.mrb[85].mxu1 }
 0xaa4   :  { %v4370_v29 = vpop.f32.mrb[86].mxu1 }
 0xaa5   :  { %v9391_v35 = vpop.f32.mrb[87].mxu1 }
 0xaa8   :  { %v4375_v15 = vpop.f32.mrb[88].mxu1 }
 0xaa9   :  { %v9394_v36 = vpop.f32.mrb[89].mxu1 }
 0xaac   :  { %v4380_v37 = vpop.f32.mrb[90].mxu1 }
 0xaad   :  { %v9397_v8 = vpop.f32.mrb[91].mxu1 }
 0xab0   :  { %v4385_v63 = vpop.f32.mrb[92].mxu1 }
 0xab1   :  { %v9400_v7 = vpop.f32.mrb[93].mxu1 }
 0xaf7   :  { %v4154_v39 = vpop.f32.mrb[86].mxu0 }
 0xaf8   :  { %v4326_v42 = vadd.f32 %v4325_v23, %v4154_v39  ;;  %v9311_v19 = vpop.f32.mrb[87].mxu0 }
 0xafb   :  { %v4159_v28 = vpop.f32.mrb[88].mxu0 }
 0xafc   :  { %v12871_v43 = vadd.f32 %v4330_v12, %v4159_v28  ;;  %v9314_v44 = vpop.f32.mrb[89].mxu0 }
 0xaff   :  { %v4164_v22 = vpop.f32.mrb[90].mxu0 }
 0xb00   :  { %v12873_v45 = vadd.f32 %v4335_v14, %v4164_v22  ;;  %v9317_v0 = vpop.f32.mrb[91].mxu0  ;;  %v12913_v22 = vld [vmem:[#allocation20] ss:$0 sm:$0xff] }
 0xb03   :  { %v4169_v25 = vpop.f32.mrb[92].mxu0 }
 0xb04   :  { %v12875_v59 = vadd.f32 %v4340_v17, %v4169_v25  ;;  %v9320_v50 = vpop.f32.mrb[93].mxu0 }
 0xb05   :  { %v4748_v51 = vpop.f32.mrb[94].mxu1  ;;  %v5005_v50 = vld [vmem:[%s14457_s22] sm:$0xff] }
 0xb06   :  { %v9470_v30 = vpop.f32.mrb[95].mxu1 }
 0xb07   :  { %v4174_v31 = vpop.f32.mrb[94].mxu0  ;;  %v5006_v30 = vld [vmem:[%s14457_s22 + $0x8] sm:$0xff] }
 0xb08   :  { %v12877_v52 = vadd.f32 %v4345_v38, %v4174_v31  ;;  %v9323_v53 = vpop.f32.mrb[95].mxu0  ;;  %v5007_v31 = vld [vmem:[%s14457_s22 + $0x10] sm:$0xff] }
 0xb09   :  { %v4753_v54 = vpop.f32.mrb[96].mxu1 }
 0xb0a   :  { %v9473_v55 = vpop.f32.mrb[97].mxu1 }
 0xb0b   :  { %v4179_v32 = vpop.f32.mrb[96].mxu0  ;;  %v10649_v55 = vpack.c.bf16 %v5006_v30, %v5005_v50 }
 0xb0c   :  { %v12879_v56 = vadd.f32 %v4350_v40, %v4179_v32  ;;  %v9326_v33 = vpop.f32.mrb[97].mxu0  ;;  %v5008_v32 = vld [vmem:[%s14457_s22 + $0x18] sm:$0xff] }
 0xb0d   :  { %v12881_v57 = vpop.f32.mrb[98].mxu1  ;;  %10650 = vmatpush3.bf16.msra.mxu0 %v10649_v55 }
 0xb0e   :  { %v9476_v58 = vpop.f32.mrb[99].mxu1  ;;  %10651 = vmatprep.subr.bf16.mxu0 %v11515_v1 }
 0xb0f   :  { %v4184_v60 = vpop.f32.mrb[98].mxu0 }
 0xb10   :  { %v12883_v3 = vadd.f32 %v4355_v20, %v4184_v60  ;;  %v9329_v48 = vpop.f32.mrb[99].mxu0 }
 0xb11   :  { %v12885_v61 = vpop.f32.mrb[100].mxu1 }
 0xb12   :  { %v9479_v4 = vpop.f32.mrb[101].mxu1 }
 0xb13   :  { %v4189_v41 = vpop.f32.mrb[100].mxu0 }
 0xb14   :  { %v12887_v5 = vadd.f32 %v4360_v21, %v4189_v41  ;;  %v9332_v62 = vpop.f32.mrb[101].mxu0 }
 0xb15   :  { %v12889_v47 = vpop.f32.mrb[102].mxu1 }
 0xb16   :  { %v9482_v23 = vpop.f32.mrb[103].mxu1 }
 0xb17   :  { %v4194_v10 = vpop.f32.mrb[102].mxu0 }
 0xb18   :  { %v12891_v11 = vadd.f32 %v4365_v24, %v4194_v10  ;;  %v9335_v12 = vpop.f32.mrb[103].mxu0 }
 0xb19   :  { %v12893_v13 = vpop.f32.mrb[104].mxu1 }
 0xb1a   :  { %v9485_v26 = vpop.f32.mrb[105].mxu1 }
 0xb1b   :  { %v4199_v14 = vpop.f32.mrb[104].mxu0 }
 0xb1c   :  { %v12895_v16 = vadd.f32 %v4370_v29, %v4199_v14  ;;  %v9338_v17 = vpop.f32.mrb[105].mxu0 }
 0xb1d   :  { %v12897_v18 = vpop.f32.mrb[106].mxu1 }
 0xb1e   :  { %v9488_v38 = vpop.f32.mrb[107].mxu1 }
 0xb1f   :  { %v4204_v6 = vpop.f32.mrb[106].mxu0 }
 0xb20   :  { %v12899_v40 = vadd.f32 %v4375_v15, %v4204_v6  ;;  %v9341_v49 = vpop.f32.mrb[107].mxu0 }
 0xb21   :  { %v12901_v20 = vpop.f32.mrb[108].mxu1 }
 0xb22   :  { %v9491_v9 = vpop.f32.mrb[109].mxu1 }
 0xb23   :  { %v4209_v21 = vpop.f32.mrb[108].mxu0 }
 0xb24   :  { %v12903_v34 = vadd.f32 %v4380_v37, %v4209_v21  ;;  %v9344_v24 = vpop.f32.mrb[109].mxu0 }
 0xb25   :  { %v12905_v27 = vpop.f32.mrb[110].mxu1 }
 0xb26   :  { %v9494_v29 = vpop.f32.mrb[111].mxu1 }
 0xb27   :  { %v4214_v35 = vpop.f32.mrb[110].mxu0 }
 0xb28   :  { %v12907_v36 = vadd.f32 %v4385_v63, %v4214_v35  ;;  %v9347_v8 = vpop.f32.mrb[111].mxu0 }
 0xb29   :  { %v12909_v15 = vpop.f32.mrb[112].mxu1 }
 0xb2a   :  { %v9497_v7 = vpop.f32.mrb[113].mxu1 }
 0xb2b   :  { %v4530_v39 = vpop.f32.mrb[112].mxu0 }
 0xb2c   :  { %v4594_v19 = vadd.f32 %v4530_v39, %v4326_v42  ;;  %v9417_v28 = vpop.f32.mrb[113].mxu0 }
 0xb2d   :  { %v12911_v37 = vpop.f32.mrb[114].mxu1 }
 0xb2e   :  { %v4812_v44 = vadd.f32 %v4748_v51, %v4594_v19  ;;  %v9500_v0 = vpop.f32.mrb[115].mxu1  ;;  %v10652_v51 = vpack.c.bf16 %v5008_v32, %v5007_v31 }
 0xb2f   :  { %v4535_v25 = vpop.f32.mrb[114].mxu0 }
 0xb30   :  { %v4595_v63 = vadd.f32 %v4535_v25, %v12871_v43  ;;  %v9420_v53 = vpop.f32.mrb[115].mxu0  ;;  %v12923_v42 = vadd.f32 %v12913_v22, %v4812_v44  ;;  %10653 = vmatpush3.bf16.msra.mxu0 %v10652_v51 }
 0xb31   :  { %v12920_v33 = vpop.f32.mrb[116].mxu1  ;;  %10672 = vmatprep.subr.bf16.mxu0 %v11515_v1 }
 0xb32   :  { %v4813_v58 = vadd.f32 %v4753_v54, %v4595_v63  ;;  %v9503_v60 = vpop.f32.mrb[117].mxu1  ;;  %v4848_v23 = vsel %vm4847_vm10, %v12923_v42, 0.0 }
 0xb33   :  { %v4540_v48 = vpop.f32.mrb[116].mxu0 }
 0xb34   :  { %v12927_v4 = vadd.f32 %v12913_v22, %v4813_v58  ;;  %v4596_v43 = vadd.f32 %v4540_v48, %v12873_v45  ;;  %v9423_v41 = vpop.f32.mrb[117].mxu0 }
 0xb35   :  { %v12930_v62 = vpop.f32.mrb[118].mxu1 }
 0xb36   :  { %v4849_v54 = vsel %vm4847_vm10, %v12927_v4, 0.0  ;;  %v4814_v10 = vadd.f32 %v12881_v57, %v4596_v43  ;;  %v9506_v12 = vpop.f32.mrb[119].mxu1 }
 0xb37   :  { %v4850_v26 = vadd.f32 %v4849_v54, %v4848_v23  ;;  %v4545_v14 = vpop.f32.mrb[118].mxu0 }
 0xb38   :  { %v12939_v17 = vadd.f32 %v12913_v22, %v4814_v10  ;;  %v4597_v45 = vadd.f32 %v4545_v14, %v12875_v59  ;;  %v9426_v38 = vpop.f32.mrb[119].mxu0 }
 0xb3a   :  { %v4851_v6 = vsel %vm4847_vm10, %v12939_v17, 0.0  ;;  %v4815_v49 = vadd.f32 %v12885_v61, %v4597_v45 }
 0xb3b   :  { %v4852_v9 = vadd.f32 %v4851_v6, %v4850_v26  ;;  %v4550_v21 = vpop.f32.mrb[120].mxu0 }
 0xb3c   :  { %v12946_v57 = vadd.f32 %v12913_v22, %v4815_v49  ;;  %v4598_v24 = vadd.f32 %v4550_v21, %v12877_v52  ;;  %v9429_v29 = vpop.f32.mrb[121].mxu0 }
 0xb3e   :  { %v4853_v35 = vsel %vm4847_vm10, %v12946_v57, 0.0  ;;  %v4816_v8 = vadd.f32 %v12889_v47, %v4598_v24 }
 0xb3f   :  { %v4854_v59 = vadd.f32 %v4853_v35, %v4852_v9  ;;  %v4555_v7 = vpop.f32.mrb[122].mxu0 }
 0xb40   :  { %v12953_v39 = vadd.f32 %v12913_v22, %v4816_v8  ;;  %v4599_v61 = vadd.f32 %v4555_v7, %v12879_v56  ;;  %v9432_v19 = vpop.f32.mrb[123].mxu0 }
 0xb42   :  { %v4855_v28 = vsel %vm4847_vm10, %v12953_v39, 0.0  ;;  %v4817_v44 = vadd.f32 %v12893_v13, %v4599_v61 }
 0xb43   :  { %v4856_v52 = vadd.f32 %v4855_v28, %v4854_v59  ;;  %v4560_v0 = vpop.f32.mrb[124].mxu0 }
 0xb44   :  { %v12960_v25 = vadd.f32 %v12913_v22, %v4817_v44  ;;  %v4600_v47 = vadd.f32 %v4560_v0, %v12883_v3  ;;  %v9435_v50 = vpop.f32.mrb[125].mxu0 }
 0xb46   :  { %v4857_v30 = vsel %vm4847_vm10, %v12960_v25, 0.0  ;;  %v4818_v31 = vadd.f32 %v12897_v18, %v4600_v47 }
 0xb47   :  { %v4858_v56 = vadd.f32 %v4857_v30, %v4856_v52  ;;  %v4565_v63 = vpop.f32.mrb[126].mxu0 }
 0xb48   :  { %v4838_v53 = vadd.f32 %v12913_v22, %v4818_v31  ;;  %v4601_v55 = vadd.f32 %v4565_v63, %v12887_v5  ;;  %v9438_v13 = vpop.f32.mrb[127].mxu0 }
 0xb4a   :  { %v4859_v32 = vsel %vm4847_vm10, %v4838_v53, 0.0  ;;  %v4819_v58 = vadd.f32 %v12901_v20, %v4601_v55 }
 0xb4b   :  { %v4860_v60 = vadd.f32 %v4859_v32, %v4858_v56  ;;  %v4570_v51 = vpop.f32.mrb[128].mxu0 }
 0xb4c   :  { %v4839_v3 = vadd.f32 %v12913_v22, %v4819_v58  ;;  %v4602_v48 = vadd.f32 %v4570_v51, %v12891_v11  ;;  %v9441_v43 = vpop.f32.mrb[129].mxu0 }
 0xb4e   :  { %v4861_v18 = vsel %vm4847_vm10, %v4839_v3, 0.0  ;;  %v4820_v41 = vadd.f32 %v12905_v27, %v4602_v48 }
 0xb4f   :  { %v4862_v23 = vadd.f32 %v4861_v18, %v4860_v60  ;;  %v4575_v54 = vpop.f32.mrb[130].mxu0 }
 0xb50   :  { %v4840_v5 = vadd.f32 %v12913_v22, %v4820_v41  ;;  %v4603_v10 = vadd.f32 %v4575_v54, %v12895_v16  ;;  %v9444_v12 = vpop.f32.mrb[131].mxu0 }
 0xb52   :  { %v4863_v20 = vsel %vm4847_vm10, %v4840_v5, 0.0  ;;  %v4821_v26 = vadd.f32 %v12909_v15, %v4603_v10 }
 0xb53   :  { %v4864_v14 = vadd.f32 %v4863_v20, %v4862_v23  ;;  %v4580_v45 = vpop.f32.mrb[132].mxu0 }
 0xb54   :  { %v4841_v11 = vadd.f32 %v12913_v22, %v4821_v26  ;;  %v4604_v38 = vadd.f32 %v4580_v45, %v12899_v40  ;;  %v9447_v6 = vpop.f32.mrb[133].mxu0 }
 0xb56   :  { %v4865_v27 = vsel %vm4847_vm10, %v4841_v11, 0.0  ;;  %v4822_v49 = vadd.f32 %v12911_v37, %v4604_v38 }
 0xb57   :  { %v4866_v9 = vadd.f32 %v4865_v27, %v4864_v14  ;;  %v4585_v21 = vpop.f32.mrb[134].mxu0 }
 0xb58   :  { %v4842_v16 = vadd.f32 %v12913_v22, %v4822_v49  ;;  %v4605_v24 = vadd.f32 %v4585_v21, %v12903_v34  ;;  %v9450_v29 = vpop.f32.mrb[135].mxu0 }
 0xb5a   :  { %v4867_v15 = vsel %vm4847_vm10, %v4842_v16, 0.0  ;;  %v4823_v35 = vadd.f32 %v12920_v33, %v4605_v24 }
 0xb5b   :  { %v4868_v8 = vadd.f32 %v4867_v15, %v4866_v9  ;;  %v4590_v59 = vpop.f32.mrb[136].mxu0 }
 0xb5c   :  { %v4843_v40 = vadd.f32 %v12913_v22, %v4823_v35  ;;  %v4606_v7 = vadd.f32 %v4590_v59, %v12907_v36  ;;  %v9453_v61 = vpop.f32.mrb[137].mxu0 }
 0xb5e   :  { %v4869_v37 = vsel %vm4847_vm10, %v4843_v40, 0.0  ;;  %v4824_v19 = vadd.f32 %v12930_v62, %v4606_v7 }
 0xb5f   :  { %v4870_v28 = vadd.f32 %v4869_v37, %v4868_v8 }
 0xb60   :  { %v4844_v34 = vadd.f32 %v12913_v22, %v4824_v19 }
 0xb62   :  { %v4872_v44 = vsel %vm4871_vm11, %v4844_v34, 0.0 }
 0xb63   :  { %v4873_v52 = vadd.f32 %v4872_v44, %v4870_v28 }
 0xb65   :  { %v4874_v0 = vrot.slane %v4873_v52, 4 }
 0xb67   :  { %v4875_v33 = vadd.f32 %v4874_v0, %v4873_v52 }
 0xb69   :  { %v4876_v47 = vrot.slane %v4875_v33, 2 }
 0xb6b   :  { %v4877_v50 = vadd.f32 %v4876_v47, %v4875_v33 }
 0xb6d   :  { %v4878_v30 = vrot.slane %v4877_v50, 1 }
 0xb6f   :  { %v4879_v31 = vadd.f32 %v4878_v30, %v4877_v50 }
 0xb71   :  { %v4880_v56 = vmul.f32 0.01, %v4879_v31 }
 0xb73   :  { %v12993_v36 = vsub.f32 %v12923_v42, %v4880_v56  ;;  %v12996_v63 = vsub.f32 %v12927_v4, %v4880_v56  ;;  %v12999_v62 = vsub.f32 %v12939_v17, %v4880_v56  ;;  %v13002_v22 = vsub.f32 %v12946_v57, %v4880_v56 }
 0xb74   :  { %v13005_v55 = vsub.f32 %v12953_v39, %v4880_v56  ;;  %v13008_v13 = vsub.f32 %v12960_v25, %v4880_v56  ;;  %v13010_v32 = vsub.f32 %v4838_v53, %v4880_v56  ;;  %v13012_v58 = vsub.f32 %v4839_v3, %v4880_v56 }
 0xb75   :  { %v13014_v42 = vsub.f32 %v4840_v5, %v4880_v56  ;;  %v13016_v4 = vsub.f32 %v4841_v11, %v4880_v56  ;;  %v13018_v60 = vsub.f32 %v4842_v16, %v4880_v56  ;;  %v13020_v17 = vsub.f32 %v4843_v40, %v4880_v56 }
 0xb76   :  { %v4893_v57 = vsub.f32 %v4844_v34, %v4880_v56  ;;  %v4894_v39 = vmul.f32 %v12993_v36, %v12993_v36  ;;  %v4895_v25 = vmul.f32 %v12996_v63, %v12996_v63  ;;  %v4896_v53 = vmul.f32 %v12999_v62, %v12999_v62  ;;  %v13059_v56 = vld [vmem:[#allocation21] ss:$0 sm:$0xff] }
 0xb77   :  { %v4897_v51 = vmul.f32 %v13002_v22, %v13002_v22  ;;  %v4898_v18 = vmul.f32 %v13005_v55, %v13005_v55  ;;  %v4899_v54 = vmul.f32 %v13008_v13, %v13008_v13  ;;  %v4900_v12 = vmul.f32 %v13010_v32, %v13010_v32 }
 0xb78   :  { %v4907_v3 = vsel %vm4847_vm10, %v4894_v39, 0.0  ;;  %v4908_v48 = vsel %vm4847_vm10, %v4895_v25, 0.0  ;;  %v4910_v41 = vsel %vm4847_vm10, %v4896_v53, 0.0  ;;  %v4901_v14 = vmul.f32 %v13012_v58, %v13012_v58 }
 0xb79   :  { %v4909_v43 = vadd.f32 %v4908_v48, %v4907_v3  ;;  %v4912_v5 = vsel %vm4847_vm10, %v4897_v51, 0.0  ;;  %v4914_v20 = vsel %vm4847_vm10, %v4898_v18, 0.0  ;;  %v4916_v45 = vsel %vm4847_vm10, %v4899_v54, 0.0  ;;  %v13066_v3 = vld [vmem:[#allocation23] ss:$0 sm:$0xff] }
 0xb7a   :  { %v4902_v38 = vmul.f32 %v13014_v42, %v13014_v42  ;;  %v4918_v6 = vsel %vm4847_vm10, %v4900_v12, 0.0  ;;  %v4903_v49 = vmul.f32 %v13016_v4, %v13016_v4  ;;  %v4920_v9 = vsel %vm4847_vm10, %v4901_v14, 0.0 }
 0xb7b   :  { %v4911_v23 = vadd.f32 %v4910_v41, %v4909_v43  ;;  %v4904_v16 = vmul.f32 %v13018_v60, %v13018_v60  ;;  %v4905_v15 = vmul.f32 %v13020_v17, %v13020_v17  ;;  %v4906_v59 = vmul.f32 %v4893_v57, %v4893_v57 }
 0xb7c   :  { %v4922_v24 = vsel %vm4847_vm10, %v4902_v38, 0.0  ;;  %v4924_v35 = vsel %vm4847_vm10, %v4903_v49, 0.0 }
 0xb7d   :  { %v4913_v10 = vadd.f32 %v4912_v5, %v4911_v23  ;;  %v4926_v40 = vsel %vm4847_vm10, %v4904_v16, 0.0  ;;  %v4928_v61 = vsel %vm4847_vm10, %v4905_v15, 0.0  ;;  %v4930_v19 = vsel %vm4871_vm11, %v4906_v59, 0.0 }
 0xb7f   :  { %v4915_v26 = vadd.f32 %v4914_v20, %v4913_v10 }
 0xb81   :  { %v4917_v11 = vadd.f32 %v4916_v45, %v4915_v26 }
 0xb83   :  { %v4919_v27 = vadd.f32 %v4918_v6, %v4917_v11 }
 0xb85   :  { %v4921_v21 = vadd.f32 %v4920_v9, %v4919_v27 }
 0xb87   :  { %v4923_v29 = vadd.f32 %v4922_v24, %v4921_v21 }
 0xb89   :  { %v4925_v8 = vadd.f32 %v4924_v35, %v4923_v29 }
 0xb8b   :  { %v4927_v7 = vadd.f32 %v4926_v40, %v4925_v8 }
 0xb8d   :  { %v4929_v37 = vadd.f32 %v4928_v61, %v4927_v7 }
 0xb8f   :  { %v4931_v28 = vadd.f32 %v4930_v19, %v4929_v37 }
 0xb91   :  { %v4932_v34 = vrot.slane %v4931_v28, 4 }
 0xb93   :  { %v4933_v44 = vadd.f32 %v4932_v34, %v4931_v28 }
 0xb95   :  { %v4934_v52 = vrot.slane %v4933_v44, 2 }
 0xb97   :  { %v4935_v0 = vadd.f32 %v4934_v52, %v4933_v44 }
 0xb99   :  { %v4936_v33 = vrot.slane %v4935_v0, 1 }
 0xb9b   :  { %v4937_v47 = vadd.f32 %v4936_v33, %v4935_v0 }
 0xb9d   :  { %v4938_v50 = vmul.f32 0.01, %v4937_v47 }
 0xb9f   :  { %v4939_v30 = vadd.f32 1e-05, %v4938_v50 }
 0xba1   :  { %11113 = vrsqrt.f32 %v4939_v30 }
 0xbab   :  { %v11114_v31 = vpop.eup %11113 }
 0xbac   :  { %v13061_v39 = vmul.f32 %v11114_v31, %v4893_v57  ;;  %v4941_v25 = vmul.f32 %v11114_v31, %v12993_v36  ;;  %v4942_v53 = vmul.f32 %v11114_v31, %v12996_v63  ;;  %v4943_v51 = vmul.f32 %v11114_v31, %v12999_v62 }
 0xbad   :  { %v4944_v48 = vmul.f32 %v11114_v31, %v13002_v22  ;;  %v4945_v43 = vmul.f32 %v11114_v31, %v13005_v55  ;;  %v4946_v18 = vmul.f32 %v11114_v31, %v13008_v13  ;;  %v4947_v41 = vmul.f32 %v11114_v31, %v13010_v32 }
 0xbae   :  { %v4960_v23 = vmul.f32 %v13059_v56, %v4941_v25  ;;  %v4961_v57 = vmul.f32 %v13059_v56, %v4942_v53  ;;  %v4948_v63 = vmul.f32 %v11114_v31, %v13012_v58  ;;  %v4962_v5 = vmul.f32 %v13059_v56, %v4943_v51 }
 0xbaf   :  { %v4949_v22 = vmul.f32 %v11114_v31, %v13014_v42  ;;  %v4950_v55 = vmul.f32 %v11114_v31, %v13016_v4  ;;  %v4951_v13 = vmul.f32 %v11114_v31, %v13018_v60  ;;  %v4952_v32 = vmul.f32 %v11114_v31, %v13020_v17 }
 0xbb0   :  { %v4979_v36 = vadd.f32 %v13066_v3, %v4960_v23  ;;  %v4980_v62 = vadd.f32 %v13066_v3, %v4961_v57  ;;  %v4981_v58 = vadd.f32 %v13066_v3, %v4962_v5  ;;  %v4963_v12 = vmul.f32 %v13059_v56, %v4944_v48 }
 0xbb1   :  { %v4964_v60 = vmul.f32 %v13059_v56, %v4945_v43  ;;  %v4965_v26 = vmul.f32 %v13059_v56, %v4946_v18  ;;  %v4966_v11 = vmul.f32 %v13059_v56, %v4947_v41  ;;  %v4967_v27 = vmul.f32 %v13059_v56, %v4948_v63 }
 0xbb2   :  { %v4992_v54 = vmax.f32 %v4979_v36, 0.0  ;;  %v4993_v10 = vmax.f32 %v4980_v62, 0.0  ;;  %v4994_v42 = vmax.f32 %v4981_v58, 0.0  ;;  %v4982_v4 = vadd.f32 %v13066_v3, %v4963_v12 }
 0xbb3   :  { %v4983_v20 = vadd.f32 %v13066_v3, %v4964_v60  ;;  %v4984_v45 = vadd.f32 %v13066_v3, %v4965_v26  ;;  %v4985_v6 = vadd.f32 %v13066_v3, %v4966_v11  ;;  %v4986_v9 = vadd.f32 %v13066_v3, %v4967_v27  ;;  %v5179_v11 = vld [vmem:[#allocation24 + $0x8] sm:$0xff]  ;;  %v5182_v27 = vld [vmem:[#allocation24 + $0x20] sm:$0xff] }
 0xbb4   :  { %9516 = vmatmul.mubr.msk.f32.vlgmr.msra.gmra.mrb[138].mxu0 %vm4847_vm10, %v4992_v54  ;;  %v4995_v17 = vmax.f32 %v4982_v4, 0.0  ;;  %v4968_v21 = vmul.f32 %v13059_v56, %v4949_v22  ;;  %v4969_v29 = vmul.f32 %v13059_v56, %v4950_v55  ;;  %v4970_v8 = vmul.f32 %v13059_v56, %v4951_v13 }
 0xbb5   :  { %9518 = vmatprep.mubr.msk.f32.mxu0 %vm11516_vm0, %v11517_v2  ;;  %v4996_v14 = vmax.f32 %v4983_v20, 0.0  ;;  %v4997_v38 = vmax.f32 %v4984_v45, 0.0  ;;  %v4998_v49 = vmax.f32 %v4985_v6, 0.0  ;;  %v4999_v16 = vmax.f32 %v4986_v9, 0.0  ;;  %v5178_v45 = vld [vmem:[#allocation24] sm:$0xff]  ;;  %v5181_v6 = vld [vmem:[#allocation24 + $0x18] sm:$0xff] }
 0xbb6   :  { %v4987_v24 = vadd.f32 %v13066_v3, %v4968_v21  ;;  %v4988_v35 = vadd.f32 %v13066_v3, %v4969_v29  ;;  %v4989_v40 = vadd.f32 %v13066_v3, %v4970_v8  ;;  %v4971_v7 = vmul.f32 %v13059_v56, %v4952_v32  ;;  %v5184_v9 = vld [vmem:[#allocation24 + $0x30] sm:$0xff]  ;;  %v5185_v21 = vld [vmem:[#allocation24 + $0x38] sm:$0xff]  ;;  %v5191_v8 = vld [vmem:[#allocation24 + $0x68] sm:$0xff] }
 0xbb7   :  { %v4972_v61 = vmul.f32 %v13059_v56, %v13061_v39  ;;  %v5188_v29 = vld [vmem:[#allocation24 + $0x50] sm:$0xff] }
 0xbb8   :  { %9519 = vmatmul.mubr.msk.f32.gmra.mrb[140].mxu0 %vm4847_vm10, %v4993_v10  ;;  %v5000_v15 = vmax.f32 %v4987_v24, 0.0  ;;  %v5001_v59 = vmax.f32 %v4988_v35, 0.0  ;;  %v5002_v37 = vmax.f32 %v4989_v40, 0.0  ;;  %v4990_v19 = vadd.f32 %v13066_v3, %v4971_v7  ;;  %v5187_v24 = vld [vmem:[#allocation24 + $0x48] sm:$0xff]  ;;  %v5190_v35 = vld [vmem:[#allocation24 + $0x60] sm:$0xff]  ;;  %v5193_v40 = vld [vmem:[#allocation24 + $0x78] sm:$0xff] }
 0xbb9   :  { %9521 = vmatprep.mubr.msk.f32.mxu0 %vm11516_vm0, %v11517_v2  ;;  %v4991_v34 = vadd.f32 %v13066_v3, %v4972_v61  ;;  %v5194_v7 = vld [vmem:[#allocation24 + $0x80] sm:$0xff]  ;;  %v5195_v61 = vld [vmem:[#allocation24 + $0x88] sm:$0xff] }
 0xbba   :  { %v5003_v28 = vmax.f32 %v4990_v19, 0.0  ;;  %v5196_v19 = vld [vmem:[#allocation24 + $0x90] sm:$0xff] }
 0xbbb   :  { %v5004_v44 = vmax.f32 %v4991_v34, 0.0 }
 0xbbc   :  { %9522 = vmatmul.mubr.msk.f32.gmra.mrb[142].mxu0 %vm4847_vm10, %v4994_v42 }
 0xbbd   :  { %9524 = vmatprep.mubr.msk.f32.mxu0 %vm11516_vm0, %v11517_v2 }
 0xbc0   :  { %9525 = vmatmul.mubr.msk.f32.gmra.mrb[144].mxu0 %vm4847_vm10, %v4995_v17 }
 0xbc1   :  { %9527 = vmatprep.mubr.msk.f32.mxu0 %vm11516_vm0, %v11517_v2 }
 0xbc4   :  { %9528 = vmatmul.mubr.msk.f32.gmra.mrb[146].mxu0 %vm4847_vm10, %v4996_v14 }
 0xbc5   :  { %9530 = vmatprep.mubr.msk.f32.mxu0 %vm11516_vm0, %v11517_v2 }
 0xbc8   :  { %9531 = vmatmul.mubr.msk.f32.gmra.mrb[148].mxu0 %vm4847_vm10, %v4997_v38  ;;  %v5180_v38 = vld [vmem:[#allocation24 + $0x10] sm:$0xff] }
 0xbc9   :  { %9533 = vmatprep.mubr.msk.f32.mxu0 %vm11516_vm0, %v11517_v2 }
 0xbcc   :  { %9534 = vmatmul.mubr.msk.f32.gmra.mrb[150].mxu0 %vm4847_vm10, %v4998_v49  ;;  %v5183_v49 = vld [vmem:[#allocation24 + $0x28] sm:$0xff] }
 0xbcd   :  { %9536 = vmatprep.mubr.msk.f32.mxu0 %vm11516_vm0, %v11517_v2 }
 0xbd0   :  { %9537 = vmatmul.mubr.msk.f32.gmra.mrb[152].mxu0 %vm4847_vm10, %v4999_v16  ;;  %v5186_v16 = vld [vmem:[#allocation24 + $0x40] sm:$0xff] }
 0xbd1   :  { %9539 = vmatprep.mubr.msk.f32.mxu0 %vm11516_vm0, %v11517_v2 }
 0xbd4   :  { %9540 = vmatmul.mubr.msk.f32.gmra.mrb[154].mxu0 %vm4847_vm10, %v5000_v15  ;;  %v5189_v15 = vld [vmem:[#allocation24 + $0x58] sm:$0xff] }
 0xbd5   :  { %9542 = vmatprep.mubr.msk.f32.mxu0 %vm11516_vm0, %v11517_v2 }
 0xbd8   :  { %9543 = vmatmul.mubr.msk.f32.gmra.mrb[156].mxu0 %vm4847_vm10, %v5001_v59  ;;  %v5192_v59 = vld [vmem:[#allocation24 + $0x70] sm:$0xff] }
 0xbd9   :  { %9545 = vmatprep.mubr.msk.f32.mxu0 %vm11516_vm0, %v11517_v2 }
 0xbdc   :  { %9546 = vmatmul.mubr.msk.f32.gmra.mrb[158].mxu0 %vm4847_vm10, %v5002_v37 }
 0xbdd   :  { %9548 = vmatprep.mubr.msk.f32.mxu0 %vm11516_vm0, %v11517_v2 }
 0xbe0   :  { %9549 = vmatmul.mubr.msk.f32.gmra.mrb[160].mxu0 %vm4847_vm10, %v5003_v28 }
 0xbe1   :  { %9551 = vmatprep.mubr.msk.f32.mxu0 %vm11516_vm0, %v11517_v2 }
 0xbe4   :  { %9552 = vmatmul.mubr.msk.f32.gmra.mrb[162].mxu0 %vm4847_vm10, %v5004_v44 }
 0xbe5   :  { %9681 = vmatprep.mubr.msk.f32.mxu0 %vm11516_vm0, %v11517_v2 }
 0xc87   :  { %v5114_v52 = vpop.f32.mrb[138].mxu0 }
 0xc88   :  { %v9517_v0 = vpop.f32.mrb[139].mxu0 }
 0xc8b   :  { %v5119_v33 = vpop.f32.mrb[140].mxu0 }
 0xc8c   :  { %v10673_v47 = vpack.c.bf16 %v5119_v33, %v5114_v52  ;;  %v9520_v50 = vpop.f32.mrb[141].mxu0  ;;  %v10911_v30 = vpack.i.bf16 %v5119_v33, %v5114_v52  ;;  %v5197_v52 = vld [vmem:[#allocation24 + $0x98] sm:$0xff]  ;;  %v5198_v33 = vld [vmem:[#allocation24 + $0xa0] sm:$0xff] }
 0xc8e   :  { %10912 = vrot.lane.b32.xlu0 %v10911_v30, %s11520_s15  ;;  %10674 = vmatpush3.bf16.msra.mxu0 %v10673_v47 }
 0xc8f   :  { %v5124_v31 = vpop.f32.mrb[142].mxu0  ;;  %10675 = vmatprep.subr.bf16.mxu0 %v11515_v1 }
 0xc90   :  { %v9523_v56 = vpop.f32.mrb[143].mxu0 }
 0xc93   :  { %v5129_v39 = vpop.f32.mrb[144].mxu0 }
 0xc94   :  { %v10676_v25 = vpack.c.bf16 %v5129_v39, %v5124_v31  ;;  %v9526_v53 = vpop.f32.mrb[145].mxu0  ;;  %v10916_v51 = vpack.i.bf16 %v5129_v39, %v5124_v31  ;;  %v5199_v31 = vld [vmem:[#allocation24 + $0xa8] sm:$0xff]  ;;  %v5200_v39 = vld [vmem:[#allocation24 + $0xb0] sm:$0xff] }
 0xc96   :  { %10917 = vrot.lane.b32.xlu1 %v10916_v51, %s11520_s15  ;;  %10677 = vmatpush3.bf16.msra.mxu0 %v10676_v25 }
 0xc97   :  { %v5134_v3 = vpop.f32.mrb[146].mxu0  ;;  %10678 = vmatprep.subr.bf16.mxu0 %v11515_v1 }
 0xc98   :  { %v9529_v48 = vpop.f32.mrb[147].mxu0 }
 0xc9b   :  { %v5139_v43 = vpop.f32.mrb[148].mxu0 }
 0xc9c   :  { %v10679_v18 = vpack.c.bf16 %v5139_v43, %v5134_v3  ;;  %v9532_v41 = vpop.f32.mrb[149].mxu0  ;;  %v10921_v23 = vpack.i.bf16 %v5139_v43, %v5134_v3  ;;  %v5201_v3 = vld [vmem:[#allocation24 + $0xb8] sm:$0xff]  ;;  %v5202_v43 = vld [vmem:[#allocation24 + $0xc0] sm:$0xff] }
 0xc9e   :  { %10922 = vrot.lane.b32.xlu0 %v10921_v23, %s11520_s15  ;;  %10680 = vmatpush3.bf16.msra.mxu0 %v10679_v18 }
 0xc9f   :  { %v5144_v57 = vpop.f32.mrb[150].mxu0  ;;  %10681 = vmatprep.subr.bf16.mxu0 %v11515_v1 }
 0xca0   :  { %v9535_v36 = vpop.f32.mrb[151].mxu0 }
 0xca3   :  { %v5149_v63 = vpop.f32.mrb[152].mxu0 }
 0xca4   :  { %v10682_v54 = vpack.c.bf16 %v5149_v63, %v5144_v57  ;;  %v9538_v62 = vpop.f32.mrb[153].mxu0  ;;  %v10926_v5 = vpack.i.bf16 %v5149_v63, %v5144_v57 }
 0xca6   :  { %10927 = vrot.lane.b32.xlu1 %v10926_v5, %s11520_s15  ;;  %10683 = vmatpush3.bf16.msra.mxu0 %v10682_v54 }
 0xca7   :  { %v5154_v22 = vpop.f32.mrb[154].mxu0  ;;  %10684 = vmatprep.subr.bf16.mxu0 %v11515_v1 }
 0xca8   :  { %v9541_v55 = vpop.f32.mrb[155].mxu0 }
 0xcab   :  { %v5159_v13 = vpop.f32.mrb[156].mxu0 }
 0xcac   :  { %v10685_v32 = vpack.c.bf16 %v5159_v13, %v5154_v22  ;;  %v9544_v10 = vpop.f32.mrb[157].mxu0  ;;  %v10931_v58 = vpack.i.bf16 %v5159_v13, %v5154_v22 }
 0xcae   :  { %10932 = vrot.lane.b32.xlu0 %v10931_v58, %s11520_s15  ;;  %10686 = vmatpush3.bf16.msra.mxu0 %v10685_v32 }
 0xcaf   :  { %v5164_v12 = vpop.f32.mrb[158].mxu0  ;;  %10687 = vmatprep.subr.bf16.mxu0 %v11515_v1 }
 0xcb0   :  { %v9547_v42 = vpop.f32.mrb[159].mxu0 }
 0xcb3   :  { %v5169_v4 = vpop.f32.mrb[160].mxu0 }
 0xcb4   :  { %v10688_v60 = vpack.c.bf16 %v5169_v4, %v5164_v12  ;;  %v9550_v17 = vpop.f32.mrb[161].mxu0  ;;  %v10936_v20 = vpack.i.bf16 %v5169_v4, %v5164_v12 }
 0xcb6   :  { %10937 = vrot.lane.b32.xlu1 %v10936_v20, %s11520_s15  ;;  %10689 = vmatpush3.bf16.msra.mxu0 %v10688_v60  ;;  %v5204_v60 = vld [vmem:[#allocation24 + $0xc8] sm:$0xff] }
 0xcb7   :  { %v5174_v26 = vpop.f32.mrb[162].mxu0  ;;  %9679 = vmatprep.subr.mxu0 %v11517_v2 }
 0xcb8   :  { %5266 = vrot.lane.b32.xlu0 %v5174_v26, %s11520_s15  ;;  %v9553_v14 = vpop.f32.mrb[163].mxu0 }
 0xcba   :  { %10942 = vrot.lane.b32.xlu1 %v10911_v30, %s11519_s16  ;;  %9680 = vmatpush3.msk.msra.mxu0 %vm1661_vm2, %v5174_v26 }
 0xcbb   :  { %10708 = vmatprep.subr.bf16.mxu0 %v11515_v1  ;;  %9682 = vmatmul.mubr.msk.f32.vlgmr.msra.gmra.mrb[164].mxu0 %vm5280_vm12, %v5178_v45 }
 0xcbc   :  { %10947 = vrot.lane.b32.xlu0 %v10911_v30, %s11521_s24  ;;  %9684 = vmatprep.mubr.msk.f32.mxu0 %vm11516_vm0, %v11517_v2 }
 0xcbe   :  { %10952 = vrot.lane.b32.xlu1 %v10916_v51, %s11519_s16 }
 0xcbf   :  { %9685 = vmatmul.mubr.msk.f32.gmra.mrb[166].mxu0 %vm5280_vm12, %v5179_v11 }
 0xcc0   :  { %10957 = vrot.lane.b32.xlu0 %v10916_v51, %s11521_s24  ;;  %9687 = vmatprep.mubr.msk.f32.mxu0 %vm11516_vm0, %v11517_v2 }
 0xcc2   :  { %10962 = vrot.lane.b32.xlu1 %v10921_v23, %s11519_s16 }
 0xcc3   :  { %9688 = vmatmul.mubr.msk.f32.gmra.mrb[168].mxu0 %vm5280_vm12, %v5180_v38 }
 0xcc4   :  { %10967 = vrot.lane.b32.xlu0 %v10921_v23, %s11521_s24  ;;  %9690 = vmatprep.mubr.msk.f32.mxu0 %vm11516_vm0, %v11517_v2 }
 0xcc6   :  { %10972 = vrot.lane.b32.xlu1 %v10926_v5, %s11519_s16 }
 0xcc7   :  { %9691 = vmatmul.mubr.msk.f32.gmra.mrb[170].mxu0 %vm5280_vm12, %v5181_v6 }
 0xcc8   :  { %10977 = vrot.lane.b32.xlu0 %v10926_v5, %s11521_s24  ;;  %9693 = vmatprep.mubr.msk.f32.mxu0 %vm11516_vm0, %v11517_v2 }
 0xcca   :  { %10982 = vrot.lane.b32.xlu1 %v10931_v58, %s11519_s16 }
 0xccb   :  { %9694 = vmatmul.mubr.msk.f32.gmra.mrb[172].mxu0 %vm5280_vm12, %v5182_v27  ;;  %v5205_v27 = vld [vmem:[#allocation24 + $0xd0] sm:$0xff] }
 0xccc   :  { %10987 = vrot.lane.b32.xlu0 %v10931_v58, %s11521_s24  ;;  %9696 = vmatprep.mubr.msk.f32.mxu0 %vm11516_vm0, %v11517_v2 }
 0xcce   :  { %10992 = vrot.lane.b32.xlu1 %v10936_v20, %s11519_s16 }
 0xccf   :  { %9697 = vmatmul.mubr.msk.f32.gmra.mrb[174].mxu0 %vm5280_vm12, %v5183_v49 }
 0xcd0   :  { %10997 = vrot.lane.b32.xlu0 %v10936_v20, %s11521_s24  ;;  %9699 = vmatprep.mubr.msk.f32.mxu0 %vm11516_vm0, %v11517_v2 }
 0xcd2   :  { %5865 = vrot.lane.b32.xlu1 %v5174_v26, %s11519_s16 }
 0xcd3   :  { %9700 = vmatmul.mubr.msk.f32.gmra.mrb[176].mxu0 %vm5280_vm12, %v5184_v9 }
 0xcd4   :  { %6221 = vrot.lane.b32.xlu0 %v5174_v26, %s11521_s24  ;;  %9702 = vmatprep.mubr.msk.f32.mxu0 %vm11516_vm0, %v11517_v2 }
 0xcd7   :  { %9703 = vmatmul.mubr.msk.f32.gmra.mrb[178].mxu0 %vm5280_vm12, %v5185_v21 }
 0xcd8   :  { %9705 = vmatprep.mubr.msk.f32.mxu0 %vm11516_vm0, %v11517_v2 }
 0xcdb   :  { %9706 = vmatmul.mubr.msk.f32.gmra.mrb[180].mxu0 %vm5280_vm12, %v5186_v16 }
 0xcdc   :  { %9708 = vmatprep.mubr.msk.f32.mxu0 %vm11516_vm0, %v11517_v2 }
 0xcdf   :  { %9709 = vmatmul.mubr.msk.f32.gmra.mrb[182].mxu0 %vm5280_vm12, %v5187_v24 }
 0xce0   :  { %9711 = vmatprep.mubr.msk.f32.mxu0 %vm11516_vm0, %v11517_v2 }
 0xce3   :  { %9712 = vmatmul.mubr.msk.f32.gmra.mrb[184].mxu0 %vm5280_vm12, %v5188_v29 }
 0xce4   :  { %9714 = vmatprep.mubr.msk.f32.mxu0 %vm11516_vm0, %v11517_v2 }
 0xce7   :  { %9715 = vmatmul.mubr.msk.f32.gmra.mrb[186].mxu0 %vm5280_vm12, %v5189_v15 }
 0xce8   :  { %9717 = vmatprep.mubr.msk.f32.mxu0 %vm11516_vm0, %v11517_v2 }
 0xceb   :  { %9718 = vmatmul.mubr.msk.f32.gmra.mrb[188].mxu0 %vm5280_vm12, %v5190_v35 }
 0xcec   :  { %9720 = vmatprep.mubr.msk.f32.mxu0 %vm11516_vm0, %v11517_v2 }
 0xcef   :  { %9721 = vmatmul.mubr.msk.f32.gmra.mrb[190].mxu0 %vm5280_vm12, %v5191_v8  ;;  %v5206_v8 = vld [vmem:[#allocation24 + $0xd8] sm:$0xff] }
 0xcf0   :  { %9723 = vmatprep.mubr.msk.f32.mxu0 %vm11516_vm0, %v11517_v2 }
 0xcf3   :  { %9724 = vmatmul.mubr.msk.f32.gmra.mrb[192].mxu0 %vm5280_vm12, %v5192_v59 }
 0xcf4   :  { %9726 = vmatprep.mubr.msk.f32.mxu0 %vm11516_vm0, %v11517_v2 }
 0xcf7   :  { %9727 = vmatmul.mubr.msk.f32.gmra.mrb[194].mxu0 %vm5280_vm12, %v5193_v40 }
 0xcf8   :  { %9729 = vmatprep.mubr.msk.f32.mxu0 %vm11516_vm0, %v11517_v2 }
 0xcfb   :  { %9730 = vmatmul.mubr.msk.f32.gmra.mrb[196].mxu0 %vm5280_vm12, %v5194_v7 }
 0xcfc   :  { %9732 = vmatprep.mubr.msk.f32.mxu0 %vm11516_vm0, %v11517_v2 }
 0xcff   :  { %9733 = vmatmul.mubr.msk.f32.gmra.mrb[198].mxu0 %vm5280_vm12, %v5195_v61 }
 0xd00   :  { %v10913_v37 = vpop.permute.xlu0 %10912  ;;  %9735 = vmatprep.mubr.msk.f32.mxu0 %vm11516_vm0, %v11517_v2 }
 0xd01   :  { %v10915_v28 = vunpack.i.h.bf16 %v10913_v37  ;;  %v10914_v34 = vunpack.i.l.bf16 %v10913_v37 }
 0xd03   :  { %v10655_v44 = vpack.c.bf16 %v10915_v28, %v10914_v34  ;;  %9736 = vmatmul.mubr.msk.f32.gmra.mrb[200].mxu0 %vm5280_vm12, %v5196_v19 }
 0xd04   :  { %9738 = vmatprep.mubr.msk.f32.mxu0 %vm11516_vm0, %v11517_v2 }
 0xd05   :  { %10656 = vmatpush3.bf16.msra.mxu1 %v10655_v44  ;;  %v5207_v44 = vld [vmem:[#allocation24 + $0xe0] sm:$0xff] }
 0xd06   :  { %10657 = vmatprep.subr.bf16.mxu1 %v11515_v1 }
 0xd07   :  { %9739 = vmatmul.mubr.msk.f32.gmra.mrb[202].mxu0 %vm5280_vm12, %v5197_v52 }
 0xd08   :  { %v10918_v0 = vpop.permute.xlu1 %10917  ;;  %9741 = vmatprep.mubr.msk.f32.mxu0 %vm11516_vm0, %v11517_v2 }
 0xd09   :  { %v10920_v47 = vunpack.i.h.bf16 %v10918_v0  ;;  %v10919_v50 = vunpack.i.l.bf16 %v10918_v0 }
 0xd0b   :  { %v10658_v30 = vpack.c.bf16 %v10920_v47, %v10919_v50  ;;  %9742 = vmatmul.mubr.msk.f32.gmra.mrb[204].mxu0 %vm5280_vm12, %v5198_v33 }
 0xd0c   :  { %9744 = vmatprep.mubr.msk.f32.mxu0 %vm11516_vm0, %v11517_v2 }
 0xd0d   :  { %10659 = vmatpush3.bf16.msra.mxu1 %v10658_v30 }
 0xd0e   :  { %10660 = vmatprep.subr.bf16.mxu1 %v11515_v1 }
 0xd0f   :  { %9745 = vmatmul.mubr.msk.f32.gmra.mrb[206].mxu0 %vm5280_vm12, %v5199_v31 }
 0xd10   :  { %v10923_v56 = vpop.permute.xlu0 %10922  ;;  %9747 = vmatprep.mubr.msk.f32.mxu0 %vm11516_vm0, %v11517_v2 }
 0xd11   :  { %v10925_v25 = vunpack.i.h.bf16 %v10923_v56  ;;  %v10924_v53 = vunpack.i.l.bf16 %v10923_v56 }
 0xd13   :  { %v10661_v51 = vpack.c.bf16 %v10925_v25, %v10924_v53  ;;  %9748 = vmatmul.mubr.msk.f32.gmra.mrb[208].mxu0 %vm5280_vm12, %v5200_v39  ;;  %v5208_v39 = vld [vmem:[#allocation24 + $0xe8] sm:$0xff] }
 0xd14   :  { %9750 = vmatprep.mubr.msk.f32.mxu0 %vm11516_vm0, %v11517_v2 }
 0xd15   :  { %10662 = vmatpush3.bf16.msra.mxu1 %v10661_v51 }
 0xd16   :  { %10663 = vmatprep.subr.bf16.mxu1 %v11515_v1 }
 0xd17   :  { %9751 = vmatmul.mubr.msk.f32.gmra.mrb[210].mxu0 %vm5280_vm12, %v5201_v3 }
 0xd18   :  { %v10928_v48 = vpop.permute.xlu1 %10927  ;;  %9753 = vmatprep.mubr.msk.f32.mxu0 %vm11516_vm0, %v11517_v2 }
 0xd19   :  { %v10930_v18 = vunpack.i.h.bf16 %v10928_v48  ;;  %v10929_v41 = vunpack.i.l.bf16 %v10928_v48 }
 0xd1b   :  { %v10664_v23 = vpack.c.bf16 %v10930_v18, %v10929_v41  ;;  %9754 = vmatmul.mubr.msk.f32.gmra.mrb[212].mxu0 %vm5280_vm12, %v5202_v43 }
 0xd1c   :  { %9883 = vmatprep.mubr.msk.f32.mxu0 %vm11516_vm0, %v11517_v2 }
 0xd1d   :  { %10665 = vmatpush3.bf16.msra.mxu1 %v10664_v23  ;;  %v5209_v23 = vld [vmem:[#allocation24 + $0xf0] sm:$0xff] }
 0xd1e   :  { %10666 = vmatprep.subr.bf16.mxu1 %v11515_v1 }
 0xd20   :  { %v10933_v57 = vpop.permute.xlu0 %10932 }
 0xd21   :  { %v10935_v36 = vunpack.i.h.bf16 %v10933_v57  ;;  %v10934_v63 = vunpack.i.l.bf16 %v10933_v57 }
 0xd23   :  { %v10667_v54 = vpack.c.bf16 %v10935_v36, %v10934_v63  ;;  %v5210_v63 = vld [vmem:[#allocation24 + $0xf8] sm:$0xff] }
 0xd25   :  { %10668 = vmatpush3.bf16.msra.mxu1 %v10667_v54  ;;  %v6172_v54 = vld [vmem:[#allocation24 + $0x258] sm:$0xff] }
 0xd26   :  { %10669 = vmatprep.subr.bf16.mxu1 %v11515_v1 }
 0xd28   :  { %v10938_v62 = vpop.permute.xlu1 %10937 }
 0xd29   :  { %v10940_v5 = vunpack.i.h.bf16 %v10938_v62  ;;  %v10939_v22 = vunpack.i.l.bf16 %v10938_v62 }
 0xd2a   :  { %v5267_v55 = vpop.permute.xlu0 %5266 }
 0xd2b   :  { %v10670_v13 = vpack.c.bf16 %v10940_v5, %v10939_v22  ;;  %v5211_v22 = vld [vmem:[#allocation24 + $0x100] sm:$0xff] }
 0xd2c   :  { %v10943_v32 = vpop.permute.xlu1 %10942 }
 0xd2d   :  { %v10945_v10 = vunpack.i.h.bf16 %v10943_v32  ;;  %v10944_v58 = vunpack.i.l.bf16 %v10943_v32  ;;  %10671 = vmatpush3.bf16.msra.mxu1 %v10670_v13  ;;  %v5212_v13 = vld [vmem:[#allocation24 + $0x108] sm:$0xff] }
 0xd2e   :  { %v10948_v12 = vpop.permute.xlu0 %10947  ;;  %9578 = vmatprep.subr.mxu1 %v11517_v2  ;;  %v6174_v32 = vld [vmem:[#allocation24 + $0x268] sm:$0xff] }
 0xd2f   :  { %v10950_v42 = vunpack.i.h.bf16 %v10948_v12  ;;  %v10949_v4 = vunpack.i.l.bf16 %v10948_v12  ;;  %v10691_v20 = vpack.c.bf16 %v10945_v10, %v10944_v58  ;;  %v5213_v10 = vld [vmem:[#allocation24 + $0x110] sm:$0xff]  ;;  %v5214_v12 = vld [vmem:[#allocation24 + $0x118] sm:$0xff] }
 0xd30   :  { %v10953_v17 = vpop.permute.xlu1 %10952  ;;  %v6175_v58 = vld [vmem:[#allocation24 + $0x270] sm:$0xff] }
 0xd31   :  { %v10709_v26 = vpack.c.bf16 %v10950_v42, %v10949_v4  ;;  %v10955_v14 = vunpack.i.h.bf16 %v10953_v17  ;;  %v10954_v45 = vunpack.i.l.bf16 %v10953_v17  ;;  %9579 = vmatpush3.msk.msra.mxu1 %vm1661_vm2, %v5267_v55  ;;  %v6173_v55 = vld [vmem:[#allocation24 + $0x260] sm:$0xff]  ;;  %v6176_v42 = vld [vmem:[#allocation24 + $0x278] sm:$0xff]  ;;  %v5216_v17 = vld [vmem:[#allocation24 + $0x128] sm:$0xff] }
 0xd32   :  { %9581 = vmatmul.mubr.msk.f32.vlgmr.msra.gmra.mrb[120].mxu1 %vm5280_vm12, %v5204_v60  ;;  %10690 = vmatprep.subr.bf16.mxu1 %v11515_v1  ;;  %v10958_v11 = vpop.permute.xlu0 %10957  ;;  %v5215_v4 = vld [vmem:[#allocation24 + $0x120] sm:$0xff] }
 0xd33   :  { %v10960_v38 = vunpack.i.h.bf16 %v10958_v11  ;;  %v10959_v6 = vunpack.i.l.bf16 %v10958_v11  ;;  %10692 = vmatpush3.bf16.msra.mxu1 %v10691_v20  ;;  %10710 = vmatpush3.bf16.msra.mxu0 %v10709_v26  ;;  %v10694_v9 = vpack.c.bf16 %v10955_v14, %v10954_v45  ;;  %v6177_v60 = vld [vmem:[#allocation24 + $0x280] sm:$0xff]  ;;  %v6178_v20 = vld [vmem:[#allocation24 + $0x288] sm:$0xff]  ;;  %v5217_v26 = vld [vmem:[#allocation24 + $0x130] sm:$0xff] }
 0xd34   :  { %v10963_v49 = vpop.permute.xlu1 %10962  ;;  %9583 = vmatprep.mubr.msk.f32.mxu1 %vm11516_vm0, %v11517_v2  ;;  %10693 = vmatprep.subr.bf16.mxu1 %v11515_v1  ;;  %v6179_v14 = vld [vmem:[#allocation24 + $0x290] sm:$0xff]  ;;  %v5218_v45 = vld [vmem:[#allocation24 + $0x138] sm:$0xff] }
 0xd35   :  { %v10712_v21 = vpack.c.bf16 %v10960_v38, %v10959_v6  ;;  %v10965_v16 = vunpack.i.h.bf16 %v10963_v49  ;;  %v10964_v24 = vunpack.i.l.bf16 %v10963_v49  ;;  %10711 = vmatprep.subr.bf16.mxu0 %v11515_v1  ;;  %v6180_v11 = vld [vmem:[#allocation24 + $0x298] sm:$0xff]  ;;  %v5219_v38 = vld [vmem:[#allocation24 + $0x140] sm:$0xff]  ;;  %v6182_v49 = vld [vmem:[#allocation24 + $0x2a8] sm:$0xff] }
 0xd36   :  { %9584 = vmatmul.mubr.msk.f32.gmra.mrb[122].mxu1 %vm5280_vm12, %v5205_v27  ;;  %v10968_v29 = vpop.permute.xlu0 %10967  ;;  %v6181_v6 = vld [vmem:[#allocation24 + $0x2a0] sm:$0xff]  ;;  %v5220_v27 = vld [vmem:[#allocation24 + $0x148] sm:$0xff] }
 0xd37   :  { %v10970_v15 = vunpack.i.h.bf16 %v10968_v29  ;;  %v10969_v35 = vunpack.i.l.bf16 %v10968_v29  ;;  %10695 = vmatpush3.bf16.msra.mxu1 %v10694_v9  ;;  %10713 = vmatpush3.bf16.msra.mxu0 %v10712_v21  ;;  %v10697_v40 = vpack.c.bf16 %v10965_v16, %v10964_v24  ;;  %v5221_v9 = vld [vmem:[#allocation24 + $0x150] sm:$0xff]  ;;  %v5222_v16 = vld [vmem:[#allocation24 + $0x158] sm:$0xff]  ;;  %v5223_v29 = vld [vmem:[#allocation24 + $0x160] sm:$0xff] }
 0xd38   :  { %v10973_v59 = vpop.permute.xlu1 %10972  ;;  %9586 = vmatprep.mubr.msk.f32.mxu1 %vm11516_vm0, %v11517_v2  ;;  %10696 = vmatprep.subr.bf16.mxu1 %v11515_v1  ;;  %v6183_v21 = vld [vmem:[#allocation24 + $0x2b0] sm:$0xff]  ;;  %v6184_v24 = vld [vmem:[#allocation24 + $0x2b8] sm:$0xff] }
 0xd39   :  { %v10715_v7 = vpack.c.bf16 %v10970_v15, %v10969_v35  ;;  %v10975_v61 = vunpack.i.h.bf16 %v10973_v59  ;;  %v10974_v37 = vunpack.i.l.bf16 %v10973_v59  ;;  %10714 = vmatprep.subr.bf16.mxu0 %v11515_v1  ;;  %v6185_v15 = vld [vmem:[#allocation24 + $0x2c0] sm:$0xff]  ;;  %v5224_v35 = vld [vmem:[#allocation24 + $0x168] sm:$0xff]  ;;  %v5225_v59 = vld [vmem:[#allocation24 + $0x170] sm:$0xff] }
 0xd3a   :  { %9587 = vmatmul.mubr.msk.f32.gmra.mrb[124].mxu1 %vm5280_vm12, %v5206_v8  ;;  %v10978_v19 = vpop.permute.xlu0 %10977  ;;  %v6186_v8 = vld [vmem:[#allocation24 + $0x2c8] sm:$0xff] }
 0xd3b   :  { %v10980_v28 = vunpack.i.h.bf16 %v10978_v19  ;;  %v10979_v34 = vunpack.i.l.bf16 %v10978_v19  ;;  %10698 = vmatpush3.bf16.msra.mxu1 %v10697_v40  ;;  %10716 = vmatpush3.bf16.msra.mxu0 %v10715_v7  ;;  %v10700_v0 = vpack.c.bf16 %v10975_v61, %v10974_v37  ;;  %v6187_v40 = vld [vmem:[#allocation24 + $0x2d0] sm:$0xff]  ;;  %v5226_v7 = vld [vmem:[#allocation24 + $0x178] sm:$0xff]  ;;  %v5227_v37 = vld [vmem:[#allocation24 + $0x180] sm:$0xff] }
 0xd3c   :  { %v10983_v52 = vpop.permute.xlu1 %10982  ;;  %9589 = vmatprep.mubr.msk.f32.mxu1 %vm11516_vm0, %v11517_v2  ;;  %10699 = vmatprep.subr.bf16.mxu1 %v11515_v1  ;;  %v6188_v61 = vld [vmem:[#allocation24 + $0x2d8] sm:$0xff]  ;;  %v6189_v19 = vld [vmem:[#allocation24 + $0x2e0] sm:$0xff] }
 0xd3d   :  { %v10718_v33 = vpack.c.bf16 %v10980_v28, %v10979_v34  ;;  %v10985_v47 = vunpack.i.h.bf16 %v10983_v52  ;;  %v10984_v50 = vunpack.i.l.bf16 %v10983_v52  ;;  %10717 = vmatprep.subr.bf16.mxu0 %v11515_v1  ;;  %v5228_v34 = vld [vmem:[#allocation24 + $0x188] sm:$0xff] }
 0xd3e   :  { %9590 = vmatmul.mubr.msk.f32.gmra.mrb[126].mxu1 %vm5280_vm12, %v5207_v44  ;;  %v10988_v30 = vpop.permute.xlu0 %10987  ;;  %v6190_v52 = vld [vmem:[#allocation24 + $0x2e8] sm:$0xff] }
 0xd3f   :  { %v10990_v31 = vunpack.i.h.bf16 %v10988_v30  ;;  %v10989_v56 = vunpack.i.l.bf16 %v10988_v30  ;;  %10701 = vmatpush3.bf16.msra.mxu1 %v10700_v0  ;;  %10719 = vmatpush3.bf16.msra.mxu0 %v10718_v33  ;;  %v10703_v53 = vpack.c.bf16 %v10985_v47, %v10984_v50  ;;  %v5816_v33 = vld [vmem:[#allocation24 + $0x190] sm:$0xff] }
 0xd40   :  { %v10993_v25 = vpop.permute.xlu1 %10992  ;;  %9592 = vmatprep.mubr.msk.f32.mxu1 %vm11516_vm0, %v11517_v2  ;;  %10702 = vmatprep.subr.bf16.mxu1 %v11515_v1  ;;  %v6191_v50 = vld [vmem:[#allocation24 + $0x2f0] sm:$0xff] }
 0xd41   :  { %v10721_v51 = vpack.c.bf16 %v10990_v31, %v10989_v56  ;;  %v10995_v3 = vunpack.i.h.bf16 %v10993_v25  ;;  %v10994_v48 = vunpack.i.l.bf16 %v10993_v25  ;;  %10720 = vmatprep.subr.bf16.mxu0 %v11515_v1  ;;  %v5817_v31 = vld [vmem:[#allocation24 + $0x198] sm:$0xff] }
 0xd42   :  { %9593 = vmatmul.mubr.msk.f32.gmra.mrb[128].mxu1 %vm5280_vm12, %v5208_v39  ;;  %v10998_v43 = vpop.permute.xlu0 %10997  ;;  %v6192_v39 = vld [vmem:[#allocation24 + $0x2f8] sm:$0xff] }
 0xd43   :  { %v11000_v18 = vunpack.i.h.bf16 %v10998_v43  ;;  %v10999_v41 = vunpack.i.l.bf16 %v10998_v43  ;;  %10704 = vmatpush3.bf16.msra.mxu1 %v10703_v53  ;;  %10722 = vmatpush3.bf16.msra.mxu0 %v10721_v51  ;;  %v10706_v57 = vpack.c.bf16 %v10995_v3, %v10994_v48  ;;  %v5818_v53 = vld [vmem:[#allocation24 + $0x1a0] sm:$0xff]  ;;  %v5819_v43 = vld [vmem:[#allocation24 + $0x1a8] sm:$0xff] }
 0xd44   :  { %9595 = vmatprep.mubr.msk.f32.mxu1 %vm11516_vm0, %v11517_v2  ;;  %10705 = vmatprep.subr.bf16.mxu1 %v11515_v1  ;;  %v5866_v62 = vpop.permute.xlu1 %5865  ;;  %v6193_v3 = vld [vmem:[#allocation24 + $0x300] sm:$0xff] }
 0xd45   :  { %v10724_v36 = vpack.c.bf16 %v11000_v18, %v10999_v41  ;;  %10723 = vmatprep.subr.bf16.mxu0 %v11515_v1  ;;  %v6194_v41 = vld [vmem:[#allocation24 + $0x308] sm:$0xff] }
 0xd46   :  { %9596 = vmatmul.mubr.msk.f32.gmra.mrb[130].mxu1 %vm5280_vm12, %v5209_v23  ;;  %v6222_v5 = vpop.permute.xlu0 %6221 }
 0xd47   :  { %10707 = vmatpush3.bf16.msra.mxu1 %v10706_v57  ;;  %10725 = vmatpush3.bf16.msra.mxu0 %v10724_v36  ;;  %v5820_v57 = vld [vmem:[#allocation24 + $0x1b0] sm:$0xff] }
 0xd48   :  { %9598 = vmatprep.mubr.msk.f32.mxu1 %vm11516_vm0, %v11517_v2  ;;  %9780 = vmatprep.subr.mxu1 %v11517_v2 }
 0xd49   :  { %9881 = vmatprep.subr.mxu0 %v11517_v2 }
 0xd4a   :  { %9599 = vmatmul.mubr.msk.f32.gmra.mrb[132].mxu1 %vm5280_vm12, %v5210_v63  ;;  %v6195_v63 = vld [vmem:[#allocation24 + $0x310] sm:$0xff] }
 0xd4b   :  { %9781 = vmatpush3.msk.msra.mxu1 %vm1661_vm2, %v5866_v62  ;;  %9882 = vmatpush3.msk.msra.mxu0 %vm1661_vm2, %v6222_v5  ;;  %v5821_v62 = vld [vmem:[#allocation24 + $0x1b8] sm:$0xff] }
 0xd4c   :  { %9601 = vmatprep.mubr.msk.f32.mxu1 %vm11516_vm0, %v11517_v2  ;;  %9884 = vmatmul.mubr.msk.f32.vlgmr.msra.gmra.mrb[214].mxu0 %vm5280_vm12, %v6172_v54 }
 0xd4d   :  { %9886 = vmatprep.mubr.msk.f32.mxu0 %vm11516_vm0, %v11517_v2  ;;  %10726 = vmatprep.subr.bf16.mxu1 %v11515_v1 }
 0xd4e   :  { %9602 = vmatmul.mubr.msk.f32.gmra.mrb[134].mxu1 %vm5280_vm12, %v5211_v22  ;;  %v6196_v22 = vld [vmem:[#allocation24 + $0x318] sm:$0xff] }
 0xd4f   :  { %9604 = vmatprep.mubr.msk.f32.mxu1 %vm11516_vm0, %v11517_v2 }
 0xd50   :  { %9887 = vmatmul.mubr.msk.f32.gmra.mrb[216].mxu0 %vm5280_vm12, %v6173_v55 }
 0xd51   :  { %9889 = vmatprep.mubr.msk.f32.mxu0 %vm11516_vm0, %v11517_v2 }
 0xd52   :  { %9605 = vmatmul.mubr.msk.f32.gmra.mrb[136].mxu1 %vm5280_vm12, %v5212_v13  ;;  %v5822_v13 = vld [vmem:[#allocation24 + $0x1c0] sm:$0xff] }
 0xd53   :  { %9607 = vmatprep.mubr.msk.f32.mxu1 %vm11516_vm0, %v11517_v2 }
 0xd54   :  { %9890 = vmatmul.mubr.msk.f32.gmra.mrb[218].mxu0 %vm5280_vm12, %v6174_v32 }
 0xd55   :  { %9892 = vmatprep.mubr.msk.f32.mxu0 %vm11516_vm0, %v11517_v2 }
 0xd56   :  { %9608 = vmatmul.mubr.msk.f32.gmra.mrb[138].mxu1 %vm5280_vm12, %v5213_v10 }
 0xd57   :  { %9610 = vmatprep.mubr.msk.f32.mxu1 %vm11516_vm0, %v11517_v2 }
 0xd58   :  { %9893 = vmatmul.mubr.msk.f32.gmra.mrb[220].mxu0 %vm5280_vm12, %v6175_v58  ;;  %v5823_v58 = vld [vmem:[#allocation24 + $0x1c8] sm:$0xff] }
 0xd59   :  { %9895 = vmatprep.mubr.msk.f32.mxu0 %vm11516_vm0, %v11517_v2 }
 0xd5a   :  { %9611 = vmatmul.mubr.msk.f32.gmra.mrb[140].mxu1 %vm5280_vm12, %v5214_v12 }
 0xd5b   :  { %9613 = vmatprep.mubr.msk.f32.mxu1 %vm11516_vm0, %v11517_v2 }
 0xd5c   :  { %9896 = vmatmul.mubr.msk.f32.gmra.mrb[222].mxu0 %vm5280_vm12, %v6176_v42 }
 0xd5d   :  { %9898 = vmatprep.mubr.msk.f32.mxu0 %vm11516_vm0, %v11517_v2 }
 0xd5e   :  { %9614 = vmatmul.mubr.msk.f32.gmra.mrb[142].mxu1 %vm5280_vm12, %v5215_v4  ;;  %v5824_v4 = vld [vmem:[#allocation24 + $0x1d0] sm:$0xff] }
 0xd5f   :  { %9616 = vmatprep.mubr.msk.f32.mxu1 %vm11516_vm0, %v11517_v2 }
 0xd60   :  { %9899 = vmatmul.mubr.msk.f32.gmra.mrb[224].mxu0 %vm5280_vm12, %v6177_v60 }
 0xd61   :  { %9901 = vmatprep.mubr.msk.f32.mxu0 %vm11516_vm0, %v11517_v2 }
 0xd62   :  { %9617 = vmatmul.mubr.msk.f32.gmra.mrb[144].mxu1 %vm5280_vm12, %v5216_v17 }
 0xd63   :  { %9619 = vmatprep.mubr.msk.f32.mxu1 %vm11516_vm0, %v11517_v2 }
 0xd64   :  { %9902 = vmatmul.mubr.msk.f32.gmra.mrb[226].mxu0 %vm5280_vm12, %v6178_v20  ;;  %v5825_v20 = vld [vmem:[#allocation24 + $0x1d8] sm:$0xff] }
 0xd65   :  { %9904 = vmatprep.mubr.msk.f32.mxu0 %vm11516_vm0, %v11517_v2 }
 0xd66   :  { %9620 = vmatmul.mubr.msk.f32.gmra.mrb[146].mxu1 %vm5280_vm12, %v5217_v26 }
 0xd67   :  { %9622 = vmatprep.mubr.msk.f32.mxu1 %vm11516_vm0, %v11517_v2 }
 0xd68   :  { %9905 = vmatmul.mubr.msk.f32.gmra.mrb[228].mxu0 %vm5280_vm12, %v6179_v14 }
 0xd69   :  { %9907 = vmatprep.mubr.msk.f32.mxu0 %vm11516_vm0, %v11517_v2 }
 0xd6a   :  { %9623 = vmatmul.mubr.msk.f32.gmra.mrb[148].mxu1 %vm5280_vm12, %v5218_v45  ;;  %v5826_v45 = vld [vmem:[#allocation24 + $0x1e0] sm:$0xff] }
 0xd6b   :  { %9625 = vmatprep.mubr.msk.f32.mxu1 %vm11516_vm0, %v11517_v2 }
 0xd6c   :  { %9908 = vmatmul.mubr.msk.f32.gmra.mrb[230].mxu0 %vm5280_vm12, %v6180_v11 }
 0xd6d   :  { %9910 = vmatprep.mubr.msk.f32.mxu0 %vm11516_vm0, %v11517_v2 }
 0xd6e   :  { %9626 = vmatmul.mubr.msk.f32.gmra.mrb[150].mxu1 %vm5280_vm12, %v5219_v38 }
 0xd6f   :  { %9628 = vmatprep.mubr.msk.f32.mxu1 %vm11516_vm0, %v11517_v2 }
 0xd70   :  { %9911 = vmatmul.mubr.msk.f32.gmra.mrb[232].mxu0 %vm5280_vm12, %v6181_v6  ;;  %v5827_v6 = vld [vmem:[#allocation24 + $0x1e8] sm:$0xff] }
 0xd71   :  { %9913 = vmatprep.mubr.msk.f32.mxu0 %vm11516_vm0, %v11517_v2 }
 0xd72   :  { %9629 = vmatmul.mubr.msk.f32.gmra.mrb[152].mxu1 %vm5280_vm12, %v5220_v27 }
 0xd73   :  { %9631 = vmatprep.mubr.msk.f32.mxu1 %vm11516_vm0, %v11517_v2 }
 0xd74   :  { %9914 = vmatmul.mubr.msk.f32.gmra.mrb[234].mxu0 %vm5280_vm12, %v6182_v49 }
 0xd75   :  { %9916 = vmatprep.mubr.msk.f32.mxu0 %vm11516_vm0, %v11517_v2 }
 0xd76   :  { %9632 = vmatmul.mubr.msk.f32.gmra.mrb[154].mxu1 %vm5280_vm12, %v5221_v9  ;;  %v5828_v9 = vld [vmem:[#allocation24 + $0x1f0] sm:$0xff] }
 0xd77   :  { %9634 = vmatprep.mubr.msk.f32.mxu1 %vm11516_vm0, %v11517_v2 }
 0xd78   :  { %9917 = vmatmul.mubr.msk.f32.gmra.mrb[236].mxu0 %vm5280_vm12, %v6183_v21 }
 0xd79   :  { %9919 = vmatprep.mubr.msk.f32.mxu0 %vm11516_vm0, %v11517_v2 }
 0xd7a   :  { %9635 = vmatmul.mubr.msk.f32.gmra.mrb[156].mxu1 %vm5280_vm12, %v5222_v16 }
 0xd7b   :  { %9637 = vmatprep.mubr.msk.f32.mxu1 %vm11516_vm0, %v11517_v2 }
 0xd7c   :  { %9920 = vmatmul.mubr.msk.f32.gmra.mrb[238].mxu0 %vm5280_vm12, %v6184_v24  ;;  %v5829_v24 = vld [vmem:[#allocation24 + $0x1f8] sm:$0xff] }
 0xd7d   :  { %9922 = vmatprep.mubr.msk.f32.mxu0 %vm11516_vm0, %v11517_v2 }
 0xd7e   :  { %9638 = vmatmul.mubr.msk.f32.gmra.mrb[158].mxu1 %vm5280_vm12, %v5223_v29 }
 0xd7f   :  { %9640 = vmatprep.mubr.msk.f32.mxu1 %vm11516_vm0, %v11517_v2 }
 0xd80   :  { %9923 = vmatmul.mubr.msk.f32.gmra.mrb[240].mxu0 %vm5280_vm12, %v6185_v15 }
 0xd81   :  { %9925 = vmatprep.mubr.msk.f32.mxu0 %vm11516_vm0, %v11517_v2 }
 0xd82   :  { %9641 = vmatmul.mubr.msk.f32.gmra.mrb[160].mxu1 %vm5280_vm12, %v5224_v35  ;;  %v5830_v35 = vld [vmem:[#allocation24 + $0x200] sm:$0xff] }
 0xd83   :  { %9643 = vmatprep.mubr.msk.f32.mxu1 %vm11516_vm0, %v11517_v2 }
 0xd84   :  { %9926 = vmatmul.mubr.msk.f32.gmra.mrb[242].mxu0 %vm5280_vm12, %v6186_v8 }
 0xd85   :  { %9928 = vmatprep.mubr.msk.f32.mxu0 %vm11516_vm0, %v11517_v2 }
 0xd86   :  { %9644 = vmatmul.mubr.msk.f32.gmra.mrb[162].mxu1 %vm5280_vm12, %v5225_v59 }
 0xd87   :  { %9646 = vmatprep.mubr.msk.f32.mxu1 %vm11516_vm0, %v11517_v2 }
 0xd88   :  { %9929 = vmatmul.mubr.msk.f32.gmra.mrb[244].mxu0 %vm5280_vm12, %v6187_v40  ;;  %v5831_v40 = vld [vmem:[#allocation24 + $0x208] sm:$0xff] }
 0xd89   :  { %9931 = vmatprep.mubr.msk.f32.mxu0 %vm11516_vm0, %v11517_v2 }
 0xd8a   :  { %9647 = vmatmul.mubr.msk.f32.gmra.mrb[164].mxu1 %vm5280_vm12, %v5226_v7 }
 0xd8b   :  { %9649 = vmatprep.mubr.msk.f32.mxu1 %vm11516_vm0, %v11517_v2 }
 0xd8c   :  { %9932 = vmatmul.mubr.msk.f32.gmra.mrb[246].mxu0 %vm5280_vm12, %v6188_v61 }
 0xd8d   :  { %9934 = vmatprep.mubr.msk.f32.mxu0 %vm11516_vm0, %v11517_v2 }
 0xd8e   :  { %9650 = vmatmul.mubr.msk.f32.gmra.mrb[166].mxu1 %vm5280_vm12, %v5227_v37  ;;  %v13391_v28 = vpop.f32.mrb[164].mxu0  ;;  %v5832_v37 = vld [vmem:[#allocation24 + $0x210] sm:$0xff] }
 0xd8f   :  { %9652 = vmatprep.mubr.msk.f32.mxu1 %vm11516_vm0, %v11517_v2  ;;  %v9683_v44 = vpop.f32.mrb[165].mxu0 }
 0xd90   :  { %9935 = vmatmul.mubr.msk.f32.gmra.mrb[248].mxu0 %vm5280_vm12, %v6189_v19  ;;  %v5833_v44 = vld [vmem:[#allocation24 + $0x218] sm:$0xff] }
 0xd91   :  { %9937 = vmatprep.mubr.msk.f32.mxu0 %vm11516_vm0, %v11517_v2 }
 0xd92   :  { %9653 = vmatmul.mubr.msk.f32.gmra.mrb[168].mxu1 %vm5280_vm12, %v5228_v34  ;;  %v13399_v0 = vpop.f32.mrb[166].mxu0 }
 0xd93   :  { %9782 = vmatprep.mubr.msk.f32.mxu1 %vm11516_vm0, %v11517_v2  ;;  %v9686_v47 = vpop.f32.mrb[167].mxu0 }
 0xd94   :  { %9938 = vmatmul.mubr.msk.f32.gmra.mrb[250].mxu0 %vm5280_vm12, %v6190_v52  ;;  %v5834_v47 = vld [vmem:[#allocation24 + $0x220] sm:$0xff] }
 0xd95   :  { %9940 = vmatprep.mubr.msk.f32.mxu0 %vm11516_vm0, %v11517_v2 }
 0xd96   :  { %9783 = vmatmul.mubr.msk.f32.vlgmr.msra.gmra.mrb[170].mxu1 %vm5280_vm12, %v5816_v33  ;;  %v13407_v30 = vpop.f32.mrb[168].mxu0 }
 0xd97   :  { %9785 = vmatprep.mubr.msk.f32.mxu1 %vm11516_vm0, %v11517_v2  ;;  %v9689_v56 = vpop.f32.mrb[169].mxu0 }
 0xd98   :  { %9941 = vmatmul.mubr.msk.f32.gmra.mrb[252].mxu0 %vm5280_vm12, %v6191_v50  ;;  %v5835_v56 = vld [vmem:[#allocation24 + $0x228] sm:$0xff] }
 0xd99   :  { %9943 = vmatprep.mubr.msk.f32.mxu0 %vm11516_vm0, %v11517_v2 }
 0xd9a   :  { %9786 = vmatmul.mubr.msk.f32.gmra.mrb[172].mxu1 %vm5280_vm12, %v5817_v31  ;;  %v13415_v25 = vpop.f32.mrb[170].mxu0 }
 0xd9b   :  { %9788 = vmatprep.mubr.msk.f32.mxu1 %vm11516_vm0, %v11517_v2  ;;  %v9692_v51 = vpop.f32.mrb[171].mxu0 }
 0xd9c   :  { %9944 = vmatmul.mubr.msk.f32.gmra.mrb[254].mxu0 %vm5280_vm12, %v6192_v39  ;;  %v5836_v51 = vld [vmem:[#allocation24 + $0x230] sm:$0xff] }
 0xd9d   :  { %9946 = vmatprep.mubr.msk.f32.mxu0 %vm11516_vm0, %v11517_v2 }
 0xd9e   :  { %9789 = vmatmul.mubr.msk.f32.gmra.mrb[174].mxu1 %vm5280_vm12, %v5818_v53  ;;  %v13423_v48 = vpop.f32.mrb[172].mxu0 }
 0xd9f   :  { %9791 = vmatprep.mubr.msk.f32.mxu1 %vm11516_vm0, %v11517_v2  ;;  %v9695_v18 = vpop.f32.mrb[173].mxu0 }
 0xda0   :  { %9947 = vmatmul.mubr.msk.f32.gmra.mrb[0].mxu0 %vm5280_vm12, %v6193_v3  ;;  %v5837_v18 = vld [vmem:[#allocation24 + $0x238] sm:$0xff] }
 0xda1   :  { %9949 = vmatprep.mubr.msk.f32.mxu0 %vm11516_vm0, %v11517_v2 }
 0xda2   :  { %9792 = vmatmul.mubr.msk.f32.gmra.mrb[176].mxu1 %vm5280_vm12, %v5819_v43  ;;  %v13431_v23 = vpop.f32.mrb[174].mxu0 }
 0xda3   :  { %9794 = vmatprep.mubr.msk.f32.mxu1 %vm11516_vm0, %v11517_v2  ;;  %v9698_v36 = vpop.f32.mrb[175].mxu0 }
 0xda4   :  { %9950 = vmatmul.mubr.msk.f32.gmra.mrb[2].mxu0 %vm5280_vm12, %v6194_v41  ;;  %v5838_v36 = vld [vmem:[#allocation24 + $0x240] sm:$0xff] }
 0xda5   :  { %9952 = vmatprep.mubr.msk.f32.mxu0 %vm11516_vm0, %v11517_v2 }
 0xda6   :  { %9795 = vmatmul.mubr.msk.f32.gmra.mrb[178].mxu1 %vm5280_vm12, %v5820_v57  ;;  %v13439_v54 = vpop.f32.mrb[176].mxu0 }
 0xda7   :  { %9797 = vmatprep.mubr.msk.f32.mxu1 %vm11516_vm0, %v11517_v2  ;;  %v9701_v5 = vpop.f32.mrb[177].mxu0 }
 0xda8   :  { %9953 = vmatmul.mubr.msk.f32.gmra.mrb[4].mxu0 %vm5280_vm12, %v6195_v63  ;;  %v5839_v5 = vld [vmem:[#allocation24 + $0x248] sm:$0xff] }
 0xda9   :  { %9955 = vmatprep.mubr.msk.f32.mxu0 %vm11516_vm0, %v11517_v2 }
 0xdaa   :  { %9798 = vmatmul.mubr.msk.f32.gmra.mrb[180].mxu1 %vm5280_vm12, %v5821_v62  ;;  %v13447_v55 = vpop.f32.mrb[178].mxu0 }
 0xdab   :  { %9800 = vmatprep.mubr.msk.f32.mxu1 %vm11516_vm0, %v11517_v2  ;;  %v9704_v32 = vpop.f32.mrb[179].mxu0 }
 0xdac   :  { %9956 = vmatmul.mubr.msk.f32.gmra.mrb[6].mxu0 %vm5280_vm12, %v6196_v22 }
 0xdae   :  { %9801 = vmatmul.mubr.msk.f32.gmra.mrb[182].mxu1 %vm5280_vm12, %v5822_v13  ;;  %v13453_v10 = vpop.f32.mrb[180].mxu0  ;;  %v5840_v13 = vld [vmem:[#allocation24 + $0x250] sm:$0xff] }
 0xdaf   :  { %9803 = vmatprep.mubr.msk.f32.mxu1 %vm11516_vm0, %v11517_v2  ;;  %v9707_v12 = vpop.f32.mrb[181].mxu0 }
 0xdb2   :  { %9804 = vmatmul.mubr.msk.f32.gmra.mrb[184].mxu1 %vm5280_vm12, %v5823_v58  ;;  %v13458_v42 = vpop.f32.mrb[182].mxu0 }
 0xdb3   :  { %9806 = vmatprep.mubr.msk.f32.mxu1 %vm11516_vm0, %v11517_v2  ;;  %v9710_v60 = vpop.f32.mrb[183].mxu0 }
 0xdb6   :  { %9807 = vmatmul.mubr.msk.f32.gmra.mrb[186].mxu1 %vm5280_vm12, %v5824_v4  ;;  %v13463_v17 = vpop.f32.mrb[184].mxu0 }
 0xdb7   :  { %9809 = vmatprep.mubr.msk.f32.mxu1 %vm11516_vm0, %v11517_v2  ;;  %v9713_v26 = vpop.f32.mrb[185].mxu0 }
 0xdba   :  { %9810 = vmatmul.mubr.msk.f32.gmra.mrb[188].mxu1 %vm5280_vm12, %v5825_v20  ;;  %v13468_v14 = vpop.f32.mrb[186].mxu0 }
 0xdbb   :  { %9812 = vmatprep.mubr.msk.f32.mxu1 %vm11516_vm0, %v11517_v2  ;;  %v9716_v11 = vpop.f32.mrb[187].mxu0 }
 0xdbe   :  { %9813 = vmatmul.mubr.msk.f32.gmra.mrb[190].mxu1 %vm5280_vm12, %v5826_v45  ;;  %v13473_v38 = vpop.f32.mrb[188].mxu0 }
 0xdbf   :  { %9815 = vmatprep.mubr.msk.f32.mxu1 %vm11516_vm0, %v11517_v2  ;;  %v9719_v27 = vpop.f32.mrb[189].mxu0 }
 0xdc2   :  { %9816 = vmatmul.mubr.msk.f32.gmra.mrb[192].mxu1 %vm5280_vm12, %v5827_v6  ;;  %v13478_v49 = vpop.f32.mrb[190].mxu0 }
 0xdc3   :  { %9818 = vmatprep.mubr.msk.f32.mxu1 %vm11516_vm0, %v11517_v2  ;;  %v9722_v21 = vpop.f32.mrb[191].mxu0 }
 0xdc6   :  { %9819 = vmatmul.mubr.msk.f32.gmra.mrb[194].mxu1 %vm5280_vm12, %v5828_v9  ;;  %v13483_v16 = vpop.f32.mrb[192].mxu0 }
 0xdc7   :  { %9821 = vmatprep.mubr.msk.f32.mxu1 %vm11516_vm0, %v11517_v2  ;;  %v9725_v29 = vpop.f32.mrb[193].mxu0 }
 0xdca   :  { %9822 = vmatmul.mubr.msk.f32.gmra.mrb[196].mxu1 %vm5280_vm12, %v5829_v24  ;;  %v13488_v15 = vpop.f32.mrb[194].mxu0 }
 0xdcb   :  { %9824 = vmatprep.mubr.msk.f32.mxu1 %vm11516_vm0, %v11517_v2  ;;  %v9728_v8 = vpop.f32.mrb[195].mxu0 }
 0xdce   :  { %9825 = vmatmul.mubr.msk.f32.gmra.mrb[198].mxu1 %vm5280_vm12, %v5830_v35  ;;  %v13493_v59 = vpop.f32.mrb[196].mxu0 }
 0xdcf   :  { %9827 = vmatprep.mubr.msk.f32.mxu1 %vm11516_vm0, %v11517_v2  ;;  %v9731_v7 = vpop.f32.mrb[197].mxu0 }
 0xdd2   :  { %9828 = vmatmul.mubr.msk.f32.gmra.mrb[200].mxu1 %vm5280_vm12, %v5831_v40  ;;  %v13498_v61 = vpop.f32.mrb[198].mxu0 }
 0xdd3   :  { %9830 = vmatprep.mubr.msk.f32.mxu1 %vm11516_vm0, %v11517_v2  ;;  %v9734_v19 = vpop.f32.mrb[199].mxu0 }
 0xdd6   :  { %9831 = vmatmul.mubr.msk.f32.gmra.mrb[202].mxu1 %vm5280_vm12, %v5832_v37  ;;  %v13503_v34 = vpop.f32.mrb[200].mxu0 }
 0xdd7   :  { %9833 = vmatprep.mubr.msk.f32.mxu1 %vm11516_vm0, %v11517_v2  ;;  %v9737_v52 = vpop.f32.mrb[201].mxu0 }
 0xdda   :  { %9834 = vmatmul.mubr.msk.f32.gmra.mrb[204].mxu1 %vm5280_vm12, %v5833_v44  ;;  %v13508_v33 = vpop.f32.mrb[202].mxu0 }
 0xddb   :  { %9836 = vmatprep.mubr.msk.f32.mxu1 %vm11516_vm0, %v11517_v2  ;;  %v9740_v50 = vpop.f32.mrb[203].mxu0 }
 0xdde   :  { %9837 = vmatmul.mubr.msk.f32.gmra.mrb[206].mxu1 %vm5280_vm12, %v5834_v47  ;;  %v13513_v31 = vpop.f32.mrb[204].mxu0 }
 0xddf   :  { %9839 = vmatprep.mubr.msk.f32.mxu1 %vm11516_vm0, %v11517_v2  ;;  %v9743_v39 = vpop.f32.mrb[205].mxu0 }
 0xde2   :  { %9840 = vmatmul.mubr.msk.f32.gmra.mrb[208].mxu1 %vm5280_vm12, %v5835_v56  ;;  %v13518_v53 = vpop.f32.mrb[206].mxu0 }
 0xde3   :  { %9842 = vmatprep.mubr.msk.f32.mxu1 %vm11516_vm0, %v11517_v2  ;;  %v9746_v3 = vpop.f32.mrb[207].mxu0 }
 0xde6   :  { %9843 = vmatmul.mubr.msk.f32.gmra.mrb[210].mxu1 %vm5280_vm12, %v5836_v51  ;;  %v13523_v43 = vpop.f32.mrb[208].mxu0 }
 0xde7   :  { %9845 = vmatprep.mubr.msk.f32.mxu1 %vm11516_vm0, %v11517_v2  ;;  %v9749_v41 = vpop.f32.mrb[209].mxu0 }
 0xdea   :  { %9846 = vmatmul.mubr.msk.f32.gmra.mrb[212].mxu1 %vm5280_vm12, %v5837_v18  ;;  %v13528_v57 = vpop.f32.mrb[210].mxu0 }
 0xdeb   :  { %9848 = vmatprep.mubr.msk.f32.mxu1 %vm11516_vm0, %v11517_v2  ;;  %v9752_v63 = vpop.f32.mrb[211].mxu0 }
 0xdee   :  { %9849 = vmatmul.mubr.msk.f32.gmra.mrb[214].mxu1 %vm5280_vm12, %v5838_v36  ;;  %v13533_v62 = vpop.f32.mrb[212].mxu0 }
 0xdef   :  { %9851 = vmatprep.mubr.msk.f32.mxu1 %vm11516_vm0, %v11517_v2  ;;  %v9755_v22 = vpop.f32.mrb[213].mxu0 }
 0xdf2   :  { %9852 = vmatmul.mubr.msk.f32.gmra.mrb[216].mxu1 %vm5280_vm12, %v5839_v5 }
 0xdf3   :  { %9854 = vmatprep.mubr.msk.f32.mxu1 %vm11516_vm0, %v11517_v2 }
 0xdf6   :  { %9855 = vmatmul.mubr.msk.f32.gmra.mrb[218].mxu1 %vm5280_vm12, %v5840_v13 }
 0xdf7   :  { %9966 = vmatprep.mubr.msk.f32.mxu1 %vm11516_vm0, %v11517_v2 }
 0xe05   :  { %v5424_v32 = vpop.f32.mrb[120].mxu1 }
 0xe06   :  { %v9582_v58 = vpop.f32.mrb[121].mxu1  ;;  %v13544_v12 = vadd.f32 %v13391_v28, %v5424_v32 }
 0xe09   :  { %v5429_v4 = vpop.f32.mrb[122].mxu1 }
 0xe0a   :  { %v9585_v60 = vpop.f32.mrb[123].mxu1  ;;  %v13547_v20 = vadd.f32 %v13399_v0, %v5429_v4 }
 0xe0d   :  { %v5434_v26 = vpop.f32.mrb[124].mxu1 }
 0xe0e   :  { %v9588_v45 = vpop.f32.mrb[125].mxu1  ;;  %v13550_v11 = vadd.f32 %v13407_v30, %v5434_v26 }
 0xe11   :  { %v5439_v6 = vpop.f32.mrb[126].mxu1 }
 0xe12   :  { %v9591_v27 = vpop.f32.mrb[127].mxu1  ;;  %v13553_v9 = vadd.f32 %v13415_v25, %v5439_v6 }
 0xe15   :  { %v5444_v21 = vpop.f32.mrb[128].mxu1 }
 0xe16   :  { %v9594_v24 = vpop.f32.mrb[129].mxu1  ;;  %v13556_v28 = vadd.f32 %v13423_v48, %v5444_v21 }
 0xe19   :  { %v5449_v29 = vpop.f32.mrb[130].mxu1 }
 0xe1a   :  { %v9597_v35 = vpop.f32.mrb[131].mxu1  ;;  %v13559_v0 = vadd.f32 %v13431_v23, %v5449_v29 }
 0xe1d   :  { %v5454_v8 = vpop.f32.mrb[132].mxu1 }
 0xe1e   :  { %v9600_v40 = vpop.f32.mrb[133].mxu1  ;;  %v13562_v30 = vadd.f32 %v13439_v54, %v5454_v8 }
 0xe1f   :  { %v13564_v7 = vpop.f32.mrb[214].mxu0 }
 0xe20   :  { %v9885_v37 = vpop.f32.mrb[215].mxu0 }
 0xe21   :  { %v5459_v25 = vpop.f32.mrb[134].mxu1 }
 0xe22   :  { %v9603_v19 = vpop.f32.mrb[135].mxu1  ;;  %v13567_v44 = vadd.f32 %v13447_v55, %v5459_v25 }
 0xe23   :  { %v13569_v48 = vpop.f32.mrb[216].mxu0 }
 0xe24   :  { %v9888_v52 = vpop.f32.mrb[217].mxu0 }
 0xe25   :  { %v5464_v47 = vpop.f32.mrb[136].mxu1 }
 0xe26   :  { %v9606_v50 = vpop.f32.mrb[137].mxu1  ;;  %v13572_v23 = vadd.f32 %v13453_v10, %v5464_v47 }
 0xe27   :  { %v13574_v56 = vpop.f32.mrb[218].mxu0 }
 0xe28   :  { %v9891_v54 = vpop.f32.mrb[219].mxu0 }
 0xe29   :  { %v5469_v39 = vpop.f32.mrb[138].mxu1 }
 0xe2a   :  { %v9609_v51 = vpop.f32.mrb[139].mxu1  ;;  %v13577_v3 = vadd.f32 %v13458_v42, %v5469_v39 }
 0xe2b   :  { %v13579_v18 = vpop.f32.mrb[220].mxu0 }
 0xe2c   :  { %v9894_v55 = vpop.f32.mrb[221].mxu0 }
 0xe2d   :  { %v5474_v41 = vpop.f32.mrb[140].mxu1 }
 0xe2e   :  { %v9612_v36 = vpop.f32.mrb[141].mxu1  ;;  %v13582_v63 = vadd.f32 %v13463_v17, %v5474_v41 }
 0xe2f   :  { %v13584_v5 = vpop.f32.mrb[222].mxu0 }
 0xe30   :  { %v9897_v10 = vpop.f32.mrb[223].mxu0 }
 0xe31   :  { %v5479_v22 = vpop.f32.mrb[142].mxu1 }
 0xe32   :  { %v9615_v13 = vpop.f32.mrb[143].mxu1  ;;  %v13587_v32 = vadd.f32 %v13468_v14, %v5479_v22 }
 0xe33   :  { %v13589_v58 = vpop.f32.mrb[224].mxu0 }
 0xe34   :  { %v9900_v42 = vpop.f32.mrb[225].mxu0 }
 0xe35   :  { %v5484_v4 = vpop.f32.mrb[144].mxu1 }
 0xe36   :  { %v9618_v60 = vpop.f32.mrb[145].mxu1  ;;  %v13592_v26 = vadd.f32 %v13473_v38, %v5484_v4 }
 0xe37   :  { %v13594_v45 = vpop.f32.mrb[226].mxu0 }
 0xe38   :  { %v9903_v17 = vpop.f32.mrb[227].mxu0 }
 0xe39   :  { %v5489_v6 = vpop.f32.mrb[146].mxu1 }
 0xe3a   :  { %v9621_v27 = vpop.f32.mrb[147].mxu1  ;;  %v13597_v21 = vadd.f32 %v13478_v49, %v5489_v6 }
 0xe3b   :  { %v13599_v24 = vpop.f32.mrb[228].mxu0 }
 0xe3c   :  { %v9906_v14 = vpop.f32.mrb[229].mxu0 }
 0xe3d   :  { %v5494_v29 = vpop.f32.mrb[148].mxu1 }
 0xe3e   :  { %v9624_v35 = vpop.f32.mrb[149].mxu1  ;;  %v13602_v8 = vadd.f32 %v13483_v16, %v5494_v29 }
 0xe3f   :  { %v13604_v40 = vpop.f32.mrb[230].mxu0 }
 0xe40   :  { %v9909_v38 = vpop.f32.mrb[231].mxu0 }
 0xe41   :  { %v5499_v37 = vpop.f32.mrb[150].mxu1 }
 0xe42   :  { %v9627_v25 = vpop.f32.mrb[151].mxu1  ;;  %v13607_v19 = vadd.f32 %v13488_v15, %v5499_v37 }
 0xe43   :  { %v13609_v52 = vpop.f32.mrb[232].mxu0 }
 0xe44   :  { %v9912_v49 = vpop.f32.mrb[233].mxu0 }
 0xe45   :  { %v5504_v47 = vpop.f32.mrb[152].mxu1 }
 0xe46   :  { %v9630_v50 = vpop.f32.mrb[153].mxu1  ;;  %v13612_v54 = vadd.f32 %v13493_v59, %v5504_v47 }
 0xe47   :  { %v13614_v39 = vpop.f32.mrb[234].mxu0 }
 0xe48   :  { %v9915_v16 = vpop.f32.mrb[235].mxu0 }
 0xe49   :  { %v5509_v51 = vpop.f32.mrb[154].mxu1 }
 0xe4a   :  { %v9633_v55 = vpop.f32.mrb[155].mxu1  ;;  %v13617_v41 = vadd.f32 %v13498_v61, %v5509_v51 }
 0xe4b   :  { %v13619_v36 = vpop.f32.mrb[236].mxu0 }
 0xe4c   :  { %v9918_v15 = vpop.f32.mrb[237].mxu0 }
 0xe4d   :  { %v5514_v10 = vpop.f32.mrb[156].mxu1 }
 0xe4e   :  { %v9636_v22 = vpop.f32.mrb[157].mxu1  ;;  %v13622_v13 = vadd.f32 %v13503_v34, %v5514_v10 }
 0xe4f   :  { %v13624_v42 = vpop.f32.mrb[238].mxu0 }
 0xe50   :  { %v9921_v59 = vpop.f32.mrb[239].mxu0 }
 0xe51   :  { %v5519_v4 = vpop.f32.mrb[158].mxu1 }
 0xe52   :  { %v9639_v60 = vpop.f32.mrb[159].mxu1  ;;  %v13627_v17 = vadd.f32 %v13508_v33, %v5519_v4 }
 0xe53   :  { %v13629_v6 = vpop.f32.mrb[240].mxu0 }
 0xe54   :  { %v9924_v61 = vpop.f32.mrb[241].mxu0 }
 0xe55   :  { %v5524_v27 = vpop.f32.mrb[160].mxu1 }
 0xe56   :  { %v9642_v14 = vpop.f32.mrb[161].mxu1  ;;  %v13632_v29 = vadd.f32 %v13513_v31, %v5524_v27 }
 0xe57   :  { %v13634_v35 = vpop.f32.mrb[242].mxu0 }
 0xe58   :  { %v9927_v34 = vpop.f32.mrb[243].mxu0 }
 0xe59   :  { %v5529_v38 = vpop.f32.mrb[162].mxu1 }
 0xe5a   :  { %v9645_v37 = vpop.f32.mrb[163].mxu1  ;;  %v13637_v25 = vadd.f32 %v13518_v53, %v5529_v38 }
 0xe5b   :  { %v13639_v49 = vpop.f32.mrb[244].mxu0 }
 0xe5c   :  { %v9930_v33 = vpop.f32.mrb[245].mxu0 }
 0xe5d   :  { %v5534_v47 = vpop.f32.mrb[164].mxu1  ;;  %v13661_v33 = vld [vmem:[%s14458_s21] ss:$0 sm:$0xff] }
 0xe5e   :  { %v9648_v50 = vpop.f32.mrb[165].mxu1  ;;  %v13642_v16 = vadd.f32 %v13523_v43, %v5534_v47 }
 0xe5f   :  { %v13644_v51 = vpop.f32.mrb[246].mxu0 }
 0xe60   :  { %v9933_v31 = vpop.f32.mrb[247].mxu0 }
 0xe61   :  { %v5539_v55 = vpop.f32.mrb[166].mxu1 }
 0xe62   :  { %v9651_v15 = vpop.f32.mrb[167].mxu1  ;;  %v13647_v10 = vadd.f32 %v13528_v57, %v5539_v55 }
 0xe63   :  { %v13649_v22 = vpop.f32.mrb[248].mxu0 }
 0xe64   :  { %v9936_v53 = vpop.f32.mrb[249].mxu0 }
 0xe65   :  { %v5544_v59 = vpop.f32.mrb[168].mxu1 }
 0xe66   :  { %v9654_v4 = vpop.f32.mrb[169].mxu1  ;;  %v13652_v60 = vadd.f32 %v13533_v62, %v5544_v59 }
 0xe67   :  { %v13654_v61 = vpop.f32.mrb[250].mxu0 }
 0xe68   :  { %v9939_v43 = vpop.f32.mrb[251].mxu0 }
 0xe69   :  { %v6022_v27 = vpop.f32.mrb[170].mxu1 }
 0xe6a   :  { %v6146_v14 = vadd.f32 %v6022_v27, %v13544_v12  ;;  %v9784_v34 = vpop.f32.mrb[171].mxu1 }
 0xe6b   :  { %v13657_v38 = vpop.f32.mrb[252].mxu0 }
 0xe6c   :  { %v6502_v57 = vadd.f32 %v13564_v7, %v6146_v14  ;;  %v9942_v37 = vpop.f32.mrb[253].mxu0 }
 0xe6d   :  { %v6027_v47 = vpop.f32.mrb[172].mxu1 }
 0xe6e   :  { %v6147_v50 = vadd.f32 %v6027_v47, %v13547_v20  ;;  %v9787_v31 = vpop.f32.mrb[173].mxu1  ;;  %v13667_v55 = vadd.f32 %v13661_v33, %v6502_v57 }
 0xe6f   :  { %v13664_v62 = vpop.f32.mrb[254].mxu0 }
 0xe70   :  { %v6503_v15 = vadd.f32 %v13569_v48, %v6147_v50  ;;  %v9945_v12 = vpop.f32.mrb[255].mxu0  ;;  %v6561_v20 = vsel %vm4847_vm10, %v13667_v55, 0.0 }
 0xe71   :  { %v6032_v53 = vpop.f32.mrb[174].mxu1 }
 0xe72   :  { %v13671_v59 = vadd.f32 %v13661_v33, %v6503_v15  ;;  %v6148_v7 = vadd.f32 %v6032_v53, %v13550_v11  ;;  %v9790_v4 = vpop.f32.mrb[175].mxu1 }
 0xe73   :  { %v13674_v43 = vpop.f32.mrb[0].mxu0 }
 0xe74   :  { %v6562_v27 = vsel %vm4847_vm10, %v13671_v59, 0.0  ;;  %v6504_v14 = vadd.f32 %v13574_v56, %v6148_v7  ;;  %v9948_v34 = vpop.f32.mrb[1].mxu0 }
 0xe75   :  { %v6563_v48 = vadd.f32 %v6562_v27, %v6561_v20  ;;  %v6037_v57 = vpop.f32.mrb[176].mxu1 }
 0xe76   :  { %v13682_v37 = vadd.f32 %v13661_v33, %v6504_v14  ;;  %v6149_v47 = vadd.f32 %v6037_v57, %v13553_v9  ;;  %v9793_v11 = vpop.f32.mrb[177].mxu1 }
 0xe77   :  { %v13685_v50 = vpop.f32.mrb[2].mxu0 }
 0xe78   :  { %v6564_v31 = vsel %vm4847_vm10, %v13682_v37, 0.0  ;;  %v6505_v15 = vadd.f32 %v13579_v18, %v6149_v47  ;;  %v9951_v12 = vpop.f32.mrb[3].mxu0 }
 0xe79   :  { %v6565_v53 = vadd.f32 %v6564_v31, %v6563_v48  ;;  %v6042_v4 = vpop.f32.mrb[178].mxu1 }
 0xe7a   :  { %v13691_v56 = vadd.f32 %v13661_v33, %v6505_v15  ;;  %v6150_v7 = vadd.f32 %v6042_v4, %v13556_v28  ;;  %v9796_v20 = vpop.f32.mrb[179].mxu1 }
 0xe7b   :  { %v13694_v27 = vpop.f32.mrb[4].mxu0 }
 0xe7c   :  { %v6566_v9 = vsel %vm4847_vm10, %v13691_v56, 0.0  ;;  %v6506_v14 = vadd.f32 %v13584_v5, %v6150_v7  ;;  %v9954_v34 = vpop.f32.mrb[5].mxu0 }
 0xe7d   :  { %v6567_v57 = vadd.f32 %v6566_v9, %v6565_v53  ;;  %v6047_v11 = vpop.f32.mrb[180].mxu1 }
 0xe7e   :  { %v13700_v18 = vadd.f32 %v13661_v33, %v6506_v14  ;;  %v6151_v48 = vadd.f32 %v6047_v11, %v13559_v0  ;;  %v9799_v47 = vpop.f32.mrb[181].mxu1 }
 0xe7f   :  { %v13703_v31 = vpop.f32.mrb[6].mxu0 }
 0xe80   :  { %v6568_v28 = vsel %vm4847_vm10, %v13700_v18, 0.0  ;;  %v6507_v15 = vadd.f32 %v13589_v58, %v6151_v48  ;;  %v9957_v12 = vpop.f32.mrb[7].mxu0 }
 0xe81   :  { %v6569_v4 = vadd.f32 %v6568_v28, %v6567_v57  ;;  %v6052_v20 = vpop.f32.mrb[182].mxu1 }
 0xe82   :  { %v13709_v5 = vadd.f32 %v13661_v33, %v6507_v15  ;;  %v6152_v53 = vadd.f32 %v6052_v20, %v13562_v30  ;;  %v9802_v7 = vpop.f32.mrb[183].mxu1 }
 0xe84   :  { %v6570_v0 = vsel %vm4847_vm10, %v13709_v5, 0.0  ;;  %v6508_v9 = vadd.f32 %v13594_v45, %v6152_v53 }
 0xe85   :  { %v6571_v14 = vadd.f32 %v6570_v0, %v6569_v4  ;;  %v6057_v34 = vpop.f32.mrb[184].mxu1 }
 0xe86   :  { %v13716_v11 = vadd.f32 %v13661_v33, %v6508_v9  ;;  %v6153_v58 = vadd.f32 %v6057_v34, %v13567_v44  ;;  %v9805_v57 = vpop.f32.mrb[185].mxu1 }
 0xe88   :  { %v6572_v48 = vsel %vm4847_vm10, %v13716_v11, 0.0  ;;  %v6509_v47 = vadd.f32 %v13599_v24, %v6153_v58 }
 0xe89   :  { %v6573_v30 = vadd.f32 %v6572_v48, %v6571_v14  ;;  %v6062_v28 = vpop.f32.mrb[186].mxu1 }
 0xe8a   :  { %v13723_v15 = vadd.f32 %v13661_v33, %v6509_v47  ;;  %v6154_v45 = vadd.f32 %v6062_v28, %v13572_v23  ;;  %v9808_v12 = vpop.f32.mrb[187].mxu1 }
 0xe8c   :  { %v6574_v4 = vsel %vm4847_vm10, %v13723_v15, 0.0  ;;  %v6510_v20 = vadd.f32 %v13604_v40, %v6154_v45 }
 0xe8d   :  { %v6575_v44 = vadd.f32 %v6574_v4, %v6573_v30  ;;  %v6067_v53 = vpop.f32.mrb[188].mxu1 }
 0xe8e   :  { %v13730_v7 = vadd.f32 %v13661_v33, %v6510_v20  ;;  %v6155_v24 = vadd.f32 %v6067_v53, %v13577_v3  ;;  %v9811_v0 = vpop.f32.mrb[189].mxu1 }
 0xe90   :  { %v6576_v9 = vsel %vm4847_vm10, %v13730_v7, 0.0  ;;  %v6511_v14 = vadd.f32 %v13609_v52, %v6155_v24 }
 0xe91   :  { %v6577_v23 = vadd.f32 %v6576_v9, %v6575_v44  ;;  %v6072_v34 = vpop.f32.mrb[190].mxu1 }
 0xe92   :  { %v13737_v58 = vadd.f32 %v13661_v33, %v6511_v14  ;;  %v6156_v40 = vadd.f32 %v6072_v34, %v13582_v63  ;;  %v9814_v57 = vpop.f32.mrb[191].mxu1 }
 0xe94   :  { %v6578_v48 = vsel %vm4847_vm10, %v13737_v58, 0.0  ;;  %v6512_v47 = vadd.f32 %v13614_v39, %v6156_v40 }
 0xe95   :  { %v6579_v3 = vadd.f32 %v6578_v48, %v6577_v23  ;;  %v6077_v30 = vpop.f32.mrb[192].mxu1 }
 0xe96   :  { %v13744_v28 = vadd.f32 %v13661_v33, %v6512_v47  ;;  %v6157_v52 = vadd.f32 %v6077_v30, %v13587_v32  ;;  %v9817_v45 = vpop.f32.mrb[193].mxu1 }
 0xe98   :  { %v6580_v12 = vsel %vm4847_vm10, %v13744_v28, 0.0  ;;  %v6513_v4 = vadd.f32 %v13619_v36, %v6157_v52 }
 0xe99   :  { %v6581_v63 = vadd.f32 %v6580_v12, %v6579_v3  ;;  %v6082_v20 = vpop.f32.mrb[194].mxu1 }
 0xe9a   :  { %v13751_v44 = vadd.f32 %v13661_v33, %v6513_v4  ;;  %v6158_v39 = vadd.f32 %v6082_v20, %v13592_v26  ;;  %v9820_v53 = vpop.f32.mrb[195].mxu1 }
 0xe9c   :  { %v6582_v24 = vsel %vm4847_vm10, %v13751_v44, 0.0  ;;  %v6514_v0 = vadd.f32 %v13624_v42, %v6158_v39 }
 0xe9d   :  { %v6583_v32 = vadd.f32 %v6582_v24, %v6581_v63  ;;  %v6087_v9 = vpop.f32.mrb[196].mxu1 }
 0xe9e   :  { %v13758_v14 = vadd.f32 %v13661_v33, %v6514_v0  ;;  %v6159_v36 = vadd.f32 %v6087_v9, %v13597_v21  ;;  %v9823_v23 = vpop.f32.mrb[197].mxu1 }
 0xea0   :  { %v6584_v34 = vsel %vm4847_vm10, %v13758_v14, 0.0  ;;  %v6515_v40 = vadd.f32 %v13629_v6, %v6159_v36 }
 0xea1   :  { %v6585_v26 = vadd.f32 %v6584_v34, %v6583_v32  ;;  %v6092_v57 = vpop.f32.mrb[198].mxu1 }
 0xea2   :  { %v13765_v48 = vadd.f32 %v13661_v33, %v6515_v40  ;;  %v6160_v42 = vadd.f32 %v6092_v57, %v13602_v8  ;;  %v9826_v47 = vpop.f32.mrb[199].mxu1 }
 0xea4   :  { %v6586_v3 = vsel %vm4847_vm10, %v13765_v48, 0.0  ;;  %v6516_v30 = vadd.f32 %v13634_v35, %v6160_v42 }
 0xea5   :  { %v6587_v21 = vadd.f32 %v6586_v3, %v6585_v26  ;;  %v6097_v52 = vpop.f32.mrb[200].mxu1 }
 0xea6   :  { %v13772_v45 = vadd.f32 %v13661_v33, %v6516_v30  ;;  %v6161_v6 = vadd.f32 %v6097_v52, %v13607_v19  ;;  %v9829_v12 = vpop.f32.mrb[201].mxu1 }
 0xea8   :  { %v6588_v4 = vsel %vm4847_vm10, %v13772_v45, 0.0  ;;  %v6517_v63 = vadd.f32 %v13639_v49, %v6161_v6 }
 0xea9   :  { %v6589_v8 = vadd.f32 %v6588_v4, %v6587_v21  ;;  %v6102_v20 = vpop.f32.mrb[202].mxu1 }
 0xeaa   :  { %v13779_v39 = vadd.f32 %v13661_v33, %v6517_v63  ;;  %v6162_v35 = vadd.f32 %v6102_v20, %v13612_v54  ;;  %v9832_v53 = vpop.f32.mrb[203].mxu1 }
 0xeac   :  { %v6590_v24 = vsel %vm4847_vm10, %v13779_v39, 0.0  ;;  %v6518_v0 = vadd.f32 %v13644_v51, %v6162_v35 }
 0xead   :  { %v6591_v19 = vadd.f32 %v6590_v24, %v6589_v8  ;;  %v6107_v32 = vpop.f32.mrb[204].mxu1 }
 0xeae   :  { %v13786_v9 = vadd.f32 %v13661_v33, %v6518_v0  ;;  %v6163_v49 = vadd.f32 %v6107_v32, %v13617_v41  ;;  %v9835_v36 = vpop.f32.mrb[205].mxu1  ;;  %v6837_v0 = vld [vmem:[%s14459_s23] sm:$0xff] }
 0xeaf   :  { %v6840_v36 = vld [vmem:[%s14459_s23 + $0x18] sm:$0xff] }
 0xeb0   :  { %v6592_v23 = vsel %vm4847_vm10, %v13786_v9, 0.0  ;;  %v6519_v34 = vadd.f32 %v13649_v22, %v6163_v49  ;;  %v6839_v49 = vld [vmem:[%s14459_s23 + $0x10] sm:$0xff] }
 0xeb1   :  { %v6593_v54 = vadd.f32 %v6592_v23, %v6591_v19  ;;  %v6112_v40 = vpop.f32.mrb[206].mxu1  ;;  %v6838_v19 = vld [vmem:[%s14459_s23 + $0x8] sm:$0xff] }
 0xeb2   :  { %v13793_v26 = vadd.f32 %v13661_v33, %v6519_v34  ;;  %v6164_v51 = vadd.f32 %v6112_v40, %v13622_v13  ;;  %v9838_v57 = vpop.f32.mrb[207].mxu1  ;;  %v10727_v32 = vpack.c.bf16 %v6838_v19, %v6837_v0 }
 0xeb4   :  { %v6594_v42 = vsel %vm4847_vm10, %v13793_v26, 0.0  ;;  %v6520_v47 = vadd.f32 %v13654_v61, %v6164_v51  ;;  %10728 = vmatpush3.bf16.msra.mxu1 %v10727_v32 }
 0xeb5   :  { %v6595_v41 = vadd.f32 %v6594_v42, %v6593_v54  ;;  %v6117_v3 = vpop.f32.mrb[208].mxu1  ;;  %v10730_v54 = vpack.c.bf16 %v6840_v36, %v6839_v49  ;;  %10729 = vmatprep.subr.bf16.mxu1 %v11515_v1 }
 0xeb6   :  { %v13800_v30 = vadd.f32 %v13661_v33, %v6520_v47  ;;  %v6165_v22 = vadd.f32 %v6117_v3, %v13627_v17  ;;  %v9841_v21 = vpop.f32.mrb[209].mxu1 }
 0xeb8   :  { %v6596_v52 = vsel %vm4847_vm10, %v13800_v30, 0.0  ;;  %v6521_v13 = vadd.f32 %v13657_v38, %v6165_v22  ;;  %10731 = vmatpush3.bf16.msra.mxu1 %v10730_v54 }
 0xeb9   :  { %v6597_v6 = vadd.f32 %v6596_v52, %v6595_v41  ;;  %v6122_v12 = vpop.f32.mrb[210].mxu1 }
 0xeba   :  { %v13807_v61 = vadd.f32 %v13661_v33, %v6521_v13  ;;  %v6166_v4 = vadd.f32 %v6122_v12, %v13632_v29  ;;  %v9844_v63 = vpop.f32.mrb[211].mxu1 }
 0xebc   :  { %v6598_v17 = vsel %vm4847_vm10, %v13807_v61, 0.0  ;;  %v6522_v8 = vadd.f32 %v13664_v62, %v6166_v4 }
 0xebd   :  { %v6599_v20 = vadd.f32 %v6598_v17, %v6597_v6  ;;  %v6127_v35 = vpop.f32.mrb[212].mxu1 }
 0xebe   :  { %v13814_v53 = vadd.f32 %v13661_v33, %v6522_v8  ;;  %v6167_v38 = vadd.f32 %v6127_v35, %v13637_v25  ;;  %v9847_v24 = vpop.f32.mrb[213].mxu1 }
 0xec0   :  { %v6600_v29 = vsel %vm4847_vm10, %v13814_v53, 0.0  ;;  %v6523_v23 = vadd.f32 %v13674_v43, %v6167_v38 }
 0xec1   :  { %v6601_v34 = vadd.f32 %v6600_v29, %v6599_v20  ;;  %v6132_v62 = vpop.f32.mrb[214].mxu1 }
 0xec2   :  { %v6555_v40 = vadd.f32 %v13661_v33, %v6523_v23  ;;  %v6168_v51 = vadd.f32 %v6132_v62, %v13642_v16  ;;  %v9850_v25 = vpop.f32.mrb[215].mxu1 }
 0xec4   :  { %v6602_v57 = vsel %vm4847_vm10, %v6555_v40, 0.0  ;;  %v6524_v42 = vadd.f32 %v13685_v50, %v6168_v51 }
 0xec5   :  { %v6603_v47 = vadd.f32 %v6602_v57, %v6601_v34  ;;  %v6137_v41 = vpop.f32.mrb[216].mxu1 }
 0xec6   :  { %v6556_v43 = vadd.f32 %v13661_v33, %v6524_v42  ;;  %v6169_v3 = vadd.f32 %v6137_v41, %v13647_v10  ;;  %v9853_v22 = vpop.f32.mrb[217].mxu1 }
 0xec8   :  { %v6604_v21 = vsel %vm4847_vm10, %v6556_v43, 0.0  ;;  %v6525_v52 = vadd.f32 %v13694_v27, %v6169_v3 }
 0xec9   :  { %v6605_v16 = vadd.f32 %v6604_v21, %v6603_v47  ;;  %v6142_v13 = vpop.f32.mrb[218].mxu1 }
 0xeca   :  { %v6557_v1 = vadd.f32 %v13661_v33, %v6525_v52  ;;  %v6170_v6 = vadd.f32 %v6142_v13, %v13652_v60  ;;  %v9856_v12 = vpop.f32.mrb[219].mxu1 }
 0xecc   :  { %v6606_v50 = vsel %vm4847_vm10, %v6557_v1, 0.0  ;;  %v6526_v4 = vadd.f32 %v13703_v31, %v6170_v6 }
 0xecd   :  { %v6607_v63 = vadd.f32 %v6606_v50, %v6605_v16 }
 0xece   :  { %v6558_v17 = vadd.f32 %v13661_v33, %v6526_v4 }
 0xed0   :  { %v6608_v10 = vsel %vm4847_vm10, %v6558_v17, 0.0 }
 0xed1   :  { %v6609_v8 = vadd.f32 %v6608_v10, %v6607_v63 }
 0xed3   :  { %v6610_v20 = vrot.slane %v6609_v8, 4 }
 0xed5   :  { %v6611_v35 = vadd.f32 %v6610_v20, %v6609_v8 }
 0xed7   :  { %v6612_v27 = vrot.slane %v6611_v35, 2 }
 0xed9   :  { %v6613_v38 = vadd.f32 %v6612_v27, %v6611_v35 }
 0xedb   :  { %v6614_v24 = vrot.slane %v6613_v38, 1 }
 0xedd   :  { %v6615_v0 = vadd.f32 %v6614_v24, %v6613_v38 }
 0xedf   :  { %v6616_v19 = vmul.f32 0.005, %v6615_v0 }
 0xee1   :  { %v13840_v60 = vsub.f32 %v13667_v55, %v6616_v19  ;;  %v13843_v32 = vsub.f32 %v13671_v59, %v6616_v19  ;;  %v13846_v31 = vsub.f32 %v13682_v37, %v6616_v19  ;;  %v13849_v33 = vsub.f32 %v13691_v56, %v6616_v19 }
 0xee2   :  { %v13852_v49 = vsub.f32 %v13700_v18, %v6616_v19  ;;  %v13855_v36 = vsub.f32 %v13709_v5, %v6616_v19  ;;  %v13858_v29 = vsub.f32 %v13716_v11, %v6616_v19  ;;  %v13861_v55 = vsub.f32 %v13723_v15, %v6616_v19 }
 0xee3   :  { %v13864_v59 = vsub.f32 %v13730_v7, %v6616_v19  ;;  %v13867_v37 = vsub.f32 %v13737_v58, %v6616_v19  ;;  %v13870_v56 = vsub.f32 %v13744_v28, %v6616_v19  ;;  %v13873_v18 = vsub.f32 %v13751_v44, %v6616_v19 }
 0xee4   :  { %v13876_v5 = vsub.f32 %v13758_v14, %v6616_v19  ;;  %v13879_v11 = vsub.f32 %v13765_v48, %v6616_v19  ;;  %v13882_v15 = vsub.f32 %v13772_v45, %v6616_v19  ;;  %v13885_v7 = vsub.f32 %v13779_v39, %v6616_v19 }
 0xee5   :  { %v13888_v58 = vsub.f32 %v13786_v9, %v6616_v19  ;;  %v13891_v28 = vsub.f32 %v13793_v26, %v6616_v19  ;;  %v13894_v44 = vsub.f32 %v13800_v30, %v6616_v19  ;;  %v13897_v14 = vsub.f32 %v13807_v61, %v6616_v19 }
 0xee6   :  { %v13900_v48 = vsub.f32 %v13814_v53, %v6616_v19  ;;  %v13902_v45 = vsub.f32 %v6555_v40, %v6616_v19  ;;  %v13904_v23 = vsub.f32 %v6556_v43, %v6616_v19  ;;  %v13906_v39 = vsub.f32 %v6557_v1, %v6616_v19 }
 0xee7   :  { %v13908_v9 = vsub.f32 %v6558_v17, %v6616_v19  ;;  %v6642_v26 = vmul.f32 %v13840_v60, %v13840_v60  ;;  %v6643_v30 = vmul.f32 %v13843_v32, %v13843_v32  ;;  %v6644_v61 = vmul.f32 %v13846_v31, %v13846_v31 }
 0xee8   :  { %v6645_v53 = vmul.f32 %v13849_v33, %v13849_v33  ;;  %v6646_v40 = vmul.f32 %v13852_v49, %v13852_v49  ;;  %v6647_v57 = vmul.f32 %v13855_v36, %v13855_v36  ;;  %v6648_v41 = vmul.f32 %v13858_v29, %v13858_v29 }
 0xee9   :  { %v6667_v34 = vsel %vm4847_vm10, %v6642_v26, 0.0  ;;  %v6668_v62 = vsel %vm4847_vm10, %v6643_v30, 0.0  ;;  %v6670_v51 = vsel %vm4847_vm10, %v6644_v61, 0.0  ;;  %v6649_v22 = vmul.f32 %v13861_v55, %v13861_v55 }
 0xeea   :  { %v6669_v54 = vadd.f32 %v6668_v62, %v6667_v34  ;;  %v6672_v42 = vsel %vm4847_vm10, %v6645_v53, 0.0  ;;  %v6674_v43 = vsel %vm4847_vm10, %v6646_v40, 0.0  ;;  %v6676_v21 = vsel %vm4847_vm10, %v6647_v57, 0.0 }
 0xeeb   :  { %v6650_v16 = vmul.f32 %v13864_v59, %v13864_v59  ;;  %v6678_v13 = vsel %vm4847_vm10, %v6648_v41, 0.0  ;;  %v6651_v6 = vmul.f32 %v13867_v37, %v13867_v37  ;;  %v6680_v12 = vsel %vm4847_vm10, %v6649_v22, 0.0 }
 0xeec   :  { %v6671_v25 = vadd.f32 %v6670_v51, %v6669_v54  ;;  %v6652_v4 = vmul.f32 %v13870_v56, %v13870_v56  ;;  %v6653_v10 = vmul.f32 %v13873_v18, %v13873_v18  ;;  %v6654_v35 = vmul.f32 %v13876_v5, %v13876_v5 }
 0xeed   :  { %v6682_v63 = vsel %vm4847_vm10, %v6650_v16, 0.0  ;;  %v6684_v8 = vsel %vm4847_vm10, %v6651_v6, 0.0  ;;  %v6655_v24 = vmul.f32 %v13879_v11, %v13879_v11  ;;  %v6656_v26 = vmul.f32 %v13882_v15, %v13882_v15 }
 0xeee   :  { %v6673_v47 = vadd.f32 %v6672_v42, %v6671_v25  ;;  %v6686_v27 = vsel %vm4847_vm10, %v6652_v4, 0.0  ;;  %v6688_v0 = vsel %vm4847_vm10, %v6653_v10, 0.0  ;;  %v6690_v30 = vsel %vm4847_vm10, %v6654_v35, 0.0 }
 0xeef   :  { %v6657_v53 = vmul.f32 %v13885_v7, %v13885_v7  ;;  %v6692_v34 = vsel %vm4847_vm10, %v6655_v24, 0.0  ;;  %v6658_v54 = vmul.f32 %v13888_v58, %v13888_v58  ;;  %v6694_v40 = vsel %vm4847_vm10, %v6656_v26, 0.0 }
 0xef0   :  { %v6675_v3 = vadd.f32 %v6674_v43, %v6673_v47  ;;  %v6659_v25 = vmul.f32 %v13891_v28, %v13891_v28  ;;  %v6660_v47 = vmul.f32 %v13894_v44, %v13894_v44 }
 0xef1   :  { %v6696_v57 = vsel %vm4847_vm10, %v6657_v53, 0.0  ;;  %v6698_v41 = vsel %vm4847_vm10, %v6658_v54, 0.0  ;;  %v11522_v53 = vmov 3  }
 0xef2   :  { %v6677_v52 = vadd.f32 %v6676_v21, %v6675_v3  ;;  %v6661_v3 = vmul.f32 %v13897_v14, %v13897_v14  ;;  %v6700_v22 = vsel %vm4847_vm10, %v6659_v25, 0.0  ;;  %v6702_v16 = vsel %vm4847_vm10, %v6660_v47, 0.0  ;;  %11004 = vset.pattern.permute.xlu0 %v11522_v53 }
 0xef4   :  { %v6679_v1 = vadd.f32 %v6678_v13, %v6677_v52  ;;  %v6662_v52 = vmul.f32 %v13900_v48, %v13900_v48  ;;  %v6704_v6 = vsel %vm4847_vm10, %v6661_v3, 0.0 }
 0xef6   :  { %v6681_v50 = vadd.f32 %v6680_v12, %v6679_v1  ;;  %v6663_v1 = vmul.f32 %v13902_v45, %v13902_v45  ;;  %v6706_v4 = vsel %vm4847_vm10, %v6662_v52, 0.0 }
 0xef8   :  { %v6683_v17 = vadd.f32 %v6682_v63, %v6681_v50  ;;  %v6664_v50 = vmul.f32 %v13904_v23, %v13904_v23  ;;  %v6708_v10 = vsel %vm4847_vm10, %v6663_v1, 0.0 }
 0xefa   :  { %v6685_v20 = vadd.f32 %v6684_v8, %v6683_v17  ;;  %v6665_v17 = vmul.f32 %v13906_v39, %v13906_v39  ;;  %v6710_v35 = vsel %vm4847_vm10, %v6664_v50, 0.0 }
 0xefc   :  { %v6687_v38 = vadd.f32 %v6686_v27, %v6685_v20  ;;  %v6666_v20 = vmul.f32 %v13908_v9, %v13908_v9 }
 0xefe   :  { %v6689_v19 = vadd.f32 %v6688_v0, %v6687_v38  ;;  %v6712_v38 = vsel %vm4847_vm10, %v6665_v17, 0.0  ;;  %v6714_v0 = vsel %vm4847_vm10, %v6666_v20, 0.0 }
 0xf00   :  { %v6691_v61 = vadd.f32 %v6690_v30, %v6689_v19 }
 0xf02   :  { %v6693_v62 = vadd.f32 %v6692_v34, %v6691_v61  ;;  %v11523_v34 = vmov 0  }
 0xf03   :  { %11001 = vset.pattern.permute.xlu1 %v11523_v34 }
 0xf04   :  { %v6695_v51 = vadd.f32 %v6694_v40, %v6693_v62 }
 0xf06   :  { %v6697_v42 = vadd.f32 %v6696_v57, %v6695_v51 }
 0xf08   :  { %v6699_v43 = vadd.f32 %v6698_v41, %v6697_v42  ;;  %v13990_v42 = vld [vmem:[%s14460_s19] ss:$0 sm:$0xff] }
 0xf0a   :  { %v6701_v21 = vadd.f32 %v6700_v22, %v6699_v43  ;;  %v13997_v43 = vld [vmem:[%s14461_s26] ss:$0 sm:$0xff] }
 0xf0c   :  { %v6703_v13 = vadd.f32 %v6702_v16, %v6701_v21 }
 0xf0e   :  { %v6705_v12 = vadd.f32 %v6704_v6, %v6703_v13 }
 0xf10   :  { %v6707_v63 = vadd.f32 %v6706_v4, %v6705_v12 }
 0xf12   :  { %v6709_v8 = vadd.f32 %v6708_v10, %v6707_v63 }
 0xf14   :  { %v6711_v27 = vadd.f32 %v6710_v35, %v6709_v8 }
 0xf16   :  { %v6713_v24 = vadd.f32 %v6712_v38, %v6711_v27 }
 0xf18   :  { %v6715_v19 = vadd.f32 %v6714_v0, %v6713_v24 }
 0xf1a   :  { %v6716_v26 = vrot.slane %v6715_v19, 4 }
 0xf1c   :  { %v6717_v30 = vadd.f32 %v6716_v26, %v6715_v19 }
 0xf1e   :  { %v6718_v61 = vrot.slane %v6717_v30, 2 }
 0xf20   :  { %v6719_v62 = vadd.f32 %v6718_v61, %v6717_v30 }
 0xf22   :  { %v6720_v54 = vrot.slane %v6719_v62, 1 }
 0xf24   :  { %v6721_v40 = vadd.f32 %v6720_v54, %v6719_v62 }
 0xf26   :  { %v6722_v51 = vmul.f32 0.005, %v6721_v40 }
 0xf28   :  { %v6723_v25 = vadd.f32 1e-05, %v6722_v51 }
 0xf2a   :  { %11115 = vrsqrt.f32 %v6723_v25 }
 0xf34   :  { %v13987_v57 = vpop.eup %11115 }
 0xf35   :  { %v6749_v47 = vmul.f32 %v13987_v57, %v13908_v9  ;;  %v6725_v41 = vmul.f32 %v13987_v57, %v13840_v60  ;;  %v6726_v3 = vmul.f32 %v13987_v57, %v13843_v32  ;;  %v6727_v52 = vmul.f32 %v13987_v57, %v13846_v31 }
 0xf36   :  { %v6728_v32 = vmul.f32 %v13987_v57, %v13849_v33  ;;  %v6729_v31 = vmul.f32 %v13987_v57, %v13852_v49  ;;  %v6730_v33 = vmul.f32 %v13987_v57, %v13855_v36  ;;  %v6747_v49 = vmul.f32 %v13987_v57, %v13904_v23 }
 0xf37   :  { %v6780_v22 = vmul.f32 %v13990_v42, %v6749_v47  ;;  %v6756_v21 = vmul.f32 %v13990_v42, %v6725_v41  ;;  %v6757_v16 = vmul.f32 %v13990_v42, %v6726_v3  ;;  %v6758_v6 = vmul.f32 %v13990_v42, %v6727_v52 }
 0xf38   :  { %v6759_v4 = vmul.f32 %v13990_v42, %v6728_v32  ;;  %v6760_v63 = vmul.f32 %v13990_v42, %v6729_v31  ;;  %v6748_v8 = vmul.f32 %v13987_v57, %v13906_v39  ;;  %v6761_v35 = vmul.f32 %v13990_v42, %v6730_v33 }
 0xf39   :  { %v14007_v13 = vadd.f32 %v13997_v43, %v6780_v22  ;;  %v6787_v9 = vadd.f32 %v13997_v43, %v6756_v21  ;;  %v6788_v1 = vadd.f32 %v13997_v43, %v6757_v16  ;;  %v6789_v50 = vadd.f32 %v13997_v43, %v6758_v6 }
 0xf3a   :  { %v6790_v10 = vadd.f32 %v13997_v43, %v6759_v4  ;;  %v6791_v20 = vadd.f32 %v13997_v43, %v6760_v63  ;;  %v6731_v36 = vmul.f32 %v13987_v57, %v13858_v29  ;;  %v6741_v27 = vmul.f32 %v13987_v57, %v13888_v58 }
 0xf3b   :  { %v6812_v60 = vmax.f32 %v6787_v9, 0.0  ;;  %v6813_v12 = vmax.f32 %v6788_v1, 0.0  ;;  %v6814_v17 = vmax.f32 %v6789_v50, 0.0  ;;  %v6742_v23 = vmul.f32 %v13987_v57, %v13891_v28 }
 0xf3c   :  { %v6743_v39 = vmul.f32 %v13987_v57, %v13894_v44  ;;  %v6744_v38 = vmul.f32 %v13987_v57, %v13897_v14  ;;  %v6745_v24 = vmul.f32 %v13987_v57, %v13900_v48  ;;  %v6815_v0 = vmax.f32 %v6790_v10, 0.0 }
 0xf3d   :  { %9967 = vmatmul.mubr.msk.f32.vlgmr.msra.gmra.mrb[220].mxu1 %vm4847_vm10, %v6812_v60  ;;  %v6772_v29 = vmul.f32 %v13990_v42, %v6741_v27  ;;  %v6746_v58 = vmul.f32 %v13987_v57, %v13902_v45  ;;  %v6778_v19 = vmul.f32 %v13990_v42, %v6747_v49  ;;  %v6773_v26 = vmul.f32 %v13990_v42, %v6742_v23 }
 0xf3e   :  { %9969 = vmatprep.mubr.msk.f32.mxu1 %vm11516_vm0, %v11517_v2  ;;  %v6774_v28 = vmul.f32 %v13990_v42, %v6743_v39  ;;  %v6775_v44 = vmul.f32 %v13990_v42, %v6744_v38  ;;  %v6776_v30 = vmul.f32 %v13990_v42, %v6745_v24  ;;  %v6762_v14 = vmul.f32 %v13990_v42, %v6731_v36 }
 0xf3f   :  { %v14060_v48 = vadd.f32 %v13997_v43, %v6772_v29  ;;  %v6777_v61 = vmul.f32 %v13990_v42, %v6746_v58  ;;  %v14064_v45 = vadd.f32 %v13997_v43, %v6778_v19  ;;  %v14069_v62 = vadd.f32 %v13997_v43, %v6773_v26 }
 0xf40   :  { %v14072_v54 = vadd.f32 %v13997_v43, %v6774_v28  ;;  %v14075_v40 = vadd.f32 %v13997_v43, %v6775_v44  ;;  %v14078_v51 = vadd.f32 %v13997_v43, %v6776_v30  ;;  %v6816_v25 = vmax.f32 %v6791_v20, 0.0 }
 0xf41   :  { %9970 = vmatmul.mubr.msk.f32.gmra.mrb[222].mxu1 %vm4847_vm10, %v6813_v12  ;;  %v6792_v47 = vadd.f32 %v13997_v43, %v6761_v35  ;;  %v6732_v41 = vmul.f32 %v13987_v57, %v13861_v55  ;;  %v14084_v3 = vadd.f32 %v13997_v43, %v6777_v61  ;;  %v6779_v22 = vmul.f32 %v13990_v42, %v6748_v8 }
 0xf42   :  { %9972 = vmatprep.mubr.msk.f32.mxu1 %vm11516_vm0, %v11517_v2  ;;  %v6793_v21 = vadd.f32 %v13997_v43, %v6762_v14  ;;  %v6733_v9 = vmul.f32 %v13987_v57, %v13864_v59  ;;  %v6734_v32 = vmul.f32 %v13987_v57, %v13867_v37  ;;  %v6735_v50 = vmul.f32 %v13987_v57, %v13870_v56 }
 0xf43   :  { %v6817_v52 = vmax.f32 %v6792_v47, 0.0  ;;  %v6763_v16 = vmul.f32 %v13990_v42, %v6732_v41  ;;  %v14095_v55 = vadd.f32 %v13997_v43, %v6779_v22  ;;  %v6736_v33 = vmul.f32 %v13987_v57, %v13873_v18 }
 0xf44   :  { %v6818_v60 = vmax.f32 %v6793_v21, 0.0  ;;  %v6764_v6 = vmul.f32 %v13990_v42, %v6733_v9  ;;  %v6765_v12 = vmul.f32 %v13990_v42, %v6734_v32  ;;  %v6766_v63 = vmul.f32 %v13990_v42, %v6735_v50 }
 0xf45   :  { %9973 = vmatmul.mubr.msk.f32.gmra.mrb[224].mxu1 %vm4847_vm10, %v6814_v17  ;;  %v6794_v1 = vadd.f32 %v13997_v43, %v6763_v16  ;;  %v6767_v17 = vmul.f32 %v13990_v42, %v6736_v33  ;;  %v6737_v10 = vmul.f32 %v13987_v57, %v13876_v5  ;;  %v6738_v35 = vmul.f32 %v13987_v57, %v13879_v11 }
 0xf46   :  { %9975 = vmatprep.mubr.msk.f32.mxu1 %vm11516_vm0, %v11517_v2  ;;  %v6795_v31 = vadd.f32 %v13997_v43, %v6764_v6  ;;  %v6796_v37 = vadd.f32 %v13997_v43, %v6765_v12  ;;  %v6797_v56 = vadd.f32 %v13997_v43, %v6766_v63  ;;  %v6739_v23 = vmul.f32 %v13987_v57, %v13882_v15 }
 0xf47   :  { %v6819_v59 = vmax.f32 %v6794_v1, 0.0  ;;  %v6798_v18 = vadd.f32 %v13997_v43, %v6767_v17  ;;  %v6768_v20 = vmul.f32 %v13990_v42, %v6737_v10  ;;  %v6769_v27 = vmul.f32 %v13990_v42, %v6738_v35 }
 0xf48   :  { %v6820_v4 = vmax.f32 %v6795_v31, 0.0  ;;  %v6821_v49 = vmax.f32 %v6796_v37, 0.0  ;;  %v6822_v8 = vmax.f32 %v6797_v56, 0.0  ;;  %v6770_v38 = vmul.f32 %v13990_v42, %v6739_v23 }
 0xf49   :  { %9976 = vmatmul.mubr.msk.f32.gmra.mrb[226].mxu1 %vm4847_vm10, %v6815_v0  ;;  %v6823_v36 = vmax.f32 %v6798_v18, 0.0  ;;  %v6799_v5 = vadd.f32 %v13997_v43, %v6768_v20  ;;  %v6800_v11 = vadd.f32 %v13997_v43, %v6769_v27  ;;  %v6740_v24 = vmul.f32 %v13987_v57, %v13885_v7 }
 0xf4a   :  { %9978 = vmatprep.mubr.msk.f32.mxu1 %vm11516_vm0, %v11517_v2  ;;  %v6801_v15 = vadd.f32 %v13997_v43, %v6770_v38  ;;  %v6828_v57 = vmax.f32 %v14060_v48, 0.0  ;;  %v6831_v26 = vmax.f32 %v14075_v40, 0.0  ;;  %v6832_v28 = vmax.f32 %v14078_v51, 0.0 }
 0xf4b   :  { %v6824_v39 = vmax.f32 %v6799_v5, 0.0  ;;  %v6825_v0 = vmax.f32 %v6800_v11, 0.0  ;;  %v6771_v29 = vmul.f32 %v13990_v42, %v6740_v24  ;;  %v6829_v42 = vmax.f32 %v14069_v62, 0.0 }
 0xf4c   :  { %v6826_v58 = vmax.f32 %v6801_v15, 0.0  ;;  %v6833_v44 = vmax.f32 %v14084_v3, 0.0  ;;  %v6834_v30 = vmax.f32 %v14064_v45, 0.0  ;;  %v6835_v14 = vmax.f32 %v14095_v55, 0.0 }
 0xf4d   :  { %9979 = vmatmul.mubr.msk.f32.gmra.mrb[228].mxu1 %vm4847_vm10, %v6816_v25  ;;  %v6802_v19 = vadd.f32 %v13997_v43, %v6771_v29  ;;  %v6830_v43 = vmax.f32 %v14072_v54, 0.0  ;;  %v6836_v48 = vmax.f32 %v14007_v13, 0.0  ;;  %v11524_v54 = vmov 1  }
 0xf4e   :  { %9981 = vmatprep.mubr.msk.f32.mxu1 %vm11516_vm0, %v11517_v2 }
 0xf4f   :  { %v6827_v7 = vmax.f32 %v6802_v19, 0.0 }
 0xf51   :  { %9982 = vmatmul.mubr.msk.f32.gmra.mrb[230].mxu1 %vm4847_vm10, %v6817_v52 }
 0xf52   :  { %9984 = vmatprep.mubr.msk.f32.mxu1 %vm11516_vm0, %v11517_v2 }
 0xf55   :  { %9985 = vmatmul.mubr.msk.f32.gmra.mrb[232].mxu1 %vm4847_vm10, %v6818_v60 }
 0xf56   :  { %9987 = vmatprep.mubr.msk.f32.mxu1 %vm11516_vm0, %v11517_v2 }
 0xf59   :  { %9988 = vmatmul.mubr.msk.f32.gmra.mrb[234].mxu1 %vm4847_vm10, %v6819_v59 }
 0xf5a   :  { %9990 = vmatprep.mubr.msk.f32.mxu1 %vm11516_vm0, %v11517_v2 }
 0xf5d   :  { %9991 = vmatmul.mubr.msk.f32.gmra.mrb[236].mxu1 %vm4847_vm10, %v6820_v4 }
 0xf5e   :  { %9993 = vmatprep.mubr.msk.f32.mxu1 %vm11516_vm0, %v11517_v2 }
 0xf61   :  { %9994 = vmatmul.mubr.msk.f32.gmra.mrb[238].mxu1 %vm4847_vm10, %v6821_v49 }
 0xf62   :  { %9996 = vmatprep.mubr.msk.f32.mxu1 %vm11516_vm0, %v11517_v2 }
 0xf65   :  { %9997 = vmatmul.mubr.msk.f32.gmra.mrb[240].mxu1 %vm4847_vm10, %v6822_v8 }
 0xf66   :  { %9999 = vmatprep.mubr.msk.f32.mxu1 %vm11516_vm0, %v11517_v2 }
 0xf69   :  { %10000 = vmatmul.mubr.msk.f32.gmra.mrb[242].mxu1 %vm4847_vm10, %v6823_v36 }
 0xf6a   :  { %10002 = vmatprep.mubr.msk.f32.mxu1 %vm11516_vm0, %v11517_v2 }
 0xf6d   :  { %10003 = vmatmul.mubr.msk.f32.gmra.mrb[244].mxu1 %vm4847_vm10, %v6824_v39 }
 0xf6e   :  { %10005 = vmatprep.mubr.msk.f32.mxu1 %vm11516_vm0, %v11517_v2 }
 0xf71   :  { %10006 = vmatmul.mubr.msk.f32.gmra.mrb[246].mxu1 %vm4847_vm10, %v6825_v0 }
 0xf72   :  { %10008 = vmatprep.mubr.msk.f32.mxu1 %vm11516_vm0, %v11517_v2 }
 0xf75   :  { %10009 = vmatmul.mubr.msk.f32.gmra.mrb[248].mxu1 %vm4847_vm10, %v6826_v58 }
 0xf76   :  { %10011 = vmatprep.mubr.msk.f32.mxu1 %vm11516_vm0, %v11517_v2 }
 0xf79   :  { %10012 = vmatmul.mubr.msk.f32.gmra.mrb[250].mxu1 %vm4847_vm10, %v6827_v7 }
 0xf7a   :  { %10014 = vmatprep.mubr.msk.f32.mxu1 %vm11516_vm0, %v11517_v2 }
 0xf7d   :  { %10015 = vmatmul.mubr.msk.f32.gmra.mrb[252].mxu1 %vm4847_vm10, %v6828_v57 }
 0xf7e   :  { %10017 = vmatprep.mubr.msk.f32.mxu1 %vm11516_vm0, %v11517_v2 }
 0xf81   :  { %10018 = vmatmul.mubr.msk.f32.gmra.mrb[254].mxu1 %vm4847_vm10, %v6829_v42 }
 0xf82   :  { %10020 = vmatprep.mubr.msk.f32.mxu1 %vm11516_vm0, %v11517_v2 }
 0xf85   :  { %10021 = vmatmul.mubr.msk.f32.gmra.mrb[0].mxu1 %vm4847_vm10, %v6830_v43 }
 0xf86   :  { %10023 = vmatprep.mubr.msk.f32.mxu1 %vm11516_vm0, %v11517_v2 }
 0xf89   :  { %10024 = vmatmul.mubr.msk.f32.gmra.mrb[2].mxu1 %vm4847_vm10, %v6831_v26 }
 0xf8a   :  { %10026 = vmatprep.mubr.msk.f32.mxu1 %vm11516_vm0, %v11517_v2 }
 0xf8d   :  { %10027 = vmatmul.mubr.msk.f32.gmra.mrb[4].mxu1 %vm4847_vm10, %v6832_v28  ;;  %v7332_v28 = vld [vmem:[#allocation26 + $0x190] sm:$0xff] }
 0xf8e   :  { %10029 = vmatprep.mubr.msk.f32.mxu1 %vm11516_vm0, %v11517_v2 }
 0xf91   :  { %10030 = vmatmul.mubr.msk.f32.gmra.mrb[6].mxu1 %vm4847_vm10, %v6833_v44  ;;  %v7333_v44 = vld [vmem:[#allocation26 + $0x198] sm:$0xff] }
 0xf92   :  { %10032 = vmatprep.mubr.msk.f32.mxu1 %vm11516_vm0, %v11517_v2 }
 0xf95   :  { %10033 = vmatmul.mubr.msk.f32.gmra.mrb[8].mxu1 %vm4847_vm10, %v6834_v30  ;;  %v7106_v30 = vld [vmem:[#allocation26] sm:$0xff] }
 0xf96   :  { %10035 = vmatprep.mubr.msk.f32.mxu1 %vm11516_vm0, %v11517_v2 }
 0xf99   :  { %10036 = vmatmul.mubr.msk.f32.gmra.mrb[10].mxu1 %vm4847_vm10, %v6835_v14  ;;  %v7107_v14 = vld [vmem:[#allocation26 + $0x8] sm:$0xff] }
 0xf9a   :  { %10038 = vmatprep.mubr.msk.f32.mxu1 %vm11516_vm0, %v11517_v2  ;;  %v11525_v2 = vmov 2  }
 0xf9d   :  { %10039 = vmatmul.mubr.msk.f32.gmra.mrb[12].mxu1 %vm4847_vm10, %v6836_v48  ;;  %v7583_v48 = vld [vmem:[#allocation26 + $0x320] sm:$0xff] }
0x1010   :  { %v6982_v61 = vpop.f32.mrb[220].mxu1 }
0x1011   :  { %7885 = vperm.xlu0 %11004, %v6982_v61   ;;  %7158 = vperm.xlu1 %11001, %v6982_v61   ;;  %v9968_v45 = vpop.f32.mrb[221].mxu1 }
0x1014   :  { %v6987_v62 = vpop.f32.mrb[222].mxu1 }
0x1015   :  { %11005 = vset.pattern.permute.xlu0 %v11523_v34  ;;  %11002 = vset.pattern.permute.xlu1 %v11524_v54  ;;  %v9971_v40 = vpop.f32.mrb[223].mxu1 }
0x1016   :  { %7383 = vperm.xlu1 %11002, %v6982_v61   ;;  %7163 = vperm.xlu0 %11005, %v6987_v62   ;;  %v7334_v40 = vld [vmem:[#allocation26 + $0x1a0] sm:$0xff] }
0x1018   :  { %v6992_v51 = vpop.f32.mrb[224].mxu1 }
0x1019   :  { %v9974_v25 = vpop.f32.mrb[225].mxu1 }
0x101a   :  { %11003 = vset.pattern.permute.xlu1 %v11525_v2  ;;  %11006 = vset.pattern.permute.xlu0 %v11524_v54 }
0x101b   :  { %7634 = vperm.xlu1 %11003, %v6982_v61   ;;  %7387 = vperm.xlu0 %11006, %v6987_v62  }
0x101c   :  { %v6997_v13 = vpop.f32.mrb[226].mxu1 }
0x101d   :  { %v9977_v47 = vpop.f32.mrb[227].mxu1 }
0x101e   :  { %v7108_v47 = vld [vmem:[#allocation26 + $0x10] sm:$0xff] }
0x101f   :  { %7638 = vperm.xlu1 %11003, %v6987_v62   ;;  %7391 = vperm.xlu0 %11006, %v6992_v51  }
0x1020   :  { %v7002_v41 = vpop.f32.mrb[228].mxu1 }
0x1021   :  { %v9980_v3 = vpop.f32.mrb[229].mxu1 }
0x1022   :  { %v7109_v3 = vld [vmem:[#allocation26 + $0x18] sm:$0xff] }
0x1023   :  { %11007 = vset.pattern.permute.xlu1 %v11522_v53  ;;  %11010 = vset.pattern.permute.xlu0 %v11522_v53 }
0x1024   :  { %7889 = vperm.xlu1 %11007, %v6987_v62   ;;  %7893 = vperm.xlu0 %11010, %v6992_v51   ;;  %v14201_v22 = vpop.f32.mrb[230].mxu1  ;;  %v7584_v62 = vld [vmem:[#allocation26 + $0x328] sm:$0xff] }
0x1025   :  { %v9983_v21 = vpop.f32.mrb[231].mxu1 }
0x1026   :  { %v7585_v21 = vld [vmem:[#allocation26 + $0x330] sm:$0xff] }
0x1028   :  { %11008 = vset.pattern.permute.xlu1 %v11523_v34  ;;  %11013 = vset.pattern.permute.xlu0 %v11525_v2  ;;  %v14205_v52 = vpop.f32.mrb[232].mxu1 }
0x1029   :  { %7168 = vperm.xlu1 %11008, %v6992_v51   ;;  %7646 = vperm.xlu0 %11013, %v6997_v13   ;;  %v9986_v16 = vpop.f32.mrb[233].mxu1 }
0x102c   :  { %v14207_v9 = vpop.f32.mrb[234].mxu1 }
0x102d   :  { %11009 = vset.pattern.permute.xlu1 %v11525_v2  ;;  %11015 = vset.pattern.permute.xlu0 %v11523_v34  ;;  %v9989_v55 = vpop.f32.mrb[235].mxu1 }
0x102e   :  { %7642 = vperm.xlu1 %11009, %v6992_v51   ;;  %7178 = vperm.xlu0 %11015, %v7002_v41   ;;  %v7335_v51 = vld [vmem:[#allocation26 + $0x1a8] sm:$0xff] }
0x1030   :  { %v14211_v60 = vpop.f32.mrb[236].mxu1 }
0x1031   :  { %v9992_v1 = vpop.f32.mrb[237].mxu1 }
0x1032   :  { %11011 = vset.pattern.permute.xlu1 %v11523_v34  ;;  %11018 = vset.pattern.permute.xlu0 %v11522_v53 }
0x1033   :  { %7173 = vperm.xlu1 %11011, %v6997_v13   ;;  %7901 = vperm.xlu0 %11018, %v7002_v41  }
0x1034   :  { %v14215_v6 = vpop.f32.mrb[238].mxu1 }
0x1035   :  { %v9995_v32 = vpop.f32.mrb[239].mxu1 }
0x1037   :  { %11012 = vset.pattern.permute.xlu1 %v11524_v54  ;;  %11021 = vset.pattern.permute.xlu0 %v11525_v2 }
0x1038   :  { %7395 = vperm.xlu1 %11012, %v6997_v13   ;;  %7654 = vperm.xlu0 %11021, %v14201_v22   ;;  %v14220_v59 = vpop.f32.mrb[240].mxu1 }
0x1039   :  { %v9998_v31 = vpop.f32.mrb[241].mxu1 }
0x103a   :  { %v7835_v31 = vld [vmem:[#allocation26 + $0x4b8] sm:$0xff] }
0x103c   :  { %11014 = vset.pattern.permute.xlu1 %v11522_v53  ;;  %11023 = vset.pattern.permute.xlu0 %v11523_v34  ;;  %v14224_v12 = vpop.f32.mrb[242].mxu1 }
0x103d   :  { %7897 = vperm.xlu1 %11014, %v6997_v13   ;;  %7188 = vperm.xlu0 %11023, %v14205_v52   ;;  %v10001_v50 = vpop.f32.mrb[243].mxu1 }
0x1040   :  { %v14227_v4 = vpop.f32.mrb[244].mxu1 }
0x1041   :  { %11016 = vset.pattern.permute.xlu1 %v11524_v54  ;;  %11026 = vset.pattern.permute.xlu0 %v11522_v53  ;;  %v10004_v37 = vpop.f32.mrb[245].mxu1 }
0x1042   :  { %7399 = vperm.xlu1 %11016, %v7002_v41   ;;  %7909 = vperm.xlu0 %11026, %v14205_v52  }
0x1044   :  { %v14232_v63 = vpop.f32.mrb[246].mxu1 }
0x1045   :  { %v10007_v33 = vpop.f32.mrb[247].mxu1 }
0x1046   :  { %11017 = vset.pattern.permute.xlu1 %v11525_v2  ;;  %11029 = vset.pattern.permute.xlu0 %v11525_v2 }
0x1047   :  { %7650 = vperm.xlu1 %11017, %v7002_v41   ;;  %7662 = vperm.xlu0 %11029, %v14207_v9  }
0x1048   :  { %v14237_v49 = vpop.f32.mrb[248].mxu1 }
0x1049   :  { %v10010_v56 = vpop.f32.mrb[249].mxu1 }
0x104b   :  { %11019 = vset.pattern.permute.xlu1 %v11523_v34  ;;  %11031 = vset.pattern.permute.xlu0 %v11523_v34 }
0x104c   :  { %7183 = vperm.xlu1 %11019, %v14201_v22   ;;  %7198 = vperm.xlu0 %11031, %v14211_v60   ;;  %v14243_v17 = vpop.f32.mrb[250].mxu1 }
0x104d   :  { %v10013_v10 = vpop.f32.mrb[251].mxu1 }
0x1050   :  { %11020 = vset.pattern.permute.xlu1 %v11524_v54  ;;  %11034 = vset.pattern.permute.xlu0 %v11522_v53  ;;  %v14247_v8 = vpop.f32.mrb[252].mxu1 }
0x1051   :  { %7403 = vperm.xlu1 %11020, %v14201_v22   ;;  %7917 = vperm.xlu0 %11034, %v14211_v60   ;;  %v10016_v18 = vpop.f32.mrb[253].mxu1 }
0x1052   :  { %v7836_v18 = vld [vmem:[#allocation26 + $0x4c0] sm:$0xff] }
0x1054   :  { %v14251_v20 = vpop.f32.mrb[254].mxu1 }
0x1055   :  { %11022 = vset.pattern.permute.xlu1 %v11522_v53  ;;  %11037 = vset.pattern.permute.xlu0 %v11525_v2  ;;  %v10019_v35 = vpop.f32.mrb[255].mxu1 }
0x1056   :  { %7905 = vperm.xlu1 %11022, %v14201_v22   ;;  %7670 = vperm.xlu0 %11037, %v14215_v6   ;;  %v7837_v35 = vld [vmem:[#allocation26 + $0x4c8] sm:$0xff] }
0x1058   :  { %v14257_v36 = vpop.f32.mrb[0].mxu1 }
0x1059   :  { %v10022_v5 = vpop.f32.mrb[1].mxu1 }
0x105a   :  { %11024 = vset.pattern.permute.xlu1 %v11524_v54  ;;  %11039 = vset.pattern.permute.xlu0 %v11523_v34 }
0x105b   :  { %7407 = vperm.xlu1 %11024, %v14205_v52   ;;  %7208 = vperm.xlu0 %11039, %v14220_v59  }
0x105c   :  { %v14263_v27 = vpop.f32.mrb[2].mxu1 }
0x105d   :  { %v10025_v23 = vpop.f32.mrb[3].mxu1 }
0x105f   :  { %11025 = vset.pattern.permute.xlu1 %v11525_v2  ;;  %11042 = vset.pattern.permute.xlu0 %v11522_v53 }
0x1060   :  { %7658 = vperm.xlu1 %11025, %v14205_v52   ;;  %7925 = vperm.xlu0 %11042, %v14220_v59   ;;  %v14269_v39 = vpop.f32.mrb[4].mxu1  ;;  %v7586_v52 = vld [vmem:[#allocation26 + $0x338] sm:$0xff] }
0x1061   :  { %v10028_v11 = vpop.f32.mrb[5].mxu1 }
0x1064   :  { %11027 = vset.pattern.permute.xlu1 %v11523_v34  ;;  %11045 = vset.pattern.permute.xlu0 %v11525_v2  ;;  %v14273_v38 = vpop.f32.mrb[6].mxu1 }
0x1065   :  { %7193 = vperm.xlu1 %11027, %v14207_v9   ;;  %7678 = vperm.xlu0 %11045, %v14224_v12   ;;  %v10031_v24 = vpop.f32.mrb[7].mxu1 }
0x1068   :  { %v14277_v0 = vpop.f32.mrb[8].mxu1 }
0x1069   :  { %11028 = vset.pattern.permute.xlu1 %v11524_v54  ;;  %11047 = vset.pattern.permute.xlu0 %v11523_v34  ;;  %v10034_v15 = vpop.f32.mrb[9].mxu1 }
0x106a   :  { %7411 = vperm.xlu1 %11028, %v14207_v9   ;;  %7218 = vperm.xlu0 %11047, %v14227_v4  }
0x106c   :  { %v14283_v29 = vpop.f32.mrb[10].mxu1 }
0x106d   :  { %v10037_v58 = vpop.f32.mrb[11].mxu1 }
0x106e   :  { %11030 = vset.pattern.permute.xlu1 %v11522_v53  ;;  %11053 = vset.pattern.permute.xlu0 %v11525_v2 }
0x106f   :  { %7913 = vperm.xlu1 %11030, %v14207_v9   ;;  %7686 = vperm.xlu0 %11053, %v14232_v63  }
0x1070   :  { %v14289_v19 = vpop.f32.mrb[12].mxu1 }
0x1071   :  { %v10040_v7 = vpop.f32.mrb[13].mxu1 }
0x1073   :  { %11032 = vset.pattern.permute.xlu1 %v11524_v54  ;;  %11055 = vset.pattern.permute.xlu0 %v11523_v34 }
0x1074   :  { %7415 = vperm.xlu1 %11032, %v14211_v60   ;;  %7228 = vperm.xlu0 %11055, %v14237_v49  }
0x1078   :  { %11033 = vset.pattern.permute.xlu1 %v11525_v2  ;;  %11057 = vset.pattern.permute.xlu0 %v11525_v2 }
0x1079   :  { %7666 = vperm.xlu1 %11033, %v14211_v60   ;;  %7690 = vperm.xlu0 %11057, %v14237_v49  }
0x107d   :  { %11035 = vset.pattern.permute.xlu1 %v11523_v34  ;;  %11058 = vset.pattern.permute.xlu0 %v11522_v53 }
0x107e   :  { %7203 = vperm.xlu1 %11035, %v14215_v6   ;;  %7941 = vperm.xlu0 %11058, %v14237_v49  }
0x1082   :  { %11036 = vset.pattern.permute.xlu1 %v11524_v54  ;;  %11060 = vset.pattern.permute.xlu0 %v11524_v54 }
0x1083   :  { %7419 = vperm.xlu1 %11036, %v14215_v6   ;;  %7443 = vperm.xlu0 %11060, %v14243_v17  }
0x1087   :  { %11038 = vset.pattern.permute.xlu1 %v11522_v53  ;;  %11067 = vset.pattern.permute.xlu0 %v11523_v34 }
0x1088   :  { %7921 = vperm.xlu1 %11038, %v14215_v6   ;;  %7243 = vperm.xlu0 %11067, %v14251_v20  }
0x108c   :  { %11040 = vset.pattern.permute.xlu1 %v11524_v54  ;;  %11069 = vset.pattern.permute.xlu0 %v11525_v2 }
0x108d   :  { %7423 = vperm.xlu1 %11040, %v14220_v59   ;;  %7702 = vperm.xlu0 %11069, %v14251_v20  }
0x1090   :  { %v7886_v57 = vpop.permute.xlu0 %7885  ;;  %v7159_v42 = vpop.permute.xlu1 %7158 }
0x1091   :  { %11041 = vset.pattern.permute.xlu1 %v11525_v2  ;;  %11070 = vset.pattern.permute.xlu0 %v11522_v53  ;;  %v7281_v41 = vmul.f32 %v7159_v42, %v7106_v30  ;;  %v7282_v16 = vmul.f32 %v7159_v42, %v7107_v14  ;;  %v7985_v15 = vmul.f32 %v7886_v57, %v7835_v31 }
0x1092   :  { %7674 = vperm.xlu1 %11041, %v14220_v59   ;;  %7953 = vperm.xlu0 %11070, %v14251_v20   ;;  %v7834_v59 = vld [vmem:[#allocation26 + $0x4b0] sm:$0xff] }
0x1093   :  { %v7984_v24 = vmul.f32 %v7886_v57, %v7834_v59 }
0x1095   :  { %v7384_v43 = vpop.permute.xlu1 %7383  ;;  %v7164_v26 = vpop.permute.xlu0 %7163 }
0x1096   :  { %11043 = vset.pattern.permute.xlu1 %v11523_v34  ;;  %11072 = vset.pattern.permute.xlu0 %v11524_v54  ;;  %v7482_v45 = vmul.f32 %v7384_v43, %v7332_v28  ;;  %v7483_v13 = vmul.f32 %v7384_v43, %v7333_v44  ;;  %v7283_v32 = vmul.f32 %v7164_v26, %v7108_v47 }
0x1097   :  { %7213 = vperm.xlu1 %11043, %v14224_v12   ;;  %7455 = vperm.xlu0 %11072, %v14257_v36   ;;  %v7284_v37 = vmul.f32 %v7164_v26, %v7109_v3  ;;  %v7337_v3 = vld [vmem:[#allocation26 + $0x1b8] sm:$0xff] }
0x1098   :  { %v7532_v6 = vadd.f32 %v7482_v45, %v7281_v41  ;;  %v7533_v50 = vadd.f32 %v7483_v13, %v7282_v16  ;;  %v7587_v41 = vld [vmem:[#allocation26 + $0x340] sm:$0xff] }
0x109a   :  { %v7635_v61 = vpop.permute.xlu1 %7634  ;;  %v7388_v25 = vpop.permute.xlu0 %7387 }
0x109b   :  { %11044 = vset.pattern.permute.xlu1 %v11524_v54  ;;  %11079 = vset.pattern.permute.xlu0 %v11523_v34  ;;  %v7733_v22 = vmul.f32 %v7635_v61, %v7583_v48  ;;  %v7734_v9 = vmul.f32 %v7635_v61, %v7584_v62  ;;  %v7484_v55 = vmul.f32 %v7388_v25, %v7334_v40  ;;  %v7110_v40 = vld [vmem:[#allocation26 + $0x20] sm:$0xff] }
0x109c   :  { %7427 = vperm.xlu1 %11044, %v14224_v12   ;;  %7258 = vperm.xlu0 %11079, %v14269_v39   ;;  %v7485_v60 = vmul.f32 %v7388_v25, %v7335_v51  ;;  %v7336_v51 = vld [vmem:[#allocation26 + $0x1b0] sm:$0xff]  ;;  %v7111_v25 = vld [vmem:[#allocation26 + $0x28] sm:$0xff] }
0x109d   :  { %v7783_v10 = vadd.f32 %v7733_v22, %v7532_v6  ;;  %v7784_v5 = vadd.f32 %v7734_v9, %v7533_v50  ;;  %v7534_v23 = vadd.f32 %v7484_v55, %v7283_v32  ;;  %v7588_v22 = vld [vmem:[#allocation26 + $0x348] sm:$0xff]  ;;  %v7113_v9 = vld [vmem:[#allocation26 + $0x38] sm:$0xff]  ;;  %v7338_v55 = vld [vmem:[#allocation26 + $0x1c0] sm:$0xff] }
0x109e   :  { %v7639_v1 = vpop.permute.xlu1 %7638  ;;  %v7535_v11 = vadd.f32 %v7485_v60, %v7284_v37  ;;  %v7392_v61 = vpop.permute.xlu0 %7391  ;;  %v7339_v60 = vld [vmem:[#allocation26 + $0x1c8] sm:$0xff] }
0x109f   :  { %v7735_v33 = vmul.f32 %v7639_v1, %v7585_v21  ;;  %v7736_v56 = vmul.f32 %v7639_v1, %v7586_v52  ;;  %v8034_v28 = vadd.f32 %v7984_v24, %v7783_v10  ;;  %v7112_v21 = vld [vmem:[#allocation26 + $0x30] sm:$0xff]  ;;  %v7486_v52 = vmul.f32 %v7392_v61, %v7336_v51  ;;  %v7590_v1 = vld [vmem:[#allocation26 + $0x358] sm:$0xff] }
0x10a0   :  { %11046 = vset.pattern.permute.xlu1 %v11522_v53  ;;  %11081 = vset.pattern.permute.xlu0 %v11525_v2  ;;  %v7487_v59 = vmul.f32 %v7392_v61, %v7337_v3  ;;  %v7839_v24 = vld [vmem:[#allocation26 + $0x4d8] sm:$0xff] }
0x10a1   :  { %7929 = vperm.xlu1 %11046, %v14224_v12   ;;  %7714 = vperm.xlu0 %11081, %v14269_v39   ;;  %v7785_v7 = vadd.f32 %v7735_v33, %v7534_v23  ;;  %v7786_v42 = vadd.f32 %v7736_v56, %v7535_v11  ;;  %v8035_v12 = vadd.f32 %v7985_v15, %v7784_v5 }
0x10a3   :  { %v7890_v58 = vpop.permute.xlu1 %7889  ;;  %v7894_v62 = vpop.permute.xlu0 %7893 }
0x10a4   :  { %v7986_v43 = vmul.f32 %v7890_v58, %v7836_v18  ;;  %v7987_v26 = vmul.f32 %v7890_v58, %v7837_v35  ;;  %v7838_v35 = vld [vmem:[#allocation26 + $0x4d0] sm:$0xff] }
0x10a5   :  { %11048 = vset.pattern.permute.xlu1 %v11524_v54  ;;  %11082 = vset.pattern.permute.xlu0 %v11522_v53 }
0x10a6   :  { %v8036_v44 = vadd.f32 %v7986_v43, %v7785_v7  ;;  %v8037_v30 = vadd.f32 %v7987_v26, %v7786_v42  ;;  %7431 = vperm.xlu1 %11048, %v14227_v4   ;;  %7965 = vperm.xlu0 %11082, %v14269_v39   ;;  %v7840_v42 = vld [vmem:[#allocation26 + $0x4e0] sm:$0xff]  ;;  %v7841_v43 = vld [vmem:[#allocation26 + $0x4e8] sm:$0xff] }
0x10a8   :  { %v7169_v14 = vpop.permute.xlu1 %7168  ;;  %v10732_v48 = vpack.c.bf16 %v8037_v30, %v8035_v12  ;;  %v10734_v57 = vpack.c.bf16 %v8036_v44, %v8034_v28  ;;  %v7647_v6 = vpop.permute.xlu0 %7646  ;;  %v7988_v28 = vmul.f32 %v7894_v62, %v7838_v35 }
0x10a9   :  { %v7285_v47 = vmul.f32 %v7169_v14, %v7110_v40  ;;  %v7286_v16 = vmul.f32 %v7169_v14, %v7111_v25  ;;  %v7740_v11 = vmul.f32 %v7647_v6, %v7590_v1  ;;  %v7989_v14 = vmul.f32 %v7894_v62, %v7839_v24  ;;  %v7842_v24 = vld [vmem:[#allocation26 + $0x4f0] sm:$0xff] }
0x10aa   :  { %10733 = vmatprep.subr.bf16.mxu0 %v10732_v48  ;;  %11049 = vset.pattern.permute.xlu1 %v11525_v2 }
0x10ab   :  { %11084 = vset.pattern.permute.xlu0 %v11524_v54  ;;  %10735 = vmatpush1.bf16.msra.mxu0 %v10734_v57  ;;  %v7536_v31 = vadd.f32 %v7486_v52, %v7285_v47  ;;  %v7537_v5 = vadd.f32 %v7487_v59, %v7286_v16  ;;  %v7114_v52 = vld [vmem:[#allocation26 + $0x40] sm:$0xff]  ;;  %v7115_v16 = vld [vmem:[#allocation26 + $0x48] sm:$0xff] }
0x10ac   :  { %7682 = vperm.xlu1 %11049, %v14227_v4   ;;  %7467 = vperm.xlu0 %11084, %v14273_v38  }
0x10ad   :  { %v7643_v45 = vpop.permute.xlu1 %7642 }
0x10ae   :  { %v7737_v32 = vmul.f32 %v7643_v45, %v7587_v41  ;;  %v7738_v50 = vmul.f32 %v7643_v45, %v7588_v22  ;;  %v7179_v41 = vpop.permute.xlu0 %7178  ;;  %v7341_v22 = vld [vmem:[#allocation26 + $0x1d8] sm:$0xff] }
0x10af   :  { %v7289_v59 = vmul.f32 %v7179_v41, %v7114_v52 }
0x10b0   :  { %11050 = vset.pattern.permute.xlu1 %v11522_v53  ;;  %11091 = vset.pattern.permute.xlu0 %v11523_v34  ;;  %v7787_v15 = vadd.f32 %v7737_v32, %v7536_v31  ;;  %v7788_v26 = vadd.f32 %v7738_v50, %v7537_v5  ;;  %v7343_v32 = vld [vmem:[#allocation26 + $0x1e8] sm:$0xff]  ;;  %v7290_v31 = vmul.f32 %v7179_v41, %v7115_v16  ;;  %v7593_v50 = vld [vmem:[#allocation26 + $0x370] sm:$0xff] }
0x10b1   :  { %7933 = vperm.xlu1 %11050, %v14227_v4   ;;  %7273 = vperm.xlu0 %11091, %v14283_v29   ;;  %v7589_v4 = vld [vmem:[#allocation26 + $0x350] sm:$0xff] }
0x10b2   :  { %v7174_v13 = vpop.permute.xlu1 %7173  ;;  %v7739_v23 = vmul.f32 %v7647_v6, %v7589_v4  ;;  %v8038_v61 = vadd.f32 %v7988_v28, %v7787_v15  ;;  %v8039_v51 = vadd.f32 %v7989_v14, %v7788_v26  ;;  %v7902_v3 = vpop.permute.xlu0 %7901  ;;  %v7117_v6 = vld [vmem:[#allocation26 + $0x58] sm:$0xff]  ;;  %v7344_v16 = vld [vmem:[#allocation26 + $0x1f0] sm:$0xff] }
0x10b3   :  { %v7287_v33 = vmul.f32 %v7174_v13, %v7112_v21  ;;  %v7288_v56 = vmul.f32 %v7174_v13, %v7113_v9  ;;  %v7591_v9 = vld [vmem:[#allocation26 + $0x360] sm:$0xff] }
0x10b5   :  { %11051 = vset.pattern.permute.xlu1 %v11523_v34  ;;  %11093 = vset.pattern.permute.xlu0 %v11525_v2 }
0x10b6   :  { %7223 = vperm.xlu1 %11051, %v14232_v63   ;;  %7726 = vperm.xlu0 %11093, %v14283_v29  }
0x10b7   :  { %v7396_v37 = vpop.permute.xlu1 %7395 }
0x10b8   :  { %v7488_v10 = vmul.f32 %v7396_v37, %v7338_v55  ;;  %v7489_v18 = vmul.f32 %v7396_v37, %v7339_v60  ;;  %v7592_v55 = vld [vmem:[#allocation26 + $0x368] sm:$0xff]  ;;  %v7116_v60 = vld [vmem:[#allocation26 + $0x50] sm:$0xff]  ;;  %v7594_v37 = vld [vmem:[#allocation26 + $0x378] sm:$0xff] }
0x10ba   :  { %v7538_v58 = vadd.f32 %v7488_v10, %v7287_v33  ;;  %v7539_v7 = vadd.f32 %v7489_v18, %v7288_v56  ;;  %11052 = vset.pattern.permute.xlu1 %v11524_v54  ;;  %11095 = vset.pattern.permute.xlu0 %v11523_v34  ;;  %v7655_v33 = vpop.permute.xlu0 %7654 }
0x10bb   :  { %7435 = vperm.xlu1 %11052, %v14232_v63   ;;  %7278 = vperm.xlu0 %11095, %v14289_v19  }
0x10bc   :  { %v7789_v44 = vadd.f32 %v7739_v23, %v7538_v58  ;;  %v7790_v30 = vadd.f32 %v7740_v11, %v7539_v7  ;;  %v7898_v12 = vpop.permute.xlu1 %7897  ;;  %v7843_v7 = vld [vmem:[#allocation26 + $0x4f8] sm:$0xff] }
0x10bd   :  { %v7990_v48 = vmul.f32 %v7898_v12, %v7840_v42  ;;  %v7991_v57 = vmul.f32 %v7898_v12, %v7841_v43  ;;  %v7743_v42 = vmul.f32 %v7655_v33, %v7593_v50  ;;  %v7744_v43 = vmul.f32 %v7655_v33, %v7594_v37  ;;  %v7346_v50 = vld [vmem:[#allocation26 + $0x200] sm:$0xff]  ;;  %v7347_v37 = vld [vmem:[#allocation26 + $0x208] sm:$0xff] }
0x10bf   :  { %v8040_v45 = vadd.f32 %v7990_v48, %v7789_v44  ;;  %v8041_v40 = vadd.f32 %v7991_v57, %v7790_v30  ;;  %11054 = vset.pattern.permute.xlu1 %v11522_v53  ;;  %11098 = vset.pattern.permute.xlu0 %v11522_v53  ;;  %v7844_v44 = vld [vmem:[#allocation26 + $0x500] sm:$0xff]  ;;  %v7845_v30 = vld [vmem:[#allocation26 + $0x508] sm:$0xff] }
0x10c0   :  { %7937 = vperm.xlu1 %11054, %v14232_v63   ;;  %7981 = vperm.xlu0 %11098, %v14289_v19   ;;  %v7340_v63 = vld [vmem:[#allocation26 + $0x1d0] sm:$0xff] }
0x10c1   :  { %v7400_v25 = vpop.permute.xlu1 %7399  ;;  %v10736_v13 = vpack.c.bf16 %v8041_v40, %v8039_v51  ;;  %v10738_v47 = vpack.c.bf16 %v8040_v45, %v8038_v61  ;;  %v7992_v45 = vmul.f32 %v7902_v3, %v7842_v24  ;;  %v7993_v40 = vmul.f32 %v7902_v3, %v7843_v7 }
0x10c2   :  { %v7490_v4 = vmul.f32 %v7400_v25, %v7340_v63  ;;  %v7491_v1 = vmul.f32 %v7400_v25, %v7341_v22 }
0x10c3   :  { %10737 = vmatprep.subr.bf16.mxu0 %v10736_v13 }
0x10c4   :  { %11056 = vset.pattern.permute.xlu1 %v11524_v54  ;;  %10739 = vmatpush1.bf16.msra.mxu0 %v10738_v47  ;;  %v7540_v15 = vadd.f32 %v7490_v4, %v7289_v59  ;;  %v7541_v58 = vadd.f32 %v7491_v1, %v7290_v31  ;;  %v7119_v4 = vld [vmem:[#allocation26 + $0x68] sm:$0xff]  ;;  %v7595_v1 = vld [vmem:[#allocation26 + $0x380] sm:$0xff]  ;;  %v7121_v31 = vld [vmem:[#allocation26 + $0x78] sm:$0xff] }
0x10c5   :  { %7439 = vperm.xlu1 %11056, %v14237_v49   ;;  %11100 = vset.pattern.permute.xlu0 %v11523_v34  ;;  %v7342_v49 = vld [vmem:[#allocation26 + $0x1e0] sm:$0xff] }
0x10c6   :  { %v7651_v62 = vpop.permute.xlu1 %7650 }
0x10c7   :  { %v7741_v56 = vmul.f32 %v7651_v62, %v7591_v9  ;;  %v7742_v10 = vmul.f32 %v7651_v62, %v7592_v55  ;;  %v7345_v9 = vld [vmem:[#allocation26 + $0x1f8] sm:$0xff] }
0x10c9   :  { %11059 = vset.pattern.permute.xlu1 %v11523_v34  ;;  %v7791_v12 = vadd.f32 %v7741_v56, %v7540_v15  ;;  %v7792_v14 = vadd.f32 %v7742_v10, %v7541_v58  ;;  %v7597_v10 = vld [vmem:[#allocation26 + $0x390] sm:$0xff] }
0x10ca   :  { %7233 = vperm.xlu1 %11059, %v14243_v17  }
0x10cb   :  { %v7184_v21 = vpop.permute.xlu1 %7183  ;;  %v8042_v13 = vadd.f32 %v7992_v45, %v7791_v12  ;;  %v8043_v62 = vadd.f32 %v7993_v40, %v7792_v14  ;;  %v7848_v14 = vld [vmem:[#allocation26 + $0x520] sm:$0xff] }
0x10cc   :  { %v7291_v35 = vmul.f32 %v7184_v21, %v7116_v60  ;;  %v7292_v5 = vmul.f32 %v7184_v21, %v7117_v6  ;;  %v7118_v60 = vld [vmem:[#allocation26 + $0x60] sm:$0xff]  ;;  %v7596_v6 = vld [vmem:[#allocation26 + $0x388] sm:$0xff] }
0x10ce   :  { %11061 = vset.pattern.permute.xlu1 %v11525_v2 }
0x10cf   :  { %7694 = vperm.xlu1 %11061, %v14243_v17  }
0x10d0   :  { %v7404_v18 = vpop.permute.xlu1 %7403 }
0x10d1   :  { %v7492_v23 = vmul.f32 %v7404_v18, %v7342_v49  ;;  %v7493_v11 = vmul.f32 %v7404_v18, %v7343_v32  ;;  %v7120_v49 = vld [vmem:[#allocation26 + $0x70] sm:$0xff]  ;;  %v7598_v18 = vld [vmem:[#allocation26 + $0x398] sm:$0xff] }
0x10d3   :  { %v7542_v26 = vadd.f32 %v7492_v23, %v7291_v35  ;;  %v7543_v28 = vadd.f32 %v7493_v11, %v7292_v5  ;;  %11062 = vset.pattern.permute.xlu1 %v11522_v53 }
0x10d4   :  { %7945 = vperm.xlu1 %11062, %v14243_v17   ;;  %v7189_v17 = vpop.permute.xlu0 %7188 }
0x10d5   :  { %v7793_v48 = vadd.f32 %v7743_v42, %v7542_v26  ;;  %v7794_v57 = vadd.f32 %v7744_v43, %v7543_v28  ;;  %v7906_v61 = vpop.permute.xlu1 %7905  ;;  %v7293_v33 = vmul.f32 %v7189_v17, %v7118_v60  ;;  %v7294_v56 = vmul.f32 %v7189_v17, %v7119_v4  ;;  %v7846_v42 = vld [vmem:[#allocation26 + $0x510] sm:$0xff]  ;;  %v7847_v28 = vld [vmem:[#allocation26 + $0x518] sm:$0xff] }
0x10d6   :  { %v7994_v51 = vmul.f32 %v7906_v61, %v7844_v44  ;;  %v7995_v25 = vmul.f32 %v7906_v61, %v7845_v30  ;;  %v7349_v60 = vld [vmem:[#allocation26 + $0x218] sm:$0xff] }
0x10d8   :  { %v8044_v47 = vadd.f32 %v7994_v51, %v7793_v48  ;;  %v8045_v41 = vadd.f32 %v7995_v25, %v7794_v57  ;;  %11063 = vset.pattern.permute.xlu1 %v11523_v34  ;;  %v7910_v52 = vpop.permute.xlu0 %7909  ;;  %v7849_v48 = vld [vmem:[#allocation26 + $0x528] sm:$0xff] }
0x10d9   :  { %7238 = vperm.xlu1 %11063, %v14247_v8   ;;  %v7996_v25 = vmul.f32 %v7910_v52, %v7846_v42 }
0x10da   :  { %v7408_v63 = vpop.permute.xlu1 %7407  ;;  %v10740_v22 = vpack.c.bf16 %v8045_v41, %v8043_v62  ;;  %v10742_v21 = vpack.c.bf16 %v8044_v47, %v8042_v13  ;;  %v7997_v13 = vmul.f32 %v7910_v52, %v7847_v28 }
0x10db   :  { %v7494_v32 = vmul.f32 %v7408_v63, %v7344_v16  ;;  %v7495_v59 = vmul.f32 %v7408_v63, %v7345_v9 }
0x10dc   :  { %10741 = vmatprep.subr.bf16.mxu0 %v10740_v22  ;;  %v7663_v35 = vpop.permute.xlu0 %7662 }
0x10dd   :  { %11064 = vset.pattern.permute.xlu1 %v11524_v54  ;;  %10743 = vmatpush1.bf16.msra.mxu0 %v10742_v21  ;;  %v7544_v43 = vadd.f32 %v7494_v32, %v7293_v33  ;;  %v7545_v26 = vadd.f32 %v7495_v59, %v7294_v56  ;;  %v7747_v44 = vmul.f32 %v7663_v35, %v7597_v10  ;;  %v7600_v32 = vld [vmem:[#allocation26 + $0x3a8] sm:$0xff]  ;;  %v7124_v59 = vld [vmem:[#allocation26 + $0x90] sm:$0xff]  ;;  %v7350_v33 = vld [vmem:[#allocation26 + $0x220] sm:$0xff] }
0x10de   :  { %7447 = vperm.xlu1 %11064, %v14247_v8   ;;  %v7748_v30 = vmul.f32 %v7663_v35, %v7598_v18  ;;  %v7351_v56 = vld [vmem:[#allocation26 + $0x228] sm:$0xff]  ;;  %v7602_v35 = vld [vmem:[#allocation26 + $0x3b8] sm:$0xff] }
0x10df   :  { %v7659_v3 = vpop.permute.xlu1 %7658 }
0x10e0   :  { %v7745_v5 = vmul.f32 %v7659_v3, %v7595_v1  ;;  %v7746_v23 = vmul.f32 %v7659_v3, %v7596_v6  ;;  %v7122_v1 = vld [vmem:[#allocation26 + $0x80] sm:$0xff]  ;;  %v7123_v6 = vld [vmem:[#allocation26 + $0x88] sm:$0xff] }
0x10e2   :  { %11065 = vset.pattern.permute.xlu1 %v11525_v2  ;;  %v7795_v57 = vadd.f32 %v7745_v5, %v7544_v43  ;;  %v7796_v61 = vadd.f32 %v7746_v23, %v7545_v26  ;;  %v7850_v43 = vld [vmem:[#allocation26 + $0x530] sm:$0xff] }
0x10e3   :  { %7698 = vperm.xlu1 %11065, %v14247_v8  }
0x10e4   :  { %v7194_v55 = vpop.permute.xlu1 %7193  ;;  %v8046_v62 = vadd.f32 %v7996_v25, %v7795_v57  ;;  %v8047_v63 = vadd.f32 %v7997_v13, %v7796_v61  ;;  %v7853_v57 = vld [vmem:[#allocation26 + $0x548] sm:$0xff] }
0x10e5   :  { %v7295_v24 = vmul.f32 %v7194_v55, %v7120_v49  ;;  %v7296_v15 = vmul.f32 %v7194_v55, %v7121_v31  ;;  %v7348_v55 = vld [vmem:[#allocation26 + $0x210] sm:$0xff]  ;;  %v7599_v49 = vld [vmem:[#allocation26 + $0x3a0] sm:$0xff] }
0x10e7   :  { %11066 = vset.pattern.permute.xlu1 %v11522_v53 }
0x10e8   :  { %7949 = vperm.xlu1 %11066, %v14247_v8  }
0x10e9   :  { %v7412_v11 = vpop.permute.xlu1 %7411 }
0x10ea   :  { %v7496_v58 = vmul.f32 %v7412_v11, %v7346_v50  ;;  %v7497_v7 = vmul.f32 %v7412_v11, %v7347_v37  ;;  %v7125_v37 = vld [vmem:[#allocation26 + $0x98] sm:$0xff] }
0x10ec   :  { %v7546_v12 = vadd.f32 %v7496_v58, %v7295_v24  ;;  %v7547_v8 = vadd.f32 %v7497_v7, %v7296_v15  ;;  %11068 = vset.pattern.permute.xlu1 %v11524_v54 }
0x10ed   :  { %7451 = vperm.xlu1 %11068, %v14251_v20   ;;  %v7199_v20 = vpop.permute.xlu0 %7198 }
0x10ee   :  { %v7797_v45 = vadd.f32 %v7747_v44, %v7546_v12  ;;  %v7798_v40 = vadd.f32 %v7748_v30, %v7547_v8  ;;  %v7914_v51 = vpop.permute.xlu1 %7913  ;;  %v7297_v10 = vmul.f32 %v7199_v20, %v7122_v1  ;;  %v7298_v18 = vmul.f32 %v7199_v20, %v7123_v6  ;;  %v7851_v44 = vld [vmem:[#allocation26 + $0x538] sm:$0xff]  ;;  %v7126_v6 = vld [vmem:[#allocation26 + $0xa0] sm:$0xff] }
0x10ef   :  { %v7998_v47 = vmul.f32 %v7914_v51, %v7848_v14  ;;  %v7999_v41 = vmul.f32 %v7914_v51, %v7849_v48  ;;  %v7852_v48 = vld [vmem:[#allocation26 + $0x540] sm:$0xff] }
0x10f1   :  { %v8048_v22 = vadd.f32 %v7998_v47, %v7797_v45  ;;  %v8049_v21 = vadd.f32 %v7999_v41, %v7798_v40  ;;  %11071 = vset.pattern.permute.xlu1 %v11523_v34  ;;  %v7918_v9 = vpop.permute.xlu0 %7917 }
0x10f2   :  { %7248 = vperm.xlu1 %11071, %v14257_v36   ;;  %v8000_v13 = vmul.f32 %v7918_v9, %v7850_v43  ;;  %v8001_v47 = vmul.f32 %v7918_v9, %v7851_v44 }
0x10f3   :  { %v10746_v17 = vpack.c.bf16 %v8048_v22, %v8046_v62  ;;  %v7416_v3 = vpop.permute.xlu1 %7415  ;;  %v10744_v16 = vpack.c.bf16 %v8049_v21, %v8047_v63 }
0x10f4   :  { %v7498_v31 = vmul.f32 %v7416_v3, %v7348_v55  ;;  %v7499_v50 = vmul.f32 %v7416_v3, %v7349_v60  ;;  %v7352_v60 = vld [vmem:[#allocation26 + $0x230] sm:$0xff] }
0x10f5   :  { %10745 = vmatprep.subr.bf16.mxu0 %v10744_v16  ;;  %v7671_v5 = vpop.permute.xlu0 %7670 }
0x10f6   :  { %11073 = vset.pattern.permute.xlu1 %v11525_v2  ;;  %10747 = vmatpush1.bf16.msra.mxu0 %v10746_v17  ;;  %v7548_v26 = vadd.f32 %v7498_v31, %v7297_v10  ;;  %v7549_v28 = vadd.f32 %v7499_v50, %v7298_v18  ;;  %v7752_v12 = vmul.f32 %v7671_v5, %v7602_v35  ;;  %v7128_v31 = vld [vmem:[#allocation26 + $0xb0] sm:$0xff] }
0x10f7   :  { %7706 = vperm.xlu1 %11073, %v14257_v36  }
0x10f8   :  { %v7667_v52 = vpop.permute.xlu1 %7666 }
0x10f9   :  { %v7749_v23 = vmul.f32 %v7667_v52, %v7599_v49  ;;  %v7750_v11 = vmul.f32 %v7667_v52, %v7600_v32  ;;  %v7209_v52 = vpop.permute.xlu0 %7208  ;;  %v7127_v49 = vld [vmem:[#allocation26 + $0xa8] sm:$0xff]  ;;  %v7603_v32 = vld [vmem:[#allocation26 + $0x3c0] sm:$0xff] }
0x10fa   :  { %v7301_v10 = vmul.f32 %v7209_v52, %v7126_v6  ;;  %v7302_v18 = vmul.f32 %v7209_v52, %v7127_v49  ;;  %v7132_v6 = vld [vmem:[#allocation26 + $0xd0] sm:$0xff]  ;;  %v7133_v49 = vld [vmem:[#allocation26 + $0xd8] sm:$0xff] }
0x10fb   :  { %11074 = vset.pattern.permute.xlu1 %v11522_v53  ;;  %v7799_v61 = vadd.f32 %v7749_v23, %v7548_v26  ;;  %v7800_v45 = vadd.f32 %v7750_v11, %v7549_v28  ;;  %v7855_v28 = vld [vmem:[#allocation26 + $0x558] sm:$0xff] }
0x10fc   :  { %7957 = vperm.xlu1 %11074, %v14257_v36   ;;  %v7601_v36 = vld [vmem:[#allocation26 + $0x3b0] sm:$0xff] }
0x10fd   :  { %v7204_v4 = vpop.permute.xlu1 %7203  ;;  %v7751_v30 = vmul.f32 %v7671_v5, %v7601_v36  ;;  %v8050_v63 = vadd.f32 %v8000_v13, %v7799_v61  ;;  %v8051_v22 = vadd.f32 %v8001_v47, %v7800_v45  ;;  %v7926_v55 = vpop.permute.xlu0 %7925  ;;  %v7606_v36 = vld [vmem:[#allocation26 + $0x3d8] sm:$0xff] }
0x10fe   :  { %v7299_v15 = vmul.f32 %v7204_v4, %v7124_v59  ;;  %v7300_v58 = vmul.f32 %v7204_v4, %v7125_v37  ;;  %v7353_v4 = vld [vmem:[#allocation26 + $0x238] sm:$0xff]  ;;  %v7604_v59 = vld [vmem:[#allocation26 + $0x3c8] sm:$0xff]  ;;  %v8005_v13 = vmul.f32 %v7926_v55, %v7855_v28 }
0x1100   :  { %11075 = vset.pattern.permute.xlu1 %v11523_v34 }
0x1101   :  { %7253 = vperm.xlu1 %11075, %v14263_v27   ;;  %v7679_v35 = vpop.permute.xlu0 %7678 }
0x1102   :  { %v7420_v24 = vpop.permute.xlu1 %7419 }
0x1103   :  { %v7500_v7 = vmul.f32 %v7420_v24, %v7350_v33  ;;  %v7501_v42 = vmul.f32 %v7420_v24, %v7351_v56  ;;  %v7129_v33 = vld [vmem:[#allocation26 + $0xb8] sm:$0xff]  ;;  %v7355_v56 = vld [vmem:[#allocation26 + $0x248] sm:$0xff] }
0x1105   :  { %v7550_v8 = vadd.f32 %v7500_v7, %v7299_v15  ;;  %v7551_v14 = vadd.f32 %v7501_v42, %v7300_v58  ;;  %11076 = vset.pattern.permute.xlu1 %v11524_v54  ;;  %v7854_v42 = vld [vmem:[#allocation26 + $0x550] sm:$0xff]  ;;  %v7219_v52 = vpop.permute.xlu0 %7218 }
0x1106   :  { %7459 = vperm.xlu1 %11076, %v14263_v27  }
0x1107   :  { %v7801_v40 = vadd.f32 %v7751_v30, %v7550_v8  ;;  %v7802_v51 = vadd.f32 %v7752_v12, %v7551_v14  ;;  %v7922_v25 = vpop.permute.xlu1 %7921  ;;  %v7756_v30 = vmul.f32 %v7679_v35, %v7606_v36  ;;  %v7856_v14 = vld [vmem:[#allocation26 + $0x560] sm:$0xff]  ;;  %v7858_v36 = vld [vmem:[#allocation26 + $0x570] sm:$0xff] }
0x1108   :  { %v8002_v41 = vmul.f32 %v7922_v25, %v7852_v48  ;;  %v8003_v62 = vmul.f32 %v7922_v25, %v7853_v57  ;;  %v7857_v48 = vld [vmem:[#allocation26 + $0x568] sm:$0xff]  ;;  %v8004_v25 = vmul.f32 %v7926_v55, %v7854_v42 }
0x110a   :  { %v8052_v21 = vadd.f32 %v8002_v41, %v7801_v40  ;;  %v8053_v17 = vadd.f32 %v8003_v62, %v7802_v51  ;;  %11077 = vset.pattern.permute.xlu1 %v11525_v2 }
0x110b   :  { %7710 = vperm.xlu1 %11077, %v14263_v27  }
0x110c   :  { %v10750_v3 = vpack.c.bf16 %v8052_v21, %v8050_v63  ;;  %v7424_v16 = vpop.permute.xlu1 %7423  ;;  %v10748_v20 = vpack.c.bf16 %v8053_v17, %v8051_v22 }
0x110d   :  { %v7502_v50 = vmul.f32 %v7424_v16, %v7352_v60  ;;  %v7503_v37 = vmul.f32 %v7424_v16, %v7353_v4  ;;  %v7130_v60 = vld [vmem:[#allocation26 + $0xc0] sm:$0xff]  ;;  %v7356_v4 = vld [vmem:[#allocation26 + $0x250] sm:$0xff] }
0x110e   :  { %10749 = vmatprep.subr.bf16.mxu0 %v10748_v20 }
0x110f   :  { %11078 = vset.pattern.permute.xlu1 %v11522_v53  ;;  %10751 = vmatpush1.bf16.msra.mxu0 %v10750_v3  ;;  %v7552_v43 = vadd.f32 %v7502_v50, %v7301_v10  ;;  %v7553_v26 = vadd.f32 %v7503_v37, %v7302_v18  ;;  %v7607_v50 = vld [vmem:[#allocation26 + $0x3e0] sm:$0xff]  ;;  %v7608_v37 = vld [vmem:[#allocation26 + $0x3e8] sm:$0xff] }
0x1110   :  { %7961 = vperm.xlu1 %11078, %v14263_v27   ;;  %v7354_v27 = vld [vmem:[#allocation26 + $0x240] sm:$0xff] }
0x1111   :  { %v7675_v9 = vpop.permute.xlu1 %7674 }
0x1112   :  { %v7753_v5 = vmul.f32 %v7675_v9, %v7603_v32  ;;  %v7754_v23 = vmul.f32 %v7675_v9, %v7604_v59  ;;  %v7358_v32 = vld [vmem:[#allocation26 + $0x260] sm:$0xff]  ;;  %v7359_v59 = vld [vmem:[#allocation26 + $0x268] sm:$0xff] }
0x1114   :  { %11080 = vset.pattern.permute.xlu1 %v11524_v54  ;;  %v7803_v57 = vadd.f32 %v7753_v5, %v7552_v43  ;;  %v7804_v61 = vadd.f32 %v7754_v23, %v7553_v26 }
0x1115   :  { %7463 = vperm.xlu1 %11080, %v14269_v39   ;;  %v7605_v39 = vld [vmem:[#allocation26 + $0x3d0] sm:$0xff] }
0x1116   :  { %v7214_v1 = vpop.permute.xlu1 %7213  ;;  %v7755_v44 = vmul.f32 %v7679_v35, %v7605_v39  ;;  %v8054_v62 = vadd.f32 %v8004_v25, %v7803_v57  ;;  %v8055_v63 = vadd.f32 %v8005_v13, %v7804_v61  ;;  %v7859_v35 = vld [vmem:[#allocation26 + $0x578] sm:$0xff] }
0x1117   :  { %v7303_v24 = vmul.f32 %v7214_v1, %v7128_v31  ;;  %v7304_v15 = vmul.f32 %v7214_v1, %v7129_v33  ;;  %v7357_v1 = vld [vmem:[#allocation26 + $0x258] sm:$0xff]  ;;  %v7131_v31 = vld [vmem:[#allocation26 + $0xc8] sm:$0xff]  ;;  %v7609_v33 = vld [vmem:[#allocation26 + $0x3f0] sm:$0xff] }
0x1119   :  { %11083 = vset.pattern.permute.xlu1 %v11523_v34 }
0x111a   :  { %7263 = vperm.xlu1 %11083, %v14273_v38  }
0x111b   :  { %v7428_v11 = vpop.permute.xlu1 %7427 }
0x111c   :  { %v7504_v58 = vmul.f32 %v7428_v11, %v7354_v27  ;;  %v7505_v7 = vmul.f32 %v7428_v11, %v7355_v56  ;;  %v7610_v27 = vld [vmem:[#allocation26 + $0x3f8] sm:$0xff] }
0x111e   :  { %v7554_v12 = vadd.f32 %v7504_v58, %v7303_v24  ;;  %v7555_v8 = vadd.f32 %v7505_v7, %v7304_v15  ;;  %11085 = vset.pattern.permute.xlu1 %v11525_v2  ;;  %v7305_v15 = vmul.f32 %v7219_v52, %v7130_v60  ;;  %v7306_v58 = vmul.f32 %v7219_v52, %v7131_v31  ;;  %v7361_v52 = vld [vmem:[#allocation26 + $0x278] sm:$0xff]  ;;  %v7612_v31 = vld [vmem:[#allocation26 + $0x408] sm:$0xff] }
0x111f   :  { %7718 = vperm.xlu1 %11085, %v14273_v38  }
0x1120   :  { %v7805_v45 = vadd.f32 %v7755_v44, %v7554_v12  ;;  %v7806_v40 = vadd.f32 %v7756_v30, %v7555_v8  ;;  %v7930_v51 = vpop.permute.xlu1 %7929  ;;  %v7860_v44 = vld [vmem:[#allocation26 + $0x580] sm:$0xff]  ;;  %v7861_v30 = vld [vmem:[#allocation26 + $0x588] sm:$0xff] }
0x1121   :  { %v8006_v47 = vmul.f32 %v7930_v51, %v7856_v14  ;;  %v8007_v41 = vmul.f32 %v7930_v51, %v7857_v48 }
0x1123   :  { %v8056_v22 = vadd.f32 %v8006_v47, %v7805_v45  ;;  %v8057_v21 = vadd.f32 %v8007_v41, %v7806_v40  ;;  %11086 = vset.pattern.permute.xlu1 %v11522_v53 }
0x1124   :  { %7969 = vperm.xlu1 %11086, %v14273_v38   ;;  %v7687_v38 = vpop.permute.xlu0 %7686 }
0x1125   :  { %v10754_v17 = vpack.c.bf16 %v8056_v22, %v8054_v62  ;;  %v7432_v3 = vpop.permute.xlu1 %7431  ;;  %v10752_v16 = vpack.c.bf16 %v8057_v21, %v8055_v63  ;;  %v7759_v42 = vmul.f32 %v7687_v38, %v7609_v33  ;;  %v7760_v43 = vmul.f32 %v7687_v38, %v7610_v27  ;;  %v7614_v33 = vld [vmem:[#allocation26 + $0x418] sm:$0xff] }
0x1126   :  { %v7506_v10 = vmul.f32 %v7432_v3, %v7356_v4  ;;  %v7507_v18 = vmul.f32 %v7432_v3, %v7357_v1  ;;  %v7136_v4 = vld [vmem:[#allocation26 + $0xf0] sm:$0xff]  ;;  %v7137_v1 = vld [vmem:[#allocation26 + $0xf8] sm:$0xff] }
0x1127   :  { %10753 = vmatprep.subr.bf16.mxu0 %v10752_v16 }
0x1128   :  { %11087 = vset.pattern.permute.xlu1 %v11523_v34  ;;  %10755 = vmatpush1.bf16.msra.mxu0 %v10754_v17  ;;  %v7229_v56 = vpop.permute.xlu0 %7228  ;;  %v7556_v12 = vadd.f32 %v7506_v10, %v7305_v15  ;;  %v7557_v8 = vadd.f32 %v7507_v18, %v7306_v58  ;;  %v7864_v15 = vld [vmem:[#allocation26 + $0x5a0] sm:$0xff]  ;;  %v7865_v58 = vld [vmem:[#allocation26 + $0x5a8] sm:$0xff] }
0x1129   :  { %7268 = vperm.xlu1 %11087, %v14277_v0  }
0x112b   :  { %v7683_v20 = vpop.permute.xlu1 %7682 }
0x112c   :  { %v7758_v7 = vmul.f32 %v7683_v20, %v7608_v37  ;;  %v7691_v40 = vpop.permute.xlu0 %7690 }
0x112d   :  { %11088 = vset.pattern.permute.xlu1 %v11524_v54 }
0x112e   :  { %7471 = vperm.xlu1 %11088, %v14277_v0   ;;  %v7808_v25 = vadd.f32 %v7758_v7, %v7557_v8 }
0x1130   :  { %v7934_v9 = vpop.permute.xlu1 %7933  ;;  %v7942_v16 = vpop.permute.xlu0 %7941 }
0x1131   :  { %v8008_v14 = vmul.f32 %v7934_v9, %v7858_v36  ;;  %v8009_v48 = vmul.f32 %v7934_v9, %v7859_v35  ;;  %v7134_v9 = vld [vmem:[#allocation26 + $0xe0] sm:$0xff] }
0x1132   :  { %11089 = vset.pattern.permute.xlu1 %v11525_v2 }
0x1133   :  { %7722 = vperm.xlu1 %11089, %v14277_v0   ;;  %v8059_v62 = vadd.f32 %v8009_v48, %v7808_v25 }
0x1135   :  { %v7224_v55 = vpop.permute.xlu1 %7223 }
0x1136   :  { %v7307_v5 = vmul.f32 %v7224_v55, %v7132_v6  ;;  %v7308_v23 = vmul.f32 %v7224_v55, %v7133_v49  ;;  %v7611_v49 = vld [vmem:[#allocation26 + $0x400] sm:$0xff] }
0x1137   :  { %11090 = vset.pattern.permute.xlu1 %v11522_v53 }
0x1138   :  { %7973 = vperm.xlu1 %11090, %v14277_v0   ;;  %v7757_v0 = vmul.f32 %v7683_v20, %v7607_v50  ;;  %v7360_v20 = vld [vmem:[#allocation26 + $0x270] sm:$0xff]  ;;  %v7363_v50 = vld [vmem:[#allocation26 + $0x288] sm:$0xff] }
0x113a   :  { %v7436_v39 = vpop.permute.xlu1 %7435  ;;  %v7807_v51 = vadd.f32 %v7757_v0, %v7556_v12 }
0x113b   :  { %v7508_v11 = vmul.f32 %v7436_v39, %v7358_v32  ;;  %v7509_v24 = vmul.f32 %v7436_v39, %v7359_v59  ;;  %v7362_v32 = vld [vmem:[#allocation26 + $0x280] sm:$0xff]  ;;  %v7444_v59 = vpop.permute.xlu0 %7443 }
0x113c   :  { %11092 = vset.pattern.permute.xlu1 %v11524_v54  ;;  %v8058_v41 = vadd.f32 %v8008_v14, %v7807_v51  ;;  %v7512_v36 = vmul.f32 %v7444_v59, %v7362_v32 }
0x113d   :  { %v7558_v26 = vadd.f32 %v7508_v11, %v7307_v5  ;;  %v7559_v28 = vadd.f32 %v7509_v24, %v7308_v23  ;;  %7475 = vperm.xlu1 %11092, %v14283_v29   ;;  %v7761_v5 = vmul.f32 %v7691_v40, %v7611_v49  ;;  %v7863_v23 = vld [vmem:[#allocation26 + $0x598] sm:$0xff]  ;;  %v7513_v11 = vmul.f32 %v7444_v59, %v7363_v50 }
0x113f   :  { %v7809_v57 = vadd.f32 %v7759_v42, %v7558_v26  ;;  %v7810_v61 = vadd.f32 %v7760_v43, %v7559_v28  ;;  %v7938_v45 = vpop.permute.xlu1 %7937  ;;  %v8013_v26 = vmul.f32 %v7942_v16, %v7863_v23 }
0x1140   :  { %v8010_v13 = vmul.f32 %v7938_v45, %v7860_v44  ;;  %v8011_v47 = vmul.f32 %v7938_v45, %v7861_v30  ;;  %v14414_v30 = vld.sshfl [vmem:[%s11683_s9] sm:$0x33 pattern:$0x76325410] }
0x1141   :  { %11094 = vset.pattern.permute.xlu1 %v11522_v53  ;;  %v7135_v53 = vld [vmem:[#allocation26 + $0xe8] sm:$0xff]  ;;  %v8103_v48 = vcombine.high %v14414_v30, %v14414_v30 }
0x1142   :  { %v8060_v63 = vadd.f32 %v8010_v13, %v7809_v57  ;;  %v8061_v22 = vadd.f32 %v8011_v47, %v7810_v61  ;;  %7977 = vperm.xlu1 %11094, %v14283_v29   ;;  %v7309_v29 = vmul.f32 %v7229_v56, %v7134_v9  ;;  %v7310_v6 = vmul.f32 %v7229_v56, %v7135_v53  ;;  %v7862_v56 = vld [vmem:[#allocation26 + $0x590] sm:$0xff]  ;;  %v7615_v9 = vld [vmem:[#allocation26 + $0x420] sm:$0xff] }
0x1143   :  { %v8012_v43 = vmul.f32 %v7942_v16, %v7862_v56  ;;  %8595 = vmatprep.mubr.msk.f32.mxu0 %vm8105_vm13, %v8103_v48  ;;  %v7141_v16 = vld [vmem:[#allocation26 + $0x118] sm:$0xff] }
0x1144   :  { %v10758_v21 = vpack.c.bf16 %v8060_v63, %v8058_v41  ;;  %v7440_v17 = vpop.permute.xlu1 %7439  ;;  %v10756_v3 = vpack.c.bf16 %v8061_v22, %v8059_v62  ;;  %v7244_v41 = vpop.permute.xlu0 %7243  ;;  %v7364_v22 = vld [vmem:[#allocation26 + $0x290] sm:$0xff] }
0x1145   :  { %v7510_v55 = vmul.f32 %v7440_v17, %v7360_v20  ;;  %v7511_v60 = vmul.f32 %v7440_v17, %v7361_v52  ;;  %v7138_v20 = vld [vmem:[#allocation26 + $0x100] sm:$0xff]  ;;  %v7139_v52 = vld [vmem:[#allocation26 + $0x108] sm:$0xff]  ;;  %v7316_v49 = vmul.f32 %v7244_v41, %v7141_v16  ;;  %v7145_v16 = vld [vmem:[#allocation26 + $0x138] sm:$0xff] }
0x1146   :  { %10757 = vmatprep.subr.bf16.mxu0 %v10756_v3  ;;  %11096 = vset.pattern.permute.xlu1 %v11524_v54  ;;  %v7613_v54 = vld [vmem:[#allocation26 + $0x410] sm:$0xff] }
0x1147   :  { %10759 = vmatpush1.bf16.msra.mxu0 %v10758_v21  ;;  %7479 = vperm.xlu1 %11096, %v14289_v19   ;;  %v7560_v27 = vadd.f32 %v7510_v55, %v7309_v29  ;;  %v7561_v10 = vadd.f32 %v7511_v60, %v7310_v6  ;;  %v7365_v21 = vld [vmem:[#allocation26 + $0x298] sm:$0xff]  ;;  %v7140_v3 = vld [vmem:[#allocation26 + $0x110] sm:$0xff]  ;;  %v7616_v55 = vld [vmem:[#allocation26 + $0x428] sm:$0xff] }
0x1148   :  { %v7703_v63 = vpop.permute.xlu0 %7702  ;;  %v7366_v60 = vld [vmem:[#allocation26 + $0x2a0] sm:$0xff]  ;;  %v7618_v29 = vld [vmem:[#allocation26 + $0x438] sm:$0xff]  ;;  %v7315_v6 = vmul.f32 %v7244_v41, %v7140_v3 }
0x1149   :  { %v7234_v38 = vpop.permute.xlu1 %7233  ;;  %v7811_v0 = vadd.f32 %v7761_v5, %v7560_v27  ;;  %v7768_v5 = vmul.f32 %v7703_v63, %v7618_v29  ;;  %v7370_v41 = vld [vmem:[#allocation26 + $0x2c0] sm:$0xff] }
0x114a   :  { %v7311_v37 = vmul.f32 %v7234_v38, %v7136_v4  ;;  %v7312_v18 = vmul.f32 %v7234_v38, %v7137_v1  ;;  %v7367_v4 = vld [vmem:[#allocation26 + $0x2a8] sm:$0xff]  ;;  %v7617_v1 = vld [vmem:[#allocation26 + $0x430] sm:$0xff] }
0x114b   :  { %11097 = vset.pattern.permute.xlu1 %v11525_v2  ;;  %v7762_v2 = vmul.f32 %v7691_v40, %v7612_v31  ;;  %v8062_v57 = vadd.f32 %v8012_v43, %v7811_v0  ;;  %v7867_v31 = vld [vmem:[#allocation26 + $0x5b8] sm:$0xff] }
0x114c   :  { %7730 = vperm.xlu1 %11097, %v14289_v19   ;;  %v7562_v19 = vadd.f32 %v7512_v36, %v7311_v37  ;;  %v7563_v42 = vadd.f32 %v7513_v11, %v7312_v18  ;;  %v7868_v37 = vld [vmem:[#allocation26 + $0x5c0] sm:$0xff]  ;;  %v7954_v27 = vpop.permute.xlu0 %7953 }
0x114d   :  { %v7812_v7 = vadd.f32 %v7762_v2, %v7561_v10 }
0x114e   :  { %v7695_v39 = vpop.permute.xlu1 %7694 }
0x114f   :  { %v7763_v35 = vmul.f32 %v7695_v39, %v7613_v54  ;;  %v7764_v24 = vmul.f32 %v7695_v39, %v7614_v33  ;;  %v8063_v40 = vadd.f32 %v8013_v26, %v7812_v7  ;;  %v7866_v54 = vld [vmem:[#allocation26 + $0x5b0] sm:$0xff]  ;;  %v7869_v33 = vld [vmem:[#allocation26 + $0x5c8] sm:$0xff] }
0x1150   :  { %11099 = vset.pattern.permute.xlu1 %v11523_v34  ;;  %v8593_v34 = vld [vmem:[#allocation3] ss:$0 sm:$0xff] }
0x1151   :  { %v7813_v28 = vadd.f32 %v7763_v35, %v7562_v19  ;;  %v7814_v12 = vadd.f32 %v7764_v24, %v7563_v42  ;;  %8092 = vperm.xlu1 %11099, %v8593_v34   ;;  %v7767_v35 = vmul.f32 %v7703_v63, %v7617_v1  ;;  %v7619_v63 = vld [vmem:[#allocation26 + $0x440] sm:$0xff] }
0x1153   :  { %v7946_v44 = vpop.permute.xlu1 %7945 }
0x1154   :  { %v8014_v8 = vmul.f32 %v7946_v44, %v7864_v15  ;;  %v8015_v14 = vmul.f32 %v7946_v44, %v7865_v58  ;;  %v8018_v15 = vmul.f32 %v7954_v27, %v7868_v37  ;;  %v8019_v58 = vmul.f32 %v7954_v27, %v7869_v33  ;;  %v7872_v33 = vld [vmem:[#allocation26 + $0x5e0] sm:$0xff]  ;;  %v7873_v27 = vld [vmem:[#allocation26 + $0x5e8] sm:$0xff] }
0x1156   :  { %v8064_v61 = vadd.f32 %v8014_v8, %v7813_v28  ;;  %v8065_v45 = vadd.f32 %v8015_v14, %v7814_v12 }
0x1158   :  { %v10762_v51 = vpack.c.bf16 %v8064_v61, %v8062_v57  ;;  %v7239_v25 = vpop.permute.xlu1 %7238  ;;  %v10760_v13 = vpack.c.bf16 %v8065_v45, %v8063_v40  ;;  %v7456_v45 = vpop.permute.xlu0 %7455 }
0x1159   :  { %v7313_v32 = vmul.f32 %v7239_v25, %v7138_v20  ;;  %v7314_v59 = vmul.f32 %v7239_v25, %v7139_v52  ;;  %v7142_v25 = vld [vmem:[#allocation26 + $0x120] sm:$0xff]  ;;  %v7621_v20 = vld [vmem:[#allocation26 + $0x450] sm:$0xff]  ;;  %v7622_v52 = vld [vmem:[#allocation26 + $0x458] sm:$0xff] }
0x115a   :  { %10761 = vmatprep.subr.bf16.mxu0 %v10760_v13  ;;  %v7143_v13 = vld [vmem:[#allocation26 + $0x128] sm:$0xff] }
0x115b   :  { %10763 = vmatpush1.bf16.msra.mxu0 %v10762_v51  ;;  %v7368_v51 = vld [vmem:[#allocation26 + $0x2b0] sm:$0xff] }
0x115d   :  { %v7448_v47 = vpop.permute.xlu1 %7447 }
0x115e   :  { %v7514_v53 = vmul.f32 %v7448_v47, %v7364_v22  ;;  %v7515_v38 = vmul.f32 %v7448_v47, %v7365_v21  ;;  %v7369_v47 = vld [vmem:[#allocation26 + $0x2b8] sm:$0xff]  ;;  %v7620_v22 = vld [vmem:[#allocation26 + $0x448] sm:$0xff]  ;;  %v7144_v21 = vld [vmem:[#allocation26 + $0x130] sm:$0xff] }
0x1160   :  { %v7564_v2 = vadd.f32 %v7514_v53, %v7313_v32  ;;  %v7565_v56 = vadd.f32 %v7515_v38, %v7314_v59 }
0x1162   :  { %v7699_v62 = vpop.permute.xlu1 %7698 }
0x1163   :  { %v7765_v10 = vmul.f32 %v7699_v62, %v7615_v9  ;;  %v7766_v18 = vmul.f32 %v7699_v62, %v7616_v55  ;;  %v7371_v62 = vld [vmem:[#allocation26 + $0x2c8] sm:$0xff]  ;;  %v7518_v55 = vmul.f32 %v7456_v45, %v7368_v51 }
0x1165   :  { %v7815_v0 = vadd.f32 %v7765_v10, %v7564_v2  ;;  %v7816_v7 = vadd.f32 %v7766_v18, %v7565_v56 }
0x1167   :  { %v7950_v17 = vpop.permute.xlu1 %7949 }
0x1168   :  { %v8016_v23 = vmul.f32 %v7950_v17, %v7866_v54  ;;  %v8017_v11 = vmul.f32 %v7950_v17, %v7867_v31 }
0x116a   :  { %v8066_v28 = vadd.f32 %v8016_v23, %v7815_v0  ;;  %v8067_v44 = vadd.f32 %v8017_v11, %v7816_v7 }
0x116c   :  { %v7452_v50 = vpop.permute.xlu1 %7451 }
0x116d   :  { %v7516_v39 = vmul.f32 %v7452_v50, %v7366_v60  ;;  %v7517_v36 = vmul.f32 %v7452_v50, %v7367_v4  ;;  %v7519_v60 = vmul.f32 %v7456_v45, %v7369_v47  ;;  %v7259_v4 = vpop.permute.xlu0 %7258  ;;  %v7149_v45 = vld [vmem:[#allocation26 + $0x158] sm:$0xff]  ;;  %v7374_v47 = vld [vmem:[#allocation26 + $0x2e0] sm:$0xff] }
0x116f   :  { %v7566_v24 = vadd.f32 %v7516_v39, %v7315_v6  ;;  %v7567_v19 = vadd.f32 %v7517_v36, %v7316_v49  ;;  %v7870_v6 = vld [vmem:[#allocation26 + $0x5d0] sm:$0xff]  ;;  %v7871_v49 = vld [vmem:[#allocation26 + $0x5d8] sm:$0xff] }
0x1171   :  { %v7817_v42 = vadd.f32 %v7767_v35, %v7566_v24  ;;  %v7818_v43 = vadd.f32 %v7768_v5, %v7567_v19  ;;  %v7249_v26 = vpop.permute.xlu1 %7248  ;;  %v7715_v19 = vpop.permute.xlu0 %7714 }
0x1172   :  { %v7317_v17 = vmul.f32 %v7249_v26, %v7142_v25  ;;  %v7318_v3 = vmul.f32 %v7249_v26, %v7143_v13  ;;  %v7623_v25 = vld [vmem:[#allocation26 + $0x460] sm:$0xff]  ;;  %v7624_v13 = vld [vmem:[#allocation26 + $0x468] sm:$0xff] }
0x1173   :  { %v8068_v12 = vadd.f32 %v8018_v15, %v7817_v42  ;;  %v8069_v8 = vadd.f32 %v8019_v58, %v7818_v43 }
0x1174   :  { %v7568_v50 = vadd.f32 %v7518_v55, %v7317_v17  ;;  %v7569_v37 = vadd.f32 %v7519_v60, %v7318_v3 }
0x1175   :  { %v10764_v14 = vpack.c.bf16 %v8069_v8, %v8067_v44  ;;  %v10766_v48 = vpack.c.bf16 %v8068_v12, %v8066_v28  ;;  %v7966_v28 = vpop.permute.xlu0 %7965  ;;  %v7372_v44 = vld [vmem:[#allocation26 + $0x2d0] sm:$0xff]  ;;  %v7373_v12 = vld [vmem:[#allocation26 + $0x2d8] sm:$0xff]  ;;  %v7146_v8 = vld [vmem:[#allocation26 + $0x140] sm:$0xff] }
0x1176   :  { %v7707_v34 = vpop.permute.xlu1 %7706 }
0x1177   :  { %10765 = vmatprep.subr.bf16.mxu0 %v10764_v14  ;;  %v7769_v1 = vmul.f32 %v7707_v34, %v7619_v63  ;;  %v7770_v29 = vmul.f32 %v7707_v34, %v7620_v22  ;;  %v7147_v14 = vld [vmem:[#allocation26 + $0x148] sm:$0xff]  ;;  %v7625_v63 = vld [vmem:[#allocation26 + $0x470] sm:$0xff]  ;;  %v7626_v22 = vld [vmem:[#allocation26 + $0x478] sm:$0xff] }
0x1178   :  { %10767 = vmatpush1.bf16.msra.mxu0 %v10766_v48  ;;  %v7322_v51 = vmul.f32 %v7259_v4, %v7147_v14  ;;  %v7629_v14 = vld [vmem:[#allocation26 + $0x490] sm:$0xff] }
0x1179   :  { %v7819_v35 = vadd.f32 %v7769_v1, %v7568_v50  ;;  %v7820_v5 = vadd.f32 %v7770_v29, %v7569_v37  ;;  %v7876_v29 = vld [vmem:[#allocation26 + $0x600] sm:$0xff] }
0x117b   :  { %v7958_v57 = vpop.permute.xlu1 %7957 }
0x117c   :  { %v8020_v10 = vmul.f32 %v7958_v57, %v7870_v6  ;;  %v8021_v18 = vmul.f32 %v7958_v57, %v7871_v49  ;;  %v7877_v6 = vld [vmem:[#allocation26 + $0x608] sm:$0xff] }
0x117e   :  { %v8070_v15 = vadd.f32 %v8020_v10, %v7819_v35  ;;  %v8071_v58 = vadd.f32 %v8021_v18, %v7820_v5 }
0x1180   :  { %v7254_v61 = vpop.permute.xlu1 %7253 }
0x1181   :  { %v7319_v32 = vmul.f32 %v7254_v61, %v7144_v21  ;;  %v7320_v59 = vmul.f32 %v7254_v61, %v7145_v16  ;;  %v7148_v61 = vld [vmem:[#allocation26 + $0x150] sm:$0xff] }
0x1185   :  { %v7460_v40 = vpop.permute.xlu1 %7459 }
0x1186   :  { %v7520_v9 = vmul.f32 %v7460_v40, %v7370_v41  ;;  %v7521_v53 = vmul.f32 %v7460_v40, %v7371_v62  ;;  %v7321_v40 = vmul.f32 %v7259_v4, %v7146_v8  ;;  %v7375_v41 = vld [vmem:[#allocation26 + $0x2e8] sm:$0xff]  ;;  %v7468_v62 = vpop.permute.xlu0 %7467 }
0x1187   :  { %v7524_v55 = vmul.f32 %v7468_v62, %v7374_v47  ;;  %v7525_v60 = vmul.f32 %v7468_v62, %v7375_v41  ;;  %v7628_v8 = vld [vmem:[#allocation26 + $0x488] sm:$0xff] }
0x1188   :  { %v7570_v39 = vadd.f32 %v7520_v9, %v7319_v32  ;;  %v7571_v36 = vadd.f32 %v7521_v53, %v7320_v59  ;;  %v7774_v9 = vmul.f32 %v7715_v19, %v7624_v13  ;;  %v7874_v53 = vld [vmem:[#allocation26 + $0x5f0] sm:$0xff]  ;;  %v7879_v13 = vld [vmem:[#allocation26 + $0x618] sm:$0xff] }
0x118a   :  { %v7711_v38 = vpop.permute.xlu1 %7710 }
0x118b   :  { %v7771_v54 = vmul.f32 %v7711_v38, %v7621_v20  ;;  %v7772_v31 = vmul.f32 %v7711_v38, %v7622_v52  ;;  %v7773_v52 = vmul.f32 %v7715_v19, %v7623_v25  ;;  %v7875_v38 = vld [vmem:[#allocation26 + $0x5f8] sm:$0xff]  ;;  %v7274_v19 = vpop.permute.xlu0 %7273  ;;  %v7878_v25 = vld [vmem:[#allocation26 + $0x610] sm:$0xff] }
0x118c   :  { %v8025_v50 = vmul.f32 %v7966_v28, %v7875_v38 }
0x118d   :  { %v7821_v56 = vadd.f32 %v7771_v54, %v7570_v39  ;;  %v7822_v23 = vadd.f32 %v7772_v31, %v7571_v36  ;;  %v8024_v31 = vmul.f32 %v7966_v28, %v7874_v53  ;;  %v7379_v28 = vld [vmem:[#allocation26 + $0x308] sm:$0xff] }
0x118f   :  { %v7962_v2 = vpop.permute.xlu1 %7961 }
0x1190   :  { %v8022_v11 = vmul.f32 %v7962_v2, %v7872_v33  ;;  %v8023_v24 = vmul.f32 %v7962_v2, %v7873_v27 }
0x1192   :  { %v8072_v0 = vadd.f32 %v8022_v11, %v7821_v56  ;;  %v8073_v7 = vadd.f32 %v8023_v24, %v7822_v23 }
0x1194   :  { %v10770_v42 = vpack.c.bf16 %v8072_v0, %v8070_v15  ;;  %v7464_v43 = vpop.permute.xlu1 %7463  ;;  %v10768_v26 = vpack.c.bf16 %v8073_v7, %v8071_v58  ;;  %v7152_v58 = vld [vmem:[#allocation26 + $0x170] sm:$0xff]  ;;  %v7153_v0 = vld [vmem:[#allocation26 + $0x178] sm:$0xff] }
0x1195   :  { %v7522_v34 = vmul.f32 %v7464_v43, %v7372_v44  ;;  %v7523_v57 = vmul.f32 %v7464_v43, %v7373_v12  ;;  %v7376_v7 = vld [vmem:[#allocation26 + $0x2f0] sm:$0xff]  ;;  %v7150_v43 = vld [vmem:[#allocation26 + $0x160] sm:$0xff]  ;;  %v7151_v44 = vld [vmem:[#allocation26 + $0x168] sm:$0xff] }
0x1196   :  { %10769 = vmatprep.subr.bf16.mxu0 %v10768_v26  ;;  %v7378_v26 = vld [vmem:[#allocation26 + $0x300] sm:$0xff] }
0x1197   :  { %10771 = vmatpush1.bf16.msra.mxu0 %v10770_v42  ;;  %v7572_v21 = vadd.f32 %v7522_v34, %v7321_v40  ;;  %v7573_v17 = vadd.f32 %v7523_v57, %v7322_v51  ;;  %v7377_v42 = vld [vmem:[#allocation26 + $0x2f8] sm:$0xff]  ;;  %v7627_v12 = vld [vmem:[#allocation26 + $0x480] sm:$0xff]  ;;  %v7727_v34 = vpop.permute.xlu0 %7726  ;;  %v7327_v40 = vmul.f32 %v7274_v19, %v7152_v58  ;;  %v7328_v51 = vmul.f32 %v7274_v19, %v7153_v0 }
0x1198   :  { %v7883_v58 = vld [vmem:[#allocation26 + $0x638] sm:$0xff] }
0x1199   :  { %v7264_v48 = vpop.permute.xlu1 %7263  ;;  %v7823_v49 = vadd.f32 %v7773_v52, %v7572_v21  ;;  %v7824_v32 = vadd.f32 %v7774_v9, %v7573_v17  ;;  %v7779_v17 = vmul.f32 %v7727_v34, %v7629_v14  ;;  %v7880_v52 = vld [vmem:[#allocation26 + $0x620] sm:$0xff]  ;;  %v7881_v9 = vld [vmem:[#allocation26 + $0x628] sm:$0xff] }
0x119a   :  { %v7323_v3 = vmul.f32 %v7264_v48, %v7148_v61  ;;  %v7324_v16 = vmul.f32 %v7264_v48, %v7149_v45  ;;  %v7630_v48 = vld [vmem:[#allocation26 + $0x498] sm:$0xff] }
0x119b   :  { %v8074_v39 = vadd.f32 %v8024_v31, %v7823_v49  ;;  %v8075_v5 = vadd.f32 %v8025_v50, %v7824_v32 }
0x119c   :  { %v7574_v59 = vadd.f32 %v7524_v55, %v7323_v3  ;;  %v7575_v54 = vadd.f32 %v7525_v60, %v7324_v16  ;;  %v7780_v3 = vmul.f32 %v7727_v34, %v7630_v48 }
0x119e   :  { %v7719_v20 = vpop.permute.xlu1 %7718 }
0x119f   :  { %v7775_v1 = vmul.f32 %v7719_v20, %v7625_v63  ;;  %v7776_v4 = vmul.f32 %v7719_v20, %v7626_v22 }
0x11a1   :  { %v7825_v33 = vadd.f32 %v7775_v1, %v7574_v59  ;;  %v7826_v27 = vadd.f32 %v7776_v4, %v7575_v54 }
0x11a3   :  { %v7970_v37 = vpop.permute.xlu1 %7969 }
0x11a4   :  { %v8026_v10 = vmul.f32 %v7970_v37, %v7876_v29  ;;  %v8027_v18 = vmul.f32 %v7970_v37, %v7877_v6 }
0x11a6   :  { %v8076_v36 = vadd.f32 %v8026_v10, %v7825_v33  ;;  %v8077_v35 = vadd.f32 %v8027_v18, %v7826_v27  ;;  %v7279_v33 = vpop.permute.xlu0 %7278  ;;  %v7380_v27 = vld [vmem:[#allocation26 + $0x310] sm:$0xff]  ;;  %v7381_v10 = vld [vmem:[#allocation26 + $0x318] sm:$0xff] }
0x11a8   :  { %v10774_v2 = vpack.c.bf16 %v8076_v36, %v8074_v39  ;;  %v7269_v56 = vpop.permute.xlu1 %7268  ;;  %v10772_v23 = vpack.c.bf16 %v8077_v35, %v8075_v5  ;;  %v7154_v35 = vld [vmem:[#allocation26 + $0x180] sm:$0xff]  ;;  %v7155_v5 = vld [vmem:[#allocation26 + $0x188] sm:$0xff] }
0x11a9   :  { %v7325_v62 = vmul.f32 %v7269_v56, %v7150_v43  ;;  %v7326_v63 = vmul.f32 %v7269_v56, %v7151_v44  ;;  %v7330_v19 = vmul.f32 %v7279_v33, %v7155_v5 }
0x11aa   :  { %10773 = vmatprep.subr.bf16.mxu0 %v10772_v23  ;;  %v7631_v23 = vld [vmem:[#allocation26 + $0x4a0] sm:$0xff]  ;;  %v7982_v0 = vpop.permute.xlu0 %7981 }
0x11ab   :  { %10775 = vmatpush1.bf16.msra.mxu0 %v10774_v2 }
0x11ad   :  { %v7472_v11 = vpop.permute.xlu1 %7471 }
0x11ae   :  { %v7526_v57 = vmul.f32 %v7472_v11, %v7376_v7  ;;  %v7527_v61 = vmul.f32 %v7472_v11, %v7377_v42  ;;  %v7632_v11 = vld [vmem:[#allocation26 + $0x4a8] sm:$0xff] }
0x11b0   :  { %v7576_v53 = vadd.f32 %v7526_v57, %v7325_v62  ;;  %v7577_v38 = vadd.f32 %v7527_v61, %v7326_v63  ;;  %v11526_v57 = vmov 1983009808  }
0x11b1   :  { %v8183_v61 = vunpack.c.l.s4 %v11526_v57 }
0x11b2   :  { %v7723_v24 = vpop.permute.xlu1 %7722 }
0x11b3   :  { %v7777_v22 = vmul.f32 %v7723_v24, %v7627_v12  ;;  %v7778_v21 = vmul.f32 %v7723_v24, %v7628_v8  ;;  %v7329_v24 = vmul.f32 %v7279_v33, %v7154_v35  ;;  %v8033_v12 = vmul.f32 %v7982_v0, %v7883_v58 }
0x11b5   :  { %v7827_v6 = vadd.f32 %v7777_v22, %v7576_v53  ;;  %v7828_v49 = vadd.f32 %v7778_v21, %v7577_v38 }
0x11b7   :  { %v7974_v15 = vpop.permute.xlu1 %7973 }
0x11b8   :  { %v8028_v55 = vmul.f32 %v7974_v15, %v7878_v25  ;;  %v8029_v60 = vmul.f32 %v7974_v15, %v7879_v13  ;;  %v7882_v15 = vld [vmem:[#allocation26 + $0x630] sm:$0xff] }
0x11b9   :  { %v8032_v44 = vmul.f32 %v7982_v0, %v7882_v15 }
0x11ba   :  { %v8078_v54 = vadd.f32 %v8028_v55, %v7827_v6  ;;  %v8079_v31 = vadd.f32 %v8029_v60, %v7828_v49 }
0x11bc   :  { %v7476_v45 = vpop.permute.xlu1 %7475 }
0x11bd   :  { %v7528_v47 = vmul.f32 %v7476_v45, %v7378_v26  ;;  %v7529_v41 = vmul.f32 %v7476_v45, %v7379_v28 }
0x11bf   :  { %v7578_v16 = vadd.f32 %v7528_v47, %v7327_v40  ;;  %v7579_v20 = vadd.f32 %v7529_v41, %v7328_v51  ;;  %v8184_v40 = vunpack.c.0.s8 %v8183_v61 }
0x11c1   :  { %v7978_v1 = vpop.permute.xlu1 %7977  ;;  %v7829_v4 = vadd.f32 %v7779_v17, %v7578_v16  ;;  %v7830_v29 = vadd.f32 %v7780_v3, %v7579_v20  ;;  %v8187_v41 = vsub.s32 %v8184_v40, %v11920_v46 }
0x11c2   :  { %v8030_v32 = vmul.f32 %v7978_v1, %v7880_v52  ;;  %v8031_v59 = vmul.f32 %v7978_v1, %v7881_v9 }
0x11c4   :  { %v8080_v50 = vadd.f32 %v8030_v32, %v7829_v4  ;;  %v8081_v37 = vadd.f32 %v8031_v59, %v7830_v29 }
0x11c6   :  { %v10778_v18 = vpack.c.bf16 %v8080_v50, %v8078_v54  ;;  %v7480_v39 = vpop.permute.xlu1 %7479  ;;  %v10776_v36 = vpack.c.bf16 %v8081_v37, %v8079_v31 }
0x11c7   :  { %v7530_v2 = vmul.f32 %v7480_v39, %v7380_v27  ;;  %v7531_v56 = vmul.f32 %v7480_v39, %v7381_v10 }
0x11c8   :  { %10777 = vmatprep.subr.bf16.mxu0 %v10776_v36 }
0x11c9   :  { %10779 = vmatpush1.bf16.msra.mxu0 %v10778_v18  ;;  %v7580_v42 = vadd.f32 %v7530_v2, %v7329_v24  ;;  %v7581_v43 = vadd.f32 %v7531_v56, %v7330_v19 }
0x11cb   :  { %v7731_v7 = vpop.permute.xlu1 %7730 }
0x11cc   :  { %v7781_v26 = vmul.f32 %v7731_v7, %v7631_v23  ;;  %v7782_v28 = vmul.f32 %v7731_v7, %v7632_v11 }
0x11ce   :  { %v7831_v8 = vadd.f32 %v7781_v26, %v7580_v42  ;;  %v7832_v14 = vadd.f32 %v7782_v28, %v7581_v43 }
0x11d0   :  { %v8082_v48 = vadd.f32 %v8032_v44, %v7831_v8  ;;  %v8083_v34 = vadd.f32 %v8033_v12, %v7832_v14  ;;  %v8093_v45 = vpop.permute.xlu1 %8092 }
0x11d2   :  { %8156 = vmatprep.subr.mxu0 %v8083_v34 }
0x11d3   :  { %8157 = vmatpush1.msra.mxu0 %v8082_v48 }
0x11d4   :  { %8173 = vmatmul.mubr.f32.vlgmr.msra.gmra.mrb[8].mxu0 %v14414_v30 }
0x12a7   :  { %v8174_v51 = vpop.f32.mrb[8].mxu0 }
0x12a8   :  { %v8175_v25 = vadd.f32 %v8174_v51, %v8093_v45  ;;  %v8176_v13 = vpop.f32.mrb[9].mxu0 }
0x12a9   :  { %v8177_v47 = vadd.f32 %v8176_v13, %v8093_v45 }
0x12ab   :  { %v8181_v62 = vcombine.low %v8175_v25, %v8177_v47 }
0x12ad   :  { %v8188_v63 = vrot.slane %v8181_v62, %v8187_v41 }
0x12af   :  { %8192 = vst.msk [vmem:[%s11688_s25] sm:$0xf] %vm8191_vm15, %v8188_v63 }
0x12b0   :  { %8197 = vsyncpa [#allocation5], 1 }
0x12b1   :  { %8198 = vsyncpa [#allocation7], 1 }
0x12b2   :  { %8199 = vsyncpa [#allocation10], 1 }
0x12b3   :  { %8200 = vsyncpa [#allocation13], 1 }
0x12b4   :  { %8201 = vsyncpa [#allocation16], 1 }
0x12b5   :  { %8202 = vsyncpa [#allocation19], 1 }
0x12b6   :  { %8203 = vsyncpa [#allocation22], 1 }
0x12b7   :  { %8204 = vsyncpa [#allocation25], 1 }

</bundles_post_ra>
